<compile_context>
chip_gen: v7x
topology: tpu7x:2x2x1
jax: 0.10.0
libtpu: 0.0.40
codegen_flags: <defaults>
</compile_context>

<pallas_src>
import functools
import math

import jax
import jax.numpy as jnp
from jax.experimental import pallas as pl
from jax.experimental.pallas import tpu as pltpu


_VMEM_LIMIT_BYTES = 48 * 1024 * 1024  # safe on v7x (64 MiB phys), ample on v5e/v6e


def _compiler_params(num_parallel_axes):
    return pltpu.CompilerParams(
        dimension_semantics=("parallel",) * num_parallel_axes,
        vmem_limit_bytes=_VMEM_LIMIT_BYTES,
    )


def _row_tile(n):
    """Largest convenient row-tile that divides n (keeps 2nd-minor dim 8-aligned)."""
    for t in (512, 256, 128, 64, 32, 16, 8):
        if n % t == 0:
            return t
    return n


# ----------------------------------------------------------------------------
# Pallas kernels
# ----------------------------------------------------------------------------
def _attn_ln_kernel(x_ref, w_ref, bias_ref, g_ref, b_ref, y_ref, attn_ref, *,
                    num_heads):
    """One batch element per grid step:
       QKV proj -> batched ALiBi attention -> +residual -> LayerNorm."""
    S = x_ref.shape[1]
    E = x_ref.shape[2]
    H = num_heads
    d = E // H

    x = x_ref[0]                                                   # (S, E) f32
    # QKV projection: bf16 operands, f32 accumulation, weight already (E, 3E).
    qkv = jnp.dot(x.astype(jnp.bfloat16), w_ref[...],
                  preferred_element_type=jnp.float32)              # (S, 3E) f32
    qkv_bf = qkv.astype(jnp.bfloat16)

    # chunk order matches the PyTorch module: key, query, value; heads are
    # gathered once into (H, S, d) so the attention matmuls are batched.
    k = jnp.stack([qkv_bf[:, h * d:(h + 1) * d] for h in range(H)], axis=0)
    q = jnp.stack([qkv_bf[:, E + h * d:E + (h + 1) * d] for h in range(H)], axis=0)
    v = jnp.stack([qkv_bf[:, 2 * E + h * d:2 * E + (h + 1) * d] for h in range(H)], axis=0)

    scale = 1.0 / math.sqrt(E)                                     # d_k = sqrt(n_embd)
    score = jnp.einsum('hqd,hkd->hqk', q, k,
                       preferred_element_type=jnp.float32) * scale
    score = score + bias_ref[...]          # ALiBi bias with causal mask folded in

    score = score - jnp.max(score, axis=-1, keepdims=True)
    p = jnp.exp(score)
    attn = p * pl.reciprocal(jnp.sum(p, axis=-1, keepdims=True), approx=True)
    attn_ref[0] = attn                                             # (H, S, S) f32

    ctx_h = jnp.einsum('hqk,hkd->hqd', attn.astype(jnp.bfloat16), v,
                       preferred_element_type=jnp.float32)         # (H, S, d)
    ctx = jnp.concatenate([ctx_h[h] for h in range(H)], axis=-1)   # (S, E)

    # fused residual add + LayerNorm (eps=1e-5, affine), all in f32
    y = ctx + x
    mean = jnp.mean(y, axis=-1, keepdims=True)
    var = jnp.mean((y - mean) ** 2, axis=-1, keepdims=True)
    y_ref[0] = (y - mean) * jax.lax.rsqrt(var + 1e-5) * g_ref[...] + b_ref[...]


def _ffn_ln_kernel(x_ref, w1_ref, b1_ref, w2_ref, b2_ref, g_ref, bt_ref, o_ref):
    """o = LayerNorm(Linear2(ReLU(Linear1(x))) + x), row-tiled over B*S."""
    x = x_ref[...]                                                 # (TM, E) f32
    h = jnp.dot(x.astype(jnp.bfloat16), w1_ref[...],
                preferred_element_type=jnp.float32) + b1_ref[...]
    h = jnp.maximum(h, 0.0)
    y = jnp.dot(h.astype(jnp.bfloat16), w2_ref[...],
                preferred_element_type=jnp.float32) + b2_ref[...]
    y = y + x                                                      # residual
    mean = jnp.mean(y, axis=-1, keepdims=True)
    var = jnp.mean((y - mean) ** 2, axis=-1, keepdims=True)
    o_ref[...] = (y - mean) * jax.lax.rsqrt(var + 1e-5) * g_ref[...] + bt_ref[...]


def _lm_nll_kernel(x_ref, w_ref, b_ref, tgt_ref, nll_ref):
    """Per-token negative log-likelihood of the LM head (cross-entropy)."""
    # TODO(synk): at production vocab sizes, tile V with an online logsumexp
    #             (flash-style) to fit v7x's 64 MiB VMEM budget.
    x = x_ref[...]                                                 # (TM, E) f32
    logits = jnp.dot(x.astype(jnp.bfloat16), w_ref[...],
                     preferred_element_type=jnp.float32) + b_ref[...]
    m = jnp.max(logits, axis=-1, keepdims=True)
    lse = m + jnp.log(jnp.sum(jnp.exp(logits - m), axis=-1, keepdims=True))
    vocab_ids = jax.lax.broadcasted_iota(jnp.int32, logits.shape, 1)
    onehot = vocab_ids == tgt_ref[...]
    tgt_logit = jnp.sum(jnp.where(onehot, logits, 0.0), axis=-1, keepdims=True)
    nll_ref[...] = lse - tgt_logit                                 # (TM, 1)


# ----------------------------------------------------------------------------
# Wrappers (pallas_call)
# ----------------------------------------------------------------------------
def attn_ln_block(x, w_qkv_t, bias, gamma, beta, num_heads):
    B, S, E = x.shape
    H = num_heads
    kernel = functools.partial(_attn_ln_kernel, num_heads=H)
    y, attn = pl.pallas_call(
        kernel,
        out_shape=(jax.ShapeDtypeStruct((B, S, E), jnp.float32),
                   jax.ShapeDtypeStruct((B, H, S, S), jnp.float32)),
        grid=(B,),
        in_specs=[pl.BlockSpec((1, S, E), lambda b: (b, 0, 0)),
                  pl.BlockSpec((E, 3 * E), lambda b: (0, 0)),
                  pl.BlockSpec((H, S, S), lambda b: (0, 0, 0)),
                  pl.BlockSpec((1, E), lambda b: (0, 0)),
                  pl.BlockSpec((1, E), lambda b: (0, 0))],
        out_specs=(pl.BlockSpec((1, S, E), lambda b: (b, 0, 0)),
                   pl.BlockSpec((1, H, S, S), lambda b: (b, 0, 0, 0))),
        compiler_params=_compiler_params(1),
    )(x, w_qkv_t, bias, gamma, beta)
    return y, attn


def ffn_ln_block(x, w1_t, b1, w2_t, b2, gamma, beta):
    B, S, E = x.shape
    Dh = w1_t.shape[1]
    N = B * S
    TM = _row_tile(N)
    out = pl.pallas_call(
        _ffn_ln_kernel,
        out_shape=jax.ShapeDtypeStruct((N, E), jnp.float32),
        grid=(N // TM,),
        in_specs=[pl.BlockSpec((TM, E), lambda i: (i, 0)),
                  pl.BlockSpec((E, Dh), lambda i: (0, 0)),
                  pl.BlockSpec((1, Dh), lambda i: (0, 0)),
                  pl.BlockSpec((Dh, E), lambda i: (0, 0)),
                  pl.BlockSpec((1, E), lambda i: (0, 0)),
                  pl.BlockSpec((1, E), lambda i: (0, 0)),
                  pl.BlockSpec((1, E), lambda i: (0, 0))],
        out_specs=pl.BlockSpec((TM, E), lambda i: (i, 0)),
        compiler_params=_compiler_params(1),
    )(x.reshape(N, E), w1_t, b1, w2_t, b2, gamma, beta)
    return out.reshape(B, S, E)


def lm_head_nll(x, w_t, b, targets):
    B, S, E = x.shape
    V = w_t.shape[1]
    N = B * S
    TM = _row_tile(N)
    # TODO(synk): at production embed dims (e.g. E=4096), K-tile w_qkv_t / w_t
    #             with an accumulator + pl.when init/finalize for v7x VMEM.
    nll = pl.pallas_call(
        _lm_nll_kernel,
        out_shape=jax.ShapeDtypeStruct((N, 1), jnp.float32),
        grid=(N // TM,),
        in_specs=[pl.BlockSpec((TM, E), lambda i: (i, 0)),
                  pl.BlockSpec((E, V), lambda i: (0, 0)),
                  pl.BlockSpec((1, V), lambda i: (0, 0)),
                  pl.BlockSpec((TM, 1), lambda i: (i, 0))],
        out_specs=pl.BlockSpec((TM, 1), lambda i: (i, 0)),
        compiler_params=_compiler_params(1),
    )(x.reshape(N, E), w_t, b, targets.reshape(N, 1).astype(jnp.int32))
    return nll


# ----------------------------------------------------------------------------
# Model: parameter init + preparation + forward
# ----------------------------------------------------------------------------
def init_params(key, n_embd, num_heads, num_layers, vocab_size, expansion_factor):
    d_hidden = n_embd * expansion_factor
    keys = jax.random.split(key, 3 + 4 * num_layers)
    params = {
        "emb": 0.02 * jax.random.normal(keys[0], (vocab_size, n_embd), jnp.float32),
        "fc_w": 0.02 * jax.random.normal(keys[1], (vocab_size, n_embd), jnp.float32),
        "fc_b": 0.02 * jax.random.normal(keys[2], (vocab_size,), jnp.float32),
        "layers": [],
    }
    for l in range(num_layers):
        k0, k1, k2, k3 = keys[3 + 4 * l: 7 + 4 * l]
        params["layers"].append({
            "w_qkv": 0.02 * jax.random.normal(k0, (3 * n_embd, n_embd), jnp.float32),
            "ln1_g": jnp.ones((n_embd,), jnp.float32),
            "ln1_b": jnp.zeros((n_embd,), jnp.float32),
            "ff_w1": 0.02 * jax.random.normal(k1, (d_hidden, n_embd), jnp.float32),
            "ff_b1": 0.02 * jax.random.normal(k2, (d_hidden,), jnp.float32),
            "ff_w2": 0.02 * jax.random.normal(k3, (n_embd, d_hidden), jnp.float32),
            "ff_b2": jnp.zeros((n_embd,), jnp.float32),
            "ln2_g": jnp.ones((n_embd,), jnp.float32),
            "ln2_b": jnp.zeros((n_embd,), jnp.float32),
        })
    return params


def prepare_params(params):
    """One-time layout/dtype prep: transpose weights to (in,out), cast to bf16."""
    prep = {
        "emb": params["emb"],
        "fc_w_t": params["fc_w"].T.astype(jnp.bfloat16),           # (E, V)
        "fc_b": params["fc_b"].reshape(1, -1).astype(jnp.float32),
        "layers": [],
    }
    for layer in params["layers"]:
        prep["layers"].append({
            "w_qkv_t": layer["w_qkv"].T.astype(jnp.bfloat16),      # (E, 3E)
            "ln1_g": layer["ln1_g"].reshape(1, -1),
            "ln1_b": layer["ln1_b"].reshape(1, -1),
            "ff_w1_t": layer["ff_w1"].T.astype(jnp.bfloat16),      # (E, Dh)
            "ff_b1": layer["ff_b1"].reshape(1, -1),
            "ff_w2_t": layer["ff_w2"].T.astype(jnp.bfloat16),      # (Dh, E)
            "ff_b2": layer["ff_b2"].reshape(1, -1),
            "ln2_g": layer["ln2_g"].reshape(1, -1),
            "ln2_b": layer["ln2_b"].reshape(1, -1),
        })
    return prep


def make_alibi_bias(num_heads, seq_len, causal):
    """slope_h * (col - row), with causal mask folded in as a large negative."""
    base = (2.0 ** 8) ** (1.0 / num_heads)
    slopes = jnp.asarray([1.0 / base ** (h + 1) for h in range(num_heads)],
                         dtype=jnp.float32)
    pos = jnp.arange(seq_len)
    rel = (pos[None, :] - pos[:, None]).astype(jnp.float32)        # (S, S)
    bias = slopes[:, None, None] * rel[None, :, :]                 # (H, S, S)
    if causal:
        keep = (pos[None, :] <= pos[:, None])[None, :, :]
        bias = jnp.where(keep, bias, jnp.float32(-1e30))           # NaN-safe mask
    return bias


def alibi_decoder_forward(prep, x_tokens, y_tokens, *, num_heads, causal):
    # token embedding lookup (gather) — glue in plain JAX
    x = prep["emb"][x_tokens]                                      # (B, S, E)
    _, S, _ = x.shape
    bias = make_alibi_bias(num_heads, S, causal)                   # shared by layers

    attention_weights_list = []
    for layer in prep["layers"]:
        x, attn = attn_ln_block(x, layer["w_qkv_t"], bias,
                                layer["ln1_g"], layer["ln1_b"], num_heads)
        attention_weights_list.extend([attn[:, h] for h in range(num_heads)])
        x = ffn_ln_block(x, layer["ff_w1_t"], layer["ff_b1"],
                         layer["ff_w2_t"], layer["ff_b2"],
                         layer["ln2_g"], layer["ln2_b"])

    nll = lm_head_nll(x, prep["fc_w_t"], prep["fc_b"], y_tokens)   # (B*S, 1)
    loss = jnp.mean(nll)                                           # CE mean reduction
    return loss, attention_weights_list


# ----------------------------------------------------------------------------
if __name__ == "__main__":
    # Small but TPU-aligned shapes (lane dim multiples of 128, sublane of 8).
    n_embd = 128
    num_heads = 4          # head_dim = 32
    num_layers = 2
    vocab_size = 256
    block_size = 128       # == seq_len here
    expansion_factor = 4   # d_hidden = 512
    causal = True
    batch = 2
    seq = block_size

    key = jax.random.PRNGKey(0)
    k_params, k_x, k_y = jax.random.split(key, 3)
    params = init_params(k_params, n_embd, num_heads, num_layers,
                         vocab_size, expansion_factor)
    prep = prepare_params(params)
    x_tokens = jax.random.randint(k_x, (batch, seq), 0, vocab_size, dtype=jnp.int32)
    y_tokens = jax.random.randint(k_y, (batch, seq), 0, vocab_size, dtype=jnp.int32)

    fwd = jax.jit(functools.partial(alibi_decoder_forward,
                                    num_heads=num_heads, causal=causal))
    loss, attn_ws = fwd(prep, x_tokens, y_tokens)
    loss = jax.block_until_ready(loss)
    for a in attn_ws:
        jax.block_until_ready(a)

    assert loss.shape == ()
    assert bool(jnp.isfinite(loss))
    assert len(attn_ws) == num_layers * num_heads
    assert all(a.shape == (batch, seq, seq) for a in attn_ws)
    print("KERNEL_OK")
</pallas_src>

<mosaic_0001>
module attributes {stable_mosaic.version = 11 : i64} {
  func.func @_ffn_ln_kernel(%arg0: i32, %arg1: memref<256x128xf32, #tpu.memory_space<vmem>>, %arg2: memref<128x512xbf16, #tpu.memory_space<vmem>>, %arg3: memref<1x512xf32, #tpu.memory_space<vmem>>, %arg4: memref<512x128xbf16, #tpu.memory_space<vmem>>, %arg5: memref<1x128xf32, #tpu.memory_space<vmem>>, %arg6: memref<1x128xf32, #tpu.memory_space<vmem>>, %arg7: memref<1x128xf32, #tpu.memory_space<vmem>>, %arg8: memref<256x128xf32, #tpu.memory_space<vmem>>) attributes {dimension_semantics = [#tpu.dimension_semantics<parallel>], iteration_bounds = array<i64: 1>, scalar_prefetch = 0 : i64, scratch_operands = 0 : i64, tpu.core_type = #tpu.core_type<tc>, window_params = [{transform_indices = @transform_0, window_bounds = array<i64: 256, 128>}, {pipeline_mode = #tpu.pipeline_mode<synchronous>, transform_indices = @transform_1, window_bounds = array<i64: 128, 512>}, {pipeline_mode = #tpu.pipeline_mode<synchronous>, transform_indices = @transform_2, window_bounds = array<i64: 1, 512>}, {pipeline_mode = #tpu.pipeline_mode<synchronous>, transform_indices = @transform_3, window_bounds = array<i64: 512, 128>}, {pipeline_mode = #tpu.pipeline_mode<synchronous>, transform_indices = @transform_4, window_bounds = array<i64: 1, 128>}, {pipeline_mode = #tpu.pipeline_mode<synchronous>, transform_indices = @transform_5, window_bounds = array<i64: 1, 128>}, {pipeline_mode = #tpu.pipeline_mode<synchronous>, transform_indices = @transform_6, window_bounds = array<i64: 1, 128>}, {transform_indices = @transform_7, window_bounds = array<i64: 256, 128>}]} {
    %c0 = arith.constant 0 : index
    %c0_0 = arith.constant 0 : index
    %0 = vector.load %arg1[%c0, %c0_0] : memref<256x128xf32, #tpu.memory_space<vmem>>, vector<256x128xf32>
    %1 = arith.truncf %0 : vector<256x128xf32> to vector<256x128xbf16>
    %c0_1 = arith.constant 0 : index
    %c0_2 = arith.constant 0 : index
    %2 = vector.load %arg2[%c0_1, %c0_2] : memref<128x512xbf16, #tpu.memory_space<vmem>>, vector<128x512xbf16>
    %cst = arith.constant dense<0.000000e+00> : vector<256x512xf32>
    %3 = tpu.matmul %1, %2, %cst {dimension_numbers = #tpu.dot_dimension_numbers<[1], [0], [0], [1], [0, 0, 1, 1], [], []>} : vector<256x128xbf16>, vector<128x512xbf16>, vector<256x512xf32> -> vector<256x512xf32>
    %c0_3 = arith.constant 0 : index
    %c0_4 = arith.constant 0 : index
    %4 = vector.load %arg3[%c0_3, %c0_4] : memref<1x512xf32, #tpu.memory_space<vmem>>, vector<1x512xf32>
    %5 = vector.broadcast %4 : vector<1x512xf32> to vector<256x512xf32>
    %6 = arith.addf %3, %5 : vector<256x512xf32>
    %cst_5 = arith.constant 0.000000e+00 : f32
    %7 = vector.broadcast %cst_5 : f32 to vector<256x512xf32>
    %8 = arith.maximumf %6, %7 : vector<256x512xf32>
    %9 = arith.truncf %8 : vector<256x512xf32> to vector<256x512xbf16>
    %c0_6 = arith.constant 0 : index
    %c0_7 = arith.constant 0 : index
    %10 = vector.load %arg4[%c0_6, %c0_7] : memref<512x128xbf16, #tpu.memory_space<vmem>>, vector<512x128xbf16>
    %cst_8 = arith.constant dense<0.000000e+00> : vector<256x128xf32>
    %11 = tpu.matmul %9, %10, %cst_8 {dimension_numbers = #tpu.dot_dimension_numbers<[1], [0], [0], [1], [0, 0, 1, 1], [], []>} : vector<256x512xbf16>, vector<512x128xbf16>, vector<256x128xf32> -> vector<256x128xf32>
    %c0_9 = arith.constant 0 : index
    %c0_10 = arith.constant 0 : index
    %12 = vector.load %arg5[%c0_9, %c0_10] : memref<1x128xf32, #tpu.memory_space<vmem>>, vector<1x128xf32>
    %13 = vector.broadcast %12 : vector<1x128xf32> to vector<256x128xf32>
    %14 = arith.addf %11, %13 : vector<256x128xf32>
    %15 = arith.addf %14, %0 : vector<256x128xf32>
    %cst_11 = arith.constant dense<0.000000e+00> : vector<256xf32>
    %16 = vector.multi_reduction <add>, %15, %cst_11 [1] : vector<256x128xf32> to vector<256xf32>
    %17 = vector.shape_cast %16 : vector<256xf32> to vector<256x1xf32>
    %cst_12 = arith.constant 1.280000e+02 : f32
    %18 = vector.broadcast %cst_12 : f32 to vector<256x1xf32>
    %19 = arith.divf %17, %18 : vector<256x1xf32>
    %20 = vector.broadcast %19 : vector<256x1xf32> to vector<256x128xf32>
    %21 = arith.subf %15, %20 : vector<256x128xf32>
    %22 = arith.mulf %21, %21 : vector<256x128xf32>
    %cst_13 = arith.constant dense<0.000000e+00> : vector<256xf32>
    %23 = vector.multi_reduction <add>, %22, %cst_13 [1] : vector<256x128xf32> to vector<256xf32>
    %24 = vector.shape_cast %23 : vector<256xf32> to vector<256x1xf32>
    %cst_14 = arith.constant 1.280000e+02 : f32
    %25 = vector.broadcast %cst_14 : f32 to vector<256x1xf32>
    %26 = arith.divf %24, %25 : vector<256x1xf32>
    %27 = vector.broadcast %19 : vector<256x1xf32> to vector<256x128xf32>
    %28 = arith.subf %15, %27 : vector<256x128xf32>
    %cst_15 = arith.constant 9.99999974E-6 : f32
    %29 = vector.broadcast %cst_15 : f32 to vector<256x1xf32>
    %30 = arith.addf %26, %29 : vector<256x1xf32>
    %31 = math.rsqrt %30 : vector<256x1xf32>
    %32 = vector.broadcast %31 : vector<256x1xf32> to vector<256x128xf32>
    %33 = arith.mulf %28, %32 : vector<256x128xf32>
    %c0_16 = arith.constant 0 : index
    %c0_17 = arith.constant 0 : index
    %34 = vector.load %arg6[%c0_16, %c0_17] : memref<1x128xf32, #tpu.memory_space<vmem>>, vector<1x128xf32>
    %35 = vector.broadcast %34 : vector<1x128xf32> to vector<256x128xf32>
    %36 = arith.mulf %33, %35 : vector<256x128xf32>
    %c0_18 = arith.constant 0 : index
    %c0_19 = arith.constant 0 : index
    %37 = vector.load %arg7[%c0_18, %c0_19] : memref<1x128xf32, #tpu.memory_space<vmem>>, vector<1x128xf32>
    %38 = vector.broadcast %37 : vector<1x128xf32> to vector<256x128xf32>
    %39 = arith.addf %36, %38 : vector<256x128xf32>
    %c0_20 = arith.constant 0 : index
    %c0_21 = arith.constant 0 : index
    %40 = vector.load %arg8[%c0_20, %c0_21] : memref<256x128xf32, #tpu.memory_space<vmem>>, vector<256x128xf32>
    tpu.vector_store %arg8[%c0_20, %c0_21], %39 {strides = array<i32>} : memref<256x128xf32, #tpu.memory_space<vmem>>, vector<256x128xf32>,
    return
  }
  func.func @transform_0(%arg0: i32) -> (i32, i32) {
    %c0_i32 = arith.constant 0 : i32
    %c0_i32_0 = arith.constant 0 : i32
    return %arg0, %c0_i32 : i32, i32
  }
  func.func @transform_1(%arg0: i32) -> (i32, i32) {
    %c0_i32 = arith.constant 0 : i32
    %c0_i32_0 = arith.constant 0 : i32
    %c0_i32_1 = arith.constant 0 : i32
    return %c0_i32, %c0_i32_0 : i32, i32
  }
  func.func @transform_2(%arg0: i32) -> (i32, i32) {
    %c0_i32 = arith.constant 0 : i32
    %c0_i32_0 = arith.constant 0 : i32
    %c0_i32_1 = arith.constant 0 : i32
    return %c0_i32, %c0_i32_0 : i32, i32
  }
  func.func @transform_3(%arg0: i32) -> (i32, i32) {
    %c0_i32 = arith.constant 0 : i32
    %c0_i32_0 = arith.constant 0 : i32
    %c0_i32_1 = arith.constant 0 : i32
    return %c0_i32, %c0_i32_0 : i32, i32
  }
  func.func @transform_4(%arg0: i32) -> (i32, i32) {
    %c0_i32 = arith.constant 0 : i32
    %c0_i32_0 = arith.constant 0 : i32
    %c0_i32_1 = arith.constant 0 : i32
    return %c0_i32, %c0_i32_0 : i32, i32
  }
  func.func @transform_5(%arg0: i32) -> (i32, i32) {
    %c0_i32 = arith.constant 0 : i32
    %c0_i32_0 = arith.constant 0 : i32
    %c0_i32_1 = arith.constant 0 : i32
    return %c0_i32, %c0_i32_0 : i32, i32
  }
  func.func @transform_6(%arg0: i32) -> (i32, i32) {
    %c0_i32 = arith.constant 0 : i32
    %c0_i32_0 = arith.constant 0 : i32
    %c0_i32_1 = arith.constant 0 : i32
    return %c0_i32, %c0_i32_0 : i32, i32
  }
  func.func @transform_7(%arg0: i32) -> (i32, i32) {
    %c0_i32 = arith.constant 0 : i32
    %c0_i32_0 = arith.constant 0 : i32
    return %arg0, %c0_i32 : i32, i32
  }
}

module attributes {stable_mosaic.version = 11 : i64} {
  func.func @_attn_ln_kernel(%arg0: i32, %arg1: memref<1x128x128xf32, #tpu.memory_space<vmem>>, %arg2: memref<128x384xbf16, #tpu.memory_space<vmem>>, %arg3: memref<4x128x128xf32, #tpu.memory_space<vmem>>, %arg4: memref<1x128xf32, #tpu.memory_space<vmem>>, %arg5: memref<1x128xf32, #tpu.memory_space<vmem>>, %arg6: memref<1x128x128xf32, #tpu.memory_space<vmem>>, %arg7: memref<1x4x128x128xf32, #tpu.memory_space<vmem>>) attributes {dimension_semantics = [#tpu.dimension_semantics<parallel>], iteration_bounds = array<i64: 2>, scalar_prefetch = 0 : i64, scratch_operands = 0 : i64, tpu.core_type = #tpu.core_type<tc>, window_params = [{transform_indices = @transform_0, window_bounds = array<i64: 1, 128, 128>}, {pipeline_mode = #tpu.pipeline_mode<synchronous>, transform_indices = @transform_1, window_bounds = array<i64: 128, 384>}, {pipeline_mode = #tpu.pipeline_mode<synchronous>, transform_indices = @transform_2, window_bounds = array<i64: 4, 128, 128>}, {pipeline_mode = #tpu.pipeline_mode<synchronous>, transform_indices = @transform_3, window_bounds = array<i64: 1, 128>}, {pipeline_mode = #tpu.pipeline_mode<synchronous>, transform_indices = @transform_4, window_bounds = array<i64: 1, 128>}, {transform_indices = @transform_5, window_bounds = array<i64: 1, 128, 128>}, {transform_indices = @transform_6, window_bounds = array<i64: 1, 4, 128, 128>}]} {
    %c0 = arith.constant 0 : index
    %c0_0 = arith.constant 0 : index
    %c0_1 = arith.constant 0 : index
    %0 = vector.load %arg1[%c0, %c0_0, %c0_1] : memref<1x128x128xf32, #tpu.memory_space<vmem>>, vector<1x128x128xf32>
    %1 = vector.shape_cast %0 : vector<1x128x128xf32> to vector<128x128xf32>
    %2 = arith.truncf %1 : vector<128x128xf32> to vector<128x128xbf16>
    %c0_2 = arith.constant 0 : index
    %c0_3 = arith.constant 0 : index
    %3 = vector.load %arg2[%c0_2, %c0_3] : memref<128x384xbf16, #tpu.memory_space<vmem>>, vector<128x384xbf16>
    %cst = arith.constant dense<0.000000e+00> : vector<128x384xf32>
    %4 = tpu.matmul %2, %3, %cst {dimension_numbers = #tpu.dot_dimension_numbers<[1], [0], [0], [1], [0, 0, 1, 1], [], []>} : vector<128x128xbf16>, vector<128x384xbf16>, vector<128x384xf32> -> vector<128x384xf32>
    %5 = arith.truncf %4 : vector<128x384xf32> to vector<128x384xbf16>
    %6 = vector.extract_strided_slice %5 {offsets = [0, 0], sizes = [128, 32], strides = [1, 1]} : vector<128x384xbf16> to vector<128x32xbf16>
    %7 = vector.extract_strided_slice %5 {offsets = [0, 32], sizes = [128, 32], strides = [1, 1]} : vector<128x384xbf16> to vector<128x32xbf16>
    %8 = vector.extract_strided_slice %5 {offsets = [0, 64], sizes = [128, 32], strides = [1, 1]} : vector<128x384xbf16> to vector<128x32xbf16>
    %9 = vector.extract_strided_slice %5 {offsets = [0, 96], sizes = [128, 32], strides = [1, 1]} : vector<128x384xbf16> to vector<128x32xbf16>
    %10 = vector.shape_cast %6 : vector<128x32xbf16> to vector<1x128x32xbf16>
    %11 = vector.shape_cast %7 : vector<128x32xbf16> to vector<1x128x32xbf16>
    %12 = vector.shape_cast %8 : vector<128x32xbf16> to vector<1x128x32xbf16>
    %13 = vector.shape_cast %9 : vector<128x32xbf16> to vector<1x128x32xbf16>
    %14 = tpu.concatenate %10, %11, %12, %13 in 0 : vector<1x128x32xbf16>, vector<1x128x32xbf16>, vector<1x128x32xbf16>, vector<1x128x32xbf16> -> vector<4x128x32xbf16>
    %15 = vector.extract_strided_slice %5 {offsets = [0, 128], sizes = [128, 32], strides = [1, 1]} : vector<128x384xbf16> to vector<128x32xbf16>
    %16 = vector.extract_strided_slice %5 {offsets = [0, 160], sizes = [128, 32], strides = [1, 1]} : vector<128x384xbf16> to vector<128x32xbf16>
    %17 = vector.extract_strided_slice %5 {offsets = [0, 192], sizes = [128, 32], strides = [1, 1]} : vector<128x384xbf16> to vector<128x32xbf16>
    %18 = vector.extract_strided_slice %5 {offsets = [0, 224], sizes = [128, 32], strides = [1, 1]} : vector<128x384xbf16> to vector<128x32xbf16>
    %19 = vector.shape_cast %15 : vector<128x32xbf16> to vector<1x128x32xbf16>
    %20 = vector.shape_cast %16 : vector<128x32xbf16> to vector<1x128x32xbf16>
    %21 = vector.shape_cast %17 : vector<128x32xbf16> to vector<1x128x32xbf16>
    %22 = vector.shape_cast %18 : vector<128x32xbf16> to vector<1x128x32xbf16>
    %23 = tpu.concatenate %19, %20, %21, %22 in 0 : vector<1x128x32xbf16>, vector<1x128x32xbf16>, vector<1x128x32xbf16>, vector<1x128x32xbf16> -> vector<4x128x32xbf16>
    %24 = vector.extract_strided_slice %5 {offsets = [0, 256], sizes = [128, 32], strides = [1, 1]} : vector<128x384xbf16> to vector<128x32xbf16>
    %25 = vector.extract_strided_slice %5 {offsets = [0, 288], sizes = [128, 32], strides = [1, 1]} : vector<128x384xbf16> to vector<128x32xbf16>
    %26 = vector.extract_strided_slice %5 {offsets = [0, 320], sizes = [128, 32], strides = [1, 1]} : vector<128x384xbf16> to vector<128x32xbf16>
    %27 = vector.extract_strided_slice %5 {offsets = [0, 352], sizes = [128, 32], strides = [1, 1]} : vector<128x384xbf16> to vector<128x32xbf16>
    %28 = vector.shape_cast %24 : vector<128x32xbf16> to vector<1x128x32xbf16>
    %29 = vector.shape_cast %25 : vector<128x32xbf16> to vector<1x128x32xbf16>
    %30 = vector.shape_cast %26 : vector<128x32xbf16> to vector<1x128x32xbf16>
    %31 = vector.shape_cast %27 : vector<128x32xbf16> to vector<1x128x32xbf16>
    %32 = tpu.concatenate %28, %29, %30, %31 in 0 : vector<1x128x32xbf16>, vector<1x128x32xbf16>, vector<1x128x32xbf16>, vector<1x128x32xbf16> -> vector<4x128x32xbf16>
    "tpu.trace_start"() <{level = 10 : i32, message = "hqd,hkd->hqk"}> : () -> ()
    %cst_4 = arith.constant dense<0.000000e+00> : vector<4x128x128xf32>
    %33 = tpu.matmul %23, %14, %cst_4 {dimension_numbers = #tpu.dot_dimension_numbers<[2], [2], [1], [1], [0, 0, 0, 1, 1, 1], [0], [0]>} : vector<4x128x32xbf16>, vector<4x128x32xbf16>, vector<4x128x128xf32> -> vector<4x128x128xf32>
    "tpu.trace_stop"() : () -> ()
    %cst_5 = arith.constant 0.0883883461 : f32
    %34 = vector.broadcast %cst_5 : f32 to vector<4x128x128xf32>
    %35 = arith.mulf %33, %34 : vector<4x128x128xf32>
    %c0_6 = arith.constant 0 : index
    %c0_7 = arith.constant 0 : index
    %c0_8 = arith.constant 0 : index
    %36 = vector.load %arg3[%c0_6, %c0_7, %c0_8] : memref<4x128x128xf32, #tpu.memory_space<vmem>>, vector<4x128x128xf32>
    %37 = arith.addf %35, %36 : vector<4x128x128xf32>
    %cst_9 = arith.constant dense<0xFF800000> : vector<4x128xf32>
    %38 = vector.multi_reduction <maximumf>, %37, %cst_9 [2] : vector<4x128x128xf32> to vector<4x128xf32>
    %39 = vector.shape_cast %38 : vector<4x128xf32> to vector<4x128x1xf32>
    %40 = vector.broadcast %39 : vector<4x128x1xf32> to vector<4x128x128xf32>
    %41 = arith.subf %37, %40 : vector<4x128x128xf32>
    %42 = math.exp %41 : vector<4x128x128xf32>
    %cst_10 = arith.constant dense<0.000000e+00> : vector<4x128xf32>
    %43 = vector.multi_reduction <add>, %42, %cst_10 [2] : vector<4x128x128xf32> to vector<4x128xf32>
    %44 = vector.shape_cast %43 : vector<4x128xf32> to vector<4x128x1xf32>
    %45 = tpu.reciprocal %44 {approx = true} : vector<4x128x1xf32> -> vector<4x128x1xf32>
    %46 = vector.broadcast %45 : vector<4x128x1xf32> to vector<4x128x128xf32>
    %47 = arith.mulf %42, %46 : vector<4x128x128xf32>
    %c0_11 = arith.constant 0 : index
    %c0_12 = arith.constant 0 : index
    %c0_13 = arith.constant 0 : index
    %c0_14 = arith.constant 0 : index
    %48 = vector.load %arg7[%c0_11, %c0_12, %c0_13, %c0_14] : memref<1x4x128x128xf32, #tpu.memory_space<vmem>>, vector<1x4x128x128xf32>
    %49 = vector.shape_cast %48 : vector<1x4x128x128xf32> to vector<4x128x128xf32>
    %50 = vector.shape_cast %47 : vector<4x128x128xf32> to vector<1x4x128x128xf32>
    tpu.vector_store %arg7[%c0_11, %c0_12, %c0_13, %c0_14], %50 {strides = array<i32>} : memref<1x4x128x128xf32, #tpu.memory_space<vmem>>, vector<1x4x128x128xf32>,
    %51 = arith.truncf %47 : vector<4x128x128xf32> to vector<4x128x128xbf16>
    "tpu.trace_start"() <{level = 10 : i32, message = "hqk,hkd->hqd"}> : () -> ()
    %cst_15 = arith.constant dense<0.000000e+00> : vector<4x128x32xf32>
    %52 = tpu.matmul %51, %32, %cst_15 {dimension_numbers = #tpu.dot_dimension_numbers<[2], [1], [1], [2], [0, 0, 0, 1, 1, 2], [0], [0]>} : vector<4x128x128xbf16>, vector<4x128x32xbf16>, vector<4x128x32xf32> -> vector<4x128x32xf32>
    "tpu.trace_stop"() : () -> ()
    %53 = vector.extract_strided_slice %52 {offsets = [0, 0, 0], sizes = [1, 128, 32], strides = [1, 1, 1]} : vector<4x128x32xf32> to vector<1x128x32xf32>
    %54 = vector.shape_cast %53 : vector<1x128x32xf32> to vector<128x32xf32>
    %55 = vector.extract_strided_slice %52 {offsets = [1, 0, 0], sizes = [1, 128, 32], strides = [1, 1, 1]} : vector<4x128x32xf32> to vector<1x128x32xf32>
    %56 = vector.shape_cast %55 : vector<1x128x32xf32> to vector<128x32xf32>
    %57 = vector.extract_strided_slice %52 {offsets = [2, 0, 0], sizes = [1, 128, 32], strides = [1, 1, 1]} : vector<4x128x32xf32> to vector<1x128x32xf32>
    %58 = vector.shape_cast %57 : vector<1x128x32xf32> to vector<128x32xf32>
    %59 = vector.extract_strided_slice %52 {offsets = [3, 0, 0], sizes = [1, 128, 32], strides = [1, 1, 1]} : vector<4x128x32xf32> to vector<1x128x32xf32>
    %60 = vector.shape_cast %59 : vector<1x128x32xf32> to vector<128x32xf32>
    %61 = tpu.concatenate %54, %56, %58, %60 in 1 : vector<128x32xf32>, vector<128x32xf32>, vector<128x32xf32>, vector<128x32xf32> -> vector<128x128xf32>
    %62 = arith.addf %61, %1 : vector<128x128xf32>
    %cst_16 = arith.constant dense<0.000000e+00> : vector<128xf32>
    %63 = vector.multi_reduction <add>, %62, %cst_16 [1] : vector<128x128xf32> to vector<128xf32>
    %64 = vector.shape_cast %63 : vector<128xf32> to vector<128x1xf32>
    %cst_17 = arith.constant 1.280000e+02 : f32
    %65 = vector.broadcast %cst_17 : f32 to vector<128x1xf32>
    %66 = arith.divf %64, %65 : vector<128x1xf32>
    %67 = vector.broadcast %66 : vector<128x1xf32> to vector<128x128xf32>
    %68 = arith.subf %62, %67 : vector<128x128xf32>
    %69 = arith.mulf %68, %68 : vector<128x128xf32>
    %cst_18 = arith.constant dense<0.000000e+00> : vector<128xf32>
    %70 = vector.multi_reduction <add>, %69, %cst_18 [1] : vector<128x128xf32> to vector<128xf32>
    %71 = vector.shape_cast %70 : vector<128xf32> to vector<128x1xf32>
    %cst_19 = arith.constant 1.280000e+02 : f32
    %72 = vector.broadcast %cst_19 : f32 to vector<128x1xf32>
    %73 = arith.divf %71, %72 : vector<128x1xf32>
    %74 = vector.broadcast %66 : vector<128x1xf32> to vector<128x128xf32>
    %75 = arith.subf %62, %74 : vector<128x128xf32>
    %cst_20 = arith.constant 9.99999974E-6 : f32
    %76 = vector.broadcast %cst_20 : f32 to vector<128x1xf32>
    %77 = arith.addf %73, %76 : vector<128x1xf32>
    %78 = math.rsqrt %77 : vector<128x1xf32>
    %79 = vector.broadcast %78 : vector<128x1xf32> to vector<128x128xf32>
    %80 = arith.mulf %75, %79 : vector<128x128xf32>
    %c0_21 = arith.constant 0 : index
    %c0_22 = arith.constant 0 : index
    %81 = vector.load %arg4[%c0_21, %c0_22] : memref<1x128xf32, #tpu.memory_space<vmem>>, vector<1x128xf32>
    %82 = vector.broadcast %81 : vector<1x128xf32> to vector<128x128xf32>
    %83 = arith.mulf %80, %82 : vector<128x128xf32>
    %c0_23 = arith.constant 0 : index
    %c0_24 = arith.constant 0 : index
    %84 = vector.load %arg5[%c0_23, %c0_24] : memref<1x128xf32, #tpu.memory_space<vmem>>, vector<1x128xf32>
    %85 = vector.broadcast %84 : vector<1x128xf32> to vector<128x128xf32>
    %86 = arith.addf %83, %85 : vector<128x128xf32>
    %c0_25 = arith.constant 0 : index
    %c0_26 = arith.constant 0 : index
    %c0_27 = arith.constant 0 : index
    %87 = vector.load %arg6[%c0_25, %c0_26, %c0_27] : memref<1x128x128xf32, #tpu.memory_space<vmem>>, vector<1x128x128xf32>
    %88 = vector.shape_cast %87 : vector<1x128x128xf32> to vector<128x128xf32>
    %89 = vector.shape_cast %86 : vector<128x128xf32> to vector<1x128x128xf32>
    tpu.vector_store %arg6[%c0_25, %c0_26, %c0_27], %89 {strides = array<i32>} : memref<1x128x128xf32, #tpu.memory_space<vmem>>, vector<1x128x128xf32>,
    return
  }
  func.func @transform_0(%arg0: i32) -> (i32, i32, i32) {
    %c0_i32 = arith.constant 0 : i32
    %c0_i32_0 = arith.constant 0 : i32
    %c0_i32_1 = arith.constant 0 : i32
    return %arg0, %c0_i32, %c0_i32_0 : i32, i32, i32
  }
  func.func @transform_1(%arg0: i32) -> (i32, i32) {
    %c0_i32 = arith.constant 0 : i32
    %c0_i32_0 = arith.constant 0 : i32
    %c0_i32_1 = arith.constant 0 : i32
    return %c0_i32, %c0_i32_0 : i32, i32
  }
  func.func @transform_2(%arg0: i32) -> (i32, i32, i32) {
    %c0_i32 = arith.constant 0 : i32
    %c0_i32_0 = arith.constant 0 : i32
    %c0_i32_1 = arith.constant 0 : i32
    %c0_i32_2 = arith.constant 0 : i32
    return %c0_i32, %c0_i32_0, %c0_i32_1 : i32, i32, i32
  }
  func.func @transform_3(%arg0: i32) -> (i32, i32) {
    %c0_i32 = arith.constant 0 : i32
    %c0_i32_0 = arith.constant 0 : i32
    %c0_i32_1 = arith.constant 0 : i32
    return %c0_i32, %c0_i32_0 : i32, i32
  }
  func.func @transform_4(%arg0: i32) -> (i32, i32) {
    %c0_i32 = arith.constant 0 : i32
    %c0_i32_0 = arith.constant 0 : i32
    %c0_i32_1 = arith.constant 0 : i32
    return %c0_i32, %c0_i32_0 : i32, i32
  }
  func.func @transform_5(%arg0: i32) -> (i32, i32, i32) {
    %c0_i32 = arith.constant 0 : i32
    %c0_i32_0 = arith.constant 0 : i32
    %c0_i32_1 = arith.constant 0 : i32
    return %arg0, %c0_i32, %c0_i32_0 : i32, i32, i32
  }
  func.func @transform_6(%arg0: i32) -> (i32, i32, i32, i32) {
    %c0_i32 = arith.constant 0 : i32
    %c0_i32_0 = arith.constant 0 : i32
    %c0_i32_1 = arith.constant 0 : i32
    %c0_i32_2 = arith.constant 0 : i32
    return %arg0, %c0_i32, %c0_i32_0, %c0_i32_1 : i32, i32, i32, i32
  }
}

module attributes {stable_mosaic.version = 11 : i64} {
  func.func @_lm_nll_kernel(%arg0: i32, %arg1: memref<256x128xf32, #tpu.memory_space<vmem>>, %arg2: memref<128x256xbf16, #tpu.memory_space<vmem>>, %arg3: memref<1x256xf32, #tpu.memory_space<vmem>>, %arg4: memref<256x1xi32, #tpu.memory_space<vmem>>, %arg5: memref<256x1xf32, #tpu.memory_space<vmem>>) attributes {dimension_semantics = [#tpu.dimension_semantics<parallel>], iteration_bounds = array<i64: 1>, scalar_prefetch = 0 : i64, scratch_operands = 0 : i64, tpu.core_type = #tpu.core_type<tc>, window_params = [{transform_indices = @transform_0, window_bounds = array<i64: 256, 128>}, {pipeline_mode = #tpu.pipeline_mode<synchronous>, transform_indices = @transform_1, window_bounds = array<i64: 128, 256>}, {pipeline_mode = #tpu.pipeline_mode<synchronous>, transform_indices = @transform_2, window_bounds = array<i64: 1, 256>}, {transform_indices = @transform_3, window_bounds = array<i64: 256, 1>}, {transform_indices = @transform_4, window_bounds = array<i64: 256, 1>}]} {
    %c0 = arith.constant 0 : index
    %c0_0 = arith.constant 0 : index
    %0 = vector.load %arg1[%c0, %c0_0] : memref<256x128xf32, #tpu.memory_space<vmem>>, vector<256x128xf32>
    %1 = arith.truncf %0 : vector<256x128xf32> to vector<256x128xbf16>
    %c0_1 = arith.constant 0 : index
    %c0_2 = arith.constant 0 : index
    %2 = vector.load %arg2[%c0_1, %c0_2] : memref<128x256xbf16, #tpu.memory_space<vmem>>, vector<128x256xbf16>
    %cst = arith.constant dense<0.000000e+00> : vector<256x256xf32>
    %3 = tpu.matmul %1, %2, %cst {dimension_numbers = #tpu.dot_dimension_numbers<[1], [0], [0], [1], [0, 0, 1, 1], [], []>} : vector<256x128xbf16>, vector<128x256xbf16>, vector<256x256xf32> -> vector<256x256xf32>
    %c0_3 = arith.constant 0 : index
    %c0_4 = arith.constant 0 : index
    %4 = vector.load %arg3[%c0_3, %c0_4] : memref<1x256xf32, #tpu.memory_space<vmem>>, vector<1x256xf32>
    %5 = vector.broadcast %4 : vector<1x256xf32> to vector<256x256xf32>
    %6 = arith.addf %3, %5 : vector<256x256xf32>
    %cst_5 = arith.constant dense<0xFF800000> : vector<256xf32>
    %7 = vector.multi_reduction <maximumf>, %6, %cst_5 [1] : vector<256x256xf32> to vector<256xf32>
    %8 = vector.shape_cast %7 : vector<256xf32> to vector<256x1xf32>
    %9 = vector.broadcast %8 : vector<256x1xf32> to vector<256x256xf32>
    %10 = arith.subf %6, %9 : vector<256x256xf32>
    %11 = math.exp %10 : vector<256x256xf32>
    %cst_6 = arith.constant dense<0.000000e+00> : vector<256xf32>
    %12 = vector.multi_reduction <add>, %11, %cst_6 [1] : vector<256x256xf32> to vector<256xf32>
    %13 = vector.shape_cast %12 : vector<256xf32> to vector<256x1xf32>
    %14 = math.log %13 : vector<256x1xf32>
    %15 = arith.addf %8, %14 : vector<256x1xf32>
    %16 = tpu.iota {dimensions = array<i32: 1>} : vector<256x256xi32>
    %c0_7 = arith.constant 0 : index
    %c0_8 = arith.constant 0 : index
    %17 = vector.load %arg4[%c0_7, %c0_8] : memref<256x1xi32, #tpu.memory_space<vmem>>, vector<256x1xi32>
    %18 = vector.broadcast %17 : vector<256x1xi32> to vector<256x256xi32>
    %19 = arith.cmpi eq, %16, %18 : vector<256x256xi32>
    %cst_9 = arith.constant 0.000000e+00 : f32
    %20 = vector.broadcast %cst_9 : f32 to vector<256x256xf32>
    %21 = arith.select %19, %6, %20 : vector<256x256xi1>, vector<256x256xf32>
    %cst_10 = arith.constant dense<0.000000e+00> : vector<256xf32>
    %22 = vector.multi_reduction <add>, %21, %cst_10 [1] : vector<256x256xf32> to vector<256xf32>
    %23 = vector.shape_cast %22 : vector<256xf32> to vector<256x1xf32>
    %24 = arith.subf %15, %23 : vector<256x1xf32>
    %c0_11 = arith.constant 0 : index
    %c0_12 = arith.constant 0 : index
    %25 = vector.load %arg5[%c0_11, %c0_12] : memref<256x1xf32, #tpu.memory_space<vmem>>, vector<256x1xf32>
    tpu.vector_store %arg5[%c0_11, %c0_12], %24 {strides = array<i32>} : memref<256x1xf32, #tpu.memory_space<vmem>>, vector<256x1xf32>,
    return
  }
  func.func @transform_0(%arg0: i32) -> (i32, i32) {
    %c0_i32 = arith.constant 0 : i32
    %c0_i32_0 = arith.constant 0 : i32
    return %arg0, %c0_i32 : i32, i32
  }
  func.func @transform_1(%arg0: i32) -> (i32, i32) {
    %c0_i32 = arith.constant 0 : i32
    %c0_i32_0 = arith.constant 0 : i32
    %c0_i32_1 = arith.constant 0 : i32
    return %c0_i32, %c0_i32_0 : i32, i32
  }
  func.func @transform_2(%arg0: i32) -> (i32, i32) {
    %c0_i32 = arith.constant 0 : i32
    %c0_i32_0 = arith.constant 0 : i32
    %c0_i32_1 = arith.constant 0 : i32
    return %c0_i32, %c0_i32_0 : i32, i32
  }
  func.func @transform_3(%arg0: i32) -> (i32, i32) {
    %c0_i32 = arith.constant 0 : i32
    %c0_i32_0 = arith.constant 0 : i32
    return %arg0, %c0_i32 : i32, i32
  }
  func.func @transform_4(%arg0: i32) -> (i32, i32) {
    %c0_i32 = arith.constant 0 : i32
    %c0_i32_0 = arith.constant 0 : i32
    return %arg0, %c0_i32 : i32, i32
  }
}

</mosaic_0001>

<bundles_post_ra>
// kernel: alibi_decoder_forward.6
= control target key start
LH: loop header
LB: loop body
LE: loop exit
PB: predicated region body
PF: predicated region fallthrough
CT: control target
= control target key end

     0   :  { %v2419_v1 = vmov 0   ;;  %s3510_s1 = inlined_call_operand.vmem [shape: bf16[128,512], index: 1, kind: input, shape index: {}]   ;;  %s3511_s0 = inlined_call_operand.vmem [shape: f32[256,128], index: 0, kind: input, shape index: {}]   ;;  %s3512_s3 = inlined_call_operand.vmem [shape: bf16[512,128], index: 3, kind: input, shape index: {}]   ;;  %s3513_s2 = inlined_call_operand.vmem [shape: f32[1,512], index: 2, kind: input, shape index: {}]   ;;  %s3514_s4 = inlined_call_operand.vmem [shape: f32[1,128], index: 4, kind: input, shape index: {}]   ;;  %s3515_s5 = inlined_call_operand.vmem [shape: f32[1,128], index: 5, kind: input, shape index: {}]   ;;  %s3516_s6 = inlined_call_operand.vmem [shape: f32[1,128], index: 6, kind: input, shape index: {}]   ;;  %s3517_s7 = inlined_call_operand.vmem [shape: f32[256,128], index: 7, kind: output, shape index: {}]  }
   0x1   :  { %v2243_v0 = vld [vmem:[%s3510_s1 + $0x4] ss:$16 sps:$4 sm:$0xff]   ;;  %321 = vmatprep.mubr.bf16.mxu0 %v2419_v1  ;;  %514 = vmatprep.mubr.bf16.mxu1 %v2419_v1  ;;  %v2245_v2 = vld [vmem:[%s3510_s1 + $0xc] ss:$16 sps:$4 sm:$0xff]   ;;  %v2247_v3 = vld [vmem:[%s3510_s1] ss:$16 sps:$4 sm:$0xff]  }
   0x2   :  { %289 = vmatprep.subr.bf16.mxu0 %v2243_v0  ;;  %v2248_v4 = vld [vmem:[%s3510_s1 + $0x8] ss:$16 sps:$4 sm:$0xff]   ;;  %482 = vmatprep.subr.bf16.mxu1 %v2245_v2  ;;  %v2249_v5 = vld [vmem:[%s3510_s1 + $0x24] ss:$16 sps:$4 sm:$0xff]   ;;  %v2251_v6 = vld [vmem:[%s3510_s1 + $0x2c] ss:$16 sps:$4 sm:$0xff]  }
   0x3   :  { %290 = vmatpush1.bf16.msra.mxu0 %v2247_v3  ;;  %483 = vmatpush1.bf16.msra.mxu1 %v2248_v4  ;;  %v2253_v7 = vld [vmem:[%s3510_s1 + $0x20] ss:$16 sps:$4 sm:$0xff]   ;;  %v2254_v8 = vld [vmem:[%s3510_s1 + $0x28] ss:$16 sps:$4 sm:$0xff]   ;;  %v2255_v9 = vld [vmem:[%s3510_s1 + $0x44] ss:$16 sps:$4 sm:$0xff]  }
   0x4   :  { %291 = vmatprep.subr.bf16.mxu0 %v2249_v5  ;;  %484 = vmatprep.subr.bf16.mxu1 %v2251_v6  ;;  %v2257_v10 = vld [vmem:[%s3510_s1 + $0x4c] ss:$16 sps:$4 sm:$0xff]   ;;  %v2259_v11 = vld [vmem:[%s3510_s1 + $0x40] ss:$16 sps:$4 sm:$0xff]   ;;  %v2260_v12 = vld [vmem:[%s3510_s1 + $0x48] ss:$16 sps:$4 sm:$0xff]  }
   0x5   :  { %v2261_v13 = vld [vmem:[%s3510_s1 + $0x64] ss:$16 sps:$4 sm:$0xff]   ;;  %v2263_v14 = vld [vmem:[%s3510_s1 + $0x6c] ss:$16 sps:$4 sm:$0xff]   ;;  %v2265_v15 = vld [vmem:[%s3510_s1 + $0x60] ss:$16 sps:$4 sm:$0xff]  }
   0x6   :  { %v2266_v16 = vld [vmem:[%s3510_s1 + $0x68] ss:$16 sps:$4 sm:$0xff]   ;;  %v2267_v17 = vld [vmem:[%s3510_s1 + $0x84] ss:$16 sps:$4 sm:$0xff]   ;;  %v2269_v18 = vld [vmem:[%s3510_s1 + $0x8c] ss:$16 sps:$4 sm:$0xff]  }
   0x7   :  { %292 = vmatpush1.bf16.msra.mxu0 %v2253_v7  ;;  %485 = vmatpush1.bf16.msra.mxu1 %v2254_v8  ;;  %v2271_v19 = vld [vmem:[%s3510_s1 + $0x80] ss:$16 sps:$4 sm:$0xff]   ;;  %v2272_v20 = vld [vmem:[%s3510_s1 + $0x88] ss:$16 sps:$4 sm:$0xff]   ;;  %v2273_v21 = vld [vmem:[%s3510_s1 + $0xa4] ss:$16 sps:$4 sm:$0xff]  }
   0x8   :  { %293 = vmatprep.subr.bf16.mxu0 %v2255_v9  ;;  %486 = vmatprep.subr.bf16.mxu1 %v2257_v10  ;;  %v2275_v22 = vld [vmem:[%s3510_s1 + $0xac] ss:$16 sps:$4 sm:$0xff]   ;;  %v2277_v23 = vld [vmem:[%s3510_s1 + $0xa0] ss:$16 sps:$4 sm:$0xff]   ;;  %v2278_v24 = vld [vmem:[%s3510_s1 + $0xa8] ss:$16 sps:$4 sm:$0xff]  }
   0x9   :  { %v2279_v25 = vld [vmem:[%s3510_s1 + $0xc4] ss:$16 sps:$4 sm:$0xff]   ;;  %v2281_v26 = vld [vmem:[%s3510_s1 + $0xcc] ss:$16 sps:$4 sm:$0xff]   ;;  %v2283_v27 = vld [vmem:[%s3510_s1 + $0xc0] ss:$16 sps:$4 sm:$0xff]  }
   0xa   :  { %v2284_v28 = vld [vmem:[%s3510_s1 + $0xc8] ss:$16 sps:$4 sm:$0xff]   ;;  %v2285_v29 = vld [vmem:[%s3510_s1 + $0xe4] ss:$16 sps:$4 sm:$0xff]   ;;  %v2287_v30 = vld [vmem:[%s3510_s1 + $0xec] ss:$16 sps:$4 sm:$0xff]  }
   0xb   :  { %294 = vmatpush1.bf16.msra.mxu0 %v2259_v11  ;;  %487 = vmatpush1.bf16.msra.mxu1 %v2260_v12  ;;  %v2289_v31 = vld [vmem:[%s3510_s1 + $0xe0] ss:$16 sps:$4 sm:$0xff]   ;;  %v2290_v32 = vld [vmem:[%s3510_s1 + $0xe8] ss:$16 sps:$4 sm:$0xff]  }
   0xc   :  { %295 = vmatprep.subr.bf16.mxu0 %v2261_v13  ;;  %488 = vmatprep.subr.bf16.mxu1 %v2263_v14  ;;  %v27_v33 = vld [vmem:[%s3511_s0] sm:$0xff]  ;;  %v28_v34 = vld [vmem:[%s3511_s0 + $0x8] sm:$0xff]  ;;  %v29_v40 = vld [vmem:[%s3511_s0 + $0x10] sm:$0xff] }
   0xd   :  { %v2291_v35 = vld [vmem:[%s3512_s3 + $0x40] sm:$0xff]   ;;  %v59_v36 = vpack.c.bf16 %v28_v34, %v27_v33  ;;  %v2295_v41 = vld [vmem:[%s3512_s3 + $0x48] sm:$0xff]   ;;  %v30_v42 = vld [vmem:[%s3511_s0 + $0x18] sm:$0xff] }
   0xe   :  { %v2292_v37 = vld [vmem:[%s3512_s3] sm:$0xff]   ;;  %v2296_v43 = vld [vmem:[%s3512_s3 + $0x8] sm:$0xff]   ;;  %v60_v45 = vpack.c.bf16 %v30_v42, %v29_v40  ;;  %v2299_v47 = vld [vmem:[%s3512_s3 + $0x50] sm:$0xff]  }
   0xf   :  { %296 = vmatpush1.bf16.msra.mxu0 %v2265_v15  ;;  %489 = vmatpush1.bf16.msra.mxu1 %v2266_v16  ;;  %v2293_v38 = vld [vmem:[%s3512_s3 + $0xc0] sm:$0xff]   ;;  %v2297_v44 = vld [vmem:[%s3512_s3 + $0xc8] sm:$0xff]   ;;  %v2300_v48 = vld [vmem:[%s3512_s3 + $0x10] sm:$0xff]  }
  0x10   :  { %297 = vmatprep.subr.bf16.mxu0 %v2267_v17  ;;  %490 = vmatprep.subr.bf16.mxu1 %v2269_v18  ;;  %v2294_v39 = vld [vmem:[%s3512_s3 + $0x80] sm:$0xff]   ;;  %v2298_v46 = vld [vmem:[%s3512_s3 + $0x88] sm:$0xff]   ;;  %v2301_v51 = vld [vmem:[%s3512_s3 + $0xd0] sm:$0xff]  }
  0x11   :  { %v31_v49 = vld [vmem:[%s3511_s0 + $0x20] sm:$0xff]  ;;  %v32_v50 = vld [vmem:[%s3511_s0 + $0x28] sm:$0xff]  ;;  %v2302_v52 = vld [vmem:[%s3512_s3 + $0x90] sm:$0xff]  }
  0x12   :  { %v2303_v53 = vld [vmem:[%s3512_s3 + $0x58] sm:$0xff]   ;;  %v61_v56 = vpack.c.bf16 %v32_v50, %v31_v49  ;;  %v2307_v58 = vld [vmem:[%s3512_s3 + $0x60] sm:$0xff]   ;;  %v33_v60 = vld [vmem:[%s3511_s0 + $0x30] sm:$0xff]  ;;  %v109_v50 = vlaneseq }
  0x13   :  { %298 = vmatpush1.bf16.msra.mxu0 %v2271_v19  ;;  %491 = vmatpush1.bf16.msra.mxu1 %v2272_v20  ;;  %v2304_v54 = vld [vmem:[%s3512_s3 + $0x18] sm:$0xff]   ;;  %v2308_v59 = vld [vmem:[%s3512_s3 + $0x20] sm:$0xff]   ;;  %v2311_v0 = vld [vmem:[%s3512_s3 + $0x68] sm:$0xff]  }
  0x14   :  { %299 = vmatprep.subr.bf16.mxu0 %v2273_v21  ;;  %492 = vmatprep.subr.bf16.mxu1 %v2275_v22  ;;  %v2305_v55 = vld [vmem:[%s3512_s3 + $0xd8] sm:$0xff]   ;;  %v2309_v62 = vld [vmem:[%s3512_s3 + $0xe0] sm:$0xff]   ;;  %v2312_v2 = vld [vmem:[%s3512_s3 + $0x28] sm:$0xff]  }
  0x15   :  { %v2306_v57 = vld [vmem:[%s3512_s3 + $0x98] sm:$0xff]   ;;  %v2310_v63 = vld [vmem:[%s3512_s3 + $0xa0] sm:$0xff]   ;;  %v2313_v3 = vld [vmem:[%s3512_s3 + $0xe8] sm:$0xff]  }
  0x16   :  { %v34_v61 = vld [vmem:[%s3511_s0 + $0x38] sm:$0xff]  ;;  %v2314_v5 = vld [vmem:[%s3512_s3 + $0xa8] sm:$0xff]   ;;  %v2315_v6 = vld [vmem:[%s3512_s3 + $0x70] sm:$0xff]  }
  0x17   :  { %300 = vmatpush1.bf16.msra.mxu0 %v2277_v23  ;;  %493 = vmatpush1.bf16.msra.mxu1 %v2278_v24  ;;  %v62_v4 = vpack.c.bf16 %v34_v61, %v33_v60  ;;  %v2316_v7 = vld [vmem:[%s3512_s3 + $0x30] sm:$0xff]   ;;  %v35_v8 = vld [vmem:[%s3511_s0 + $0x40] sm:$0xff]  ;;  %v36_v9 = vld [vmem:[%s3511_s0 + $0x48] sm:$0xff] }
  0x18   :  { %301 = vmatprep.subr.bf16.mxu0 %v2279_v25  ;;  %494 = vmatprep.subr.bf16.mxu1 %v2281_v26  ;;  %v2317_v10 = vld [vmem:[%s3512_s3 + $0xf0] sm:$0xff]   ;;  %v2319_v12 = vld [vmem:[%s3512_s3 + $0x78] sm:$0xff]   ;;  %v63_v15 = vpack.c.bf16 %v36_v9, %v35_v8  ;;  %v39_v20 = vld [vmem:[%s3511_s0 + $0x60] sm:$0xff] }
  0x19   :  { %v2318_v11 = vld [vmem:[%s3512_s3 + $0xb0] sm:$0xff]   ;;  %v2320_v13 = vld [vmem:[%s3512_s3 + $0x38] sm:$0xff]   ;;  %v40_v21 = vld [vmem:[%s3511_s0 + $0x68] sm:$0xff] }
  0x1a   :  { %v2321_v14 = vld [vmem:[%s3512_s3 + $0xf8] sm:$0xff]   ;;  %v37_v17 = vld [vmem:[%s3511_s0 + $0x50] sm:$0xff]  ;;  %v65_v22 = vpack.c.bf16 %v40_v21, %v39_v20  ;;  %v43_v26 = vld [vmem:[%s3511_s0 + $0x80] sm:$0xff] }
  0x1b   :  { %302 = vmatpush1.bf16.msra.mxu0 %v2283_v27  ;;  %495 = vmatpush1.bf16.msra.mxu1 %v2284_v28  ;;  %v2322_v16 = vld [vmem:[%s3512_s3 + $0xb8] sm:$0xff]   ;;  %v41_v23 = vld [vmem:[%s3511_s0 + $0x70] sm:$0xff]  ;;  %v44_v27 = vld [vmem:[%s3511_s0 + $0x88] sm:$0xff] }
  0x1c   :  { %303 = vmatprep.subr.bf16.mxu0 %v2285_v29  ;;  %496 = vmatprep.subr.bf16.mxu1 %v2287_v30  ;;  %v38_v18 = vld [vmem:[%s3511_s0 + $0x58] sm:$0xff]  ;;  %v67_v28 = vpack.c.bf16 %v44_v27, %v43_v26  ;;  %v45_v29 = vld [vmem:[%s3511_s0 + $0x90] sm:$0xff]  ;;  %v48_v33 = vld [vmem:[%s3511_s0 + $0xa8] sm:$0xff] }
  0x1d   :  { %v64_v19 = vpack.c.bf16 %v38_v18, %v37_v17  ;;  %v42_v24 = vld [vmem:[%s3511_s0 + $0x78] sm:$0xff] }
  0x1e   :  { %v66_v25 = vpack.c.bf16 %v42_v24, %v41_v23  ;;  %v46_v30 = vld [vmem:[%s3511_s0 + $0x98] sm:$0xff] }
  0x1f   :  { %304 = vmatpush1.bf16.msra.mxu0 %v2289_v31  ;;  %497 = vmatpush1.bf16.msra.mxu1 %v2290_v32  ;;  %v68_v31 = vpack.c.bf16 %v46_v30, %v45_v29  ;;  %v47_v32 = vld [vmem:[%s3511_s0 + $0xa0] sm:$0xff]  ;;  %v54_v42 = vld [vmem:[%s3511_s0 + $0xd8] sm:$0xff] }
  0x20   :  { %2018 = vmatprep.subr.bf16.mxu0 %v2291_v35  ;;  %2130 = vmatprep.subr.bf16.mxu1 %v2293_v38  ;;  %v69_v34 = vpack.c.bf16 %v48_v33, %v47_v32  ;;  %v49_v35 = vld [vmem:[%s3511_s0 + $0xb0] sm:$0xff]  ;;  %v51_v38 = vld [vmem:[%s3511_s0 + $0xc0] sm:$0xff] }
  0x22   :  { %322 = vmatmul.mubr.bf16.vlgmr.msra.gmra.mrb[0].mxu0 %v59_v36  ;;  %515 = vmatmul.mubr.bf16.vlgmr.msra.gmra.mrb[0].mxu1 %v59_v36  ;;  %v50_v36 = vld [vmem:[%s3511_s0 + $0xb8] sm:$0xff] }
  0x23   :  { %331 = vmatprep.mubr.bf16.mxu0 %v2419_v1  ;;  %524 = vmatprep.mubr.bf16.mxu1 %v2419_v1 }
  0x24   :  { %2019 = vmatpush3.bf16.msra.mxu0 %v2292_v37  ;;  %2131 = vmatpush3.bf16.msra.mxu1 %v2294_v39  ;;  %v70_v37 = vpack.c.bf16 %v50_v36, %v49_v35  ;;  %v52_v39 = vld [vmem:[%s3511_s0 + $0xc8] sm:$0xff] }
  0x25   :  { %2020 = vmatprep.subr.bf16.mxu0 %v2295_v41  ;;  %2132 = vmatprep.subr.bf16.mxu1 %v2297_v44  ;;  %v71_v40 = vpack.c.bf16 %v52_v39, %v51_v38  ;;  %v53_v41 = vld [vmem:[%s3511_s0 + $0xd0] sm:$0xff]  ;;  %v55_v44 = vld [vmem:[%s3511_s0 + $0xe0] sm:$0xff] }
  0x28   :  { %2021 = vmatpush3.bf16.msra.mxu0 %v2296_v43  ;;  %2133 = vmatpush3.bf16.msra.mxu1 %v2298_v46  ;;  %v72_v43 = vpack.c.bf16 %v54_v42, %v53_v41 }
  0x29   :  { %2022 = vmatprep.subr.bf16.mxu0 %v2299_v47  ;;  %2134 = vmatprep.subr.bf16.mxu1 %v2301_v51  ;;  %v57_v47 = vld [vmem:[%s3511_s0 + $0xf0] sm:$0xff]  ;;  %v110_v51 = vshrl.u32 %v109_v50, 7 }
  0x2a   :  { %332 = vmatmul.mubr.bf16.gmra.mrb[4].mxu0 %v60_v45  ;;  %525 = vmatmul.mubr.bf16.gmra.mrb[4].mxu1 %v60_v45  ;;  %v56_v45 = vld [vmem:[%s3511_s0 + $0xe8] sm:$0xff] }
  0x2b   :  { %341 = vmatprep.mubr.bf16.mxu0 %v2419_v1  ;;  %534 = vmatprep.mubr.bf16.mxu1 %v2419_v1  ;;  %v73_v46 = vpack.c.bf16 %v56_v45, %v55_v44 }
  0x2c   :  { %2023 = vmatpush3.bf16.msra.mxu0 %v2300_v48  ;;  %2135 = vmatpush3.bf16.msra.mxu1 %v2302_v52  ;;  %v58_v48 = vld [vmem:[%s3511_s0 + $0xf8] sm:$0xff]  ;;  %v111_v52 = vsub.s32 0, %v110_v51 }
  0x2d   :  { %2024 = vmatprep.subr.bf16.mxu0 %v2303_v53  ;;  %2136 = vmatprep.subr.bf16.mxu1 %v2305_v55  ;;  %v74_v49 = vpack.c.bf16 %v58_v48, %v57_v47  ;;  %v119_v53 = vsub.s32 2, %v110_v51  ;;  %v123_v55 = vsub.s32 3, %v110_v51 }
  0x30   :  { %2025 = vmatpush3.bf16.msra.mxu0 %v2304_v54  ;;  %2137 = vmatpush3.bf16.msra.mxu1 %v2306_v57  ;;  %v107_v54 = vld [vmem:[%s3513_s2] sm:$0xf] }
  0x31   :  { %2026 = vmatprep.subr.bf16.mxu0 %v2307_v58  ;;  %2138 = vmatprep.subr.bf16.mxu1 %v2309_v62  ;;  %v2785_v57 = vrot.slane %v107_v54, %v119_v53 }
  0x32   :  { %342 = vmatmul.mubr.bf16.gmra.mrb[8].mxu0 %v61_v56  ;;  %535 = vmatmul.mubr.bf16.gmra.mrb[8].mxu1 %v61_v56  ;;  %v2783_v56 = vrot.slane %v107_v54, %v111_v52 }
  0x33   :  { %351 = vmatprep.mubr.bf16.mxu0 %v2419_v1  ;;  %544 = vmatprep.mubr.bf16.mxu1 %v2419_v1 }
  0x34   :  { %2027 = vmatpush3.bf16.msra.mxu0 %v2308_v59  ;;  %2139 = vmatpush3.bf16.msra.mxu1 %v2310_v63  ;;  %v2789_v59 = vrot.slane %v107_v54, %v123_v55 }
  0x35   :  { %2028 = vmatprep.subr.bf16.mxu0 %v2311_v0  ;;  %2140 = vmatprep.subr.bf16.mxu1 %v2313_v3 }
  0x38   :  { %2029 = vmatpush3.bf16.msra.mxu0 %v2312_v2  ;;  %2141 = vmatpush3.bf16.msra.mxu1 %v2314_v5 }
  0x39   :  { %2030 = vmatprep.subr.bf16.mxu0 %v2315_v6  ;;  %2142 = vmatprep.subr.bf16.mxu1 %v2317_v10 }
  0x3a   :  { %352 = vmatmul.mubr.bf16.gmra.mrb[12].mxu0 %v62_v4  ;;  %545 = vmatmul.mubr.bf16.gmra.mrb[12].mxu1 %v62_v4 }
  0x3b   :  { %361 = vmatprep.mubr.bf16.mxu0 %v2419_v1  ;;  %554 = vmatprep.mubr.bf16.mxu1 %v2419_v1 }
  0x3c   :  { %2031 = vmatpush3.bf16.msra.mxu0 %v2316_v7  ;;  %2143 = vmatpush3.bf16.msra.mxu1 %v2318_v11 }
  0x3d   :  { %2032 = vmatprep.subr.bf16.mxu0 %v2319_v12  ;;  %2144 = vmatprep.subr.bf16.mxu1 %v2321_v14 }
  0x40   :  { %2033 = vmatpush3.bf16.msra.mxu0 %v2320_v13  ;;  %2145 = vmatpush3.bf16.msra.mxu1 %v2322_v16 }
  0x42   :  { %362 = vmatmul.mubr.bf16.gmra.mrb[16].mxu0 %v63_v15  ;;  %555 = vmatmul.mubr.bf16.gmra.mrb[16].mxu1 %v63_v15 }
  0x43   :  { %371 = vmatprep.mubr.bf16.mxu0 %v2419_v1  ;;  %564 = vmatprep.mubr.bf16.mxu1 %v2419_v1 }
  0x4a   :  { %372 = vmatmul.mubr.bf16.gmra.mrb[20].mxu0 %v64_v19  ;;  %565 = vmatmul.mubr.bf16.gmra.mrb[20].mxu1 %v64_v19 }
  0x4b   :  { %381 = vmatprep.mubr.bf16.mxu0 %v2419_v1  ;;  %574 = vmatprep.mubr.bf16.mxu1 %v2419_v1 }
  0x52   :  { %382 = vmatmul.mubr.bf16.gmra.mrb[24].mxu0 %v65_v22  ;;  %575 = vmatmul.mubr.bf16.gmra.mrb[24].mxu1 %v65_v22 }
  0x53   :  { %391 = vmatprep.mubr.bf16.mxu0 %v2419_v1  ;;  %584 = vmatprep.mubr.bf16.mxu1 %v2419_v1 }
  0x5a   :  { %392 = vmatmul.mubr.bf16.gmra.mrb[28].mxu0 %v66_v25  ;;  %585 = vmatmul.mubr.bf16.gmra.mrb[28].mxu1 %v66_v25 }
  0x5b   :  { %401 = vmatprep.mubr.bf16.mxu0 %v2419_v1  ;;  %594 = vmatprep.mubr.bf16.mxu1 %v2419_v1 }
  0x62   :  { %402 = vmatmul.mubr.bf16.gmra.mrb[32].mxu0 %v67_v28  ;;  %595 = vmatmul.mubr.bf16.gmra.mrb[32].mxu1 %v67_v28 }
  0x63   :  { %411 = vmatprep.mubr.bf16.mxu0 %v2419_v1  ;;  %604 = vmatprep.mubr.bf16.mxu1 %v2419_v1 }
  0x6a   :  { %412 = vmatmul.mubr.bf16.gmra.mrb[36].mxu0 %v68_v31  ;;  %605 = vmatmul.mubr.bf16.gmra.mrb[36].mxu1 %v68_v31 }
  0x6b   :  { %421 = vmatprep.mubr.bf16.mxu0 %v2419_v1  ;;  %614 = vmatprep.mubr.bf16.mxu1 %v2419_v1 }
  0x72   :  { %422 = vmatmul.mubr.bf16.gmra.mrb[40].mxu0 %v69_v34  ;;  %615 = vmatmul.mubr.bf16.gmra.mrb[40].mxu1 %v69_v34 }
  0x73   :  { %431 = vmatprep.mubr.bf16.mxu0 %v2419_v1  ;;  %624 = vmatprep.mubr.bf16.mxu1 %v2419_v1 }
  0x7a   :  { %432 = vmatmul.mubr.bf16.gmra.mrb[44].mxu0 %v70_v37  ;;  %625 = vmatmul.mubr.bf16.gmra.mrb[44].mxu1 %v70_v37 }
  0x7b   :  { %441 = vmatprep.mubr.bf16.mxu0 %v2419_v1  ;;  %634 = vmatprep.mubr.bf16.mxu1 %v2419_v1 }
  0x82   :  { %442 = vmatmul.mubr.bf16.gmra.mrb[48].mxu0 %v71_v40  ;;  %635 = vmatmul.mubr.bf16.gmra.mrb[48].mxu1 %v71_v40 }
  0x83   :  { %451 = vmatprep.mubr.bf16.mxu0 %v2419_v1  ;;  %644 = vmatprep.mubr.bf16.mxu1 %v2419_v1 }
  0x8a   :  { %452 = vmatmul.mubr.bf16.gmra.mrb[52].mxu0 %v72_v43  ;;  %645 = vmatmul.mubr.bf16.gmra.mrb[52].mxu1 %v72_v43 }
  0x8b   :  { %461 = vmatprep.mubr.bf16.mxu0 %v2419_v1  ;;  %654 = vmatprep.mubr.bf16.mxu1 %v2419_v1 }
  0x92   :  { %462 = vmatmul.mubr.bf16.gmra.mrb[56].mxu0 %v73_v46  ;;  %655 = vmatmul.mubr.bf16.gmra.mrb[56].mxu1 %v73_v46 }
  0x93   :  { %471 = vmatprep.mubr.bf16.mxu0 %v2419_v1  ;;  %664 = vmatprep.mubr.bf16.mxu1 %v2419_v1  ;;  %v115_v1 = vsub.s32 1, %v110_v51 }
  0x95   :  { %v2787_v58 = vrot.slane %v107_v54, %v115_v1 }
  0x9a   :  { %472 = vmatmul.mubr.bf16.gmra.mrb[60].mxu0 %v74_v49  ;;  %665 = vmatmul.mubr.bf16.gmra.mrb[60].mxu1 %v74_v49 }
  0xf5   :  { %v323_v60 = vpop.f32.mrb[0].mxu0  ;;  %v516_v61 = vpop.f32.mrb[0].mxu1 }
  0xf6   :  { %v324_v62 = vadd.f32 %v323_v60, %v2783_v56  ;;  %v517_v63 = vadd.f32 %v516_v61, %v2785_v57  ;;  %v325_v0 = vpop.f32.mrb[1].mxu0  ;;  %v518_v2 = vpop.f32.mrb[1].mxu1 }
  0xf7   :  { %v326_v3 = vadd.f32 %v325_v0, %v2787_v58  ;;  %v519_v4 = vadd.f32 %v518_v2, %v2789_v59  ;;  %v327_v5 = vpop.f32.mrb[2].mxu0  ;;  %v520_v6 = vpop.f32.mrb[2].mxu1 }
  0xf8   :  { %v677_v7 = vmax.f32 %v517_v63, 0.0  ;;  %v328_v8 = vadd.f32 %v327_v5, %v2783_v56  ;;  %v521_v9 = vadd.f32 %v520_v6, %v2785_v57  ;;  %v329_v10 = vpop.f32.mrb[3].mxu0  ;;  %v522_v11 = vpop.f32.mrb[3].mxu1  ;;  %v675_v15 = vmax.f32 %v324_v62, 0.0 }
  0xf9   :  { %v678_v12 = vmax.f32 %v519_v4, 0.0  ;;  %v330_v13 = vadd.f32 %v329_v10, %v2787_v58  ;;  %v523_v14 = vadd.f32 %v522_v11, %v2789_v59  ;;  %v676_v18 = vmax.f32 %v326_v3, 0.0 }
  0xfa   :  { %v679_v16 = vmax.f32 %v328_v8, 0.0  ;;  %v681_v17 = vmax.f32 %v521_v9, 0.0 }
  0xfb   :  { %v680_v19 = vmax.f32 %v330_v13, 0.0  ;;  %v682_v20 = vmax.f32 %v523_v14, 0.0 }
  0xfc   :  { %v803_v21 = vpack.c.bf16 %v679_v16, %v675_v15  ;;  %v805_v22 = vpack.c.bf16 %v681_v17, %v677_v7 }
  0xfd   :  { %v804_v23 = vpack.c.bf16 %v680_v19, %v676_v18  ;;  %v806_v24 = vpack.c.bf16 %v682_v20, %v678_v12  ;;  %v333_v25 = vpop.f32.mrb[4].mxu0  ;;  %v526_v26 = vpop.f32.mrb[4].mxu1 }
  0xfe   :  { %v334_v27 = vadd.f32 %v333_v25, %v2783_v56  ;;  %v527_v28 = vadd.f32 %v526_v26, %v2785_v57  ;;  %v335_v29 = vpop.f32.mrb[5].mxu0  ;;  %v528_v30 = vpop.f32.mrb[5].mxu1 }
  0xff   :  { %v336_v31 = vadd.f32 %v335_v29, %v2787_v58  ;;  %v529_v32 = vadd.f32 %v528_v30, %v2789_v59  ;;  %v337_v33 = vpop.f32.mrb[6].mxu0  ;;  %v530_v34 = vpop.f32.mrb[6].mxu1  ;;  %1162 = vmatprep.mubr.bf16.mxu0 %v804_v23  ;;  %1323 = vmatprep.mubr.bf16.mxu1 %v806_v24 }
 0x100   :  { %v685_v35 = vmax.f32 %v527_v28, 0.0  ;;  %v338_v36 = vadd.f32 %v337_v33, %v2783_v56  ;;  %v531_v37 = vadd.f32 %v530_v34, %v2785_v57  ;;  %v339_v38 = vpop.f32.mrb[7].mxu0  ;;  %v532_v39 = vpop.f32.mrb[7].mxu1  ;;  %1163 = vmatmul.mubr.bf16.vlgmr.msra.gmra.mrb[64].mxu0 %v803_v21  ;;  %1324 = vmatmul.mubr.bf16.vlgmr.msra.gmra.mrb[64].mxu1 %v805_v22  ;;  %v683_v43 = vmax.f32 %v334_v27, 0.0 }
 0x101   :  { %v686_v40 = vmax.f32 %v529_v32, 0.0  ;;  %v340_v41 = vadd.f32 %v339_v38, %v2787_v58  ;;  %v533_v42 = vadd.f32 %v532_v39, %v2789_v59  ;;  %v684_v46 = vmax.f32 %v336_v31, 0.0 }
 0x102   :  { %v687_v44 = vmax.f32 %v338_v36, 0.0  ;;  %v689_v45 = vmax.f32 %v531_v37, 0.0 }
 0x103   :  { %v688_v47 = vmax.f32 %v340_v41, 0.0  ;;  %v690_v48 = vmax.f32 %v533_v42, 0.0 }
 0x104   :  { %v807_v49 = vpack.c.bf16 %v687_v44, %v683_v43  ;;  %v809_v50 = vpack.c.bf16 %v689_v45, %v685_v35 }
 0x105   :  { %v808_v51 = vpack.c.bf16 %v688_v47, %v684_v46  ;;  %v810_v52 = vpack.c.bf16 %v690_v48, %v686_v40  ;;  %v343_v53 = vpop.f32.mrb[8].mxu0  ;;  %v536_v54 = vpop.f32.mrb[8].mxu1 }
 0x106   :  { %v344_v1 = vadd.f32 %v343_v53, %v2783_v56  ;;  %v537_v55 = vadd.f32 %v536_v54, %v2785_v57  ;;  %v345_v60 = vpop.f32.mrb[9].mxu0  ;;  %v538_v61 = vpop.f32.mrb[9].mxu1 }
 0x107   :  { %v346_v62 = vadd.f32 %v345_v60, %v2787_v58  ;;  %v539_v63 = vadd.f32 %v538_v61, %v2789_v59  ;;  %v347_v0 = vpop.f32.mrb[10].mxu0  ;;  %v540_v2 = vpop.f32.mrb[10].mxu1  ;;  %1170 = vmatprep.mubr.bf16.mxu0 %v808_v51  ;;  %1331 = vmatprep.mubr.bf16.mxu1 %v810_v52 }
 0x108   :  { %v693_v3 = vmax.f32 %v537_v55, 0.0  ;;  %v348_v4 = vadd.f32 %v347_v0, %v2783_v56  ;;  %v541_v5 = vadd.f32 %v540_v2, %v2785_v57  ;;  %v349_v6 = vpop.f32.mrb[11].mxu0  ;;  %v542_v7 = vpop.f32.mrb[11].mxu1  ;;  %1171 = vmatmul.mubr.bf16.gmra.mrb[68].mxu0 %v807_v49  ;;  %1332 = vmatmul.mubr.bf16.gmra.mrb[68].mxu1 %v809_v50  ;;  %v691_v11 = vmax.f32 %v344_v1, 0.0 }
 0x109   :  { %v694_v8 = vmax.f32 %v539_v63, 0.0  ;;  %v350_v9 = vadd.f32 %v349_v6, %v2787_v58  ;;  %v543_v10 = vadd.f32 %v542_v7, %v2789_v59  ;;  %v692_v14 = vmax.f32 %v346_v62, 0.0 }
 0x10a   :  { %v695_v12 = vmax.f32 %v348_v4, 0.0  ;;  %v697_v13 = vmax.f32 %v541_v5, 0.0 }
 0x10b   :  { %v696_v15 = vmax.f32 %v350_v9, 0.0  ;;  %v698_v16 = vmax.f32 %v543_v10, 0.0 }
 0x10c   :  { %v811_v17 = vpack.c.bf16 %v695_v12, %v691_v11  ;;  %v813_v18 = vpack.c.bf16 %v697_v13, %v693_v3 }
 0x10d   :  { %v812_v19 = vpack.c.bf16 %v696_v15, %v692_v14  ;;  %v814_v20 = vpack.c.bf16 %v698_v16, %v694_v8  ;;  %v353_v21 = vpop.f32.mrb[12].mxu0  ;;  %v546_v22 = vpop.f32.mrb[12].mxu1 }
 0x10e   :  { %v354_v23 = vadd.f32 %v353_v21, %v2783_v56  ;;  %v547_v24 = vadd.f32 %v546_v22, %v2785_v57  ;;  %v355_v25 = vpop.f32.mrb[13].mxu0  ;;  %v548_v26 = vpop.f32.mrb[13].mxu1 }
 0x10f   :  { %v356_v27 = vadd.f32 %v355_v25, %v2787_v58  ;;  %v549_v28 = vadd.f32 %v548_v26, %v2789_v59  ;;  %v357_v29 = vpop.f32.mrb[14].mxu0  ;;  %v550_v30 = vpop.f32.mrb[14].mxu1  ;;  %1178 = vmatprep.mubr.bf16.mxu0 %v812_v19  ;;  %1339 = vmatprep.mubr.bf16.mxu1 %v814_v20 }
 0x110   :  { %v701_v31 = vmax.f32 %v547_v24, 0.0  ;;  %v358_v32 = vadd.f32 %v357_v29, %v2783_v56  ;;  %v551_v33 = vadd.f32 %v550_v30, %v2785_v57  ;;  %v359_v34 = vpop.f32.mrb[15].mxu0  ;;  %v552_v35 = vpop.f32.mrb[15].mxu1  ;;  %1179 = vmatmul.mubr.bf16.gmra.mrb[72].mxu0 %v811_v17  ;;  %1340 = vmatmul.mubr.bf16.gmra.mrb[72].mxu1 %v813_v18  ;;  %v699_v39 = vmax.f32 %v354_v23, 0.0 }
 0x111   :  { %v702_v36 = vmax.f32 %v549_v28, 0.0  ;;  %v360_v37 = vadd.f32 %v359_v34, %v2787_v58  ;;  %v553_v38 = vadd.f32 %v552_v35, %v2789_v59  ;;  %v700_v42 = vmax.f32 %v356_v27, 0.0 }
 0x112   :  { %v703_v40 = vmax.f32 %v358_v32, 0.0  ;;  %v705_v41 = vmax.f32 %v551_v33, 0.0 }
 0x113   :  { %v704_v43 = vmax.f32 %v360_v37, 0.0  ;;  %v706_v44 = vmax.f32 %v553_v38, 0.0 }
 0x114   :  { %v815_v45 = vpack.c.bf16 %v703_v40, %v699_v39  ;;  %v817_v46 = vpack.c.bf16 %v705_v41, %v701_v31 }
 0x115   :  { %v816_v47 = vpack.c.bf16 %v704_v43, %v700_v42  ;;  %v818_v48 = vpack.c.bf16 %v706_v44, %v702_v36  ;;  %v363_v49 = vpop.f32.mrb[16].mxu0  ;;  %v556_v50 = vpop.f32.mrb[16].mxu1 }
 0x116   :  { %v364_v51 = vadd.f32 %v363_v49, %v2783_v56  ;;  %v557_v52 = vadd.f32 %v556_v50, %v2785_v57  ;;  %v365_v53 = vpop.f32.mrb[17].mxu0  ;;  %v558_v54 = vpop.f32.mrb[17].mxu1 }
 0x117   :  { %v366_v1 = vadd.f32 %v365_v53, %v2787_v58  ;;  %v559_v55 = vadd.f32 %v558_v54, %v2789_v59  ;;  %v367_v60 = vpop.f32.mrb[18].mxu0  ;;  %v560_v61 = vpop.f32.mrb[18].mxu1  ;;  %1186 = vmatprep.mubr.bf16.mxu0 %v816_v47  ;;  %1347 = vmatprep.mubr.bf16.mxu1 %v818_v48 }
 0x118   :  { %v709_v62 = vmax.f32 %v557_v52, 0.0  ;;  %v368_v63 = vadd.f32 %v367_v60, %v2783_v56  ;;  %v561_v0 = vadd.f32 %v560_v61, %v2785_v57  ;;  %v369_v2 = vpop.f32.mrb[19].mxu0  ;;  %v562_v3 = vpop.f32.mrb[19].mxu1  ;;  %1187 = vmatmul.mubr.bf16.gmra.mrb[76].mxu0 %v815_v45  ;;  %1348 = vmatmul.mubr.bf16.gmra.mrb[76].mxu1 %v817_v46  ;;  %v707_v7 = vmax.f32 %v364_v51, 0.0 }
 0x119   :  { %v710_v4 = vmax.f32 %v559_v55, 0.0  ;;  %v370_v5 = vadd.f32 %v369_v2, %v2787_v58  ;;  %v563_v6 = vadd.f32 %v562_v3, %v2789_v59  ;;  %v708_v10 = vmax.f32 %v366_v1, 0.0 }
 0x11a   :  { %v711_v8 = vmax.f32 %v368_v63, 0.0  ;;  %v713_v9 = vmax.f32 %v561_v0, 0.0 }
 0x11b   :  { %v712_v11 = vmax.f32 %v370_v5, 0.0  ;;  %v714_v12 = vmax.f32 %v563_v6, 0.0 }
 0x11c   :  { %v819_v13 = vpack.c.bf16 %v711_v8, %v707_v7  ;;  %v821_v14 = vpack.c.bf16 %v713_v9, %v709_v62 }
 0x11d   :  { %v820_v15 = vpack.c.bf16 %v712_v11, %v708_v10  ;;  %v822_v16 = vpack.c.bf16 %v714_v12, %v710_v4  ;;  %v373_v17 = vpop.f32.mrb[20].mxu0  ;;  %v566_v18 = vpop.f32.mrb[20].mxu1 }
 0x11e   :  { %v374_v19 = vadd.f32 %v373_v17, %v2783_v56  ;;  %v567_v20 = vadd.f32 %v566_v18, %v2785_v57  ;;  %v375_v21 = vpop.f32.mrb[21].mxu0  ;;  %v568_v22 = vpop.f32.mrb[21].mxu1 }
 0x11f   :  { %v376_v23 = vadd.f32 %v375_v21, %v2787_v58  ;;  %v569_v24 = vadd.f32 %v568_v22, %v2789_v59  ;;  %v377_v25 = vpop.f32.mrb[22].mxu0  ;;  %v570_v26 = vpop.f32.mrb[22].mxu1  ;;  %1194 = vmatprep.mubr.bf16.mxu0 %v820_v15  ;;  %1355 = vmatprep.mubr.bf16.mxu1 %v822_v16 }
 0x120   :  { %v717_v27 = vmax.f32 %v567_v20, 0.0  ;;  %v378_v28 = vadd.f32 %v377_v25, %v2783_v56  ;;  %v571_v29 = vadd.f32 %v570_v26, %v2785_v57  ;;  %v379_v30 = vpop.f32.mrb[23].mxu0  ;;  %v572_v31 = vpop.f32.mrb[23].mxu1  ;;  %1195 = vmatmul.mubr.bf16.gmra.mrb[80].mxu0 %v819_v13  ;;  %1356 = vmatmul.mubr.bf16.gmra.mrb[80].mxu1 %v821_v14  ;;  %v715_v35 = vmax.f32 %v374_v19, 0.0 }
 0x121   :  { %v718_v32 = vmax.f32 %v569_v24, 0.0  ;;  %v380_v33 = vadd.f32 %v379_v30, %v2787_v58  ;;  %v573_v34 = vadd.f32 %v572_v31, %v2789_v59  ;;  %v716_v38 = vmax.f32 %v376_v23, 0.0 }
 0x122   :  { %v719_v36 = vmax.f32 %v378_v28, 0.0  ;;  %v721_v37 = vmax.f32 %v571_v29, 0.0 }
 0x123   :  { %v720_v39 = vmax.f32 %v380_v33, 0.0  ;;  %v722_v40 = vmax.f32 %v573_v34, 0.0 }
 0x124   :  { %v823_v41 = vpack.c.bf16 %v719_v36, %v715_v35  ;;  %v825_v42 = vpack.c.bf16 %v721_v37, %v717_v27 }
 0x125   :  { %v824_v43 = vpack.c.bf16 %v720_v39, %v716_v38  ;;  %v826_v44 = vpack.c.bf16 %v722_v40, %v718_v32  ;;  %v383_v45 = vpop.f32.mrb[24].mxu0  ;;  %v576_v46 = vpop.f32.mrb[24].mxu1 }
 0x126   :  { %v384_v47 = vadd.f32 %v383_v45, %v2783_v56  ;;  %v577_v48 = vadd.f32 %v576_v46, %v2785_v57  ;;  %v385_v49 = vpop.f32.mrb[25].mxu0  ;;  %v578_v50 = vpop.f32.mrb[25].mxu1 }
 0x127   :  { %v386_v51 = vadd.f32 %v385_v49, %v2787_v58  ;;  %v579_v52 = vadd.f32 %v578_v50, %v2789_v59  ;;  %v387_v53 = vpop.f32.mrb[26].mxu0  ;;  %v580_v54 = vpop.f32.mrb[26].mxu1  ;;  %1202 = vmatprep.mubr.bf16.mxu0 %v824_v43  ;;  %1363 = vmatprep.mubr.bf16.mxu1 %v826_v44 }
 0x128   :  { %v725_v1 = vmax.f32 %v577_v48, 0.0  ;;  %v388_v55 = vadd.f32 %v387_v53, %v2783_v56  ;;  %v581_v60 = vadd.f32 %v580_v54, %v2785_v57  ;;  %v389_v61 = vpop.f32.mrb[27].mxu0  ;;  %v582_v62 = vpop.f32.mrb[27].mxu1  ;;  %1203 = vmatmul.mubr.bf16.gmra.mrb[84].mxu0 %v823_v41  ;;  %1364 = vmatmul.mubr.bf16.gmra.mrb[84].mxu1 %v825_v42  ;;  %v723_v3 = vmax.f32 %v384_v47, 0.0 }
 0x129   :  { %v726_v63 = vmax.f32 %v579_v52, 0.0  ;;  %v390_v0 = vadd.f32 %v389_v61, %v2787_v58  ;;  %v583_v2 = vadd.f32 %v582_v62, %v2789_v59  ;;  %v724_v6 = vmax.f32 %v386_v51, 0.0 }
 0x12a   :  { %v727_v4 = vmax.f32 %v388_v55, 0.0  ;;  %v729_v5 = vmax.f32 %v581_v60, 0.0 }
 0x12b   :  { %v728_v7 = vmax.f32 %v390_v0, 0.0  ;;  %v730_v8 = vmax.f32 %v583_v2, 0.0 }
 0x12c   :  { %v827_v9 = vpack.c.bf16 %v727_v4, %v723_v3  ;;  %v829_v10 = vpack.c.bf16 %v729_v5, %v725_v1 }
 0x12d   :  { %v828_v11 = vpack.c.bf16 %v728_v7, %v724_v6  ;;  %v830_v12 = vpack.c.bf16 %v730_v8, %v726_v63  ;;  %v393_v13 = vpop.f32.mrb[28].mxu0  ;;  %v586_v14 = vpop.f32.mrb[28].mxu1 }
 0x12e   :  { %v394_v15 = vadd.f32 %v393_v13, %v2783_v56  ;;  %v587_v16 = vadd.f32 %v586_v14, %v2785_v57  ;;  %v395_v17 = vpop.f32.mrb[29].mxu0  ;;  %v588_v18 = vpop.f32.mrb[29].mxu1 }
 0x12f   :  { %v396_v19 = vadd.f32 %v395_v17, %v2787_v58  ;;  %v589_v20 = vadd.f32 %v588_v18, %v2789_v59  ;;  %v397_v21 = vpop.f32.mrb[30].mxu0  ;;  %v590_v22 = vpop.f32.mrb[30].mxu1  ;;  %1210 = vmatprep.mubr.bf16.mxu0 %v828_v11  ;;  %1371 = vmatprep.mubr.bf16.mxu1 %v830_v12 }
 0x130   :  { %v733_v23 = vmax.f32 %v587_v16, 0.0  ;;  %v398_v24 = vadd.f32 %v397_v21, %v2783_v56  ;;  %v591_v25 = vadd.f32 %v590_v22, %v2785_v57  ;;  %v399_v26 = vpop.f32.mrb[31].mxu0  ;;  %v592_v27 = vpop.f32.mrb[31].mxu1  ;;  %1211 = vmatmul.mubr.bf16.gmra.mrb[88].mxu0 %v827_v9  ;;  %1372 = vmatmul.mubr.bf16.gmra.mrb[88].mxu1 %v829_v10  ;;  %v731_v31 = vmax.f32 %v394_v15, 0.0 }
 0x131   :  { %v734_v28 = vmax.f32 %v589_v20, 0.0  ;;  %v400_v29 = vadd.f32 %v399_v26, %v2787_v58  ;;  %v593_v30 = vadd.f32 %v592_v27, %v2789_v59  ;;  %v732_v34 = vmax.f32 %v396_v19, 0.0 }
 0x132   :  { %v735_v32 = vmax.f32 %v398_v24, 0.0  ;;  %v737_v33 = vmax.f32 %v591_v25, 0.0 }
 0x133   :  { %v736_v35 = vmax.f32 %v400_v29, 0.0  ;;  %v738_v36 = vmax.f32 %v593_v30, 0.0 }
 0x134   :  { %v831_v37 = vpack.c.bf16 %v735_v32, %v731_v31  ;;  %v833_v38 = vpack.c.bf16 %v737_v33, %v733_v23 }
 0x135   :  { %v832_v39 = vpack.c.bf16 %v736_v35, %v732_v34  ;;  %v834_v40 = vpack.c.bf16 %v738_v36, %v734_v28  ;;  %v403_v41 = vpop.f32.mrb[32].mxu0  ;;  %v596_v42 = vpop.f32.mrb[32].mxu1 }
 0x136   :  { %v404_v43 = vadd.f32 %v403_v41, %v2783_v56  ;;  %v597_v44 = vadd.f32 %v596_v42, %v2785_v57  ;;  %v405_v45 = vpop.f32.mrb[33].mxu0  ;;  %v598_v46 = vpop.f32.mrb[33].mxu1 }
 0x137   :  { %v406_v47 = vadd.f32 %v405_v45, %v2787_v58  ;;  %v599_v48 = vadd.f32 %v598_v46, %v2789_v59  ;;  %v407_v49 = vpop.f32.mrb[34].mxu0  ;;  %v600_v50 = vpop.f32.mrb[34].mxu1  ;;  %1218 = vmatprep.mubr.bf16.mxu0 %v832_v39  ;;  %1379 = vmatprep.mubr.bf16.mxu1 %v834_v40 }
 0x138   :  { %v741_v51 = vmax.f32 %v597_v44, 0.0  ;;  %v408_v52 = vadd.f32 %v407_v49, %v2783_v56  ;;  %v601_v53 = vadd.f32 %v600_v50, %v2785_v57  ;;  %v409_v54 = vpop.f32.mrb[35].mxu0  ;;  %v602_v1 = vpop.f32.mrb[35].mxu1  ;;  %1219 = vmatmul.mubr.bf16.gmra.mrb[92].mxu0 %v831_v37  ;;  %1380 = vmatmul.mubr.bf16.gmra.mrb[92].mxu1 %v833_v38  ;;  %v739_v62 = vmax.f32 %v404_v43, 0.0 }
 0x139   :  { %v742_v55 = vmax.f32 %v599_v48, 0.0  ;;  %v410_v60 = vadd.f32 %v409_v54, %v2787_v58  ;;  %v603_v61 = vadd.f32 %v602_v1, %v2789_v59  ;;  %v740_v2 = vmax.f32 %v406_v47, 0.0 }
 0x13a   :  { %v743_v63 = vmax.f32 %v408_v52, 0.0  ;;  %v745_v0 = vmax.f32 %v601_v53, 0.0 }
 0x13b   :  { %v744_v3 = vmax.f32 %v410_v60, 0.0  ;;  %v746_v4 = vmax.f32 %v603_v61, 0.0 }
 0x13c   :  { %v835_v5 = vpack.c.bf16 %v743_v63, %v739_v62  ;;  %v837_v6 = vpack.c.bf16 %v745_v0, %v741_v51 }
 0x13d   :  { %v836_v7 = vpack.c.bf16 %v744_v3, %v740_v2  ;;  %v838_v8 = vpack.c.bf16 %v746_v4, %v742_v55  ;;  %v413_v9 = vpop.f32.mrb[36].mxu0  ;;  %v606_v10 = vpop.f32.mrb[36].mxu1 }
 0x13e   :  { %v414_v11 = vadd.f32 %v413_v9, %v2783_v56  ;;  %v607_v12 = vadd.f32 %v606_v10, %v2785_v57  ;;  %v415_v13 = vpop.f32.mrb[37].mxu0  ;;  %v608_v14 = vpop.f32.mrb[37].mxu1 }
 0x13f   :  { %v416_v15 = vadd.f32 %v415_v13, %v2787_v58  ;;  %v609_v16 = vadd.f32 %v608_v14, %v2789_v59  ;;  %v417_v17 = vpop.f32.mrb[38].mxu0  ;;  %v610_v18 = vpop.f32.mrb[38].mxu1  ;;  %1226 = vmatprep.mubr.bf16.mxu0 %v836_v7  ;;  %1387 = vmatprep.mubr.bf16.mxu1 %v838_v8 }
 0x140   :  { %v749_v19 = vmax.f32 %v607_v12, 0.0  ;;  %v418_v20 = vadd.f32 %v417_v17, %v2783_v56  ;;  %v611_v21 = vadd.f32 %v610_v18, %v2785_v57  ;;  %v419_v22 = vpop.f32.mrb[39].mxu0  ;;  %v612_v23 = vpop.f32.mrb[39].mxu1  ;;  %1227 = vmatmul.mubr.bf16.gmra.mrb[96].mxu0 %v835_v5  ;;  %1388 = vmatmul.mubr.bf16.gmra.mrb[96].mxu1 %v837_v6  ;;  %v747_v27 = vmax.f32 %v414_v11, 0.0 }
 0x141   :  { %v750_v24 = vmax.f32 %v609_v16, 0.0  ;;  %v420_v25 = vadd.f32 %v419_v22, %v2787_v58  ;;  %v613_v26 = vadd.f32 %v612_v23, %v2789_v59  ;;  %v748_v30 = vmax.f32 %v416_v15, 0.0 }
 0x142   :  { %v751_v28 = vmax.f32 %v418_v20, 0.0  ;;  %v753_v29 = vmax.f32 %v611_v21, 0.0 }
 0x143   :  { %v752_v31 = vmax.f32 %v420_v25, 0.0  ;;  %v754_v32 = vmax.f32 %v613_v26, 0.0 }
 0x144   :  { %v839_v33 = vpack.c.bf16 %v751_v28, %v747_v27  ;;  %v841_v34 = vpack.c.bf16 %v753_v29, %v749_v19 }
 0x145   :  { %v840_v35 = vpack.c.bf16 %v752_v31, %v748_v30  ;;  %v842_v36 = vpack.c.bf16 %v754_v32, %v750_v24  ;;  %v423_v37 = vpop.f32.mrb[40].mxu0  ;;  %v616_v38 = vpop.f32.mrb[40].mxu1 }
 0x146   :  { %v424_v39 = vadd.f32 %v423_v37, %v2783_v56  ;;  %v617_v40 = vadd.f32 %v616_v38, %v2785_v57  ;;  %v425_v41 = vpop.f32.mrb[41].mxu0  ;;  %v618_v42 = vpop.f32.mrb[41].mxu1 }
 0x147   :  { %v426_v43 = vadd.f32 %v425_v41, %v2787_v58  ;;  %v619_v44 = vadd.f32 %v618_v42, %v2789_v59  ;;  %v427_v45 = vpop.f32.mrb[42].mxu0  ;;  %v620_v46 = vpop.f32.mrb[42].mxu1  ;;  %1234 = vmatprep.mubr.bf16.mxu0 %v840_v35  ;;  %1395 = vmatprep.mubr.bf16.mxu1 %v842_v36 }
 0x148   :  { %v757_v47 = vmax.f32 %v617_v40, 0.0  ;;  %v428_v48 = vadd.f32 %v427_v45, %v2783_v56  ;;  %v621_v49 = vadd.f32 %v620_v46, %v2785_v57  ;;  %v429_v50 = vpop.f32.mrb[43].mxu0  ;;  %v622_v51 = vpop.f32.mrb[43].mxu1  ;;  %1235 = vmatmul.mubr.bf16.gmra.mrb[100].mxu0 %v839_v33  ;;  %1396 = vmatmul.mubr.bf16.gmra.mrb[100].mxu1 %v841_v34  ;;  %v755_v1 = vmax.f32 %v424_v39, 0.0 }
 0x149   :  { %v758_v52 = vmax.f32 %v619_v44, 0.0  ;;  %v430_v53 = vadd.f32 %v429_v50, %v2787_v58  ;;  %v623_v54 = vadd.f32 %v622_v51, %v2789_v59  ;;  %v756_v61 = vmax.f32 %v426_v43, 0.0 }
 0x14a   :  { %v759_v55 = vmax.f32 %v428_v48, 0.0  ;;  %v761_v60 = vmax.f32 %v621_v49, 0.0 }
 0x14b   :  { %v760_v62 = vmax.f32 %v430_v53, 0.0  ;;  %v762_v63 = vmax.f32 %v623_v54, 0.0 }
 0x14c   :  { %v843_v0 = vpack.c.bf16 %v759_v55, %v755_v1  ;;  %v845_v2 = vpack.c.bf16 %v761_v60, %v757_v47 }
 0x14d   :  { %v844_v3 = vpack.c.bf16 %v760_v62, %v756_v61  ;;  %v846_v4 = vpack.c.bf16 %v762_v63, %v758_v52  ;;  %v433_v5 = vpop.f32.mrb[44].mxu0  ;;  %v626_v6 = vpop.f32.mrb[44].mxu1 }
 0x14e   :  { %v434_v7 = vadd.f32 %v433_v5, %v2783_v56  ;;  %v627_v8 = vadd.f32 %v626_v6, %v2785_v57  ;;  %v435_v9 = vpop.f32.mrb[45].mxu0  ;;  %v628_v10 = vpop.f32.mrb[45].mxu1 }
 0x14f   :  { %v436_v11 = vadd.f32 %v435_v9, %v2787_v58  ;;  %v629_v12 = vadd.f32 %v628_v10, %v2789_v59  ;;  %v437_v13 = vpop.f32.mrb[46].mxu0  ;;  %v630_v14 = vpop.f32.mrb[46].mxu1  ;;  %1242 = vmatprep.mubr.bf16.mxu0 %v844_v3  ;;  %1403 = vmatprep.mubr.bf16.mxu1 %v846_v4 }
 0x150   :  { %v765_v15 = vmax.f32 %v627_v8, 0.0  ;;  %v438_v16 = vadd.f32 %v437_v13, %v2783_v56  ;;  %v631_v17 = vadd.f32 %v630_v14, %v2785_v57  ;;  %v439_v18 = vpop.f32.mrb[47].mxu0  ;;  %v632_v19 = vpop.f32.mrb[47].mxu1  ;;  %1243 = vmatmul.mubr.bf16.gmra.mrb[104].mxu0 %v843_v0  ;;  %1404 = vmatmul.mubr.bf16.gmra.mrb[104].mxu1 %v845_v2  ;;  %v763_v23 = vmax.f32 %v434_v7, 0.0 }
 0x151   :  { %v766_v20 = vmax.f32 %v629_v12, 0.0  ;;  %v440_v21 = vadd.f32 %v439_v18, %v2787_v58  ;;  %v633_v22 = vadd.f32 %v632_v19, %v2789_v59  ;;  %v764_v26 = vmax.f32 %v436_v11, 0.0 }
 0x152   :  { %v767_v24 = vmax.f32 %v438_v16, 0.0  ;;  %v769_v25 = vmax.f32 %v631_v17, 0.0 }
 0x153   :  { %v768_v27 = vmax.f32 %v440_v21, 0.0  ;;  %v770_v28 = vmax.f32 %v633_v22, 0.0 }
 0x154   :  { %v847_v29 = vpack.c.bf16 %v767_v24, %v763_v23  ;;  %v849_v30 = vpack.c.bf16 %v769_v25, %v765_v15 }
 0x155   :  { %v848_v31 = vpack.c.bf16 %v768_v27, %v764_v26  ;;  %v850_v32 = vpack.c.bf16 %v770_v28, %v766_v20  ;;  %v443_v33 = vpop.f32.mrb[48].mxu0  ;;  %v636_v34 = vpop.f32.mrb[48].mxu1 }
 0x156   :  { %v444_v35 = vadd.f32 %v443_v33, %v2783_v56  ;;  %v637_v36 = vadd.f32 %v636_v34, %v2785_v57  ;;  %v445_v37 = vpop.f32.mrb[49].mxu0  ;;  %v638_v38 = vpop.f32.mrb[49].mxu1 }
 0x157   :  { %v446_v39 = vadd.f32 %v445_v37, %v2787_v58  ;;  %v639_v40 = vadd.f32 %v638_v38, %v2789_v59  ;;  %v447_v41 = vpop.f32.mrb[50].mxu0  ;;  %v640_v42 = vpop.f32.mrb[50].mxu1  ;;  %1250 = vmatprep.mubr.bf16.mxu0 %v848_v31  ;;  %1411 = vmatprep.mubr.bf16.mxu1 %v850_v32 }
 0x158   :  { %v773_v43 = vmax.f32 %v637_v36, 0.0  ;;  %v448_v44 = vadd.f32 %v447_v41, %v2783_v56  ;;  %v641_v45 = vadd.f32 %v640_v42, %v2785_v57  ;;  %v449_v46 = vpop.f32.mrb[51].mxu0  ;;  %v642_v47 = vpop.f32.mrb[51].mxu1  ;;  %1251 = vmatmul.mubr.bf16.gmra.mrb[108].mxu0 %v847_v29  ;;  %1412 = vmatmul.mubr.bf16.gmra.mrb[108].mxu1 %v849_v30  ;;  %v771_v51 = vmax.f32 %v444_v35, 0.0 }
 0x159   :  { %v774_v48 = vmax.f32 %v639_v40, 0.0  ;;  %v450_v49 = vadd.f32 %v449_v46, %v2787_v58  ;;  %v643_v50 = vadd.f32 %v642_v47, %v2789_v59  ;;  %v772_v54 = vmax.f32 %v446_v39, 0.0 }
 0x15a   :  { %v775_v52 = vmax.f32 %v448_v44, 0.0  ;;  %v777_v53 = vmax.f32 %v641_v45, 0.0 }
 0x15b   :  { %v776_v1 = vmax.f32 %v450_v49, 0.0  ;;  %v778_v55 = vmax.f32 %v643_v50, 0.0 }
 0x15c   :  { %v851_v60 = vpack.c.bf16 %v775_v52, %v771_v51  ;;  %v853_v61 = vpack.c.bf16 %v777_v53, %v773_v43 }
 0x15d   :  { %v852_v62 = vpack.c.bf16 %v776_v1, %v772_v54  ;;  %v854_v63 = vpack.c.bf16 %v778_v55, %v774_v48  ;;  %v453_v0 = vpop.f32.mrb[52].mxu0  ;;  %v646_v2 = vpop.f32.mrb[52].mxu1 }
 0x15e   :  { %v454_v3 = vadd.f32 %v453_v0, %v2783_v56  ;;  %v647_v4 = vadd.f32 %v646_v2, %v2785_v57  ;;  %v455_v5 = vpop.f32.mrb[53].mxu0  ;;  %v648_v6 = vpop.f32.mrb[53].mxu1 }
 0x15f   :  { %v456_v7 = vadd.f32 %v455_v5, %v2787_v58  ;;  %v649_v8 = vadd.f32 %v648_v6, %v2789_v59  ;;  %v457_v9 = vpop.f32.mrb[54].mxu0  ;;  %v650_v10 = vpop.f32.mrb[54].mxu1  ;;  %1258 = vmatprep.mubr.bf16.mxu0 %v852_v62  ;;  %1419 = vmatprep.mubr.bf16.mxu1 %v854_v63 }
 0x160   :  { %v781_v11 = vmax.f32 %v647_v4, 0.0  ;;  %v458_v12 = vadd.f32 %v457_v9, %v2783_v56  ;;  %v651_v13 = vadd.f32 %v650_v10, %v2785_v57  ;;  %v459_v14 = vpop.f32.mrb[55].mxu0  ;;  %v652_v15 = vpop.f32.mrb[55].mxu1  ;;  %1259 = vmatmul.mubr.bf16.gmra.mrb[112].mxu0 %v851_v60  ;;  %1420 = vmatmul.mubr.bf16.gmra.mrb[112].mxu1 %v853_v61  ;;  %v779_v19 = vmax.f32 %v454_v3, 0.0 }
 0x161   :  { %v782_v16 = vmax.f32 %v649_v8, 0.0  ;;  %v460_v17 = vadd.f32 %v459_v14, %v2787_v58  ;;  %v653_v18 = vadd.f32 %v652_v15, %v2789_v59  ;;  %v780_v22 = vmax.f32 %v456_v7, 0.0 }
 0x162   :  { %v783_v20 = vmax.f32 %v458_v12, 0.0  ;;  %v785_v21 = vmax.f32 %v651_v13, 0.0 }
 0x163   :  { %v784_v23 = vmax.f32 %v460_v17, 0.0  ;;  %v786_v24 = vmax.f32 %v653_v18, 0.0 }
 0x164   :  { %v855_v25 = vpack.c.bf16 %v783_v20, %v779_v19  ;;  %v857_v26 = vpack.c.bf16 %v785_v21, %v781_v11 }
 0x165   :  { %v856_v27 = vpack.c.bf16 %v784_v23, %v780_v22  ;;  %v858_v28 = vpack.c.bf16 %v786_v24, %v782_v16  ;;  %v463_v29 = vpop.f32.mrb[56].mxu0  ;;  %v656_v30 = vpop.f32.mrb[56].mxu1 }
 0x166   :  { %v464_v31 = vadd.f32 %v463_v29, %v2783_v56  ;;  %v657_v32 = vadd.f32 %v656_v30, %v2785_v57  ;;  %v465_v33 = vpop.f32.mrb[57].mxu0  ;;  %v658_v34 = vpop.f32.mrb[57].mxu1 }
 0x167   :  { %v466_v35 = vadd.f32 %v465_v33, %v2787_v58  ;;  %v659_v36 = vadd.f32 %v658_v34, %v2789_v59  ;;  %v467_v37 = vpop.f32.mrb[58].mxu0  ;;  %v660_v38 = vpop.f32.mrb[58].mxu1  ;;  %1266 = vmatprep.mubr.bf16.mxu0 %v856_v27  ;;  %1427 = vmatprep.mubr.bf16.mxu1 %v858_v28 }
 0x168   :  { %v789_v39 = vmax.f32 %v657_v32, 0.0  ;;  %v468_v40 = vadd.f32 %v467_v37, %v2783_v56  ;;  %v661_v41 = vadd.f32 %v660_v38, %v2785_v57  ;;  %v469_v42 = vpop.f32.mrb[59].mxu0  ;;  %v662_v43 = vpop.f32.mrb[59].mxu1  ;;  %1267 = vmatmul.mubr.bf16.gmra.mrb[116].mxu0 %v855_v25  ;;  %1428 = vmatmul.mubr.bf16.gmra.mrb[116].mxu1 %v857_v26  ;;  %v787_v47 = vmax.f32 %v464_v31, 0.0 }
 0x169   :  { %v790_v44 = vmax.f32 %v659_v36, 0.0  ;;  %v470_v45 = vadd.f32 %v469_v42, %v2787_v58  ;;  %v663_v46 = vadd.f32 %v662_v43, %v2789_v59  ;;  %v788_v50 = vmax.f32 %v466_v35, 0.0 }
 0x16a   :  { %v791_v48 = vmax.f32 %v468_v40, 0.0  ;;  %v793_v49 = vmax.f32 %v661_v41, 0.0  ;;  %v2387_v40 = vld [vmem:[%s3511_s0] sm:$0xff] }
 0x16b   :  { %v792_v51 = vmax.f32 %v470_v45, 0.0  ;;  %v794_v52 = vmax.f32 %v663_v46, 0.0 }
 0x16c   :  { %v859_v53 = vpack.c.bf16 %v791_v48, %v787_v47  ;;  %v861_v54 = vpack.c.bf16 %v793_v49, %v789_v39 }
 0x16d   :  { %v860_v1 = vpack.c.bf16 %v792_v51, %v788_v50  ;;  %v862_v55 = vpack.c.bf16 %v794_v52, %v790_v44  ;;  %v473_v60 = vpop.f32.mrb[60].mxu0  ;;  %v666_v61 = vpop.f32.mrb[60].mxu1 }
 0x16e   :  { %v474_v62 = vadd.f32 %v473_v60, %v2783_v56  ;;  %v667_v63 = vadd.f32 %v666_v61, %v2785_v57  ;;  %v475_v0 = vpop.f32.mrb[61].mxu0  ;;  %v668_v2 = vpop.f32.mrb[61].mxu1 }
 0x16f   :  { %v476_v3 = vadd.f32 %v475_v0, %v2787_v58  ;;  %v669_v4 = vadd.f32 %v668_v2, %v2789_v59  ;;  %v477_v5 = vpop.f32.mrb[62].mxu0  ;;  %v670_v6 = vpop.f32.mrb[62].mxu1  ;;  %1274 = vmatprep.mubr.bf16.mxu0 %v860_v1  ;;  %1435 = vmatprep.mubr.bf16.mxu1 %v862_v55 }
 0x170   :  { %v797_v7 = vmax.f32 %v667_v63, 0.0  ;;  %v478_v8 = vadd.f32 %v477_v5, %v2783_v56  ;;  %v671_v9 = vadd.f32 %v670_v6, %v2785_v57  ;;  %v479_v10 = vpop.f32.mrb[63].mxu0  ;;  %v672_v11 = vpop.f32.mrb[63].mxu1  ;;  %1275 = vmatmul.mubr.bf16.gmra.mrb[120].mxu0 %v859_v53  ;;  %1436 = vmatmul.mubr.bf16.gmra.mrb[120].mxu1 %v861_v54  ;;  %v795_v15 = vmax.f32 %v474_v62, 0.0  ;;  %v2388_v53 = vld [vmem:[%s3511_s0 + $0x8] sm:$0xff]  ;;  %v2389_v63 = vld [vmem:[%s3511_s0 + $0x10] sm:$0xff] }
 0x171   :  { %v798_v12 = vmax.f32 %v669_v4, 0.0  ;;  %v480_v13 = vadd.f32 %v479_v10, %v2787_v58  ;;  %v673_v14 = vadd.f32 %v672_v11, %v2789_v59  ;;  %v796_v18 = vmax.f32 %v476_v3, 0.0  ;;  %v2922_v58 = vld [vmem:[%s3514_s4] ss:$0 sm:$0xff] }
 0x172   :  { %v799_v16 = vmax.f32 %v478_v8, 0.0  ;;  %v801_v17 = vmax.f32 %v671_v9, 0.0 }
 0x173   :  { %v800_v19 = vmax.f32 %v480_v13, 0.0  ;;  %v802_v20 = vmax.f32 %v673_v14, 0.0  ;;  %v2390_v13 = vld [vmem:[%s3511_s0 + $0x18] sm:$0xff] }
 0x174   :  { %v863_v21 = vpack.c.bf16 %v799_v16, %v795_v15  ;;  %v865_v22 = vpack.c.bf16 %v801_v17, %v797_v7 }
 0x175   :  { %v864_v56 = vpack.c.bf16 %v800_v19, %v796_v18  ;;  %v866_v23 = vpack.c.bf16 %v802_v20, %v798_v12  ;;  %v2391_v20 = vld [vmem:[%s3511_s0 + $0x20] sm:$0xff] }
 0x177   :  { %1282 = vmatprep.mubr.bf16.mxu0 %v864_v56  ;;  %1443 = vmatprep.mubr.bf16.mxu1 %v866_v23 }
 0x178   :  { %1283 = vmatmul.mubr.bf16.gmra.mrb[124].mxu0 %v863_v21  ;;  %1444 = vmatmul.mubr.bf16.gmra.mrb[124].mxu1 %v865_v22 }
 0x1d3   :  { %v2034_v57 = vpop.f32.mrb[64].mxu0  ;;  %v2146_v24 = vpop.f32.mrb[64].mxu1 }
 0x1d4   :  { %v2035_v59 = vpop.f32.mrb[65].mxu0  ;;  %v2147_v25 = vpop.f32.mrb[65].mxu1 }
 0x1d5   :  { %v2036_v26 = vadd.f32 %v2035_v59, %v2034_v57  ;;  %v2148_v27 = vadd.f32 %v2147_v25, %v2146_v24  ;;  %v2037_v28 = vpop.f32.mrb[66].mxu0  ;;  %v2149_v29 = vpop.f32.mrb[66].mxu1  ;;  %v2392_v25 = vld [vmem:[%s3511_s0 + $0x28] sm:$0xff] }
 0x1d6   :  { %v2038_v30 = vpop.f32.mrb[67].mxu0  ;;  %v2150_v31 = vpop.f32.mrb[67].mxu1 }
 0x1d7   :  { %v1165_v32 = vadd.f32 %v2036_v26, %v2922_v58  ;;  %v2039_v33 = vadd.f32 %v2038_v30, %v2037_v28  ;;  %v2151_v34 = vadd.f32 %v2150_v31, %v2149_v29 }
 0x1d9   :  { %v1326_v35 = vadd.f32 %v2148_v27, %v1165_v32  ;;  %v1168_v36 = vadd.f32 %v2039_v33, %v2922_v58 }
 0x1db   :  { %v1329_v37 = vadd.f32 %v2151_v34, %v1168_v36  ;;  %v2040_v38 = vpop.f32.mrb[68].mxu0  ;;  %v2152_v39 = vpop.f32.mrb[68].mxu1  ;;  %v2929_v41 = vadd.f32 %v2387_v40, %v1326_v35 }
 0x1dc   :  { %v2041_v42 = vpop.f32.mrb[69].mxu0  ;;  %v2153_v43 = vpop.f32.mrb[69].mxu1 }
 0x1dd   :  { %v2042_v44 = vadd.f32 %v2041_v42, %v2040_v38  ;;  %v2154_v45 = vadd.f32 %v2153_v43, %v2152_v39  ;;  %v2043_v46 = vpop.f32.mrb[70].mxu0  ;;  %v2155_v47 = vpop.f32.mrb[70].mxu1  ;;  %1484 = vadd.xlane.f32.xlu0 %v2929_v41  ;;  %v2936_v54 = vadd.f32 %v2388_v53, %v1329_v37  ;;  %v2393_v37 = vld [vmem:[%s3511_s0 + $0x30] sm:$0xff] }
 0x1de   :  { %v2044_v48 = vpop.f32.mrb[71].mxu0  ;;  %v2156_v49 = vpop.f32.mrb[71].mxu1 }
 0x1df   :  { %v1173_v50 = vadd.f32 %v2042_v44, %v2922_v58  ;;  %v2045_v51 = vadd.f32 %v2044_v48, %v2043_v46  ;;  %v2157_v52 = vadd.f32 %v2156_v49, %v2155_v47  ;;  %v2394_v46 = vld [vmem:[%s3511_s0 + $0x38] sm:$0xff] }
 0x1e1   :  { %v1334_v1 = vadd.f32 %v2154_v45, %v1173_v50  ;;  %v1176_v55 = vadd.f32 %v2045_v51, %v2922_v58  ;;  %1486 = vadd.xlane.f32.xlu0 %v2936_v54 }
 0x1e3   :  { %v1337_v60 = vadd.f32 %v2157_v52, %v1176_v55  ;;  %v2046_v61 = vpop.f32.mrb[72].mxu0  ;;  %v2158_v62 = vpop.f32.mrb[72].mxu1  ;;  %v2943_v0 = vadd.f32 %v2389_v63, %v1334_v1 }
 0x1e4   :  { %v2047_v2 = vpop.f32.mrb[73].mxu0  ;;  %v2159_v3 = vpop.f32.mrb[73].mxu1 }
 0x1e5   :  { %v2048_v4 = vadd.f32 %v2047_v2, %v2046_v61  ;;  %v2160_v5 = vadd.f32 %v2159_v3, %v2158_v62  ;;  %v2049_v6 = vpop.f32.mrb[74].mxu0  ;;  %v2161_v7 = vpop.f32.mrb[74].mxu1  ;;  %1488 = vadd.xlane.f32.xlu1 %v2943_v0  ;;  %v2950_v14 = vadd.f32 %v2390_v13, %v1337_v60  ;;  %v2395_v62 = vld [vmem:[%s3511_s0 + $0x40] sm:$0xff] }
 0x1e6   :  { %v2050_v8 = vpop.f32.mrb[75].mxu0  ;;  %v2162_v9 = vpop.f32.mrb[75].mxu1 }
 0x1e7   :  { %v1181_v10 = vadd.f32 %v2048_v4, %v2922_v58  ;;  %v2051_v11 = vadd.f32 %v2050_v8, %v2049_v6  ;;  %v2163_v12 = vadd.f32 %v2162_v9, %v2161_v7  ;;  %v2396_v8 = vld [vmem:[%s3511_s0 + $0x48] sm:$0xff] }
 0x1e9   :  { %v1342_v15 = vadd.f32 %v2160_v5, %v1181_v10  ;;  %v1184_v16 = vadd.f32 %v2051_v11, %v2922_v58  ;;  %1490 = vadd.xlane.f32.xlu1 %v2950_v14 }
 0x1eb   :  { %v1345_v17 = vadd.f32 %v2163_v12, %v1184_v16  ;;  %v2052_v18 = vpop.f32.mrb[76].mxu0  ;;  %v2164_v19 = vpop.f32.mrb[76].mxu1  ;;  %v2957_v21 = vadd.f32 %v2391_v20, %v1342_v15 }
 0x1ec   :  { %v2053_v22 = vpop.f32.mrb[77].mxu0  ;;  %v2165_v56 = vpop.f32.mrb[77].mxu1 }
 0x1ed   :  { %v2054_v23 = vadd.f32 %v2053_v22, %v2052_v18  ;;  %v2166_v57 = vadd.f32 %v2165_v56, %v2164_v19  ;;  %v2055_v24 = vpop.f32.mrb[78].mxu0  ;;  %v2167_v59 = vpop.f32.mrb[78].mxu1  ;;  %1492 = vadd.xlane.f32.xlu0 %v2957_v21  ;;  %v2963_v26 = vadd.f32 %v2392_v25, %v1345_v17  ;;  %v2397_v22 = vld [vmem:[%s3511_s0 + $0x50] sm:$0xff] }
 0x1ee   :  { %v2056_v27 = vpop.f32.mrb[79].mxu0  ;;  %v2168_v28 = vpop.f32.mrb[79].mxu1 }
 0x1ef   :  { %v1189_v29 = vadd.f32 %v2054_v23, %v2922_v58  ;;  %v2057_v30 = vadd.f32 %v2056_v27, %v2055_v24  ;;  %v2169_v31 = vadd.f32 %v2168_v28, %v2167_v59  ;;  %1494 = vadd.xlane.f32.xlu1 %v2963_v26  ;;  %v2398_v28 = vld [vmem:[%s3511_s0 + $0x58] sm:$0xff] }
 0x1f1   :  { %v1350_v32 = vadd.f32 %v2166_v57, %v1189_v29  ;;  %v1192_v33 = vadd.f32 %v2057_v30, %v2922_v58 }
 0x1f3   :  { %v1353_v34 = vadd.f32 %v2169_v31, %v1192_v33  ;;  %v2058_v35 = vpop.f32.mrb[80].mxu0  ;;  %v2170_v36 = vpop.f32.mrb[80].mxu1  ;;  %v2971_v38 = vadd.f32 %v2393_v37, %v1350_v32 }
 0x1f4   :  { %v2059_v39 = vpop.f32.mrb[81].mxu0  ;;  %v2171_v40 = vpop.f32.mrb[81].mxu1 }
 0x1f5   :  { %v2060_v42 = vadd.f32 %v2059_v39, %v2058_v35  ;;  %v2172_v43 = vadd.f32 %v2171_v40, %v2170_v36  ;;  %v2061_v44 = vpop.f32.mrb[82].mxu0  ;;  %v2173_v45 = vpop.f32.mrb[82].mxu1  ;;  %1496 = vadd.xlane.f32.xlu0 %v2971_v38  ;;  %v2977_v47 = vadd.f32 %v2394_v46, %v1353_v34 }
 0x1f6   :  { %v2062_v48 = vpop.f32.mrb[83].mxu0  ;;  %v2174_v49 = vpop.f32.mrb[83].mxu1 }
 0x1f7   :  { %v1197_v50 = vadd.f32 %v2060_v42, %v2922_v58  ;;  %v2063_v51 = vadd.f32 %v2062_v48, %v2061_v44  ;;  %v2175_v52 = vadd.f32 %v2174_v49, %v2173_v45  ;;  %1498 = vadd.xlane.f32.xlu1 %v2977_v47  ;;  %v2399_v42 = vld [vmem:[%s3511_s0 + $0x60] sm:$0xff] }
 0x1f9   :  { %v1358_v53 = vadd.f32 %v2172_v43, %v1197_v50  ;;  %v1200_v1 = vadd.f32 %v2063_v51, %v2922_v58  ;;  %v2400_v51 = vld [vmem:[%s3511_s0 + $0x68] sm:$0xff] }
 0x1fb   :  { %v1361_v55 = vadd.f32 %v2175_v52, %v1200_v1  ;;  %v2064_v60 = vpop.f32.mrb[84].mxu0  ;;  %v2176_v61 = vpop.f32.mrb[84].mxu1  ;;  %v2985_v63 = vadd.f32 %v2395_v62, %v1358_v53 }
 0x1fc   :  { %v2065_v2 = vpop.f32.mrb[85].mxu0  ;;  %v2177_v3 = vpop.f32.mrb[85].mxu1 }
 0x1fd   :  { %v2066_v4 = vadd.f32 %v2065_v2, %v2064_v60  ;;  %v2178_v5 = vadd.f32 %v2177_v3, %v2176_v61  ;;  %v2067_v6 = vpop.f32.mrb[86].mxu0  ;;  %v2179_v7 = vpop.f32.mrb[86].mxu1  ;;  %1500 = vadd.xlane.f32.xlu0 %v2985_v63  ;;  %v2991_v9 = vadd.f32 %v2396_v8, %v1361_v55 }
 0x1fe   :  { %v2068_v10 = vpop.f32.mrb[87].mxu0  ;;  %v2180_v11 = vpop.f32.mrb[87].mxu1 }
 0x1ff   :  { %v1205_v12 = vadd.f32 %v2066_v4, %v2922_v58  ;;  %v2069_v13 = vadd.f32 %v2068_v10, %v2067_v6  ;;  %v2181_v15 = vadd.f32 %v2180_v11, %v2179_v7  ;;  %1502 = vadd.xlane.f32.xlu1 %v2991_v9  ;;  %v2401_v6 = vld [vmem:[%s3511_s0 + $0x70] sm:$0xff] }
 0x201   :  { %v1366_v16 = vadd.f32 %v2178_v5, %v1205_v12  ;;  %v1208_v17 = vadd.f32 %v2069_v13, %v2922_v58 }
 0x203   :  { %v1369_v18 = vadd.f32 %v2181_v15, %v1208_v17  ;;  %v2070_v19 = vpop.f32.mrb[88].mxu0  ;;  %v2182_v20 = vpop.f32.mrb[88].mxu1  ;;  %v2999_v56 = vadd.f32 %v2397_v22, %v1366_v16  ;;  %v2402_v16 = vld [vmem:[%s3511_s0 + $0x78] sm:$0xff] }
 0x204   :  { %v2071_v23 = vpop.f32.mrb[89].mxu0  ;;  %v2183_v57 = vpop.f32.mrb[89].mxu1 }
 0x205   :  { %v2072_v24 = vadd.f32 %v2071_v23, %v2070_v19  ;;  %v2184_v59 = vadd.f32 %v2183_v57, %v2182_v20  ;;  %v2073_v25 = vpop.f32.mrb[90].mxu0  ;;  %v2185_v27 = vpop.f32.mrb[90].mxu1  ;;  %1504 = vadd.xlane.f32.xlu0 %v2999_v56  ;;  %v3005_v29 = vadd.f32 %v2398_v28, %v1369_v18  ;;  %v2403_v28 = vld [vmem:[%s3511_s0 + $0x80] sm:$0xff] }
 0x206   :  { %v2074_v30 = vpop.f32.mrb[91].mxu0  ;;  %v2186_v31 = vpop.f32.mrb[91].mxu1 }
 0x207   :  { %v1213_v32 = vadd.f32 %v2072_v24, %v2922_v58  ;;  %v2075_v33 = vadd.f32 %v2074_v30, %v2073_v25  ;;  %v2187_v34 = vadd.f32 %v2186_v31, %v2185_v27  ;;  %1506 = vadd.xlane.f32.xlu1 %v3005_v29 }
 0x209   :  { %v1374_v35 = vadd.f32 %v2184_v59, %v1213_v32  ;;  %v1216_v36 = vadd.f32 %v2075_v33, %v2922_v58 }
 0x20b   :  { %v1377_v37 = vadd.f32 %v2187_v34, %v1216_v36  ;;  %v2076_v39 = vpop.f32.mrb[92].mxu0  ;;  %v2188_v40 = vpop.f32.mrb[92].mxu1  ;;  %v3013_v43 = vadd.f32 %v2399_v42, %v1374_v35 }
 0x20c   :  { %v2077_v44 = vpop.f32.mrb[93].mxu0  ;;  %v2189_v45 = vpop.f32.mrb[93].mxu1 }
 0x20d   :  { %v2078_v46 = vadd.f32 %v2077_v44, %v2076_v39  ;;  %v2190_v48 = vadd.f32 %v2189_v45, %v2188_v40  ;;  %v2079_v49 = vpop.f32.mrb[94].mxu0  ;;  %v2191_v50 = vpop.f32.mrb[94].mxu1  ;;  %1508 = vadd.xlane.f32.xlu0 %v3013_v43  ;;  %v3019_v52 = vadd.f32 %v2400_v51, %v1377_v37  ;;  %v2404_v37 = vld [vmem:[%s3511_s0 + $0x88] sm:$0xff] }
 0x20e   :  { %v2080_v53 = vpop.f32.mrb[95].mxu0  ;;  %v2192_v1 = vpop.f32.mrb[95].mxu1 }
 0x20f   :  { %v1221_v55 = vadd.f32 %v2078_v46, %v2922_v58  ;;  %v2081_v60 = vadd.f32 %v2080_v53, %v2079_v49  ;;  %v2193_v61 = vadd.f32 %v2192_v1, %v2191_v50  ;;  %1510 = vadd.xlane.f32.xlu1 %v3019_v52  ;;  %v2405_v1 = vld [vmem:[%s3511_s0 + $0x90] sm:$0xff] }
 0x211   :  { %v1382_v62 = vadd.f32 %v2190_v48, %v1221_v55  ;;  %v1224_v2 = vadd.f32 %v2081_v60, %v2922_v58 }
 0x213   :  { %v1385_v3 = vadd.f32 %v2193_v61, %v1224_v2  ;;  %v2082_v4 = vpop.f32.mrb[96].mxu0  ;;  %v2194_v5 = vpop.f32.mrb[96].mxu1  ;;  %v3027_v7 = vadd.f32 %v2401_v6, %v1382_v62 }
 0x214   :  { %v2083_v8 = vpop.f32.mrb[97].mxu0  ;;  %v2195_v10 = vpop.f32.mrb[97].mxu1 }
 0x215   :  { %v2084_v11 = vadd.f32 %v2083_v8, %v2082_v4  ;;  %v2196_v12 = vadd.f32 %v2195_v10, %v2194_v5  ;;  %v2085_v13 = vpop.f32.mrb[98].mxu0  ;;  %v2197_v15 = vpop.f32.mrb[98].mxu1  ;;  %1512 = vadd.xlane.f32.xlu0 %v3027_v7  ;;  %v3033_v17 = vadd.f32 %v2402_v16, %v1385_v3  ;;  %v2406_v5 = vld [vmem:[%s3511_s0 + $0x98] sm:$0xff] }
 0x216   :  { %v2086_v18 = vpop.f32.mrb[99].mxu0  ;;  %v2198_v19 = vpop.f32.mrb[99].mxu1 }
 0x217   :  { %v1229_v20 = vadd.f32 %v2084_v11, %v2922_v58  ;;  %v2087_v22 = vadd.f32 %v2086_v18, %v2085_v13  ;;  %v2199_v23 = vadd.f32 %v2198_v19, %v2197_v15  ;;  %1514 = vadd.xlane.f32.xlu1 %v3033_v17 }
 0x219   :  { %v1390_v57 = vadd.f32 %v2196_v12, %v1229_v20  ;;  %v1232_v24 = vadd.f32 %v2087_v22, %v2922_v58  ;;  %v2407_v22 = vld [vmem:[%s3511_s0 + $0xa0] sm:$0xff] }
 0x21b   :  { %v1393_v59 = vadd.f32 %v2199_v23, %v1232_v24  ;;  %v2088_v25 = vpop.f32.mrb[100].mxu0  ;;  %v2200_v27 = vpop.f32.mrb[100].mxu1  ;;  %v3041_v30 = vadd.f32 %v2403_v28, %v1390_v57 }
 0x21c   :  { %v2089_v31 = vpop.f32.mrb[101].mxu0  ;;  %v2201_v32 = vpop.f32.mrb[101].mxu1 }
 0x21d   :  { %v2090_v33 = vadd.f32 %v2089_v31, %v2088_v25  ;;  %v2202_v34 = vadd.f32 %v2201_v32, %v2200_v27  ;;  %v2091_v35 = vpop.f32.mrb[102].mxu0  ;;  %v2203_v36 = vpop.f32.mrb[102].mxu1  ;;  %1516 = vadd.xlane.f32.xlu0 %v3041_v30  ;;  %v3047_v39 = vadd.f32 %v2404_v37, %v1393_v59  ;;  %v2408_v31 = vld [vmem:[%s3511_s0 + $0xa8] sm:$0xff] }
 0x21e   :  { %v2092_v40 = vpop.f32.mrb[103].mxu0  ;;  %v2204_v42 = vpop.f32.mrb[103].mxu1 }
 0x21f   :  { %v1237_v44 = vadd.f32 %v2090_v33, %v2922_v58  ;;  %v2093_v45 = vadd.f32 %v2092_v40, %v2091_v35  ;;  %v2205_v46 = vadd.f32 %v2204_v42, %v2203_v36  ;;  %1518 = vadd.xlane.f32.xlu1 %v3047_v39 }
 0x221   :  { %v1398_v48 = vadd.f32 %v2202_v34, %v1237_v44  ;;  %v1240_v49 = vadd.f32 %v2093_v45, %v2922_v58 }
 0x223   :  { %v1401_v50 = vadd.f32 %v2205_v46, %v1240_v49  ;;  %v2094_v51 = vpop.f32.mrb[104].mxu0  ;;  %v2206_v53 = vpop.f32.mrb[104].mxu1  ;;  %v3055_v55 = vadd.f32 %v2405_v1, %v1398_v48  ;;  %v2409_v48 = vld [vmem:[%s3511_s0 + $0xb0] sm:$0xff] }
 0x224   :  { %v2095_v60 = vpop.f32.mrb[105].mxu0  ;;  %v2207_v61 = vpop.f32.mrb[105].mxu1 }
 0x225   :  { %v2096_v62 = vadd.f32 %v2095_v60, %v2094_v51  ;;  %v2208_v2 = vadd.f32 %v2207_v61, %v2206_v53  ;;  %v2097_v3 = vpop.f32.mrb[106].mxu0  ;;  %v2209_v4 = vpop.f32.mrb[106].mxu1  ;;  %1520 = vadd.xlane.f32.xlu0 %v3055_v55  ;;  %v3061_v6 = vadd.f32 %v2406_v5, %v1401_v50 }
 0x226   :  { %v2098_v8 = vpop.f32.mrb[107].mxu0  ;;  %v2210_v10 = vpop.f32.mrb[107].mxu1 }
 0x227   :  { %v1245_v11 = vadd.f32 %v2096_v62, %v2922_v58  ;;  %v2099_v12 = vadd.f32 %v2098_v8, %v2097_v3  ;;  %v2211_v13 = vadd.f32 %v2210_v10, %v2209_v4  ;;  %1522 = vadd.xlane.f32.xlu1 %v3061_v6  ;;  %v2410_v62 = vld [vmem:[%s3511_s0 + $0xb8] sm:$0xff] }
 0x229   :  { %v1406_v15 = vadd.f32 %v2208_v2, %v1245_v11  ;;  %v1248_v16 = vadd.f32 %v2099_v12, %v2922_v58 }
 0x22b   :  { %v1409_v18 = vadd.f32 %v2211_v13, %v1248_v16  ;;  %v2100_v19 = vpop.f32.mrb[108].mxu0  ;;  %v2212_v20 = vpop.f32.mrb[108].mxu1  ;;  %v3069_v23 = vadd.f32 %v2407_v22, %v1406_v15 }
 0x22c   :  { %v2101_v57 = vpop.f32.mrb[109].mxu0  ;;  %v2213_v24 = vpop.f32.mrb[109].mxu1 }
 0x22d   :  { %v2102_v59 = vadd.f32 %v2101_v57, %v2100_v19  ;;  %v2214_v25 = vadd.f32 %v2213_v24, %v2212_v20  ;;  %v2103_v27 = vpop.f32.mrb[110].mxu0  ;;  %v2215_v28 = vpop.f32.mrb[110].mxu1  ;;  %1524 = vadd.xlane.f32.xlu0 %v3069_v23  ;;  %v3075_v32 = vadd.f32 %v2408_v31, %v1409_v18  ;;  %v2411_v18 = vld [vmem:[%s3511_s0 + $0xc0] sm:$0xff] }
 0x22e   :  { %v2104_v33 = vpop.f32.mrb[111].mxu0  ;;  %v2216_v34 = vpop.f32.mrb[111].mxu1 }
 0x22f   :  { %v1253_v35 = vadd.f32 %v2102_v59, %v2922_v58  ;;  %v2105_v36 = vadd.f32 %v2104_v33, %v2103_v27  ;;  %v2217_v37 = vadd.f32 %v2216_v34, %v2215_v28  ;;  %1526 = vadd.xlane.f32.xlu1 %v3075_v32  ;;  %v2412_v27 = vld [vmem:[%s3511_s0 + $0xc8] sm:$0xff] }
 0x231   :  { %v1414_v40 = vadd.f32 %v2214_v25, %v1253_v35  ;;  %v1256_v42 = vadd.f32 %v2105_v36, %v2922_v58 }
 0x233   :  { %v1417_v44 = vadd.f32 %v2217_v37, %v1256_v42  ;;  %v2106_v45 = vpop.f32.mrb[112].mxu0  ;;  %v2218_v46 = vpop.f32.mrb[112].mxu1  ;;  %v3083_v49 = vadd.f32 %v2409_v48, %v1414_v40 }
 0x234   :  { %v2107_v50 = vpop.f32.mrb[113].mxu0  ;;  %v2219_v51 = vpop.f32.mrb[113].mxu1 }
 0x235   :  { %v2108_v53 = vadd.f32 %v2107_v50, %v2106_v45  ;;  %v2220_v1 = vadd.f32 %v2219_v51, %v2218_v46  ;;  %v2109_v60 = vpop.f32.mrb[114].mxu0  ;;  %v2221_v61 = vpop.f32.mrb[114].mxu1  ;;  %1528 = vadd.xlane.f32.xlu0 %v3083_v49  ;;  %v3089_v2 = vadd.f32 %v2410_v62, %v1417_v44  ;;  %v2413_v46 = vld [vmem:[%s3511_s0 + $0xd0] sm:$0xff]  ;;  %v2414_v62 = vld [vmem:[%s3511_s0 + $0xd8] sm:$0xff] }
 0x236   :  { %v2110_v3 = vpop.f32.mrb[115].mxu0  ;;  %v2222_v4 = vpop.f32.mrb[115].mxu1 }
 0x237   :  { %v1261_v5 = vadd.f32 %v2108_v53, %v2922_v58  ;;  %v2111_v8 = vadd.f32 %v2110_v3, %v2109_v60  ;;  %v2223_v10 = vadd.f32 %v2222_v4, %v2221_v61  ;;  %1530 = vadd.xlane.f32.xlu1 %v3089_v2 }
 0x239   :  { %v1422_v11 = vadd.f32 %v2220_v1, %v1261_v5  ;;  %v1264_v12 = vadd.f32 %v2111_v8, %v2922_v58 }
 0x23b   :  { %v1425_v13 = vadd.f32 %v2223_v10, %v1264_v12  ;;  %v2112_v15 = vpop.f32.mrb[116].mxu0  ;;  %v2224_v16 = vpop.f32.mrb[116].mxu1  ;;  %v3097_v19 = vadd.f32 %v2411_v18, %v1422_v11 }
 0x23c   :  { %v2113_v20 = vpop.f32.mrb[117].mxu0  ;;  %v2225_v22 = vpop.f32.mrb[117].mxu1 }
 0x23d   :  { %v2114_v57 = vadd.f32 %v2113_v20, %v2112_v15  ;;  %v2226_v24 = vadd.f32 %v2225_v22, %v2224_v16  ;;  %v2115_v59 = vpop.f32.mrb[118].mxu0  ;;  %v2227_v25 = vpop.f32.mrb[118].mxu1  ;;  %1532 = vadd.xlane.f32.xlu0 %v3097_v19  ;;  %v3103_v28 = vadd.f32 %v2412_v27, %v1425_v13  ;;  %v2415_v20 = vld [vmem:[%s3511_s0 + $0xe0] sm:$0xff] }
 0x23e   :  { %v2116_v31 = vpop.f32.mrb[119].mxu0  ;;  %v2228_v33 = vpop.f32.mrb[119].mxu1 }
 0x23f   :  { %v1269_v34 = vadd.f32 %v2114_v57, %v2922_v58  ;;  %v2117_v35 = vadd.f32 %v2116_v31, %v2115_v59  ;;  %v2229_v36 = vadd.f32 %v2228_v33, %v2227_v25  ;;  %1534 = vadd.xlane.f32.xlu1 %v3103_v28  ;;  %v2416_v33 = vld [vmem:[%s3511_s0 + $0xe8] sm:$0xff] }
 0x241   :  { %v1430_v37 = vadd.f32 %v2226_v24, %v1269_v34  ;;  %v1272_v40 = vadd.f32 %v2117_v35, %v2922_v58 }
 0x243   :  { %v1433_v42 = vadd.f32 %v2229_v36, %v1272_v40  ;;  %v2118_v44 = vpop.f32.mrb[120].mxu0  ;;  %v2230_v45 = vpop.f32.mrb[120].mxu1  ;;  %v3111_v48 = vadd.f32 %v2413_v46, %v1430_v37 }
 0x244   :  { %v2119_v50 = vpop.f32.mrb[121].mxu0  ;;  %v2231_v51 = vpop.f32.mrb[121].mxu1 }
 0x245   :  { %v2120_v53 = vadd.f32 %v2119_v50, %v2118_v44  ;;  %v2232_v1 = vadd.f32 %v2231_v51, %v2230_v45  ;;  %v2121_v60 = vpop.f32.mrb[122].mxu0  ;;  %v2233_v61 = vpop.f32.mrb[122].mxu1  ;;  %1536 = vadd.xlane.f32.xlu0 %v3111_v48  ;;  %v3117_v3 = vadd.f32 %v2414_v62, %v1433_v42  ;;  %v2417_v50 = vld [vmem:[%s3511_s0 + $0xf0] sm:$0xff] }
 0x246   :  { %v2122_v4 = vpop.f32.mrb[123].mxu0  ;;  %v2234_v5 = vpop.f32.mrb[123].mxu1 }
 0x247   :  { %v1277_v8 = vadd.f32 %v2120_v53, %v2922_v58  ;;  %v2123_v10 = vadd.f32 %v2122_v4, %v2121_v60  ;;  %v2235_v11 = vadd.f32 %v2234_v5, %v2233_v61  ;;  %1538 = vadd.xlane.f32.xlu1 %v3117_v3  ;;  %v2418_v53 = vld [vmem:[%s3511_s0 + $0xf8] sm:$0xff] }
 0x249   :  { %v1438_v12 = vadd.f32 %v2232_v1, %v1277_v8  ;;  %v1280_v13 = vadd.f32 %v2123_v10, %v2922_v58 }
 0x24b   :  { %v1441_v15 = vadd.f32 %v2235_v11, %v1280_v13  ;;  %v2124_v16 = vpop.f32.mrb[124].mxu0  ;;  %v2236_v18 = vpop.f32.mrb[124].mxu1  ;;  %v3125_v22 = vadd.f32 %v2415_v20, %v1438_v12 }
 0x24c   :  { %v2125_v57 = vpop.f32.mrb[125].mxu0  ;;  %v2237_v24 = vpop.f32.mrb[125].mxu1 }
 0x24d   :  { %v2126_v59 = vadd.f32 %v2125_v57, %v2124_v16  ;;  %v2238_v25 = vadd.f32 %v2237_v24, %v2236_v18  ;;  %v2127_v27 = vpop.f32.mrb[126].mxu0  ;;  %v2239_v31 = vpop.f32.mrb[126].mxu1  ;;  %1540 = vadd.xlane.f32.xlu0 %v3125_v22  ;;  %v3131_v34 = vadd.f32 %v2416_v33, %v1441_v15 }
 0x24e   :  { %v2128_v35 = vpop.f32.mrb[127].mxu0  ;;  %v2240_v36 = vpop.f32.mrb[127].mxu1 }
 0x24f   :  { %v1285_v37 = vadd.f32 %v2126_v59, %v2922_v58  ;;  %v2129_v40 = vadd.f32 %v2128_v35, %v2127_v27  ;;  %v2241_v42 = vadd.f32 %v2240_v36, %v2239_v31  ;;  %1542 = vadd.xlane.f32.xlu1 %v3131_v34 }
 0x251   :  { %v1446_v44 = vadd.f32 %v2238_v25, %v1285_v37  ;;  %v1288_v45 = vadd.f32 %v2129_v40, %v2922_v58 }
 0x253   :  { %v1449_v46 = vadd.f32 %v2241_v42, %v1288_v45  ;;  %v3139_v51 = vadd.f32 %v2417_v50, %v1446_v44 }
 0x255   :  { %1544 = vadd.xlane.f32.xlu0 %v3139_v51  ;;  %v3145_v1 = vadd.f32 %v2418_v53, %v1449_v46 }
 0x257   :  { %1546 = vadd.xlane.f32.xlu1 %v3145_v1 }
 0x26a   :  { %v1485_v60 = vpop.xlane.xlu0 %1484 }
 0x26b   :  { %v1549_v61 = vmul.f32 0.0078125, %v1485_v60 }
 0x26d   :  { %v3149_v58 = vsub.f32 %v2929_v41, %v1549_v61 }
 0x26e   :  { %v1487_v62 = vpop.xlane.xlu0 %1486 }
 0x26f   :  { %v1550_v4 = vmul.f32 0.0078125, %v1487_v62  ;;  %v1613_v5 = vmul.f32 %v3149_v58, %v3149_v58 }
 0x271   :  { %v3154_v8 = vsub.f32 %v2936_v54, %v1550_v4  ;;  %1645 = vadd.xlane.f32.xlu0 %v1613_v5 }
 0x272   :  { %v1489_v10 = vpop.xlane.xlu1 %1488 }
 0x273   :  { %v1551_v11 = vmul.f32 0.0078125, %v1489_v10  ;;  %v1614_v12 = vmul.f32 %v3154_v8, %v3154_v8 }
 0x275   :  { %v3159_v13 = vsub.f32 %v2943_v0, %v1551_v11  ;;  %1647 = vadd.xlane.f32.xlu1 %v1614_v12 }
 0x276   :  { %v1491_v41 = vpop.xlane.xlu1 %1490 }
 0x277   :  { %v1552_v15 = vmul.f32 0.0078125, %v1491_v41  ;;  %v1615_v16 = vmul.f32 %v3159_v13, %v3159_v13 }
 0x279   :  { %v3164_v18 = vsub.f32 %v2950_v14, %v1552_v15  ;;  %1649 = vadd.xlane.f32.xlu0 %v1615_v16 }
 0x27a   :  { %v1493_v54 = vpop.xlane.xlu0 %1492 }
 0x27b   :  { %v1553_v20 = vmul.f32 0.0078125, %v1493_v54  ;;  %v1616_v57 = vmul.f32 %v3164_v18, %v3164_v18 }
 0x27c   :  { %v1495_v24 = vpop.xlane.xlu1 %1494 }
 0x27d   :  { %v3169_v59 = vsub.f32 %v2957_v21, %v1553_v20  ;;  %v1554_v0 = vmul.f32 0.0078125, %v1495_v24  ;;  %1651 = vadd.xlane.f32.xlu1 %v1616_v57 }
 0x27f   :  { %v3172_v25 = vsub.f32 %v2963_v26, %v1554_v0  ;;  %v1617_v27 = vmul.f32 %v3169_v59, %v3169_v59 }
 0x281   :  { %1653 = vadd.xlane.f32.xlu0 %v1617_v27  ;;  %v1618_v14 = vmul.f32 %v3172_v25, %v3172_v25 }
 0x282   :  { %v1497_v31 = vpop.xlane.xlu0 %1496 }
 0x283   :  { %v1555_v33 = vmul.f32 0.0078125, %v1497_v31  ;;  %1655 = vadd.xlane.f32.xlu1 %v1618_v14 }
 0x284   :  { %v1499_v35 = vpop.xlane.xlu1 %1498 }
 0x285   :  { %v3179_v36 = vsub.f32 %v2971_v38, %v1555_v33  ;;  %v1556_v21 = vmul.f32 0.0078125, %v1499_v35 }
 0x287   :  { %v3182_v37 = vsub.f32 %v2977_v47, %v1556_v21  ;;  %v1619_v26 = vmul.f32 %v3179_v36, %v3179_v36 }
 0x289   :  { %1657 = vadd.xlane.f32.xlu0 %v1619_v26  ;;  %v1620_v40 = vmul.f32 %v3182_v37, %v3182_v37 }
 0x28a   :  { %v1501_v42 = vpop.xlane.xlu0 %1500 }
 0x28b   :  { %v1557_v44 = vmul.f32 0.0078125, %v1501_v42  ;;  %1659 = vadd.xlane.f32.xlu1 %v1620_v40 }
 0x28c   :  { %v1503_v45 = vpop.xlane.xlu1 %1502 }
 0x28d   :  { %v3189_v46 = vsub.f32 %v2985_v63, %v1557_v44  ;;  %v1558_v38 = vmul.f32 0.0078125, %v1503_v45 }
 0x28f   :  { %v3192_v50 = vsub.f32 %v2991_v9, %v1558_v38  ;;  %v1621_v47 = vmul.f32 %v3189_v46, %v3189_v46 }
 0x291   :  { %1661 = vadd.xlane.f32.xlu0 %v1621_v47  ;;  %v1622_v53 = vmul.f32 %v3192_v50, %v3192_v50 }
 0x292   :  { %v1505_v60 = vpop.xlane.xlu0 %1504 }
 0x293   :  { %v1559_v61 = vmul.f32 0.0078125, %v1505_v60  ;;  %1663 = vadd.xlane.f32.xlu1 %v1622_v53 }
 0x294   :  { %v1507_v62 = vpop.xlane.xlu1 %1506 }
 0x295   :  { %v3199_v4 = vsub.f32 %v2999_v56, %v1559_v61  ;;  %v1560_v63 = vmul.f32 0.0078125, %v1507_v62 }
 0x297   :  { %v3202_v5 = vsub.f32 %v3005_v29, %v1560_v63  ;;  %v1623_v9 = vmul.f32 %v3199_v4, %v3199_v4 }
 0x299   :  { %1665 = vadd.xlane.f32.xlu0 %v1623_v9  ;;  %v1624_v10 = vmul.f32 %v3202_v5, %v3202_v5 }
 0x29a   :  { %v1509_v11 = vpop.xlane.xlu0 %1508 }
 0x29b   :  { %v1561_v12 = vmul.f32 0.0078125, %v1509_v11  ;;  %1667 = vadd.xlane.f32.xlu1 %v1624_v10 }
 0x29c   :  { %v1511_v41 = vpop.xlane.xlu1 %1510 }
 0x29d   :  { %v3209_v15 = vsub.f32 %v3013_v43, %v1561_v12  ;;  %v1562_v56 = vmul.f32 0.0078125, %v1511_v41 }
 0x29f   :  { %v3212_v16 = vsub.f32 %v3019_v52, %v1562_v56  ;;  %v1625_v29 = vmul.f32 %v3209_v15, %v3209_v15 }
 0x2a1   :  { %1669 = vadd.xlane.f32.xlu0 %v1625_v29  ;;  %v1626_v54 = vmul.f32 %v3212_v16, %v3212_v16 }
 0x2a2   :  { %v1513_v20 = vpop.xlane.xlu0 %1512 }
 0x2a3   :  { %v1563_v57 = vmul.f32 0.0078125, %v1513_v20  ;;  %1671 = vadd.xlane.f32.xlu1 %v1626_v54 }
 0x2a4   :  { %v1515_v24 = vpop.xlane.xlu1 %1514 }
 0x2a5   :  { %v3219_v0 = vsub.f32 %v3027_v7, %v1563_v57  ;;  %v1564_v43 = vmul.f32 0.0078125, %v1515_v24 }
 0x2a7   :  { %v3222_v27 = vsub.f32 %v3033_v17, %v1564_v43  ;;  %v1627_v52 = vmul.f32 %v3219_v0, %v3219_v0 }
 0x2a9   :  { %1673 = vadd.xlane.f32.xlu0 %v1627_v52  ;;  %v1628_v14 = vmul.f32 %v3222_v27, %v3222_v27 }
 0x2aa   :  { %v1517_v31 = vpop.xlane.xlu0 %1516 }
 0x2ab   :  { %v1565_v33 = vmul.f32 0.0078125, %v1517_v31  ;;  %1675 = vadd.xlane.f32.xlu1 %v1628_v14 }
 0x2ac   :  { %v1519_v35 = vpop.xlane.xlu1 %1518 }
 0x2ad   :  { %v3229_v21 = vsub.f32 %v3041_v30, %v1565_v33  ;;  %v1566_v7 = vmul.f32 0.0078125, %v1519_v35 }
 0x2af   :  { %v3232_v26 = vsub.f32 %v3047_v39, %v1566_v7  ;;  %v1629_v17 = vmul.f32 %v3229_v21, %v3229_v21 }
 0x2b1   :  { %1677 = vadd.xlane.f32.xlu0 %v1629_v17  ;;  %v1630_v40 = vmul.f32 %v3232_v26, %v3232_v26 }
 0x2b2   :  { %v1521_v42 = vpop.xlane.xlu0 %1520 }
 0x2b3   :  { %v1567_v44 = vmul.f32 0.0078125, %v1521_v42  ;;  %1679 = vadd.xlane.f32.xlu1 %v1630_v40 }
 0x2b4   :  { %v1523_v45 = vpop.xlane.xlu1 %1522 }
 0x2b5   :  { %v3239_v38 = vsub.f32 %v3055_v55, %v1567_v44  ;;  %v1568_v30 = vmul.f32 0.0078125, %v1523_v45 }
 0x2b7   :  { %v3242_v47 = vsub.f32 %v3061_v6, %v1568_v30  ;;  %v1631_v39 = vmul.f32 %v3239_v38, %v3239_v38 }
 0x2b9   :  { %1681 = vadd.xlane.f32.xlu0 %v1631_v39  ;;  %v1632_v53 = vmul.f32 %v3242_v47, %v3242_v47 }
 0x2ba   :  { %v1525_v60 = vpop.xlane.xlu0 %1524 }
 0x2bb   :  { %v1569_v61 = vmul.f32 0.0078125, %v1525_v60  ;;  %1683 = vadd.xlane.f32.xlu1 %v1632_v53 }
 0x2bc   :  { %v1527_v62 = vpop.xlane.xlu1 %1526 }
 0x2bd   :  { %v3249_v63 = vsub.f32 %v3069_v23, %v1569_v61  ;;  %v1570_v55 = vmul.f32 0.0078125, %v1527_v62 }
 0x2bf   :  { %v3252_v9 = vsub.f32 %v3075_v32, %v1570_v55  ;;  %v1633_v6 = vmul.f32 %v3249_v63, %v3249_v63 }
 0x2c1   :  { %1685 = vadd.xlane.f32.xlu0 %v1633_v6  ;;  %v1634_v10 = vmul.f32 %v3252_v9, %v3252_v9 }
 0x2c2   :  { %v1529_v11 = vpop.xlane.xlu0 %1528 }
 0x2c3   :  { %v1571_v12 = vmul.f32 0.0078125, %v1529_v11  ;;  %1687 = vadd.xlane.f32.xlu1 %v1634_v10 }
 0x2c4   :  { %v1531_v41 = vpop.xlane.xlu1 %1530 }
 0x2c5   :  { %v3259_v56 = vsub.f32 %v3083_v49, %v1571_v12  ;;  %v1572_v23 = vmul.f32 0.0078125, %v1531_v41 }
 0x2c7   :  { %v3262_v29 = vsub.f32 %v3089_v2, %v1572_v23  ;;  %v1635_v32 = vmul.f32 %v3259_v56, %v3259_v56 }
 0x2c9   :  { %1689 = vadd.xlane.f32.xlu0 %v1635_v32  ;;  %v1636_v54 = vmul.f32 %v3262_v29, %v3262_v29 }
 0x2ca   :  { %v1533_v20 = vpop.xlane.xlu0 %1532 }
 0x2cb   :  { %v1573_v57 = vmul.f32 0.0078125, %v1533_v20  ;;  %1691 = vadd.xlane.f32.xlu1 %v1636_v54 }
 0x2cc   :  { %v1535_v24 = vpop.xlane.xlu1 %1534 }
 0x2cd   :  { %v3269_v43 = vsub.f32 %v3097_v19, %v1573_v57  ;;  %v1574_v49 = vmul.f32 0.0078125, %v1535_v24 }
 0x2cf   :  { %v3272_v52 = vsub.f32 %v3103_v28, %v1574_v49  ;;  %v1637_v2 = vmul.f32 %v3269_v43, %v3269_v43 }
 0x2d1   :  { %1693 = vadd.xlane.f32.xlu0 %v1637_v2  ;;  %v1638_v14 = vmul.f32 %v3272_v52, %v3272_v52  ;;  %v3311_v2 = vld [vmem:[%s3515_s5] ss:$0 sm:$0xff] }
 0x2d2   :  { %v1537_v31 = vpop.xlane.xlu0 %1536 }
 0x2d3   :  { %v1575_v33 = vmul.f32 0.0078125, %v1537_v31  ;;  %1695 = vadd.xlane.f32.xlu1 %v1638_v14 }
 0x2d4   :  { %v1539_v35 = vpop.xlane.xlu1 %1538 }
 0x2d5   :  { %v3279_v7 = vsub.f32 %v3111_v48, %v1575_v33  ;;  %v1576_v19 = vmul.f32 0.0078125, %v1539_v35  ;;  %v3317_v35 = vld [vmem:[%s3516_s6] ss:$0 sm:$0xff] }
 0x2d7   :  { %v3282_v17 = vsub.f32 %v3117_v3, %v1576_v19  ;;  %v1639_v28 = vmul.f32 %v3279_v7, %v3279_v7 }
 0x2d9   :  { %1697 = vadd.xlane.f32.xlu0 %v1639_v28  ;;  %v1640_v40 = vmul.f32 %v3282_v17, %v3282_v17 }
 0x2da   :  { %v1541_v42 = vpop.xlane.xlu0 %1540 }
 0x2db   :  { %v1577_v44 = vmul.f32 0.0078125, %v1541_v42  ;;  %1699 = vadd.xlane.f32.xlu1 %v1640_v40 }
 0x2dc   :  { %v1543_v45 = vpop.xlane.xlu1 %1542 }
 0x2dd   :  { %v3289_v30 = vsub.f32 %v3125_v22, %v1577_v44  ;;  %v1578_v48 = vmul.f32 0.0078125, %v1543_v45 }
 0x2df   :  { %v3292_v39 = vsub.f32 %v3131_v34, %v1578_v48  ;;  %v1641_v3 = vmul.f32 %v3289_v30, %v3289_v30 }
 0x2e1   :  { %1701 = vadd.xlane.f32.xlu0 %v1641_v3  ;;  %v1642_v53 = vmul.f32 %v3292_v39, %v3292_v39 }
 0x2e2   :  { %v1545_v60 = vpop.xlane.xlu0 %1544 }
 0x2e3   :  { %v1579_v61 = vmul.f32 0.0078125, %v1545_v60  ;;  %1703 = vadd.xlane.f32.xlu1 %v1642_v53 }
 0x2e4   :  { %v1547_v62 = vpop.xlane.xlu1 %1546 }
 0x2e5   :  { %v3299_v55 = vsub.f32 %v3139_v51, %v1579_v61  ;;  %v1580_v22 = vmul.f32 0.0078125, %v1547_v62 }
 0x2e7   :  { %v3302_v6 = vsub.f32 %v3145_v1, %v1580_v22  ;;  %v1643_v34 = vmul.f32 %v3299_v55, %v3299_v55 }
 0x2e9   :  { %1705 = vadd.xlane.f32.xlu0 %v1643_v34  ;;  %v1644_v10 = vmul.f32 %v3302_v6, %v3302_v6 }
 0x2eb   :  { %1707 = vadd.xlane.f32.xlu1 %v1644_v10 }
 0x2fe   :  { %v1646_v11 = vpop.xlane.xlu0 %1645 }
 0x2ff   :  { %v1709_v12 = vmul.f32 0.0078125, %v1646_v11 }
 0x301   :  { %v1741_v41 = vadd.f32 1e-05, %v1709_v12 }
 0x302   :  { %v1648_v23 = vpop.xlane.xlu1 %1647 }
 0x303   :  { %2323 = vrsqrt.f32 %v1741_v41  ;;  %v1710_v32 = vmul.f32 0.0078125, %v1648_v23 }
 0x305   :  { %v1742_v51 = vadd.f32 1e-05, %v1710_v32 }
 0x306   :  { %v1650_v54 = vpop.xlane.xlu0 %1649 }
 0x307   :  { %2325 = vrsqrt.f32 %v1742_v51  ;;  %v1711_v20 = vmul.f32 0.0078125, %v1650_v54 }
 0x309   :  { %v1743_v1 = vadd.f32 1e-05, %v1711_v20 }
 0x30a   :  { %v1652_v57 = vpop.xlane.xlu1 %1651 }
 0x30b   :  { %2327 = vrsqrt.f32 %v1743_v1  ;;  %v1712_v24 = vmul.f32 0.0078125, %v1652_v57 }
 0x30d   :  { %v2324_v49 = vpop.eup %2323  ;;  %v1744_v14 = vadd.f32 1e-05, %v1712_v24 }
 0x30e   :  { %v1805_v31 = vmul.f32 %v2324_v49, %v3149_v58  ;;  %v1654_v33 = vpop.xlane.xlu0 %1653 }
 0x30f   :  { %2329 = vrsqrt.f32 %v1744_v14  ;;  %v1713_v19 = vmul.f32 0.0078125, %v1654_v33 }
 0x310   :  { %v1844_v28 = vmul.f32 %v3311_v2, %v1805_v31  ;;  %v1656_v40 = vpop.xlane.xlu1 %1655 }
 0x311   :  { %v2326_v42 = vpop.eup %2325  ;;  %v1745_v44 = vadd.f32 1e-05, %v1713_v19  ;;  %v1714_v45 = vmul.f32 0.0078125, %v1656_v40 }
 0x312   :  { %v1883_v48 = vadd.f32 %v3317_v35, %v1844_v28  ;;  %v1806_v3 = vmul.f32 %v2326_v42, %v3154_v8 }
 0x313   :  { %2331 = vrsqrt.f32 %v1745_v44  ;;  %v1746_v58 = vadd.f32 1e-05, %v1714_v45 }
 0x314   :  { %1915 = vst [vmem:[%s3517_s7] sm:$0xff] %v1883_v48  ;;  %v1845_v53 = vmul.f32 %v3311_v2, %v1806_v3 }
 0x315   :  { %v2328_v60 = vpop.eup %2327  ;;  %2333 = vrsqrt.f32 %v1746_v58 }
 0x316   :  { %v1884_v61 = vadd.f32 %v3317_v35, %v1845_v53  ;;  %v1807_v62 = vmul.f32 %v2328_v60, %v3159_v13  ;;  %v1658_v22 = vpop.xlane.xlu0 %1657 }
 0x317   :  { %v1715_v34 = vmul.f32 0.0078125, %v1658_v22 }
 0x318   :  { %1916 = vst [vmem:[%s3517_s7 + $0x8] sm:$0xff] %v1884_v61  ;;  %v1846_v8 = vmul.f32 %v3311_v2, %v1807_v62  ;;  %v1660_v10 = vpop.xlane.xlu1 %1659 }
 0x319   :  { %v2330_v11 = vpop.eup %2329  ;;  %v1747_v12 = vadd.f32 1e-05, %v1715_v34  ;;  %v1716_v41 = vmul.f32 0.0078125, %v1660_v10 }
 0x31a   :  { %v1885_v23 = vadd.f32 %v3317_v35, %v1846_v8  ;;  %v1808_v32 = vmul.f32 %v2330_v11, %v3164_v18 }
 0x31b   :  { %2335 = vrsqrt.f32 %v1747_v12  ;;  %v1748_v51 = vadd.f32 1e-05, %v1716_v41 }
 0x31c   :  { %1917 = vst [vmem:[%s3517_s7 + $0x10] sm:$0xff] %v1885_v23  ;;  %v1847_v13 = vmul.f32 %v3311_v2, %v1808_v32 }
 0x31d   :  { %v2332_v54 = vpop.eup %2331  ;;  %2337 = vrsqrt.f32 %v1748_v51 }
 0x31e   :  { %v1886_v20 = vadd.f32 %v3317_v35, %v1847_v13  ;;  %v1809_v1 = vmul.f32 %v2332_v54, %v3169_v59  ;;  %v1662_v57 = vpop.xlane.xlu0 %1661 }
 0x31f   :  { %v2334_v24 = vpop.eup %2333  ;;  %v1717_v49 = vmul.f32 0.0078125, %v1662_v57 }
 0x320   :  { %1918 = vst [vmem:[%s3517_s7 + $0x18] sm:$0xff] %v1886_v20  ;;  %v1848_v18 = vmul.f32 %v3311_v2, %v1809_v1  ;;  %v1810_v14 = vmul.f32 %v2334_v24, %v3172_v25  ;;  %v1664_v31 = vpop.xlane.xlu1 %1663 }
 0x321   :  { %v1749_v33 = vadd.f32 1e-05, %v1717_v49  ;;  %v1718_v19 = vmul.f32 0.0078125, %v1664_v31 }
 0x322   :  { %v1887_v28 = vadd.f32 %v3317_v35, %v1848_v18  ;;  %v1849_v40 = vmul.f32 %v3311_v2, %v1810_v14 }
 0x323   :  { %2339 = vrsqrt.f32 %v1749_v33  ;;  %v1750_v59 = vadd.f32 1e-05, %v1718_v19 }
 0x324   :  { %1919 = vst [vmem:[%s3517_s7 + $0x20] sm:$0xff] %v1887_v28  ;;  %v1888_v42 = vadd.f32 %v3317_v35, %v1849_v40 }
 0x325   :  { %v2336_v44 = vpop.eup %2335  ;;  %2341 = vrsqrt.f32 %v1750_v59 }
 0x326   :  { %1920 = vst [vmem:[%s3517_s7 + $0x28] sm:$0xff] %v1888_v42  ;;  %v1811_v25 = vmul.f32 %v2336_v44, %v3179_v36  ;;  %v1666_v45 = vpop.xlane.xlu0 %1665 }
 0x327   :  { %v2338_v48 = vpop.eup %2337  ;;  %v1719_v3 = vmul.f32 0.0078125, %v1666_v45 }
 0x328   :  { %v1850_v58 = vmul.f32 %v3311_v2, %v1811_v25  ;;  %v1812_v53 = vmul.f32 %v2338_v48, %v3182_v37  ;;  %v1668_v60 = vpop.xlane.xlu1 %1667 }
 0x329   :  { %v1751_v61 = vadd.f32 1e-05, %v1719_v3  ;;  %v1720_v62 = vmul.f32 0.0078125, %v1668_v60 }
 0x32a   :  { %v1889_v22 = vadd.f32 %v3317_v35, %v1850_v58  ;;  %v1851_v34 = vmul.f32 %v3311_v2, %v1812_v53 }
 0x32b   :  { %2343 = vrsqrt.f32 %v1751_v61  ;;  %v1752_v8 = vadd.f32 1e-05, %v1720_v62 }
 0x32c   :  { %1921 = vst [vmem:[%s3517_s7 + $0x30] sm:$0xff] %v1889_v22  ;;  %v1890_v36 = vadd.f32 %v3317_v35, %v1851_v34 }
 0x32d   :  { %v2340_v10 = vpop.eup %2339  ;;  %2345 = vrsqrt.f32 %v1752_v8 }
 0x32e   :  { %1922 = vst [vmem:[%s3517_s7 + $0x38] sm:$0xff] %v1890_v36  ;;  %v1813_v37 = vmul.f32 %v2340_v10, %v3189_v46  ;;  %v1670_v11 = vpop.xlane.xlu0 %1669 }
 0x32f   :  { %v2342_v12 = vpop.eup %2341  ;;  %v1721_v41 = vmul.f32 0.0078125, %v1670_v11 }
 0x330   :  { %v1852_v23 = vmul.f32 %v3311_v2, %v1813_v37  ;;  %v1814_v32 = vmul.f32 %v2342_v12, %v3192_v50  ;;  %v1672_v51 = vpop.xlane.xlu1 %1671 }
 0x331   :  { %v1753_v13 = vadd.f32 1e-05, %v1721_v41  ;;  %v1722_v54 = vmul.f32 0.0078125, %v1672_v51 }
 0x332   :  { %v1891_v20 = vadd.f32 %v3317_v35, %v1852_v23  ;;  %v1853_v1 = vmul.f32 %v3311_v2, %v1814_v32 }
 0x333   :  { %2347 = vrsqrt.f32 %v1753_v13  ;;  %v1754_v57 = vadd.f32 1e-05, %v1722_v54 }
 0x334   :  { %1923 = vst [vmem:[%s3517_s7 + $0x40] sm:$0xff] %v1891_v20  ;;  %v1892_v46 = vadd.f32 %v3317_v35, %v1853_v1 }
 0x335   :  { %v2344_v24 = vpop.eup %2343  ;;  %2349 = vrsqrt.f32 %v1754_v57 }
 0x336   :  { %1924 = vst [vmem:[%s3517_s7 + $0x48] sm:$0xff] %v1892_v46  ;;  %v1815_v50 = vmul.f32 %v2344_v24, %v3199_v4  ;;  %v1674_v49 = vpop.xlane.xlu0 %1673 }
 0x337   :  { %v2346_v18 = vpop.eup %2345  ;;  %v1723_v14 = vmul.f32 0.0078125, %v1674_v49 }
 0x338   :  { %v1854_v31 = vmul.f32 %v3311_v2, %v1815_v50  ;;  %v1816_v33 = vmul.f32 %v2346_v18, %v3202_v5  ;;  %v1676_v19 = vpop.xlane.xlu1 %1675 }
 0x339   :  { %v1755_v28 = vadd.f32 1e-05, %v1723_v14  ;;  %v1724_v40 = vmul.f32 0.0078125, %v1676_v19 }
 0x33a   :  { %v1893_v59 = vadd.f32 %v3317_v35, %v1854_v31  ;;  %v1855_v42 = vmul.f32 %v3311_v2, %v1816_v33 }
 0x33b   :  { %2351 = vrsqrt.f32 %v1755_v28  ;;  %v1756_v44 = vadd.f32 1e-05, %v1724_v40 }
 0x33c   :  { %1925 = vst [vmem:[%s3517_s7 + $0x50] sm:$0xff] %v1893_v59  ;;  %v1894_v4 = vadd.f32 %v3317_v35, %v1855_v42 }
 0x33d   :  { %v2348_v25 = vpop.eup %2347  ;;  %2353 = vrsqrt.f32 %v1756_v44 }
 0x33e   :  { %1926 = vst [vmem:[%s3517_s7 + $0x58] sm:$0xff] %v1894_v4  ;;  %v1817_v5 = vmul.f32 %v2348_v25, %v3209_v15  ;;  %v1678_v45 = vpop.xlane.xlu0 %1677 }
 0x33f   :  { %v2350_v48 = vpop.eup %2349  ;;  %v1725_v3 = vmul.f32 0.0078125, %v1678_v45 }
 0x340   :  { %v1856_v58 = vmul.f32 %v3311_v2, %v1817_v5  ;;  %v1818_v53 = vmul.f32 %v2350_v48, %v3212_v16  ;;  %v1680_v60 = vpop.xlane.xlu1 %1679 }
 0x341   :  { %v1757_v61 = vadd.f32 1e-05, %v1725_v3  ;;  %v1726_v62 = vmul.f32 0.0078125, %v1680_v60 }
 0x342   :  { %v1895_v22 = vadd.f32 %v3317_v35, %v1856_v58  ;;  %v1857_v34 = vmul.f32 %v3311_v2, %v1818_v53 }
 0x343   :  { %2355 = vrsqrt.f32 %v1757_v61  ;;  %v1758_v8 = vadd.f32 1e-05, %v1726_v62 }
 0x344   :  { %1927 = vst [vmem:[%s3517_s7 + $0x60] sm:$0xff] %v1895_v22  ;;  %v1896_v15 = vadd.f32 %v3317_v35, %v1857_v34 }
 0x345   :  { %v2352_v36 = vpop.eup %2351  ;;  %2357 = vrsqrt.f32 %v1758_v8 }
 0x346   :  { %1928 = vst [vmem:[%s3517_s7 + $0x68] sm:$0xff] %v1896_v15  ;;  %v1819_v16 = vmul.f32 %v2352_v36, %v3219_v0  ;;  %v1682_v10 = vpop.xlane.xlu0 %1681 }
 0x347   :  { %v2354_v37 = vpop.eup %2353  ;;  %v1727_v11 = vmul.f32 0.0078125, %v1682_v10 }
 0x348   :  { %v1858_v12 = vmul.f32 %v3311_v2, %v1819_v16  ;;  %v1820_v41 = vmul.f32 %v2354_v37, %v3222_v27  ;;  %v1684_v23 = vpop.xlane.xlu1 %1683 }
 0x349   :  { %v1759_v32 = vadd.f32 1e-05, %v1727_v11  ;;  %v1728_v51 = vmul.f32 0.0078125, %v1684_v23 }
 0x34a   :  { %v1897_v13 = vadd.f32 %v3317_v35, %v1858_v12  ;;  %v1859_v54 = vmul.f32 %v3311_v2, %v1820_v41 }
 0x34b   :  { %2359 = vrsqrt.f32 %v1759_v32  ;;  %v1760_v20 = vadd.f32 1e-05, %v1728_v51 }
 0x34c   :  { %1929 = vst [vmem:[%s3517_s7 + $0x70] sm:$0xff] %v1897_v13  ;;  %v1898_v0 = vadd.f32 %v3317_v35, %v1859_v54 }
 0x34d   :  { %v2356_v1 = vpop.eup %2355  ;;  %2361 = vrsqrt.f32 %v1760_v20 }
 0x34e   :  { %1930 = vst [vmem:[%s3517_s7 + $0x78] sm:$0xff] %v1898_v0  ;;  %v1821_v27 = vmul.f32 %v2356_v1, %v3229_v21  ;;  %v1686_v57 = vpop.xlane.xlu0 %1685 }
 0x34f   :  { %v2358_v46 = vpop.eup %2357  ;;  %v1729_v24 = vmul.f32 0.0078125, %v1686_v57 }
 0x350   :  { %v1860_v50 = vmul.f32 %v3311_v2, %v1821_v27  ;;  %v1822_v49 = vmul.f32 %v2358_v46, %v3232_v26  ;;  %v1688_v18 = vpop.xlane.xlu1 %1687 }
 0x351   :  { %v1761_v14 = vadd.f32 1e-05, %v1729_v24  ;;  %v1730_v31 = vmul.f32 0.0078125, %v1688_v18 }
 0x352   :  { %v1899_v33 = vadd.f32 %v3317_v35, %v1860_v50  ;;  %v1861_v19 = vmul.f32 %v3311_v2, %v1822_v49 }
 0x353   :  { %2363 = vrsqrt.f32 %v1761_v14  ;;  %v1762_v28 = vadd.f32 1e-05, %v1730_v31 }
 0x354   :  { %1931 = vst [vmem:[%s3517_s7 + $0x80] sm:$0xff] %v1899_v33  ;;  %v1900_v21 = vadd.f32 %v3317_v35, %v1861_v19 }
 0x355   :  { %v2360_v40 = vpop.eup %2359  ;;  %2365 = vrsqrt.f32 %v1762_v28 }
 0x356   :  { %1932 = vst [vmem:[%s3517_s7 + $0x88] sm:$0xff] %v1900_v21  ;;  %v1823_v26 = vmul.f32 %v2360_v40, %v3239_v38  ;;  %v1690_v59 = vpop.xlane.xlu0 %1689 }
 0x357   :  { %v2362_v42 = vpop.eup %2361  ;;  %v1731_v44 = vmul.f32 0.0078125, %v1690_v59 }
 0x358   :  { %v1862_v4 = vmul.f32 %v3311_v2, %v1823_v26  ;;  %v1824_v25 = vmul.f32 %v2362_v42, %v3242_v47  ;;  %v1692_v5 = vpop.xlane.xlu1 %1691 }
 0x359   :  { %v1763_v45 = vadd.f32 1e-05, %v1731_v44  ;;  %v1732_v48 = vmul.f32 0.0078125, %v1692_v5 }
 0x35a   :  { %v1901_v3 = vadd.f32 %v3317_v35, %v1862_v4  ;;  %v1863_v58 = vmul.f32 %v3311_v2, %v1824_v25 }
 0x35b   :  { %2367 = vrsqrt.f32 %v1763_v45  ;;  %v1764_v53 = vadd.f32 1e-05, %v1732_v48 }
 0x35c   :  { %1933 = vst [vmem:[%s3517_s7 + $0x90] sm:$0xff] %v1901_v3  ;;  %v1902_v38 = vadd.f32 %v3317_v35, %v1863_v58 }
 0x35d   :  { %v2364_v60 = vpop.eup %2363  ;;  %2369 = vrsqrt.f32 %v1764_v53 }
 0x35e   :  { %1934 = vst [vmem:[%s3517_s7 + $0x98] sm:$0xff] %v1902_v38  ;;  %v1825_v47 = vmul.f32 %v2364_v60, %v3249_v63  ;;  %v1694_v61 = vpop.xlane.xlu0 %1693 }
 0x35f   :  { %v2366_v62 = vpop.eup %2365  ;;  %v1733_v22 = vmul.f32 0.0078125, %v1694_v61 }
 0x360   :  { %v1864_v34 = vmul.f32 %v3311_v2, %v1825_v47  ;;  %v1826_v8 = vmul.f32 %v2366_v62, %v3252_v9  ;;  %v1696_v15 = vpop.xlane.xlu1 %1695 }
 0x361   :  { %v1765_v36 = vadd.f32 1e-05, %v1733_v22  ;;  %v1734_v16 = vmul.f32 0.0078125, %v1696_v15 }
 0x362   :  { %v1903_v10 = vadd.f32 %v3317_v35, %v1864_v34  ;;  %v1865_v37 = vmul.f32 %v3311_v2, %v1826_v8 }
 0x363   :  { %2371 = vrsqrt.f32 %v1765_v36  ;;  %v1766_v11 = vadd.f32 1e-05, %v1734_v16 }
 0x364   :  { %1935 = vst [vmem:[%s3517_s7 + $0xa0] sm:$0xff] %v1903_v10  ;;  %v1904_v63 = vadd.f32 %v3317_v35, %v1865_v37 }
 0x365   :  { %v2368_v12 = vpop.eup %2367  ;;  %2373 = vrsqrt.f32 %v1766_v11 }
 0x366   :  { %1936 = vst [vmem:[%s3517_s7 + $0xa8] sm:$0xff] %v1904_v63  ;;  %v1827_v9 = vmul.f32 %v2368_v12, %v3259_v56  ;;  %v1698_v41 = vpop.xlane.xlu0 %1697 }
 0x367   :  { %v2370_v23 = vpop.eup %2369  ;;  %v1735_v32 = vmul.f32 0.0078125, %v1698_v41 }
 0x368   :  { %v1866_v51 = vmul.f32 %v3311_v2, %v1827_v9  ;;  %v1828_v13 = vmul.f32 %v2370_v23, %v3262_v29  ;;  %v1700_v54 = vpop.xlane.xlu1 %1699 }
 0x369   :  { %v1767_v20 = vadd.f32 1e-05, %v1735_v32  ;;  %v1736_v0 = vmul.f32 0.0078125, %v1700_v54 }
 0x36a   :  { %v1905_v1 = vadd.f32 %v3317_v35, %v1866_v51  ;;  %v1867_v27 = vmul.f32 %v3311_v2, %v1828_v13 }
 0x36b   :  { %2375 = vrsqrt.f32 %v1767_v20  ;;  %v1768_v57 = vadd.f32 1e-05, %v1736_v0 }
 0x36c   :  { %1937 = vst [vmem:[%s3517_s7 + $0xb0] sm:$0xff] %v1905_v1  ;;  %v1906_v56 = vadd.f32 %v3317_v35, %v1867_v27 }
 0x36d   :  { %v2372_v46 = vpop.eup %2371  ;;  %2377 = vrsqrt.f32 %v1768_v57 }
 0x36e   :  { %1938 = vst [vmem:[%s3517_s7 + $0xb8] sm:$0xff] %v1906_v56  ;;  %v1829_v29 = vmul.f32 %v2372_v46, %v3269_v43  ;;  %v1702_v24 = vpop.xlane.xlu0 %1701 }
 0x36f   :  { %v2374_v50 = vpop.eup %2373  ;;  %v1737_v49 = vmul.f32 0.0078125, %v1702_v24 }
 0x370   :  { %v1868_v18 = vmul.f32 %v3311_v2, %v1829_v29  ;;  %v1830_v14 = vmul.f32 %v2374_v50, %v3272_v52  ;;  %v1704_v31 = vpop.xlane.xlu1 %1703 }
 0x371   :  { %v1769_v33 = vadd.f32 1e-05, %v1737_v49  ;;  %v1738_v19 = vmul.f32 0.0078125, %v1704_v31 }
 0x372   :  { %v1907_v28 = vadd.f32 %v3317_v35, %v1868_v18  ;;  %v1869_v21 = vmul.f32 %v3311_v2, %v1830_v14 }
 0x373   :  { %2379 = vrsqrt.f32 %v1769_v33  ;;  %v1770_v40 = vadd.f32 1e-05, %v1738_v19 }
 0x374   :  { %1939 = vst [vmem:[%s3517_s7 + $0xc0] sm:$0xff] %v1907_v28  ;;  %v1908_v43 = vadd.f32 %v3317_v35, %v1869_v21 }
 0x375   :  { %v2376_v26 = vpop.eup %2375  ;;  %2381 = vrsqrt.f32 %v1770_v40 }
 0x376   :  { %1940 = vst [vmem:[%s3517_s7 + $0xc8] sm:$0xff] %v1908_v43  ;;  %v1831_v52 = vmul.f32 %v2376_v26, %v3279_v7  ;;  %v1706_v59 = vpop.xlane.xlu0 %1705 }
 0x377   :  { %v2378_v42 = vpop.eup %2377  ;;  %v1739_v44 = vmul.f32 0.0078125, %v1706_v59 }
 0x378   :  { %v1870_v4 = vmul.f32 %v3311_v2, %v1831_v52  ;;  %v1832_v25 = vmul.f32 %v2378_v42, %v3282_v17  ;;  %v1708_v5 = vpop.xlane.xlu1 %1707 }
 0x379   :  { %v1771_v45 = vadd.f32 1e-05, %v1739_v44  ;;  %v1740_v48 = vmul.f32 0.0078125, %v1708_v5 }
 0x37a   :  { %v1909_v3 = vadd.f32 %v3317_v35, %v1870_v4  ;;  %v1871_v58 = vmul.f32 %v3311_v2, %v1832_v25 }
 0x37b   :  { %2383 = vrsqrt.f32 %v1771_v45  ;;  %v1772_v53 = vadd.f32 1e-05, %v1740_v48 }
 0x37c   :  { %1941 = vst [vmem:[%s3517_s7 + $0xd0] sm:$0xff] %v1909_v3  ;;  %v1910_v7 = vadd.f32 %v3317_v35, %v1871_v58 }
 0x37d   :  { %v2380_v38 = vpop.eup %2379  ;;  %2385 = vrsqrt.f32 %v1772_v53 }
 0x37e   :  { %1942 = vst [vmem:[%s3517_s7 + $0xd8] sm:$0xff] %v1910_v7  ;;  %v1833_v17 = vmul.f32 %v2380_v38, %v3289_v30 }
 0x37f   :  { %v2382_v60 = vpop.eup %2381 }
 0x380   :  { %v1872_v47 = vmul.f32 %v3311_v2, %v1833_v17  ;;  %v1834_v61 = vmul.f32 %v2382_v60, %v3292_v39 }
 0x382   :  { %v1911_v62 = vadd.f32 %v3317_v35, %v1872_v47  ;;  %v1873_v22 = vmul.f32 %v3311_v2, %v1834_v61 }
 0x384   :  { %1943 = vst [vmem:[%s3517_s7 + $0xe0] sm:$0xff] %v1911_v62  ;;  %v1912_v34 = vadd.f32 %v3317_v35, %v1873_v22 }
 0x385   :  { %v2384_v8 = vpop.eup %2383 }
 0x386   :  { %1944 = vst [vmem:[%s3517_s7 + $0xe8] sm:$0xff] %v1912_v34  ;;  %v1835_v30 = vmul.f32 %v2384_v8, %v3299_v55 }
 0x387   :  { %v2386_v15 = vpop.eup %2385 }
 0x388   :  { %v1874_v39 = vmul.f32 %v3311_v2, %v1835_v30  ;;  %v1836_v36 = vmul.f32 %v2386_v15, %v3302_v6 }
 0x38a   :  { %v1913_v16 = vadd.f32 %v3317_v35, %v1874_v39  ;;  %v1875_v10 = vmul.f32 %v3311_v2, %v1836_v36 }
 0x38c   :  { %1945 = vst [vmem:[%s3517_s7 + $0xf0] sm:$0xff] %v1913_v16  ;;  %v1914_v37 = vadd.f32 %v3317_v35, %v1875_v10 }
 0x38e   :  { %1946 = vst [vmem:[%s3517_s7 + $0xf8] sm:$0xff] %v1914_v37 }

// kernel: alibi_decoder_forward.5
= control target key start
LH: loop header
LB: loop body
LE: loop exit
PB: predicated region body
PF: predicated region fallthrough
CT: control target
= control target key end

     0   :  { %s4227_s21 = smov 0   ;;  %s6141_s0 = inlined_call_operand.vmem [shape: f32[2,128,128], index: 0, kind: input, shape index: {}]   ;;  %s6142_s1 = inlined_call_operand.vmem [shape: bf16[128,384], index: 1, kind: input, shape index: {}]   ;;  %s6143_s2 = inlined_call_operand.vmem [shape: f32[4,128,128], index: 2, kind: input, shape index: {}]   ;;  %s6144_s3 = inlined_call_operand.vmem [shape: f32[1,128], index: 3, kind: input, shape index: {}]   ;;  %s6145_s4 = inlined_call_operand.vmem [shape: f32[1,128], index: 4, kind: input, shape index: {}]   ;;  %s6146_s5 = inlined_call_operand.vmem [shape: f32[2,128,128], index: 5, kind: output, shape index: {0}]   ;;  %s6147_s6 = inlined_call_operand.vmem [shape: f32[2,4,128,128], index: 6, kind: output, shape index: {1}]  }
   0x1 LB: > { %s3294_s22 = sadd.s32 4294967295, %s4186_s21   ;;  %p3298_p0 = scmp.ge.s32.totalorder %s4186_s21, 1  ;;  %s4186_s21 = sphi %s4227_s21, %s17_s21  }
   0x2   : > { %p215_p1 = scmp.lt.s32.totalorder %s4186_s21, 3 }
   0x4   : > { %p216_p2 = pnand %p3298_p0, %p215_p1 }
   0x6   : > { %219 = sbr.rel (%p216_p2) target bundleno = 1870 (0x74e), region = 40 }
   0xd   : > { %v3844_v0 = vld [vmem:[%s6142_s1 + $0x4] ss:$12 sps:$4 sm:$0xff]   ;;  %p250_p3 = scmp.lt.s32.totalorder %s3294_s22, 1  ;;  %v3846_v1 = vld [vmem:[%s6142_s1] ss:$12 sps:$4 sm:$0xff]   ;;  %v4188_v2 = vmov 0  }
   0xe   : > { %482 = vmatprep.mubr.bf16.mxu0 %v4188_v2  ;;  %450 = vmatprep.subr.bf16.mxu0 %v3844_v0  ;;  %v3847_v3 = vld [vmem:[%s6142_s1 + $0x1c] ss:$12 sps:$4 sm:$0xff]   ;;  %v3849_v4 = vld [vmem:[%s6142_s1 + $0x18] ss:$12 sps:$4 sm:$0xff]   ;;  %v3850_v5 = vld [vmem:[%s6142_s1 + $0x34] ss:$12 sps:$4 sm:$0xff]  }
   0xf   : > { %s6279_s22 = smov (!%p250_p3, %s3294_s22), 1  ;;  %451 = vmatpush1.bf16.msra.mxu0 %v3846_v1  ;;  %v3852_v6 = vld [vmem:[%s6142_s1 + $0x30] ss:$12 sps:$4 sm:$0xff]   ;;  %v3853_v7 = vld [vmem:[%s6142_s1 + $0x4c] ss:$12 sps:$4 sm:$0xff]   ;;  %vm876_vm0 = vcmask 261120  }
  0x10   : > { %452 = vmatprep.subr.bf16.mxu0 %v3847_v3  ;;  %s3365_s9 = sshll.u32 %s6279_s22, 7  ;;  %v3855_v9 = vld [vmem:[%s6142_s1 + $0x48] ss:$12 sps:$4 sm:$0xff]   ;;  %v3856_v11 = vld [vmem:[%s6142_s1 + $0x64] ss:$12 sps:$4 sm:$0xff]   ;;  %s4189_s10 = smov 96  }
  0x11   : > { %s4262_s14 = scalar_lea.vmem %s6141_s0, %s3365_s9  ;;  %v3858_v13 = vld [vmem:[%s6142_s1 + $0x60] ss:$12 sps:$4 sm:$0xff]   ;;  %v3859_v14 = vld [vmem:[%s6142_s1 + $0x7c] ss:$12 sps:$4 sm:$0xff]   ;;  %v3861_v17 = vld [vmem:[%s6142_s1 + $0x78] ss:$12 sps:$4 sm:$0xff]   ;;  %s6074_s7 = scalar_lea.vmem %s6146_s5, %s3365_s9 }
  0x12   : > { %v266_v8 = vld [vmem:[%s4262_s14] sm:$0xff]  ;;  %v267_v10 = vld [vmem:[%s4262_s14 + $0x8] sm:$0xff]  ;;  %v3864_v20 = vld [vmem:[%s6142_s1 + $0x90] ss:$12 sps:$4 sm:$0xff]   ;;  %s4190_s11 = smov 64   ;;  %s4191_s12 = smov 32  }
  0x13   : > { %453 = vmatpush1.bf16.msra.mxu0 %v3849_v4  ;;  %v282_v12 = vpack.c.bf16 %v267_v10, %v266_v8  ;;  %v3868_v15 = vld [vmem:[%s6142_s1 + $0x8] ss:$12 sps:$4 sm:$0xff]   ;;  %v3869_v16 = vld [vmem:[%s6142_s1 + $0x20] ss:$12 sps:$4 sm:$0xff]   ;;  %v3870_v19 = vld [vmem:[%s6142_s1 + $0x38] ss:$12 sps:$4 sm:$0xff]  }
  0x14   : > { %454 = vmatprep.subr.bf16.mxu0 %v3850_v5  ;;  %3512 = vmatprep.subr.bf16.mxu1 %v3868_v15  ;;  %v3862_v18 = vld [vmem:[%s6142_s1 + $0x94] ss:$12 sps:$4 sm:$0xff]   ;;  %v3865_v21 = vld [vmem:[%s6142_s1 + $0xac] ss:$12 sps:$4 sm:$0xff]   ;;  %v3871_v22 = vld [vmem:[%s6142_s1 + $0x50] ss:$12 sps:$4 sm:$0xff]  }
  0x15   : > { %3528 = vmatprep.mubr.bf16.mxu1 %v282_v12  ;;  %3513 = vmatpush3.bf16.msra.mxu1 %v3868_v15  ;;  %v3867_v23 = vld [vmem:[%s6142_s1 + $0xa8] ss:$12 sps:$4 sm:$0xff]   ;;  %v3873_v25 = vld [vmem:[%s6142_s1 + $0x80] ss:$12 sps:$4 sm:$0xff]   ;;  %v269_v27 = vld [vmem:[%s4262_s14 + $0x18] sm:$0xff]  ;;  %s3367_s25 = sshll.u32 %s6279_s22, 9 }
  0x16   : > { %3514 = vmatprep.subr.bf16.mxu1 %v3869_v16  ;;  %v3872_v24 = vld [vmem:[%s6142_s1 + $0x68] ss:$12 sps:$4 sm:$0xff]   ;;  %v3874_v28 = vld [vmem:[%s6142_s1 + $0x98] ss:$12 sps:$4 sm:$0xff]   ;;  %v3875_v30 = vld [vmem:[%s6142_s1 + $0xb0] ss:$12 sps:$4 sm:$0xff]   ;;  %s5362_s28 = scalar_lea.vmem %s6147_s6, %s3367_s25 }
  0x17   : > { %455 = vmatpush1.bf16.msra.mxu0 %v3852_v6  ;;  %v268_v26 = vld [vmem:[%s4262_s14 + $0x10] sm:$0xff]  ;;  %v270_v31 = vld [vmem:[%s4262_s14 + $0x20] sm:$0xff]  ;;  %v271_v32 = vld [vmem:[%s4262_s14 + $0x28] sm:$0xff]  ;;  %vm2917_vm1 = vcmask 523264   ;;  %vm2934_vm2 = vcmask 785408  }
  0x18   : > { %456 = vmatprep.subr.bf16.mxu0 %v3853_v7  ;;  %v283_v29 = vpack.c.bf16 %v269_v27, %v268_v26  ;;  %v284_v33 = vpack.c.bf16 %v271_v32, %v270_v31  ;;  %v272_v34 = vld [vmem:[%s4262_s14 + $0x30] sm:$0xff]  ;;  %v273_v35 = vld [vmem:[%s4262_s14 + $0x38] sm:$0xff]  ;;  %v274_v37 = vld [vmem:[%s4262_s14 + $0x40] sm:$0xff] }
  0x19   : > { %3515 = vmatpush3.bf16.msra.mxu1 %v3869_v16  ;;  %v285_v36 = vpack.c.bf16 %v273_v35, %v272_v34  ;;  %v275_v38 = vld [vmem:[%s4262_s14 + $0x48] sm:$0xff]  ;;  %v276_v40 = vld [vmem:[%s4262_s14 + $0x50] sm:$0xff]  ;;  %v277_v41 = vld [vmem:[%s4262_s14 + $0x58] sm:$0xff] }
  0x1a   : > { %3516 = vmatprep.subr.bf16.mxu1 %v3870_v19  ;;  %v286_v39 = vpack.c.bf16 %v275_v38, %v274_v37  ;;  %v278_v42 = vld [vmem:[%s4262_s14 + $0x60] sm:$0xff]  ;;  %v279_v43 = vld [vmem:[%s4262_s14 + $0x68] sm:$0xff]  ;;  %v287_v44 = vpack.c.bf16 %v277_v41, %v276_v40  ;;  %v280_v46 = vld [vmem:[%s4262_s14 + $0x70] sm:$0xff] }
  0x1b   : > { %457 = vmatpush1.bf16.msra.mxu0 %v3855_v9  ;;  %v288_v45 = vpack.c.bf16 %v279_v43, %v278_v42  ;;  %v281_v47 = vld [vmem:[%s4262_s14 + $0x78] sm:$0xff] }
  0x1c   : > { %458 = vmatprep.subr.bf16.mxu0 %v3856_v11  ;;  %v289_v48 = vpack.c.bf16 %v281_v47, %v280_v46 }
  0x1d   : > { %3517 = vmatpush3.bf16.msra.mxu1 %v3870_v19 }
  0x1e   : > { %3518 = vmatprep.subr.bf16.mxu1 %v3871_v22 }
  0x1f   : > { %459 = vmatpush1.bf16.msra.mxu0 %v3858_v13 }
  0x20   : > { %460 = vmatprep.subr.bf16.mxu0 %v3859_v14 }
  0x21   : > { %3519 = vmatpush3.bf16.msra.mxu1 %v3871_v22 }
  0x22   : > { %3520 = vmatprep.subr.bf16.mxu1 %v3872_v24 }
  0x23   : > { %461 = vmatpush1.bf16.msra.mxu0 %v3861_v17 }
  0x24   : > { %462 = vmatprep.subr.bf16.mxu0 %v3862_v18 }
  0x25   : > { %3521 = vmatpush3.bf16.msra.mxu1 %v3872_v24 }
  0x26   : > { %3522 = vmatprep.subr.bf16.mxu1 %v3873_v25 }
  0x27   : > { %463 = vmatpush1.bf16.msra.mxu0 %v3864_v20 }
  0x28   : > { %464 = vmatprep.subr.bf16.mxu0 %v3865_v21 }
  0x29   : > { %3523 = vmatpush3.bf16.msra.mxu1 %v3873_v25 }
  0x2a   : > { %3524 = vmatprep.subr.bf16.mxu1 %v3874_v28 }
  0x2b   : > { %465 = vmatpush1.bf16.msra.mxu0 %v3867_v23 }
  0x2d   : > { %3525 = vmatpush3.bf16.msra.mxu1 %v3874_v28 }
  0x2e   : > { %483 = vmatmul.mubr.bf16.vlgmr.msra.gmra.mrb[0].mxu0 %v282_v12  ;;  %3526 = vmatprep.subr.bf16.mxu1 %v3875_v30 }
  0x2f   : > { %492 = vmatprep.mubr.bf16.mxu0 %v4188_v2 }
  0x31   : > { %3527 = vmatpush3.bf16.msra.mxu1 %v3875_v30 }
  0x34   : > { %3529 = vmatmul.mubr.bf16.vlgmr.msra.gmra.mrb[0].mxu1 %v283_v29 }
  0x35   : > { %3532 = vmatprep.mubr.bf16.mxu1 %v284_v33 }
  0x36   : > { %493 = vmatmul.mubr.bf16.gmra.mrb[4].mxu0 %v283_v29 }
  0x37   : > { %502 = vmatprep.mubr.bf16.mxu0 %v4188_v2 }
  0x3c   : > { %3533 = vmatmul.mubr.bf16.gmra.mrb[4].mxu1 %v285_v36 }
  0x3d   : > { %3536 = vmatprep.mubr.bf16.mxu1 %v286_v39 }
  0x3e   : > { %503 = vmatmul.mubr.bf16.gmra.mrb[8].mxu0 %v284_v33 }
  0x3f   : > { %512 = vmatprep.mubr.bf16.mxu0 %v4188_v2 }
  0x44   : > { %3537 = vmatmul.mubr.bf16.gmra.mrb[8].mxu1 %v287_v44 }
  0x45   : > { %3540 = vmatprep.mubr.bf16.mxu1 %v288_v45 }
  0x46   : > { %513 = vmatmul.mubr.bf16.gmra.mrb[12].mxu0 %v285_v36 }
  0x47   : > { %522 = vmatprep.mubr.bf16.mxu0 %v4188_v2 }
  0x4c   : > { %3541 = vmatmul.mubr.bf16.gmra.mrb[12].mxu1 %v289_v48 }
  0x4e   : > { %523 = vmatmul.mubr.bf16.gmra.mrb[16].mxu0 %v286_v39 }
  0x4f   : > { %532 = vmatprep.mubr.bf16.mxu0 %v4188_v2 }
  0x56   : > { %533 = vmatmul.mubr.bf16.gmra.mrb[20].mxu0 %v287_v44 }
  0x57   : > { %542 = vmatprep.mubr.bf16.mxu0 %v4188_v2 }
  0x5e   : > { %543 = vmatmul.mubr.bf16.gmra.mrb[24].mxu0 %v288_v45 }
  0x5f   : > { %552 = vmatprep.mubr.bf16.mxu0 %v4188_v2 }
  0x66   : > { %553 = vmatmul.mubr.bf16.gmra.mrb[28].mxu0 %v289_v48 }
 0x101   : > { %v484_v49 = vpop.f32.mrb[0].mxu0 }
 0x102   : > { %v486_v50 = vpop.f32.mrb[1].mxu0 }
 0x103   : > { %v488_v51 = vpop.f32.mrb[2].mxu0 }
 0x104   : > { %v4341_v52 = vpack.c.bf16 %v488_v51, %v484_v49  ;;  %v490_v53 = vpop.f32.mrb[3].mxu0 }
 0x105   : > { %v4343_v54 = vpack.c.bf16 %v490_v53, %v486_v50 }
 0x106   : > { %692 = vrot.lane.b32.xlu0 %v4341_v52, %s4189_s10  ;;  %3800 = vmatprep.subr.msk.bf16.mxu0 %vm876_vm0, %v4341_v52  ;;  %v902_v55 = vsel %vm876_vm0, %v4341_v52, 0 }
 0x107   : > { %3545 = vmatpush3.bf16.xpose.msra.mxu0 %v902_v55  ;;  %3560 = vmatprep.mubr.msk.bf16.mxu0 %vm876_vm0, %v4343_v54  ;;  %v3530_v41 = vpop.f32.mrb[0].mxu1 }
 0x108   : > { %v597_v42 = vpop.f32.mrb[1].mxu1 }
 0x109   : > { %v494_v56 = vpop.f32.mrb[4].mxu0  ;;  %v3531_v43 = vpop.f32.mrb[2].mxu1 }
 0x10a   : > { %v496_v57 = vpop.f32.mrb[5].mxu0  ;;  %v4422_v44 = vpack.c.bf16 %v3531_v43, %v3530_v41  ;;  %v600_v45 = vpop.f32.mrb[3].mxu1 }
 0x10b   : > { %v498_v58 = vpop.f32.mrb[6].mxu0  ;;  %v4428_v46 = vpack.c.bf16 %v600_v45, %v597_v42 }
 0x10c   : > { %v4353_v59 = vpack.c.bf16 %v498_v58, %v494_v56  ;;  %v500_v60 = vpop.f32.mrb[7].mxu0 }
 0x10d   : > { %v4355_v61 = vpack.c.bf16 %v500_v60, %v496_v57 }
 0x10e   : > { %694 = vrot.lane.b32.xlu0 %v4353_v59, %s4189_s10  ;;  %3801 = vmatprep.subr.msk.bf16.mxu0 %vm876_vm0, %v4353_v59  ;;  %v905_v62 = vsel %vm876_vm0, %v4353_v59, 0 }
 0x10f   : > { %3547 = vmatpush3.bf16.xpose.msra.mxu0 %v905_v62  ;;  %v3534_v47 = vpop.f32.mrb[4].mxu1 }
 0x110   : > { %v613_v48 = vpop.f32.mrb[5].mxu1 }
 0x111   : > { %v504_v63 = vpop.f32.mrb[8].mxu0  ;;  %v3535_v49 = vpop.f32.mrb[6].mxu1 }
 0x112   : > { %v506_v0 = vpop.f32.mrb[9].mxu0  ;;  %v4430_v50 = vpack.c.bf16 %v3535_v49, %v3534_v47  ;;  %v616_v51 = vpop.f32.mrb[7].mxu1 }
 0x113   : > { %v508_v1 = vpop.f32.mrb[10].mxu0  ;;  %v4436_v53 = vpack.c.bf16 %v616_v51, %v613_v48 }
 0x114   : > { %v4363_v2 = vpack.c.bf16 %v508_v1, %v504_v63  ;;  %v510_v3 = vpop.f32.mrb[11].mxu0 }
 0x115   : > { %v4365_v4 = vpack.c.bf16 %v510_v3, %v506_v0 }
 0x116   : > { %696 = vrot.lane.b32.xlu1 %v4363_v2, %s4189_s10  ;;  %3802 = vmatprep.subr.msk.bf16.mxu0 %vm876_vm0, %v4363_v2  ;;  %v908_v5 = vsel %vm876_vm0, %v4363_v2, 0 }
 0x117   : > { %3549 = vmatpush3.bf16.xpose.msra.mxu0 %v908_v5  ;;  %v3538_v55 = vpop.f32.mrb[8].mxu1 }
 0x119   : > { %v514_v6 = vpop.f32.mrb[12].mxu0 }
 0x11a   : > { %v516_v7 = vpop.f32.mrb[13].mxu0 }
 0x11b   : > { %v518_v8 = vpop.f32.mrb[14].mxu0 }
 0x11c   : > { %v4373_v9 = vpack.c.bf16 %v518_v8, %v514_v6  ;;  %v520_v10 = vpop.f32.mrb[15].mxu0 }
 0x11d   : > { %v4375_v11 = vpack.c.bf16 %v520_v10, %v516_v7 }
 0x11e   : > { %698 = vrot.lane.b32.xlu1 %v4373_v9, %s4189_s10  ;;  %3803 = vmatprep.subr.msk.bf16.mxu0 %vm876_vm0, %v4373_v9  ;;  %v911_v12 = vsel %vm876_vm0, %v4373_v9, 0 }
 0x11f   : > { %3551 = vmatpush3.bf16.xpose.msra.mxu0 %v911_v12 }
 0x121   : > { %v524_v13 = vpop.f32.mrb[16].mxu0 }
 0x122   : > { %v526_v14 = vpop.f32.mrb[17].mxu0 }
 0x123   : > { %v528_v15 = vpop.f32.mrb[18].mxu0 }
 0x124   : > { %v4383_v16 = vpack.c.bf16 %v528_v15, %v524_v13  ;;  %v530_v17 = vpop.f32.mrb[19].mxu0 }
 0x125   : > { %v4385_v18 = vpack.c.bf16 %v530_v17, %v526_v14 }
 0x126   : > { %700 = vrot.lane.b32.xlu0 %v4383_v16, %s4189_s10  ;;  %3804 = vmatprep.subr.msk.bf16.mxu0 %vm876_vm0, %v4383_v16  ;;  %v914_v19 = vsel %vm876_vm0, %v4383_v16, 0 }
 0x127   : > { %3553 = vmatpush3.bf16.xpose.msra.mxu0 %v914_v19 }
 0x129   : > { %v534_v20 = vpop.f32.mrb[20].mxu0 }
 0x12a   : > { %v536_v21 = vpop.f32.mrb[21].mxu0 }
 0x12b   : > { %v538_v22 = vpop.f32.mrb[22].mxu0 }
 0x12c   : > { %v4393_v23 = vpack.c.bf16 %v538_v22, %v534_v20  ;;  %v540_v24 = vpop.f32.mrb[23].mxu0 }
 0x12d   : > { %v4395_v25 = vpack.c.bf16 %v540_v24, %v536_v21 }
 0x12e   : > { %702 = vrot.lane.b32.xlu1 %v4393_v23, %s4189_s10  ;;  %3805 = vmatprep.subr.msk.bf16.mxu0 %vm876_vm0, %v4393_v23  ;;  %v917_v26 = vsel %vm876_vm0, %v4393_v23, 0 }
 0x12f   : > { %3555 = vmatpush3.bf16.xpose.msra.mxu0 %v917_v26 }
 0x131   : > { %v544_v27 = vpop.f32.mrb[24].mxu0 }
 0x132   : > { %v546_v28 = vpop.f32.mrb[25].mxu0 }
 0x133   : > { %v548_v29 = vpop.f32.mrb[26].mxu0 }
 0x134   : > { %v4403_v30 = vpack.c.bf16 %v548_v29, %v544_v27  ;;  %v550_v31 = vpop.f32.mrb[27].mxu0 }
 0x135   : > { %v4405_v32 = vpack.c.bf16 %v550_v31, %v546_v28 }
 0x136   : > { %704 = vrot.lane.b32.xlu0 %v4403_v30, %s4189_s10  ;;  %3806 = vmatprep.subr.msk.bf16.mxu0 %vm876_vm0, %v4403_v30  ;;  %v920_v33 = vsel %vm876_vm0, %v4403_v30, 0 }
 0x137   : > { %3557 = vmatpush3.bf16.xpose.msra.mxu0 %v920_v33 }
 0x139   : > { %v554_v34 = vpop.f32.mrb[28].mxu0 }
 0x13a   : > { %708 = vrot.lane.b32.xlu0 %v4341_v52, %s4190_s11  ;;  %v556_v35 = vpop.f32.mrb[29].mxu0 }
 0x13b   : > { %v558_v36 = vpop.f32.mrb[30].mxu0 }
 0x13c   : > { %v681_v37 = vpack.c.bf16 %v558_v36, %v554_v34  ;;  %v560_v38 = vpop.f32.mrb[31].mxu0 }
 0x13d   : > { %v4415_v39 = vpack.c.bf16 %v560_v38, %v556_v35 }
 0x13e   : > { %748 = vrot.lane.b32.xlu0 %v4343_v54, %s4189_s10  ;;  %706 = vrot.lane.b32.xlu1 %v681_v37, %s4189_s10  ;;  %v923_v40 = vsel %vm876_vm0, %v681_v37, 0 }
 0x13f   : > { %3807 = vmatprep.subr.msk.bf16.mxu0 %vm876_vm0, %v681_v37 }
 0x140   : > { %3559 = vmatpush3.bf16.xpose.msra.mxu0 %v923_v40 }
 0x142   : > { %710 = vrot.lane.b32.xlu0 %v4353_v59, %s4190_s11  ;;  %724 = vrot.lane.b32.xlu1 %v4341_v52, %s4191_s12  ;;  %v629_v52 = vpop.f32.mrb[9].mxu1 }
 0x143   : > { %v3539_v56 = vpop.f32.mrb[10].mxu1 }
 0x144   : > { %v4442_v57 = vpack.c.bf16 %v3539_v56, %v3538_v55  ;;  %v632_v58 = vpop.f32.mrb[11].mxu1 }
 0x145   : > { %v4448_v60 = vpack.c.bf16 %v632_v58, %v629_v52  ;;  %v3542_v62 = vpop.f32.mrb[12].mxu1 }
 0x146   : > { %712 = vrot.lane.b32.xlu0 %v4363_v2, %s4190_s11  ;;  %750 = vrot.lane.b32.xlu1 %v4355_v61, %s4189_s10  ;;  %v645_v63 = vpop.f32.mrb[13].mxu1 }
 0x147   : > { %3561 = vmatmul.mubr.msk.bf16.vlgmr.msra.gmra.mrb[32].mxu0 %vm876_vm0, %v4355_v61  ;;  %v3543_v0 = vpop.f32.mrb[14].mxu1 }
 0x148   : > { %3564 = vmatprep.mubr.msk.bf16.mxu0 %vm876_vm0, %v4365_v4  ;;  %v4450_v1 = vpack.c.bf16 %v3543_v0, %v3542_v62  ;;  %v648_v3 = vpop.f32.mrb[15].mxu1 }
 0x149   : > { %v4456_v5 = vpack.c.bf16 %v648_v3, %v645_v63 }
 0x14a   : > { %714 = vrot.lane.b32.xlu0 %v4373_v9, %s4190_s11  ;;  %726 = vrot.lane.b32.xlu1 %v4353_v59, %s4191_s12  ;;  %6192 = vst [vmem:[#allocation2_spill] sm:$0xff] %v4450_v1 }
 0x14e   : > { %716 = vrot.lane.b32.xlu0 %v4383_v16, %s4190_s11  ;;  %728 = vrot.lane.b32.xlu1 %v4363_v2, %s4191_s12 }
 0x14f   : > { %3565 = vmatmul.mubr.msk.bf16.gmra.mrb[36].mxu0 %vm876_vm0, %v4375_v11 }
 0x150   : > { %3568 = vmatprep.mubr.msk.bf16.mxu0 %vm876_vm0, %v4385_v18 }
 0x152   : > { %718 = vrot.lane.b32.xlu0 %v4393_v23, %s4190_s11  ;;  %730 = vrot.lane.b32.xlu1 %v4373_v9, %s4191_s12 }
 0x156   : > { %734 = vrot.lane.b32.xlu0 %v4393_v23, %s4191_s12  ;;  %732 = vrot.lane.b32.xlu1 %v4383_v16, %s4191_s12 }
 0x157   : > { %3569 = vmatmul.mubr.msk.bf16.gmra.mrb[40].mxu0 %vm876_vm0, %v4395_v25 }
 0x158   : > { %3572 = vmatprep.mubr.msk.bf16.mxu0 %vm876_vm0, %v4405_v32 }
 0x15a   : > { %720 = vrot.lane.b32.xlu0 %v4403_v30, %s4190_s11  ;;  %752 = vrot.lane.b32.xlu1 %v4365_v4, %s4189_s10 }
 0x15e   : > { %736 = vrot.lane.b32.xlu0 %v4403_v30, %s4191_s12  ;;  %754 = vrot.lane.b32.xlu1 %v4375_v11, %s4189_s10 }
 0x15f   : > { %3573 = vmatmul.mubr.msk.bf16.gmra.mrb[44].mxu0 %vm876_vm0, %v4415_v39 }
 0x162   : > { %722 = vrot.lane.b32.xlu0 %v681_v37, %s4190_s11  ;;  %756 = vrot.lane.b32.xlu1 %v4385_v18, %s4189_s10 }
 0x166   : > { %738 = vrot.lane.b32.xlu0 %v681_v37, %s4191_s12  ;;  %758 = vrot.lane.b32.xlu1 %v4395_v25, %s4189_s10 }
 0x16a   : > { %764 = vrot.lane.b32.xlu0 %v4343_v54, %s4190_s11  ;;  %760 = vrot.lane.b32.xlu1 %v4405_v32, %s4189_s10 }
 0x16e   : > { %780 = vrot.lane.b32.xlu0 %v4343_v54, %s4191_s12  ;;  %762 = vrot.lane.b32.xlu1 %v4415_v39, %s4189_s10 }
 0x172   : > { %768 = vrot.lane.b32.xlu0 %v4365_v4, %s4190_s11  ;;  %766 = vrot.lane.b32.xlu1 %v4355_v61, %s4190_s11 }
 0x176   : > { %784 = vrot.lane.b32.xlu0 %v4365_v4, %s4191_s12  ;;  %782 = vrot.lane.b32.xlu1 %v4355_v61, %s4191_s12 }
 0x178   : > { %v693_v59 = vpop.permute.xlu0 %692 }
 0x179   : > { %3808 = vmatprep.subr.msk.bf16.mxu1 %vm876_vm0, %v693_v59  ;;  %v1047_v54 = vsel %vm876_vm0, %v693_v59, 0 }
 0x17a   : > { %3577 = vmatpush3.bf16.xpose.msra.mxu1 %v1047_v54  ;;  %772 = vrot.lane.b32.xlu0 %v4385_v18, %s4190_s11 }
 0x17b   : > { %770 = vrot.lane.b32.xlu1 %v4375_v11, %s4190_s11 }
 0x17e   : > { %788 = vrot.lane.b32.xlu0 %v4385_v18, %s4191_s12 }
 0x17f   : > { %786 = vrot.lane.b32.xlu1 %v4375_v11, %s4191_s12 }
 0x180   : > { %v695_v2 = vpop.permute.xlu0 %694 }
 0x181   : > { %3809 = vmatprep.subr.msk.bf16.mxu1 %vm876_vm0, %v695_v2  ;;  %v1050_v61 = vsel %vm876_vm0, %v695_v2, 0 }
 0x182   : > { %3579 = vmatpush3.bf16.xpose.msra.mxu1 %v1050_v61  ;;  %776 = vrot.lane.b32.xlu0 %v4405_v32, %s4190_s11 }
 0x183   : > { %774 = vrot.lane.b32.xlu1 %v4395_v25, %s4190_s11 }
 0x186   : > { %792 = vrot.lane.b32.xlu0 %v4405_v32, %s4191_s12 }
 0x187   : > { %790 = vrot.lane.b32.xlu1 %v4395_v25, %s4191_s12 }
 0x188   : > { %v697_v4 = vpop.permute.xlu1 %696 }
 0x189   : > { %3810 = vmatprep.subr.msk.bf16.mxu1 %vm876_vm0, %v697_v4  ;;  %v1053_v6 = vsel %vm876_vm0, %v697_v4, 0 }
 0x18a   : > { %3581 = vmatpush3.bf16.xpose.msra.mxu1 %v1053_v6  ;;  %806 = vrot.lane.b32.xlu0 %v4422_v44, %s4189_s10 }
 0x18b   : > { %778 = vrot.lane.b32.xlu1 %v4415_v39, %s4190_s11 }
 0x18e   : > { %808 = vrot.lane.b32.xlu0 %v4436_v53, %s4189_s10 }
 0x18f   : > { %794 = vrot.lane.b32.xlu1 %v4415_v39, %s4191_s12 }
 0x190   : > { %v699_v7 = vpop.permute.xlu1 %698 }
 0x191   : > { %3811 = vmatprep.subr.msk.bf16.mxu1 %vm876_vm0, %v699_v7  ;;  %v1056_v8 = vsel %vm876_vm0, %v699_v7, 0 }
 0x192   : > { %3583 = vmatpush3.bf16.xpose.msra.mxu1 %v1056_v8  ;;  %812 = vrot.lane.b32.xlu0 %v4448_v60, %s4189_s10 }
 0x193   : > { %804 = vrot.lane.b32.xlu1 %v4428_v46, %s4189_s10 }
 0x196   : > { %814 = vrot.lane.b32.xlu0 %v4442_v57, %s4189_s10 }
 0x197   : > { %810 = vrot.lane.b32.xlu1 %v4430_v50, %s4189_s10 }
 0x198   : > { %v701_v9 = vpop.permute.xlu0 %700 }
 0x199   : > { %3812 = vmatprep.subr.msk.bf16.mxu1 %vm876_vm0, %v701_v9  ;;  %v1059_v10 = vsel %vm876_vm0, %v701_v9, 0 }
 0x19a   : > { %3585 = vmatpush3.bf16.xpose.msra.mxu1 %v1059_v10  ;;  %818 = vrot.lane.b32.xlu0 %v4450_v1, %s4189_s10 }
 0x19b   : > { %816 = vrot.lane.b32.xlu1 %v4456_v5, %s4189_s10 }
 0x19e   : > { %854 = vrot.lane.b32.xlu0 %v4422_v44, %s4191_s12 }
 0x19f   : > { %828 = vrot.lane.b32.xlu1 %v4428_v46, %s4190_s11 }
 0x1a0   : > { %v703_v11 = vpop.permute.xlu1 %702 }
 0x1a1   : > { %3813 = vmatprep.subr.msk.bf16.mxu1 %vm876_vm0, %v703_v11  ;;  %v1062_v12 = vsel %vm876_vm0, %v703_v11, 0 }
 0x1a2   : > { %3587 = vmatpush3.bf16.xpose.msra.mxu1 %v1062_v12  ;;  %858 = vrot.lane.b32.xlu0 %v4430_v50, %s4191_s12 }
 0x1a3   : > { %852 = vrot.lane.b32.xlu1 %v4428_v46, %s4191_s12 }
 0x1a6   : > { %862 = vrot.lane.b32.xlu0 %v4442_v57, %s4191_s12 }
 0x1a7   : > { %830 = vrot.lane.b32.xlu1 %v4422_v44, %s4190_s11 }
 0x1a8   : > { %v705_v13 = vpop.permute.xlu0 %704 }
 0x1a9   : > { %3814 = vmatprep.subr.msk.bf16.mxu1 %vm876_vm0, %v705_v13  ;;  %v1065_v14 = vsel %vm876_vm0, %v705_v13, 0 }
 0x1aa   : > { %3589 = vmatpush3.bf16.xpose.msra.mxu1 %v1065_v14 }
 0x1ab   : > { %832 = vrot.lane.b32.xlu1 %v4436_v53, %s4190_s11 }
 0x1ac   : > { %v709_v15 = vpop.permute.xlu0 %708 }
 0x1ad   : > { %3816 = vmatprep.subr.msk.bf16.mxu0 %vm876_vm0, %v709_v15  ;;  %v1192_v16 = vsel %vm876_vm0, %v709_v15, 0 }
 0x1ae   : > { %3609 = vmatpush3.bf16.xpose.msra.mxu0 %v1192_v16 }
 0x1af   : > { %856 = vrot.lane.b32.xlu1 %v4436_v53, %s4191_s12 }
 0x1b0   : > { %v749_v17 = vpop.permute.xlu0 %748  ;;  %v707_v18 = vpop.permute.xlu1 %706 }
 0x1b1   : > { %3815 = vmatprep.subr.msk.bf16.mxu1 %vm876_vm0, %v707_v18  ;;  %3592 = vmatprep.mubr.msk.bf16.mxu1 %vm876_vm0, %v749_v17  ;;  %v1068_v19 = vsel %vm876_vm0, %v707_v18, 0 }
 0x1b2   : > { %3591 = vmatpush3.bf16.xpose.msra.mxu1 %v1068_v19  ;;  %v1523_v19 = vld [vmem:[%s6143_s2 + $0x10] sm:$0xff] }
 0x1b3   : > { %834 = vrot.lane.b32.xlu1 %v4430_v50, %s4190_s11 }
 0x1b4   : > { %v711_v20 = vpop.permute.xlu0 %710  ;;  %v725_v21 = vpop.permute.xlu1 %724 }
 0x1b5   : > { %3817 = vmatprep.subr.msk.bf16.mxu0 %vm876_vm0, %v711_v20  ;;  %3824 = vmatprep.subr.msk.bf16.mxu1 %vm876_vm0, %v725_v21  ;;  %v1195_v22 = vsel %vm876_vm0, %v711_v20, 0  ;;  %v1337_v25 = vsel %vm876_vm0, %v725_v21, 0 }
 0x1b6   : > { %3611 = vmatpush3.bf16.xpose.msra.mxu0 %v1195_v22 }
 0x1b7   : > { %836 = vrot.lane.b32.xlu1 %v4448_v60, %s4190_s11 }
 0x1b8   : > { %v713_v23 = vpop.permute.xlu0 %712  ;;  %v751_v24 = vpop.permute.xlu1 %750 }
 0x1b9   : > { %3593 = vmatmul.mubr.msk.bf16.vlgmr.msra.gmra.mrb[16].mxu1 %vm876_vm0, %v751_v24  ;;  %3818 = vmatprep.subr.msk.bf16.mxu0 %vm876_vm0, %v713_v23  ;;  %v1198_v28 = vsel %vm876_vm0, %v713_v23, 0 }
 0x1ba   : > { %3641 = vmatpush3.bf16.xpose.msra.mxu1 %v1337_v25 }
 0x1bb   : > { %860 = vrot.lane.b32.xlu1 %v4448_v60, %s4191_s12 }
 0x1bc   : > { %v715_v26 = vpop.permute.xlu0 %714  ;;  %v727_v27 = vpop.permute.xlu1 %726 }
 0x1bd   : > { %3825 = vmatprep.subr.msk.bf16.mxu1 %vm876_vm0, %v727_v27  ;;  %v1340_v31 = vsel %vm876_vm0, %v727_v27, 0  ;;  %v1201_v34 = vsel %vm876_vm0, %v715_v26, 0 }
 0x1be   : > { %3613 = vmatpush3.bf16.xpose.msra.mxu0 %v1198_v28  ;;  %v1521_v28 = vld [vmem:[%s6143_s2] sm:$0xff] }
 0x1bf   : > { %3819 = vmatprep.subr.msk.bf16.mxu0 %vm876_vm0, %v715_v26  ;;  %838 = vrot.lane.b32.xlu1 %v4442_v57, %s4190_s11  ;;  %v1522_v26 = vld [vmem:[%s6143_s2 + $0x8] sm:$0xff] }
 0x1c0   : > { %v717_v29 = vpop.permute.xlu0 %716  ;;  %v729_v30 = vpop.permute.xlu1 %728 }
 0x1c1   : > { %v1343_v37 = vsel %vm876_vm0, %v729_v30, 0  ;;  %v1204_v40 = vsel %vm876_vm0, %v717_v29, 0 }
 0x1c2   : > { %3643 = vmatpush3.bf16.xpose.msra.mxu1 %v1340_v31 }
 0x1c3   : > { %3826 = vmatprep.subr.msk.bf16.mxu1 %vm876_vm0, %v729_v30  ;;  %840 = vrot.lane.b32.xlu1 %v4456_v5, %s4190_s11 }
 0x1c4   : > { %v719_v32 = vpop.permute.xlu0 %718  ;;  %v731_v33 = vpop.permute.xlu1 %730 }
 0x1c5   : > { %v1346_v43 = vsel %vm876_vm0, %v731_v33, 0  ;;  %v1207_v48 = vsel %vm876_vm0, %v719_v32, 0 }
 0x1c6   : > { %3615 = vmatpush3.bf16.xpose.msra.mxu0 %v1201_v34  ;;  %v1524_v34 = vld [vmem:[%s6143_s2 + $0x18] sm:$0xff] }
 0x1c7   : > { %3820 = vmatprep.subr.msk.bf16.mxu0 %vm876_vm0, %v717_v29  ;;  %864 = vrot.lane.b32.xlu1 %v4456_v5, %s4191_s12 }
 0x1c8   : > { %v735_v35 = vpop.permute.xlu0 %734  ;;  %v733_v36 = vpop.permute.xlu1 %732 }
 0x1c9   : > { %v1349_v55 = vsel %vm876_vm0, %v733_v36, 0  ;;  %v1352_v0 = vsel %vm876_vm0, %v735_v35, 0 }
 0x1ca   : > { %3645 = vmatpush3.bf16.xpose.msra.mxu1 %v1343_v37 }
 0x1cb   : > { %3827 = vmatprep.subr.msk.bf16.mxu1 %vm876_vm0, %v731_v33 }
 0x1cc   : > { %v721_v38 = vpop.permute.xlu0 %720  ;;  %v753_v39 = vpop.permute.xlu1 %752 }
 0x1cd   : > { %3596 = vmatprep.mubr.msk.bf16.mxu1 %vm876_vm0, %v753_v39  ;;  %v1210_v58 = vsel %vm876_vm0, %v721_v38, 0 }
 0x1ce   : > { %3617 = vmatpush3.bf16.xpose.msra.mxu0 %v1204_v40 }
 0x1cf   : > { %3821 = vmatprep.subr.msk.bf16.mxu0 %vm876_vm0, %v719_v32 }
 0x1d0   : > { %v737_v41 = vpop.permute.xlu0 %736  ;;  %v755_v42 = vpop.permute.xlu1 %754 }
 0x1d1   : > { %3597 = vmatmul.mubr.msk.bf16.gmra.mrb[20].mxu1 %vm876_vm0, %v755_v42  ;;  %v1355_v4 = vsel %vm876_vm0, %v737_v41, 0 }
 0x1d2   : > { %3647 = vmatpush3.bf16.xpose.msra.mxu1 %v1346_v43 }
 0x1d3   : > { %3828 = vmatprep.subr.msk.bf16.mxu1 %vm876_vm0, %v733_v36 }
 0x1d4   : > { %v723_v45 = vpop.permute.xlu0 %722  ;;  %v757_v47 = vpop.permute.xlu1 %756 }
 0x1d5   : > { %3600 = vmatprep.mubr.msk.bf16.mxu1 %vm876_vm0, %v757_v47  ;;  %v1213_v54 = vsel %vm876_vm0, %v723_v45, 0  ;;  %v1528_v47 = vld [vmem:[%s6143_s2 + $0x38] sm:$0xff] }
 0x1d6   : > { %3619 = vmatpush3.bf16.xpose.msra.mxu0 %v1207_v48  ;;  %v1525_v48 = vld [vmem:[%s6143_s2 + $0x20] sm:$0xff] }
 0x1d7   : > { %3822 = vmatprep.subr.msk.bf16.mxu0 %vm876_vm0, %v721_v38 }
 0x1d8   : > { %v739_v49 = vpop.permute.xlu0 %738  ;;  %v759_v51 = vpop.permute.xlu1 %758 }
 0x1d9   : > { %3601 = vmatmul.mubr.msk.bf16.gmra.mrb[24].mxu1 %vm876_vm0, %v759_v51  ;;  %v1358_v9 = vsel %vm876_vm0, %v739_v49, 0 }
 0x1da   : > { %3649 = vmatpush3.bf16.xpose.msra.mxu1 %v1349_v55 }
 0x1db   : > { %3829 = vmatprep.subr.msk.bf16.mxu1 %vm876_vm0, %v735_v35  ;;  %v1527_v35 = vld [vmem:[%s6143_s2 + $0x30] sm:$0xff] }
 0x1dc   : > { %v765_v52 = vpop.permute.xlu0 %764  ;;  %v761_v56 = vpop.permute.xlu1 %760 }
 0x1dd   : > { %3604 = vmatprep.mubr.msk.bf16.mxu1 %vm876_vm0, %v761_v56  ;;  %3624 = vmatprep.mubr.msk.bf16.mxu0 %vm876_vm0, %v765_v52  ;;  %v1526_v56 = vld [vmem:[%s6143_s2 + $0x28] sm:$0xff] }
 0x1de   : > { %3621 = vmatpush3.bf16.xpose.msra.mxu0 %v1210_v58  ;;  %v1531_v58 = vld [vmem:[%s6143_s2 + $0x50] sm:$0xff] }
 0x1df   : > { %3823 = vmatprep.subr.msk.bf16.mxu0 %vm876_vm0, %v723_v45 }
 0x1e0   : > { %v781_v62 = vpop.permute.xlu0 %780  ;;  %v763_v63 = vpop.permute.xlu1 %762 }
 0x1e1   : > { %3605 = vmatmul.mubr.msk.bf16.gmra.mrb[28].mxu1 %vm876_vm0, %v763_v63 }
 0x1e2   : > { %3651 = vmatpush3.bf16.xpose.msra.mxu1 %v1352_v0  ;;  %3656 = vmatprep.mubr.msk.bf16.mxu1 %vm876_vm0, %v781_v62 }
 0x1e3   : > { %3830 = vmatprep.subr.msk.bf16.mxu1 %vm876_vm0, %v737_v41 }
 0x1e4   : > { %v769_v3 = vpop.permute.xlu0 %768  ;;  %v767_v59 = vpop.permute.xlu1 %766 }
 0x1e6   : > { %3623 = vmatpush3.bf16.xpose.msra.mxu0 %v1213_v54 }
 0x1e7   : > { %3672 = vmatprep.subr.bf16.mxu0 %v4428_v46 }
 0x1e8   : > { %v785_v2 = vpop.permute.xlu0 %784  ;;  %v783_v61 = vpop.permute.xlu1 %782 }
 0x1ea   : > { %3653 = vmatpush3.bf16.xpose.msra.mxu1 %v1355_v4  ;;  %v1532_v4 = vld [vmem:[%s6143_s2 + $0x58] sm:$0xff] }
 0x1eb   : > { %3831 = vmatprep.subr.msk.bf16.mxu1 %vm876_vm0, %v739_v49 }
 0x1ec   : > { %v773_v6 = vpop.permute.xlu0 %772 }
 0x1ed   : > { %v771_v7 = vpop.permute.xlu1 %770  ;;  %3625 = vmatmul.mubr.msk.bf16.vlgmr.msra.gmra.mrb[48].mxu0 %vm876_vm0, %v767_v59 }
 0x1ee   : > { %3628 = vmatprep.mubr.msk.bf16.mxu0 %vm876_vm0, %v769_v3  ;;  %3673 = vmatpush3.bf16.msra.mxu0 %v4428_v46 }
 0x1ef   : > { %3674 = vmatprep.subr.bf16.mxu0 %v4422_v44 }
 0x1f0   : > { %v789_v10 = vpop.permute.xlu0 %788 }
 0x1f1   : > { %v787_v8 = vpop.permute.xlu1 %786 }
 0x1f2   : > { %3655 = vmatpush3.bf16.xpose.msra.mxu1 %v1358_v9  ;;  %3675 = vmatpush3.bf16.msra.mxu0 %v4422_v44 }
 0x1f3   : > { %3676 = vmatprep.subr.bf16.mxu0 %v4436_v53 }
 0x1f4   : > { %v777_v46 = vpop.permute.xlu0 %776 }
 0x1f5   : > { %v775_v11 = vpop.permute.xlu1 %774  ;;  %3629 = vmatmul.mubr.msk.bf16.gmra.mrb[52].mxu0 %vm876_vm0, %v771_v7 }
 0x1f6   : > { %3632 = vmatprep.mubr.msk.bf16.mxu0 %vm876_vm0, %v773_v6  ;;  %3677 = vmatpush3.bf16.msra.mxu0 %v4436_v53  ;;  %v1529_v6 = vld [vmem:[%s6143_s2 + $0x40] sm:$0xff] }
 0x1f7   : > { %3678 = vmatprep.subr.bf16.mxu0 %v4430_v50 }
 0x1f8   : > { %v793_v53 = vpop.permute.xlu0 %792 }
 0x1f9   : > { %v791_v12 = vpop.permute.xlu1 %790  ;;  %3657 = vmatmul.mubr.msk.bf16.vlgmr.msra.gmra.mrb[32].mxu1 %vm876_vm0, %v783_v61 }
 0x1fa   : > { %3660 = vmatprep.mubr.msk.bf16.mxu1 %vm876_vm0, %v785_v2  ;;  %3679 = vmatpush3.bf16.msra.mxu0 %v4430_v50 }
 0x1fb   : > { %3680 = vmatprep.subr.bf16.mxu0 %v4448_v60 }
 0x1fc   : > { %v807_v50 = vpop.permute.xlu0 %806 }
 0x1fd   : > { %v779_v44 = vpop.permute.xlu1 %778  ;;  %3633 = vmatmul.mubr.msk.bf16.gmra.mrb[56].mxu0 %vm876_vm0, %v775_v11  ;;  %v1530_v11 = vld [vmem:[%s6143_s2 + $0x48] sm:$0xff] }
 0x1fe   : > { %3636 = vmatprep.mubr.msk.bf16.mxu0 %vm876_vm0, %v777_v46  ;;  %3681 = vmatpush3.bf16.msra.mxu0 %v4448_v60  ;;  %v1535_v46 = vld [vmem:[%s6143_s2 + $0x70] sm:$0xff] }
 0x1ff   : > { %3682 = vmatprep.subr.bf16.mxu0 %v4442_v57 }
 0x200   : > { %v809_v15 = vpop.permute.xlu0 %808 }
 0x201   : > { %v795_v13 = vpop.permute.xlu1 %794  ;;  %3661 = vmatmul.mubr.msk.bf16.gmra.mrb[36].mxu1 %vm876_vm0, %v787_v8 }
 0x202   : > { %3664 = vmatprep.mubr.msk.bf16.mxu1 %vm876_vm0, %v789_v10  ;;  %3683 = vmatpush3.bf16.msra.mxu0 %v4442_v57 }
 0x203   : > { %3684 = vmatprep.subr.bf16.mxu0 %v4456_v5 }
 0x204   : > { %v813_v16 = vpop.permute.xlu0 %812 }
 0x205   : > { %3637 = vmatmul.mubr.msk.bf16.gmra.mrb[60].mxu0 %vm876_vm0, %v779_v44  ;;  %v805_v14 = vpop.permute.xlu1 %804 }
 0x206   : > { %3685 = vmatpush3.bf16.msra.mxu0 %v4456_v5  ;;  %3704 = vmatprep.subr.bf16.mxu1 %v805_v14 }
 0x207   : > { %3686 = vmatprep.subr.bf16.mxu0 %v4450_v1  ;;  %3705 = vmatpush3.bf16.msra.mxu1 %v805_v14 }
 0x208   : > { %3706 = vmatprep.subr.bf16.mxu1 %v807_v50  ;;  %v815_v17 = vpop.permute.xlu0 %814 }
 0x209   : > { %3665 = vmatmul.mubr.msk.bf16.gmra.mrb[40].mxu1 %vm876_vm0, %v791_v12  ;;  %v811_v60 = vpop.permute.xlu1 %810 }
 0x20a   : > { %3668 = vmatprep.mubr.msk.bf16.mxu1 %vm876_vm0, %v793_v53  ;;  %3687 = vmatpush3.bf16.msra.mxu0 %v4450_v1 }
 0x20b   : > { %3707 = vmatpush3.bf16.msra.mxu1 %v807_v50 }
 0x20c   : > { %3708 = vmatprep.subr.bf16.mxu1 %v809_v15  ;;  %v819_v29 = vpop.permute.xlu0 %818 }
 0x20d   : > { %v817_v57 = vpop.permute.xlu1 %816 }
 0x20f   : > { %3709 = vmatpush3.bf16.msra.mxu1 %v809_v15 }
 0x210   : > { %3710 = vmatprep.subr.bf16.mxu1 %v811_v60 }
 0x211   : > { %3669 = vmatmul.mubr.msk.bf16.gmra.mrb[44].mxu1 %vm876_vm0, %v795_v13  ;;  %v4658_v5 = vpop.permute.xlu1 %828 }
 0x212   : > { %6193 = vst [vmem:[#allocation3_spill] sm:$0xff] %v4658_v5  ;;  %3736 = vmatprep.subr.bf16.mxu0 %v4658_v5 }
 0x213   : > { %3711 = vmatpush3.bf16.msra.mxu1 %v811_v60 }
 0x214   : > { %3712 = vmatprep.subr.bf16.mxu1 %v813_v16 }
 0x215   : > { %v4685_v38 = vpop.permute.xlu1 %852 }
 0x216   : > { %6194 = vst [vmem:[#allocation4_spill] sm:$0xff] %v4685_v38 }
 0x217   : > { %3713 = vmatpush3.bf16.msra.mxu1 %v813_v16  ;;  %v1536_v16 = vld [vmem:[%s6143_s2 + $0x78] sm:$0xff] }
 0x218   : > { %3714 = vmatprep.subr.bf16.mxu1 %v815_v17 }
 0x21a   : > { %v3562_v18 = vpop.f32.mrb[32].mxu0 }
 0x21b   : > { %v1459_v20 = vmul.f32 0.088388346, %v3562_v18  ;;  %v959_v21 = vpop.f32.mrb[33].mxu0  ;;  %3715 = vmatpush3.bf16.msra.mxu1 %v815_v17 }
 0x21c   : > { %v3563_v22 = vpop.f32.mrb[34].mxu0  ;;  %3716 = vmatprep.subr.bf16.mxu1 %v817_v57  ;;  %v1457_v23 = vmul.f32 0.088388346, %v959_v21 }
 0x21d   : > { %v962_v24 = vpop.f32.mrb[35].mxu0  ;;  %v4664_v25 = vadd.f32 %v1523_v19, %v1459_v20  ;;  %v1460_v31 = vmul.f32 0.088388346, %v3563_v22  ;;  %v1534_v20 = vld [vmem:[%s6143_s2 + $0x68] sm:$0xff] }
 0x21e   : > { %v1458_v27 = vmul.f32 0.088388346, %v962_v24  ;;  %v4675_v32 = vadd.f32 %v1521_v28, %v1457_v23  ;;  %v1539_v23 = vld [vmem:[%s6143_s2 + $0x90] sm:$0xff]  ;;  %v1540_v28 = vld [vmem:[%s6143_s2 + $0x98] sm:$0xff] }
 0x21f   : > { %1653 = vmax.xlane.f32.xlu0 %v4664_v25  ;;  %3717 = vmatpush3.bf16.msra.mxu1 %v817_v57  ;;  %v4688_v43 = vadd.f32 %v1524_v34, %v1460_v31  ;;  %v1533_v57 = vld [vmem:[%s6143_s2 + $0x60] sm:$0xff] }
 0x220   : > { %v4673_v30 = vadd.f32 %v1522_v26, %v1458_v27  ;;  %3718 = vmatprep.subr.bf16.mxu1 %v819_v29 }
 0x222   : > { %v3566_v33 = vpop.f32.mrb[36].mxu0  ;;  %1651 = vmax.xlane.f32.xlu1 %v4673_v30 }
 0x223   : > { %v1463_v36 = vmul.f32 0.088388346, %v3566_v33  ;;  %1649 = vmax.xlane.f32.xlu0 %v4675_v32  ;;  %v975_v37 = vpop.f32.mrb[37].mxu0  ;;  %3719 = vmatpush3.bf16.msra.mxu1 %v819_v29 }
 0x224   : > { %v3567_v39 = vpop.f32.mrb[38].mxu0  ;;  %3768 = vmatprep.subr.bf16.mxu1 %v4685_v38  ;;  %v1461_v40 = vmul.f32 0.088388346, %v975_v37 }
 0x225   : > { %v1464_v41 = vmul.f32 0.088388346, %v3567_v39  ;;  %v978_v42 = vpop.f32.mrb[39].mxu0  ;;  %v4690_v45 = vadd.f32 %v1527_v35, %v1463_v36 }
 0x226   : > { %v1462_v49 = vmul.f32 0.088388346, %v978_v42  ;;  %v4702_v55 = vadd.f32 %v1525_v48, %v1461_v40 }
 0x227   : > { %1655 = vmax.xlane.f32.xlu0 %v4688_v43  ;;  %1661 = vmax.xlane.f32.xlu1 %v4690_v45  ;;  %v4700_v51 = vadd.f32 %v1528_v47, %v1464_v41  ;;  %v4782_v47 = vpop.permute.xlu1 %830 }
 0x228   : > { %v4712_v2 = vadd.f32 %v1526_v56, %v1462_v49  ;;  %6195 = vst [vmem:[#allocation5_spill] sm:$0xff] %v4782_v47 }
 0x22a   : > { %v3570_v52 = vpop.f32.mrb[40].mxu0 }
 0x22b   : > { %v1467_v62 = vmul.f32 0.088388346, %v3570_v52  ;;  %1663 = vmax.xlane.f32.xlu0 %v4700_v51  ;;  %v991_v63 = vpop.f32.mrb[41].mxu0  ;;  %1657 = vmax.xlane.f32.xlu1 %v4702_v55  ;;  %v4786_v49 = vpop.permute.xlu1 %832 }
 0x22c   : > { %v3571_v0 = vpop.f32.mrb[42].mxu0  ;;  %v1465_v3 = vmul.f32 0.088388346, %v991_v63  ;;  %6196 = vst [vmem:[#allocation6_spill] sm:$0xff] %v4786_v49 }
 0x22d   : > { %v1468_v59 = vmul.f32 0.088388346, %v3571_v0  ;;  %v994_v54 = vpop.f32.mrb[43].mxu0  ;;  %v4714_v61 = vadd.f32 %v1531_v58, %v1467_v62 }
 0x22e   : > { %v1466_v7 = vmul.f32 0.088388346, %v994_v54  ;;  %v4726_v9 = vadd.f32 %v1529_v6, %v1465_v3  ;;  %v1555_v3 = vld [vmem:[%s6143_s2 + $0x110] sm:$0xff] }
 0x22f   : > { %1659 = vmax.xlane.f32.xlu0 %v4712_v2  ;;  %1669 = vmax.xlane.f32.xlu1 %v4714_v61  ;;  %v4724_v8 = vadd.f32 %v1532_v4, %v1468_v59  ;;  %v4796_v63 = vpop.permute.xlu1 %856 }
 0x230   : > { %v4736_v60 = vadd.f32 %v1530_v11, %v1466_v7  ;;  %6197 = vst [vmem:[#allocation7_spill] sm:$0xff] %v4796_v63  ;;  %v1556_v7 = vld [vmem:[%s6143_s2 + $0x118] sm:$0xff] }
 0x232   : > { %v3574_v10 = vpop.f32.mrb[44].mxu0 }
 0x233   : > { %v1471_v12 = vmul.f32 0.088388346, %v3574_v10  ;;  %1671 = vmax.xlane.f32.xlu0 %v4724_v8  ;;  %1665 = vmax.xlane.f32.xlu1 %v4726_v9  ;;  %v1007_v44 = vpop.f32.mrb[45].mxu0  ;;  %v4801_v59 = vpop.permute.xlu1 %834 }
 0x234   : > { %v3575_v53 = vpop.f32.mrb[46].mxu0  ;;  %v1469_v13 = vmul.f32 0.088388346, %v1007_v44  ;;  %6198 = vst [vmem:[#allocation8_spill] sm:$0xff] %v4801_v59  ;;  %v1537_v44 = vld [vmem:[%s6143_s2 + $0x80] sm:$0xff] }
 0x235   : > { %v1472_v50 = vmul.f32 0.088388346, %v3575_v53  ;;  %v1010_v14 = vpop.f32.mrb[47].mxu0  ;;  %v4738_v15 = vadd.f32 %v1535_v46, %v1471_v12 }
 0x236   : > { %v1470_v17 = vmul.f32 0.088388346, %v1010_v14  ;;  %v4748_v18 = vadd.f32 %v1533_v57, %v1469_v13 }
 0x237   : > { %1667 = vmax.xlane.f32.xlu0 %v4736_v60  ;;  %1677 = vmax.xlane.f32.xlu1 %v4738_v15  ;;  %v4750_v19 = vadd.f32 %v1536_v16, %v1472_v50  ;;  %v1538_v50 = vld [vmem:[%s6143_s2 + $0x88] sm:$0xff]  ;;  %v4817_v14 = vpop.permute.xlu1 %836 }
 0x238   : > { %v4757_v21 = vadd.f32 %v1534_v20, %v1470_v17  ;;  %6199 = vst [vmem:[#allocation9_spill] sm:$0xff] %v4817_v14  ;;  %v1553_v20 = vld [vmem:[%s6143_s2 + $0x100] sm:$0xff] }
 0x23b   : > { %1673 = vmax.xlane.f32.xlu1 %v4748_v18  ;;  %1679 = vmax.xlane.f32.xlu0 %v4750_v19 }
 0x23f   : > { %1675 = vmax.xlane.f32.xlu0 %v4757_v21 }
 0x28c   : > { %v3594_v22 = vpop.f32.mrb[16].mxu1 }
 0x28d   : > { %v1475_v24 = vmul.f32 0.088388346, %v3594_v22  ;;  %v1104_v26 = vpop.f32.mrb[17].mxu1 }
 0x28e   : > { %v3595_v27 = vpop.f32.mrb[18].mxu1  ;;  %v1473_v10 = vmul.f32 0.088388346, %v1104_v26 }
 0x28f   : > { %v1476_v29 = vmul.f32 0.088388346, %v3595_v27  ;;  %v1107_v31 = vpop.f32.mrb[19].mxu1  ;;  %v4766_v33 = vadd.f32 %v1539_v23, %v1475_v24  ;;  %v1554_v27 = vld [vmem:[%s6143_s2 + $0x108] sm:$0xff] }
 0x290   : > { %v1474_v53 = vmul.f32 0.088388346, %v1107_v31  ;;  %v4820_v16 = vadd.f32 %v1537_v44, %v1473_v10  ;;  %v1544_v10 = vld [vmem:[%s6143_s2 + $0xb8] sm:$0xff] }
 0x291   : > { %1685 = vmax.xlane.f32.xlu1 %v4766_v33  ;;  %v4769_v34 = vadd.f32 %v1540_v28, %v1476_v29 }
 0x292   : > { %v4826_v24 = vadd.f32 %v1538_v50, %v1474_v53  ;;  %v1559_v53 = vld [vmem:[%s6143_s2 + $0x130] sm:$0xff] }
 0x293   : > { %1687 = vmax.xlane.f32.xlu0 %v4769_v34 }
 0x294   : > { %6200 = vst [vmem:[#allocation10_spill] sm:$0xff] %v4826_v24 }
 0x2a4   : > { %v3598_v35 = vpop.f32.mrb[20].mxu1 }
 0x2a5   : > { %v4772_v36 = vpop.f32.mrb[21].mxu1  ;;  %v1479_v28 = vmul.f32 0.088388346, %v3598_v35 }
 0x2a6   : > { %v3599_v37 = vpop.f32.mrb[22].mxu1 }
 0x2a7   : > { %v4774_v39 = vpop.f32.mrb[23].mxu1 }
 0x2ac   : > { %v4776_v40 = vpop.f32.mrb[24].mxu1 }
 0x2ad   : > { %v4778_v41 = vpop.f32.mrb[25].mxu1  ;;  %v1483_v49 = vmul.f32 0.088388346, %v4776_v40  ;;  %v1548_v40 = vld [vmem:[%s6143_s2 + $0xd8] sm:$0xff] }
 0x2ae   : > { %v4780_v42 = vpop.f32.mrb[26].mxu1 }
 0x2af   : > { %v4784_v48 = vpop.f32.mrb[27].mxu1  ;;  %v1484_v5 = vmul.f32 0.088388346, %v4780_v42  ;;  %v1563_v42 = vld [vmem:[%s6143_s2 + $0x150] sm:$0xff] }
 0x2b4   : > { %v4788_v52 = vpop.f32.mrb[28].mxu1 }
 0x2b5   : > { %v4790_v56 = vpop.f32.mrb[29].mxu1 }
 0x2b6   : > { %v4792_v58 = vpop.f32.mrb[30].mxu1 }
 0x2b7   : > { %v4794_v62 = vpop.f32.mrb[31].mxu1 }
 0x2c0   : > { %v3626_v0 = vpop.f32.mrb[48].mxu0 }
 0x2c1   : > { %v1491_v54 = vmul.f32 0.088388346, %v3626_v0  ;;  %v1249_v4 = vpop.f32.mrb[49].mxu0  ;;  %v1543_v0 = vld [vmem:[%s6143_s2 + $0xb0] sm:$0xff] }
 0x2c2   : > { %v3627_v6 = vpop.f32.mrb[50].mxu0  ;;  %v1489_v57 = vmul.f32 0.088388346, %v1249_v4  ;;  %v1480_v4 = vmul.f32 0.088388346, %v3599_v37  ;;  %v4856_v37 = vpop.permute.xlu0 %854 }
 0x2c3   : > { %v1492_v11 = vmul.f32 0.088388346, %v3627_v6  ;;  %v1252_v46 = vpop.f32.mrb[51].mxu0  ;;  %v4806_v12 = vadd.f32 %v1555_v3, %v1491_v54  ;;  %v4839_v54 = vpop.permute.xlu1 %860  ;;  %6203 = vst [vmem:[#allocation13_spill] sm:$0xff] %v4856_v37  ;;  %v1478_v37 = vmul.f32 0.088388346, %v4774_v39 }
 0x2c4   : > { %v1490_v22 = vmul.f32 0.088388346, %v1252_v46  ;;  %v4832_v31 = vadd.f32 %v1553_v20, %v1489_v57  ;;  %6201 = vst [vmem:[#allocation11_spill] sm:$0xff] %v4839_v54 }
 0x2c5   : > { %1717 = vmax.xlane.f32.xlu1 %v4806_v12  ;;  %v4812_v13 = vadd.f32 %v1556_v7, %v1492_v11  ;;  %v4851_v11 = vadd.f32 %v1543_v0, %v1479_v28  ;;  %v1477_v0 = vmul.f32 0.088388346, %v4772_v36 }
 0x2c6   : > { %v4844_v7 = vadd.f32 %v1554_v27, %v1490_v22  ;;  %v4864_v22 = vadd.f32 %v1544_v10, %v1480_v4  ;;  %v4877_v63 = vpop.permute.xlu0 %858  ;;  %v1541_v4 = vld [vmem:[%s6143_s2 + $0xa0] sm:$0xff] }
 0x2c7   : > { %1719 = vmax.xlane.f32.xlu0 %v4812_v13  ;;  %6202 = vst [vmem:[#allocation12_spill] sm:$0xff] %v4851_v11  ;;  %v4869_v28 = vpop.permute.xlu1 %838  ;;  %6207 = vst [vmem:[#allocation17_spill] sm:$0xff] %v4877_v63  ;;  %v4895_v63 = vadd.f32 %v1541_v4, %v1477_v0 }
 0x2c8   : > { %v3630_v17 = vpop.f32.mrb[52].mxu0  ;;  %6204 = vst [vmem:[#allocation14_spill] sm:$0xff] %v4864_v22  ;;  %6205 = vst [vmem:[#allocation15_spill] sm:$0xff] %v4869_v28 }
 0x2c9   : > { %1681 = vmax.xlane.f32.xlu1 %v4820_v16  ;;  %v1265_v23 = vpop.f32.mrb[53].mxu0  ;;  %v1495_v46 = vmul.f32 0.088388346, %v3630_v17  ;;  %v1560_v17 = vld [vmem:[%s6143_s2 + $0x138] sm:$0xff]  ;;  %6209 = vst [vmem:[#allocation19_spill] sm:$0xff] %v4895_v63 }
 0x2ca   : > { %v3631_v26 = vpop.f32.mrb[54].mxu0  ;;  %v1493_v1 = vmul.f32 0.088388346, %v1265_v23  ;;  %v4900_v39 = vpop.permute.xlu0 %862 }
 0x2cb   : > { %1683 = vmax.xlane.f32.xlu0 %v4826_v24  ;;  %v1268_v29 = vpop.f32.mrb[55].mxu0  ;;  %v1496_v57 = vmul.f32 0.088388346, %v3631_v26  ;;  %v4872_v54 = vadd.f32 %v1559_v53, %v1495_v46  ;;  %v1542_v53 = vld [vmem:[%s6143_s2 + $0xa8] sm:$0xff]  ;;  %6210 = vst [vmem:[#allocation20_spill] sm:$0xff] %v4900_v39  ;;  %v4907_v14 = vpop.permute.xlu1 %840 }
 0x2cc   : > { %v4837_v3 = vpop.f32.mrb[32].mxu1  ;;  %6211 = vst [vmem:[#allocation21_spill] sm:$0xff] %v4907_v14  ;;  %v1494_v59 = vmul.f32 0.088388346, %v1268_v29  ;;  %v4912_v23 = vadd.f32 %v1542_v53, %v1478_v37  ;;  %v1558_v39 = vld [vmem:[%s6143_s2 + $0x128] sm:$0xff]  ;;  %v1547_v29 = vld [vmem:[%s6143_s2 + $0xd0] sm:$0xff] }
 0x2cd   : > { %v4841_v6 = vpop.f32.mrb[33].mxu1  ;;  %1713 = vmax.xlane.f32.xlu1 %v4832_v31  ;;  %6206 = vst [vmem:[#allocation16_spill] sm:$0xff] %v4872_v54  ;;  %v4888_v36 = vadd.f32 %v1560_v17, %v1496_v57  ;;  %v1557_v57 = vld [vmem:[%s6143_s2 + $0x120] sm:$0xff] }
 0x2ce   : > { %v4846_v35 = vpop.f32.mrb[34].mxu1  ;;  %6212 = vst [vmem:[#allocation22_spill] sm:$0xff] %v4912_v23  ;;  %v4920_v47 = vadd.f32 %v1557_v57, %v1493_v1  ;;  %v4930_v53 = vpop.xlane.xlu0 %1653  ;;  %v4936_v1 = vadd.f32 %v1558_v39, %v1494_v59  ;;  %v4953_v59 = vadd.f32 %v1548_v40, %v1484_v5  ;;  %v1545_v5 = vld [vmem:[%s6143_s2 + $0xc0] sm:$0xff]  ;;  %v1482_v40 = vmul.f32 0.088388346, %v4784_v48 }
 0x2cf   : > { %v4853_v44 = vpop.f32.mrb[35].mxu1  ;;  %1715 = vmax.xlane.f32.xlu0 %v4844_v7  ;;  %6208 = vst [vmem:[#allocation18_spill] sm:$0xff] %v4888_v36  ;;  %v1561_v48 = vld [vmem:[%s6143_s2 + $0x140] sm:$0xff] }
 0x2d0   : > { %v3634_v50 = vpop.f32.mrb[56].mxu0  ;;  %6213 = vst [vmem:[#allocation23_spill] sm:$0xff] %v4920_v47  ;;  %6214 = vst [vmem:[#allocation24_spill] sm:$0xff] %v4936_v1 }
 0x2d1   : > { %1693 = vmax.xlane.f32.xlu1 %v4851_v11  ;;  %v4862_v20 = vpop.f32.mrb[57].mxu0  ;;  %6217 = vst [vmem:[#allocation27_spill] sm:$0xff] %v4953_v59 }
 0x2d2   : > { %v3635_v27 = vpop.f32.mrb[58].mxu0 }
 0x2d3   : > { %1695 = vmax.xlane.f32.xlu0 %v4864_v22  ;;  %v4875_v26 = vpop.f32.mrb[59].mxu0  ;;  %v1500_v39 = vmul.f32 0.088388346, %v3635_v27 }
 0x2d4   : > { %v4882_v10 = vpop.f32.mrb[36].mxu1  ;;  %v1498_v11 = vmul.f32 0.088388346, %v4875_v26 }
 0x2d5   : > { %v4885_v38 = vpop.f32.mrb[37].mxu1  ;;  %1725 = vmax.xlane.f32.xlu1 %v4872_v54 }
 0x2d6   : > { %v4890_v46 = vpop.f32.mrb[38].mxu1 }
 0x2d7   : > { %v4897_v28 = vpop.f32.mrb[39].mxu1  ;;  %1727 = vmax.xlane.f32.xlu0 %v4888_v36  ;;  %v1499_v36 = vmul.f32 0.088388346, %v3634_v50 }
 0x2d8   : > { %v4905_v17 = vpop.f32.mrb[60].mxu0 }
 0x2d9   : > { %1689 = vmax.xlane.f32.xlu1 %v4895_v63  ;;  %v4910_v0 = vpop.f32.mrb[61].mxu0  ;;  %v4945_v63 = vadd.f32 %v1547_v29, %v1483_v49  ;;  %v1481_v49 = vmul.f32 0.088388346, %v4778_v41  ;;  %v4962_v29 = vpop.xlane.xlu0 %1649  ;;  %v1546_v41 = vld [vmem:[%s6143_s2 + $0xc8] sm:$0xff] }
 0x2da   : > { %v4914_v4 = vpop.f32.mrb[62].mxu0 }
 0x2db   : > { %1691 = vmax.xlane.f32.xlu0 %v4912_v23  ;;  %v4923_v14 = vpop.f32.mrb[63].mxu0  ;;  %v4943_v23 = vpop.permute.xlu1 %864  ;;  %6216 = vst [vmem:[#allocation26_spill] sm:$0xff] %v4945_v63 }
 0x2dc   : > { %v4928_v37 = vpop.f32.mrb[40].mxu1  ;;  %6215 = vst [vmem:[#allocation25_spill] sm:$0xff] %v4943_v23  ;;  %v1564_v23 = vld [vmem:[%s6143_s2 + $0x158] sm:$0xff] }
 0x2dd   : > { %v4933_v22 = vpop.f32.mrb[41].mxu1  ;;  %1721 = vmax.xlane.f32.xlu1 %v4920_v47 }
 0x2de   : > { %v4941_v57 = vpop.f32.mrb[42].mxu1 }
 0x2df   : > { %v4947_v54 = vpop.f32.mrb[43].mxu1  ;;  %1723 = vmax.xlane.f32.xlu0 %v4936_v1  ;;  %v4960_v50 = vpop.xlane.xlu1 %1651  ;;  %v4964_v1 = vadd.f32 %v1563_v42, %v1499_v36  ;;  %v4983_v42 = vadd.f32 %v1545_v5, %v1481_v49  ;;  %v1487_v49 = vmul.f32 0.088388346, %v4788_v52  ;;  %v1552_v52 = vld [vmem:[%s6143_s2 + $0xf8] sm:$0xff] }
 0x2e1   : > { %1701 = vmax.xlane.f32.xlu1 %v4945_v63  ;;  %6218 = vst [vmem:[#allocation28_spill] sm:$0xff] %v4964_v1  ;;  %v4973_v63 = vadd.f32 %v1564_v23, %v1500_v39  ;;  %6220 = vst [vmem:[#allocation30_spill] sm:$0xff] %v4983_v42  ;;  %v4992_v23 = vadd.f32 %v1546_v41, %v1482_v40  ;;  %v1656_v39 = vpop.xlane.xlu0 %1655  ;;  %v1551_v40 = vld [vmem:[%s6143_s2 + $0xf0] sm:$0xff]  ;;  %v1488_v41 = vmul.f32 0.088388346, %v4792_v58 }
 0x2e2   : > { %v1779_v58 = vsub.f32 %v4664_v25, %v4930_v53 }
 0x2e3   : > { %1703 = vmax.xlane.f32.xlu0 %v4953_v59  ;;  %6219 = vst [vmem:[#allocation29_spill] sm:$0xff] %v4973_v63  ;;  %v1497_v59 = vmul.f32 0.088388346, %v4862_v20  ;;  %6221 = vst [vmem:[#allocation31_spill] sm:$0xff] %v4992_v23  ;;  %v1562_v20 = vld [vmem:[%s6143_s2 + $0x148] sm:$0xff] }
 0x2e4   : > { %v4970_v27 = vpop.f32.mrb[44].mxu1  ;;  %v1845_v53 = vmul.f32 1.442695, %v1779_v58  ;;  %v1501_v58 = vmul.f32 0.088388346, %v4910_v0 }
 0x2e5   : > { %v4975_v47 = vpop.f32.mrb[45].mxu1  ;;  %1733 = vmax.xlane.f32.xlu1 %v4964_v1  ;;  %v1662_v1 = vpop.xlane.xlu1 %1661  ;;  %v5000_v5 = vadd.f32 %v1561_v48, %v1497_v59  ;;  %v5014_v59 = vadd.f32 %v1551_v40, %v1487_v49  ;;  %v1485_v40 = vmul.f32 0.088388346, %v4790_v56 }
 0x2e6   : > { %v4981_v36 = vpop.f32.mrb[46].mxu1  ;;  %v1783_v26 = vsub.f32 %v4690_v45, %v1662_v1  ;;  %v1664_v48 = vpop.xlane.xlu0 %1663  ;;  %v5023_v45 = vadd.f32 %v1552_v52, %v1488_v41  ;;  %v1504_v1 = vmul.f32 0.088388346, %v4914_v4  ;;  %v1777_v41 = vsub.f32 %v4675_v32, %v4962_v29  ;;  %v1549_v4 = vld [vmem:[%s6143_s2 + $0xe0] sm:$0xff] }
 0x2e7   : > { %v4986_v24 = vpop.f32.mrb[47].mxu1  ;;  %1735 = vmax.xlane.f32.xlu0 %v4973_v63  ;;  %v5007_v63 = vadd.f32 %v1562_v20, %v1498_v11  ;;  %v1567_v11 = vld [vmem:[%s6143_s2 + $0x170] sm:$0xff]  ;;  %v1784_v56 = vsub.f32 %v4700_v51, %v1664_v48  ;;  %v5048_v29 = vadd.f32 %v1549_v4, %v1485_v40  ;;  %v1502_v48 = vmul.f32 0.088388346, %v4923_v14 }
 0x2e8   : > { %v1853_v20 = vmul.f32 1.442695, %v1783_v26  ;;  %v1778_v40 = vsub.f32 %v4673_v30, %v4960_v50 }
 0x2e9   : > { %1697 = vmax.xlane.f32.xlu1 %v4983_v42  ;;  %v1503_v42 = vmul.f32 0.088388346, %v4905_v17  ;;  %v1568_v17 = vld [vmem:[%s6143_s2 + $0x178] sm:$0xff] }
 0x2ea   : > { %v5041_v52 = vadd.f32 %v1568_v17, %v1504_v1  ;;  %3876 = vpow2.f32 %v1853_v20  ;;  %v1565_v1 = vld [vmem:[%s6143_s2 + $0x160] sm:$0xff]  ;;  %v1855_v20 = vmul.f32 1.442695, %v1784_v56 }
 0x2eb   : > { %1699 = vmax.xlane.f32.xlu0 %v4992_v23  ;;  %v1658_v23 = vpop.xlane.xlu1 %1657  ;;  %v5032_v25 = vadd.f32 %v1567_v11, %v1503_v42  ;;  %v1550_v42 = vld [vmem:[%s6143_s2 + $0xe8] sm:$0xff]  ;;  %3878 = vpow2.f32 %v1845_v53  ;;  %v1780_v11 = vsub.f32 %v4688_v43, %v1656_v39  ;;  %v5064_v39 = vadd.f32 %v1565_v1, %v1501_v58 }
 0x2ec   : > { %v1781_v49 = vsub.f32 %v4702_v55, %v1658_v23  ;;  %v1486_v55 = vmul.f32 0.088388346, %v4794_v62  ;;  %v1660_v23 = vpop.xlane.xlu0 %1659  ;;  %v1841_v62 = vmul.f32 1.442695, %v1777_v41 }
 0x2ed   : > { %1729 = vmax.xlane.f32.xlu1 %v5000_v5  ;;  %v1847_v14 = vmul.f32 1.442695, %v1780_v11 }
 0x2ee   : > { %v1849_v32 = vmul.f32 1.442695, %v1781_v49  ;;  %v5056_v51 = vadd.f32 %v1550_v42, %v1486_v55  ;;  %v1566_v49 = vld [vmem:[%s6143_s2 + $0x168] sm:$0xff]  ;;  %v1843_v55 = vmul.f32 1.442695, %v1778_v40 }
 0x2ef   : > { %1731 = vmax.xlane.f32.xlu0 %v5007_v63  ;;  %v1670_v26 = vpop.xlane.xlu1 %1669  ;;  %v5069_v53 = vadd.f32 %v1566_v49, %v1502_v48 }
 0x2f0   : > { %3880 = vpow2.f32 %v1849_v32  ;;  %v1787_v0 = vsub.f32 %v4714_v61, %v1670_v26  ;;  %v1672_v17 = vpop.xlane.xlu0 %1671  ;;  %v1782_v26 = vsub.f32 %v4712_v2, %v1660_v23 }
 0x2f1   : > { %1709 = vmax.xlane.f32.xlu1 %v5014_v59  ;;  %3882 = vpow2.f32 %v1841_v62  ;;  %v1788_v50 = vsub.f32 %v4724_v8, %v1672_v17 }
 0x2f2   : > { %3884 = vpow2.f32 %v1855_v20  ;;  %v1861_v61 = vmul.f32 1.442695, %v1787_v0  ;;  %v1851_v32 = vmul.f32 1.442695, %v1782_v26 }
 0x2f3   : > { %1711 = vmax.xlane.f32.xlu0 %v5023_v45  ;;  %v1666_v43 = vpop.xlane.xlu1 %1665  ;;  %3886 = vpow2.f32 %v1847_v14  ;;  %v1863_v23 = vmul.f32 1.442695, %v1788_v50  ;;  %v1508_v50 = vmul.f32 0.088388346, %v4846_v35  ;;  %v1569_v35 = vld [vmem:[%s6143_s2 + $0x180] sm:$0xff] }
 0x2f4   : > { %v1785_v41 = vsub.f32 %v4726_v9, %v1666_v43  ;;  %v5074_v4 = vpop.eup %3876  ;;  %v1668_v56 = vpop.xlane.xlu0 %1667  ;;  %3888 = vpow2.f32 %v1861_v61 }
 0x2f5   : > { %1741 = vmax.xlane.f32.xlu1 %v5032_v25  ;;  %v5078_v30 = vpop.eup %3878  ;;  %3890 = vpow2.f32 %v1843_v55  ;;  %v1786_v58 = vsub.f32 %v4736_v60, %v1668_v56  ;;  %v1571_v56 = vld [vmem:[%s6143_s2 + $0x190] sm:$0xff] }
 0x2f6   : > { %v1857_v42 = vmul.f32 1.442695, %v1785_v41 }
 0x2f7   : > { %1743 = vmax.xlane.f32.xlu0 %v5041_v52  ;;  %v1678_v62 = vpop.xlane.xlu1 %1677  ;;  %v1859_v8 = vmul.f32 1.442695, %v1786_v58 }
 0x2f8   : > { %3892 = vpow2.f32 %v1857_v42  ;;  %v1680_v60 = vpop.xlane.xlu0 %1679  ;;  %v1791_v0 = vsub.f32 %v4738_v15, %v1678_v62  ;;  %v1507_v15 = vmul.f32 0.088388346, %v4837_v3  ;;  %v1572_v3 = vld [vmem:[%s6143_s2 + $0x198] sm:$0xff] }
 0x2f9   : > { %1705 = vmax.xlane.f32.xlu1 %v5048_v29  ;;  %3894 = vpow2.f32 %v1851_v32  ;;  %v1792_v55 = vsub.f32 %v4750_v19, %v1680_v60  ;;  %v5131_v62 = vadd.f32 %v1572_v3, %v1508_v50  ;;  %v1574_v50 = vld [vmem:[%s6143_s2 + $0x1a8] sm:$0xff]  ;;  %v1579_v3 = vld [vmem:[%s6143_s2 + $0x1d0] sm:$0xff] }
 0x2fa   : > { %v5082_v9 = vpop.eup %3880  ;;  %3896 = vpow2.f32 %v1863_v23  ;;  %v1869_v40 = vmul.f32 1.442695, %v1791_v0  ;;  %v5124_v32 = vadd.f32 %v1571_v56, %v1507_v15 }
 0x2fb   : > { %1707 = vmax.xlane.f32.xlu0 %v5056_v51  ;;  %v5086_v2 = vpop.eup %3882  ;;  %v1674_v48 = vpop.xlane.xlu1 %1673  ;;  %3898 = vpow2.f32 %v1859_v8  ;;  %v1871_v19 = vmul.f32 1.442695, %v1792_v55  ;;  %v1506_v8 = vmul.f32 0.088388346, %v4853_v44  ;;  %v1576_v55 = vld [vmem:[%s6143_s2 + $0x1b8] sm:$0xff] }
 0x2fc   : > { %v5089_v11 = vpop.eup %3884  ;;  %v1789_v17 = vsub.f32 %v4748_v18, %v1674_v48  ;;  %v1676_v14 = vpop.xlane.xlu0 %1675  ;;  %3900 = vpow2.f32 %v1869_v40  ;;  %v1570_v48 = vld [vmem:[%s6143_s2 + $0x188] sm:$0xff]  ;;  %v1575_v40 = vld [vmem:[%s6143_s2 + $0x1b0] sm:$0xff] }
 0x2fd   : > { %1737 = vmax.xlane.f32.xlu1 %v5064_v39  ;;  %v5092_v1 = vpop.eup %3886  ;;  %v1790_v18 = vsub.f32 %v4757_v21, %v1676_v14  ;;  %v1505_v21 = vmul.f32 0.088388346, %v4841_v6  ;;  %v5147_v0 = vadd.f32 %v1570_v48, %v1506_v8  ;;  %v1512_v14 = vmul.f32 0.088388346, %v4890_v46  ;;  %v1577_v48 = vld [vmem:[%s6143_s2 + $0x1c0] sm:$0xff] }
 0x2fe   : > { %v5095_v20 = vpop.eup %3888  ;;  %v1865_v41 = vmul.f32 1.442695, %v1789_v17  ;;  %v1511_v17 = vmul.f32 0.088388346, %v4882_v10  ;;  %v1509_v10 = vmul.f32 0.088388346, %v4885_v38 }
 0x2ff   : > { %1739 = vmax.xlane.f32.xlu0 %v5069_v53  ;;  %v5099_v49 = vpop.eup %3890  ;;  %v1867_v58 = vmul.f32 1.442695, %v1790_v18  ;;  %v5134_v23 = vadd.f32 %v1569_v35, %v1505_v21  ;;  %v1573_v18 = vld [vmem:[%s6143_s2 + $0x1a0] sm:$0xff]  ;;  %v5171_v56 = vadd.f32 %v1576_v55, %v1512_v14  ;;  %v1510_v46 = vmul.f32 0.088388346, %v4897_v28  ;;  %v1580_v35 = vld [vmem:[%s6143_s2 + $0x1d8] sm:$0xff] }
 0x300   : > { %3902 = vpow2.f32 %v1865_v41  ;;  %v5164_v15 = vadd.f32 %v1575_v40, %v1511_v17  ;;  %v1515_v38 = vmul.f32 0.088388346, %v4928_v37  ;;  %v1516_v28 = vmul.f32 0.088388346, %v4941_v57  ;;  %v1578_v14 = vld [vmem:[%s6143_s2 + $0x1c8] sm:$0xff] }
 0x301   : > { %1981 = vadd.xlane.f32.xlu1 %v5074_v4  ;;  %3904 = vpow2.f32 %v1871_v19  ;;  %v5178_v19 = vadd.f32 %v1573_v18, %v1509_v10  ;;  %v5185_v21 = vadd.f32 %v1574_v50, %v1510_v46  ;;  %v1513_v37 = vmul.f32 0.088388346, %v4933_v22  ;;  %v1584_v46 = vld [vmem:[%s6143_s2 + $0x1f8] sm:$0xff] }
 0x302   : > { %v5103_v43 = vpop.eup %3892  ;;  %3906 = vpow2.f32 %v1867_v58  ;;  %v5192_v8 = vadd.f32 %v1579_v3, %v1515_v38  ;;  %v5200_v57 = vadd.f32 %v1580_v35, %v1516_v28  ;;  %v1514_v40 = vmul.f32 0.088388346, %v4947_v54  ;;  %v1581_v38 = vld [vmem:[%s6143_s2 + $0x1e0] sm:$0xff]  ;;  %v1582_v28 = vld [vmem:[%s6143_s2 + $0x1e8] sm:$0xff] }
 0x303   : > { %1973 = vadd.xlane.f32.xlu0 %v5078_v30  ;;  %v5106_v61 = vpop.eup %3894  ;;  %v5207_v55 = vadd.f32 %v1577_v48, %v1513_v37  ;;  %v1519_v22 = vmul.f32 0.088388346, %v4970_v27  ;;  %v1520_v54 = vmul.f32 0.088388346, %v4981_v36  ;;  %v1517_v27 = vmul.f32 0.088388346, %v4975_v47 }
 0x304   : > { %v5111_v26 = vpop.eup %3896  ;;  %v5214_v18 = vadd.f32 %v1578_v14, %v1514_v40  ;;  %v1518_v36 = vmul.f32 0.088388346, %v4986_v24 }
 0x305   : > { %1977 = vadd.xlane.f32.xlu1 %v5082_v9  ;;  %v5119_v42 = vpop.eup %3898  ;;  %v5228_v3 = vadd.f32 %v1584_v46, %v1520_v54 }
 0x306   : > { %v5139_v6 = vpop.eup %3900  ;;  %v5238_v47 = vadd.f32 %v1582_v28, %v1518_v36 }
 0x307   : > { %1969 = vadd.xlane.f32.xlu0 %v5086_v2 }
 0x309   : > { %1983 = vadd.xlane.f32.xlu1 %v5089_v11 }
 0x30a   : > { %v5145_v60 = vpop.eup %3902 }
 0x30b   : > { %1975 = vadd.xlane.f32.xlu0 %v5092_v1  ;;  %v5152_v44 = vpop.eup %3904 }
 0x30c   : > { %v5159_v41 = vpop.eup %3906 }
 0x30d   : > { %1989 = vadd.xlane.f32.xlu1 %v5095_v20 }
 0x30f   : > { %1971 = vadd.xlane.f32.xlu0 %v5099_v49 }
 0x311   : > { %1985 = vadd.xlane.f32.xlu1 %v5103_v43 }
 0x313   : > { %1979 = vadd.xlane.f32.xlu0 %v5106_v61 }
 0x315   : > { %1991 = vadd.xlane.f32.xlu1 %v5111_v26 }
 0x317   : > { %1987 = vadd.xlane.f32.xlu0 %v5119_v42 }
 0x319   : > { %1749 = vmax.xlane.f32.xlu1 %v5124_v32 }
 0x31b   : > { %1751 = vmax.xlane.f32.xlu0 %v5131_v62 }
 0x31d   : > { %1745 = vmax.xlane.f32.xlu1 %v5134_v23 }
 0x31e   : > { %v1686_v58 = vpop.xlane.xlu1 %1685 }
 0x31f   : > { %1997 = vadd.xlane.f32.xlu0 %v5139_v6  ;;  %v1795_v17 = vsub.f32 %v4766_v33, %v1686_v58  ;;  %v1583_v33 = vld [vmem:[%s6143_s2 + $0x1f0] sm:$0xff]  ;;  %v5235_v58 = vadd.f32 %v1581_v38, %v1517_v27 }
 0x320   : > { %v5221_v50 = vadd.f32 %v1583_v33, %v1519_v22  ;;  %v1688_v24 = vpop.xlane.xlu0 %1687 }
 0x321   : > { %1993 = vadd.xlane.f32.xlu1 %v5145_v60  ;;  %v1877_v10 = vmul.f32 1.442695, %v1795_v17  ;;  %v1796_v54 = vsub.f32 %v4769_v34, %v1688_v24 }
 0x323   : > { %1747 = vmax.xlane.f32.xlu0 %v5147_v0  ;;  %3908 = vpow2.f32 %v1877_v10 }
 0x325   : > { %1999 = vadd.xlane.f32.xlu1 %v5152_v44 }
 0x327   : > { %1995 = vadd.xlane.f32.xlu0 %v5159_v41 }
 0x329   : > { %1757 = vmax.xlane.f32.xlu1 %v5164_v15 }
 0x32b   : > { %1759 = vmax.xlane.f32.xlu0 %v5171_v56 }
 0x32d   : > { %1753 = vmax.xlane.f32.xlu1 %v5178_v19  ;;  %v5242_v35 = vpop.eup %3908 }
 0x32e   : > { %6222 = vst [vmem:[#allocation32_spill] sm:$0xff] %v5242_v35 }
 0x32f   : > { %1755 = vmax.xlane.f32.xlu0 %v5185_v21 }
 0x331   : > { %1765 = vmax.xlane.f32.xlu1 %v5192_v8 }
 0x333   : > { %1767 = vmax.xlane.f32.xlu0 %v5200_v57 }
 0x335   : > { %1761 = vmax.xlane.f32.xlu1 %v5207_v55 }
 0x337   : > { %1763 = vmax.xlane.f32.xlu0 %v5214_v18 }
 0x339   : > { %1773 = vmax.xlane.f32.xlu1 %v5221_v50 }
 0x33b   : > { %1775 = vmax.xlane.f32.xlu0 %v5228_v3 }
 0x33d   : > { %1769 = vmax.xlane.f32.xlu1 %v5235_v58 }
 0x33f   : > { %1771 = vmax.xlane.f32.xlu0 %v5238_v47 }
 0x343   : > { %2005 = vadd.xlane.f32.xlu0 %v5242_v35  ;;  %v1879_v35 = vmul.f32 1.442695, %v1796_v54  ;;  %v6225_v54 = vld [vmem:[#allocation16_spill] sm:$0xff] }
 0x352   : > { %v1718_v37 = vpop.xlane.xlu1 %1717 }
 0x353   : > { %v1811_v48 = vsub.f32 %v4806_v12, %v1718_v37 }
 0x354   : > { %v1720_v17 = vpop.xlane.xlu0 %1719 }
 0x355   : > { %v1909_v40 = vmul.f32 1.442695, %v1811_v48  ;;  %v1812_v37 = vsub.f32 %v4812_v13, %v1720_v17 }
 0x356   : > { %v1682_v14 = vpop.xlane.xlu1 %1681 }
 0x357   : > { %3910 = vpow2.f32 %v1909_v40  ;;  %v1793_v22 = vsub.f32 %v4820_v16, %v1682_v14  ;;  %v6223_v40 = vld [vmem:[#allocation12_spill] sm:$0xff] }
 0x358   : > { %v1684_v33 = vpop.xlane.xlu0 %1683 }
 0x359   : > { %v1873_v10 = vmul.f32 1.442695, %v1793_v22 }
 0x35a   : > { %v1714_v46 = vpop.xlane.xlu1 %1713 }
 0x35b   : > { %3912 = vpow2.f32 %v1873_v10  ;;  %v1809_v27 = vsub.f32 %v4832_v31, %v1714_v46  ;;  %v1911_v31 = vmul.f32 1.442695, %v1812_v37  ;;  %v6224_v10 = vld [vmem:[#allocation10_spill] sm:$0xff] }
 0x35c   : > { %v1716_v38 = vpop.xlane.xlu0 %1715 }
 0x35d   : > { %v1905_v36 = vmul.f32 1.442695, %v1809_v27  ;;  %v1810_v28 = vsub.f32 %v4844_v7, %v1716_v38  ;;  %v1794_v7 = vsub.f32 %v6224_v10, %v1684_v33  ;;  %v6230_v10 = vld [vmem:[#allocation23_spill] sm:$0xff] }
 0x35e   : > { %v1694_v12 = vpop.xlane.xlu1 %1693 }
 0x35f   : > { %3914 = vpow2.f32 %v1905_v36  ;;  %v1907_v48 = vmul.f32 1.442695, %v1810_v28  ;;  %v1799_v16 = vsub.f32 %v6223_v40, %v1694_v12  ;;  %v1875_v36 = vmul.f32 1.442695, %v1794_v7  ;;  %v6226_v28 = vld [vmem:[#allocation18_spill] sm:$0xff] }
 0x360   : > { %v1696_v14 = vpop.xlane.xlu0 %1695 }
 0x361   : > { %v5252_v22 = vpop.eup %3910  ;;  %3916 = vpow2.f32 %v1907_v48  ;;  %v1885_v34 = vmul.f32 1.442695, %v1799_v16  ;;  %v6227_v48 = vld [vmem:[#allocation19_spill] sm:$0xff] }
 0x362   : > { %v1726_v24 = vpop.xlane.xlu1 %1725  ;;  %2037 = vadd.xlane.f32.xlu0 %v5252_v22  ;;  %3918 = vpow2.f32 %v1879_v35 }
 0x363   : > { %v1815_v46 = vsub.f32 %v6225_v54, %v1726_v24  ;;  %3920 = vpow2.f32 %v1885_v34 }
 0x364   : > { %v1728_v27 = vpop.xlane.xlu0 %1727  ;;  %3922 = vpow2.f32 %v1911_v31 }
 0x365   : > { %v5257_v13 = vpop.eup %3912  ;;  %v1917_v17 = vmul.f32 1.442695, %v1815_v46  ;;  %v1816_v12 = vsub.f32 %v6226_v28, %v1728_v27  ;;  %v6231_v46 = vld [vmem:[#allocation14_spill] sm:$0xff] }
 0x366   : > { %v1690_v38 = vpop.xlane.xlu1 %1689  ;;  %2001 = vadd.xlane.f32.xlu1 %v5257_v13  ;;  %v1800_v27 = vsub.f32 %v6231_v46, %v1696_v14  ;;  %v6236_v14 = vld [vmem:[#allocation22_spill] sm:$0xff] }
 0x367   : > { %v1797_v40 = vsub.f32 %v6227_v48, %v1690_v38  ;;  %3924 = vpow2.f32 %v1917_v17  ;;  %v1919_v34 = vmul.f32 1.442695, %v1816_v12  ;;  %v6232_v17 = vld [vmem:[#allocation24_spill] sm:$0xff]  ;;  %v6234_v12 = vld [vmem:[#allocation26_spill] sm:$0xff] }
 0x368   : > { %v1692_v35 = vpop.xlane.xlu0 %1691  ;;  %3926 = vpow2.f32 %v1875_v36 }
 0x369   : > { %v5262_v37 = vpop.eup %3914  ;;  %v1881_v33 = vmul.f32 1.442695, %v1797_v40 }
 0x36a   : > { %6228 = vst [vmem:[#allocation12_spill] sm:$0xff] %v5262_v37  ;;  %v1722_v16 = vpop.xlane.xlu1 %1721  ;;  %2033 = vadd.xlane.f32.xlu0 %v5262_v37  ;;  %v1887_v37 = vmul.f32 1.442695, %v1800_v27 }
 0x36b   : > { %v5265_v24 = vpop.eup %3916  ;;  %v1813_v54 = vsub.f32 %v6230_v10, %v1722_v16  ;;  %3928 = vpow2.f32 %v1881_v33  ;;  %v1798_v33 = vsub.f32 %v6236_v14, %v1692_v35 }
 0x36c   : > { %6229 = vst [vmem:[#allocation10_spill] sm:$0xff] %v5265_v24  ;;  %v1724_v31 = vpop.xlane.xlu0 %1723  ;;  %2035 = vadd.xlane.f32.xlu1 %v5265_v24  ;;  %v5269_v7 = vpop.eup %3918  ;;  %3930 = vpow2.f32 %v1919_v34 }
 0x36d   : > { %v1913_v38 = vmul.f32 1.442695, %v1813_v54  ;;  %v1814_v28 = vsub.f32 %v6232_v17, %v1724_v31  ;;  %v5274_v40 = vpop.eup %3920 }
 0x36e   : > { %v1702_v48 = vpop.xlane.xlu1 %1701  ;;  %2007 = vadd.xlane.f32.xlu0 %v5269_v7  ;;  %6233 = vst [vmem:[#allocation16_spill] sm:$0xff] %v5274_v40  ;;  %v5278_v24 = vpop.eup %3922 }
 0x36f   : > { %v1915_v36 = vmul.f32 1.442695, %v1814_v28  ;;  %v1803_v16 = vsub.f32 %v6234_v12, %v1702_v48  ;;  %6235 = vst [vmem:[#allocation18_spill] sm:$0xff] %v5278_v24  ;;  %3932 = vpow2.f32 %v1913_v38  ;;  %v1883_v28 = vmul.f32 1.442695, %v1798_v33  ;;  %v6238_v48 = vld [vmem:[#allocation28_spill] sm:$0xff] }
 0x370   : > { %v1704_v10 = vpop.xlane.xlu0 %1703  ;;  %2013 = vadd.xlane.f32.xlu1 %v5274_v40  ;;  %v6239_v38 = vld [vmem:[#allocation29_spill] sm:$0xff] }
 0x371   : > { %v5282_v31 = vpop.eup %3924  ;;  %3934 = vpow2.f32 %v1915_v36  ;;  %v1893_v46 = vmul.f32 1.442695, %v1803_v16 }
 0x372   : > { %v1734_v54 = vpop.xlane.xlu1 %1733  ;;  %2039 = vadd.xlane.f32.xlu0 %v5278_v24  ;;  %6237 = vst [vmem:[#allocation19_spill] sm:$0xff] %v5282_v31  ;;  %v5285_v17 = vpop.eup %3926  ;;  %3936 = vpow2.f32 %v1887_v37  ;;  %v6240_v24 = vld [vmem:[#allocation30_spill] sm:$0xff] }
 0x373   : > { %v1819_v12 = vsub.f32 %v6238_v48, %v1734_v54  ;;  %3938 = vpow2.f32 %v1893_v46 }
 0x374   : > { %v1736_v34 = vpop.xlane.xlu0 %1735  ;;  %2045 = vadd.xlane.f32.xlu1 %v5282_v31  ;;  %3940 = vpow2.f32 %v1883_v28 }
 0x375   : > { %v5289_v35 = vpop.eup %3928  ;;  %v1820_v14 = vsub.f32 %v6239_v38, %v1736_v34  ;;  %v1925_v37 = vmul.f32 1.442695, %v1819_v12 }
 0x376   : > { %v1698_v27 = vpop.xlane.xlu1 %1697  ;;  %2003 = vadd.xlane.f32.xlu0 %v5285_v17  ;;  %v5294_v31 = vpop.eup %3930 }
 0x377   : > { %v1801_v36 = vsub.f32 %v6240_v24, %v1698_v27  ;;  %6241 = vst [vmem:[#allocation23_spill] sm:$0xff] %v5294_v31  ;;  %v1927_v48 = vmul.f32 1.442695, %v1820_v14  ;;  %v6243_v27 = vld [vmem:[#allocation27_spill] sm:$0xff] }
 0x378   : > { %v1700_v16 = vpop.xlane.xlu0 %1699  ;;  %2009 = vadd.xlane.f32.xlu1 %v5289_v35  ;;  %v1804_v38 = vsub.f32 %v6243_v27, %v1704_v10  ;;  %v6244_v10 = vld [vmem:[#allocation31_spill] sm:$0xff] }
 0x379   : > { %v1889_v33 = vmul.f32 1.442695, %v1801_v36  ;;  %v5297_v54 = vpop.eup %3932 }
 0x37a   : > { %v1730_v40 = vpop.xlane.xlu1 %1729  ;;  %2047 = vadd.xlane.f32.xlu0 %v5294_v31  ;;  %6242 = vst [vmem:[#allocation14_spill] sm:$0xff] %v5297_v54 }
 0x37b   : > { %3942 = vpow2.f32 %v1889_v33  ;;  %v1817_v46 = vsub.f32 %v5000_v5, %v1730_v40  ;;  %v5301_v24 = vpop.eup %3934 }
 0x37c   : > { %v1732_v34 = vpop.xlane.xlu0 %1731  ;;  %2041 = vadd.xlane.f32.xlu1 %v5297_v54  ;;  %3944 = vpow2.f32 %v1925_v37  ;;  %v5306_v31 = vpop.eup %3936  ;;  %v1895_v54 = vmul.f32 1.442695, %v1804_v38  ;;  %v1802_v37 = vsub.f32 %v6244_v10, %v1700_v16 }
 0x37d   : > { %v1921_v28 = vmul.f32 1.442695, %v1817_v46  ;;  %v1818_v12 = vsub.f32 %v5007_v63, %v1732_v34  ;;  %3946 = vpow2.f32 %v1927_v48  ;;  %v5310_v33 = vpop.eup %3938 }
 0x37e   : > { %v1710_v36 = vpop.xlane.xlu1 %1709  ;;  %2043 = vadd.xlane.f32.xlu0 %v5301_v24  ;;  %v5314_v63 = vpop.eup %3940  ;;  %v1891_v27 = vmul.f32 1.442695, %v1802_v37 }
 0x37f   : > { %v1923_v14 = vmul.f32 1.442695, %v1818_v12  ;;  %v1807_v5 = vsub.f32 %v5014_v59, %v1710_v36  ;;  %3948 = vpow2.f32 %v1921_v28 }
 0x380   : > { %v1712_v40 = vpop.xlane.xlu0 %1711  ;;  %2015 = vadd.xlane.f32.xlu1 %v5306_v31 }
 0x381   : > { %3950 = vpow2.f32 %v1923_v14  ;;  %v1901_v34 = vmul.f32 1.442695, %v1807_v5 }
 0x382   : > { %v1742_v46 = vpop.xlane.xlu1 %1741  ;;  %2021 = vadd.xlane.f32.xlu0 %v5310_v33  ;;  %3952 = vpow2.f32 %v1895_v54 }
 0x383   : > { %v1823_v12 = vsub.f32 %v5032_v25, %v1742_v46  ;;  %3954 = vpow2.f32 %v1901_v34  ;;  %v1808_v34 = vsub.f32 %v5023_v45, %v1712_v40 }
 0x384   : > { %2011 = vadd.xlane.f32.xlu1 %v5314_v63  ;;  %v1744_v48 = vpop.xlane.xlu0 %1743  ;;  %3956 = vpow2.f32 %v1891_v27 }
 0x385   : > { %v5317_v59 = vpop.eup %3942  ;;  %v1824_v38 = vsub.f32 %v5041_v52, %v1744_v48  ;;  %v1933_v54 = vmul.f32 1.442695, %v1823_v12 }
 0x386   : > { %v1706_v16 = vpop.xlane.xlu1 %1705  ;;  %2017 = vadd.xlane.f32.xlu0 %v5317_v59  ;;  %v5322_v28 = vpop.eup %3944 }
 0x387   : > { %v1805_v36 = vsub.f32 %v5048_v29, %v1706_v16  ;;  %v5326_v5 = vpop.eup %3946  ;;  %v1935_v37 = vmul.f32 1.442695, %v1824_v38 }
 0x388   : > { %2053 = vadd.xlane.f32.xlu1 %v5322_v28  ;;  %v1708_v14 = vpop.xlane.xlu0 %1707 }
 0x389   : > { %v1897_v10 = vmul.f32 1.442695, %v1805_v36  ;;  %v5329_v52 = vpop.eup %3948  ;;  %v1806_v45 = vsub.f32 %v5056_v51, %v1708_v14 }
 0x38a   : > { %v1738_v25 = vpop.xlane.xlu1 %1737  ;;  %2055 = vadd.xlane.f32.xlu0 %v5326_v5 }
 0x38b   : > { %3958 = vpow2.f32 %v1897_v10  ;;  %v1821_v46 = vsub.f32 %v5064_v39, %v1738_v25  ;;  %v5334_v48 = vpop.eup %3950  ;;  %v1903_v39 = vmul.f32 1.442695, %v1808_v34 }
 0x38c   : > { %2049 = vadd.xlane.f32.xlu1 %v5329_v52  ;;  %v1740_v29 = vpop.xlane.xlu0 %1739  ;;  %3960 = vpow2.f32 %v1933_v54  ;;  %v5338_v16 = vpop.eup %3952 }
 0x38d   : > { %v1929_v27 = vmul.f32 1.442695, %v1821_v46  ;;  %v1822_v12 = vsub.f32 %v5069_v53, %v1740_v29  ;;  %3962 = vpow2.f32 %v1935_v37  ;;  %v5342_v10 = vpop.eup %3954  ;;  %v1899_v37 = vmul.f32 1.442695, %v1806_v45 }
 0x38e   : > { %v1982_v38 = vpop.xlane.xlu1 %1981  ;;  %2051 = vadd.xlane.f32.xlu0 %v5334_v48  ;;  %v5345_v54 = vpop.eup %3956 }
 0x38f   : > { %3964 = vpow2.f32 %v1929_v27  ;;  %v1931_v36 = vmul.f32 1.442695, %v1822_v12 }
 0x390   : > { %3966 = vrcp.f32 %v1982_v38  ;;  %2023 = vadd.xlane.f32.xlu1 %v5338_v16  ;;  %v1974_v40 = vpop.xlane.xlu0 %1973 }
 0x391   : > { %3968 = vpow2.f32 %v1931_v36 }
 0x392   : > { %3970 = vrcp.f32 %v1974_v40  ;;  %v1978_v53 = vpop.xlane.xlu1 %1977  ;;  %2029 = vadd.xlane.f32.xlu0 %v5342_v10 }
 0x393   : > { %3972 = vrcp.f32 %v1978_v53 }
 0x394   : > { %3974 = vpow2.f32 %v1903_v39  ;;  %2019 = vadd.xlane.f32.xlu1 %v5345_v54  ;;  %v1970_v51 = vpop.xlane.xlu0 %1969 }
 0x395   : > { %v5348_v14 = vpop.eup %3958  ;;  %3976 = vrcp.f32 %v1970_v51 }
 0x396   : > { %v1984_v25 = vpop.xlane.xlu1 %1983  ;;  %2025 = vadd.xlane.f32.xlu0 %v5348_v14  ;;  %v5351_v46 = vpop.eup %3960 }
 0x397   : > { %3978 = vrcp.f32 %v1984_v25  ;;  %v5354_v34 = vpop.eup %3962 }
 0x398   : > { %6245 = vst [vmem:[#allocation24_spill] sm:$0xff] %v5354_v34  ;;  %3980 = vpow2.f32 %v1899_v37  ;;  %2061 = vadd.xlane.f32.xlu1 %v5351_v46  ;;  %v1976_v29 = vpop.xlane.xlu0 %1975 }
 0x399   : > { %v5357_v27 = vpop.eup %3964  ;;  %3982 = vrcp.f32 %v1976_v29 }
 0x39a   : > { %6246 = vst [vmem:[#allocation26_spill] sm:$0xff] %v5357_v27  ;;  %v3967_v12 = vpop.eup %3966  ;;  %v1990_v38 = vpop.xlane.xlu1 %1989  ;;  %2063 = vadd.xlane.f32.xlu0 %v5354_v34 }
 0x39b   : > { %v5365_v36 = vpop.eup %3968  ;;  %3984 = vrcp.f32 %v1990_v38  ;;  %v5368_v39 = vmul.f32 %v3967_v12, %v5074_v4 }
 0x39c   : > { %6247 = vst [vmem:[#allocation22_spill] sm:$0xff] %v5365_v36  ;;  %v3971_v45 = vpop.eup %3970  ;;  %2057 = vadd.xlane.f32.xlu1 %v5357_v27  ;;  %v1972_v40 = vpop.xlane.xlu0 %1971 }
 0x39d   : > { %v3973_v53 = vpop.eup %3972  ;;  %v2163_v37 = vmul.f32 %v3971_v45, %v5078_v30  ;;  %3986 = vrcp.f32 %v1972_v40  ;;  %2231 = vst [vmem:[%s5362_s28 + $0x30] sm:$0xff] %v5368_v39 }
 0x39e   : > { %v5374_v51 = vpop.eup %3974  ;;  %v1986_v25 = vpop.xlane.xlu1 %1985  ;;  %2059 = vadd.xlane.f32.xlu0 %v5365_v36  ;;  %v2165_v4 = vmul.f32 %v3973_v53, %v5082_v9 }
 0x39f   : > { %6248 = vst [vmem:[#allocation28_spill] sm:$0xff] %v5374_v51  ;;  %v3977_v29 = vpop.eup %3976  ;;  %2227 = vst [vmem:[%s5362_s28 + $0x10] sm:$0xff] %v2163_v37  ;;  %3988 = vrcp.f32 %v1986_v25 }
 0x3a0   : > { %2031 = vadd.xlane.f32.xlu1 %v5374_v51  ;;  %v1980_v12 = vpop.xlane.xlu0 %1979  ;;  %v2161_v30 = vmul.f32 %v3977_v29, %v5086_v2  ;;  %2229 = vst [vmem:[%s5362_s28 + $0x20] sm:$0xff] %v2165_v4 }
 0x3a1   : > { %v3979_v38 = vpop.eup %3978  ;;  %3990 = vrcp.f32 %v1980_v12 }
 0x3a2   : > { %v5382_v45 = vpop.eup %3980  ;;  %v1992_v40 = vpop.xlane.xlu1 %1991  ;;  %2225 = vst [vmem:[%s5362_s28] sm:$0xff] %v2161_v30  ;;  %v2168_v36 = vmul.f32 %v3979_v38, %v5089_v11 }
 0x3a3   : > { %6249 = vst [vmem:[#allocation29_spill] sm:$0xff] %v5382_v45  ;;  %v3983_v9 = vpop.eup %3982  ;;  %3992 = vrcp.f32 %v1992_v40 }
 0x3a4   : > { %v2164_v53 = vmul.f32 %v3983_v9, %v5092_v1  ;;  %2027 = vadd.xlane.f32.xlu1 %v5382_v45  ;;  %v1988_v25 = vpop.xlane.xlu0 %1987  ;;  %2232 = vst [vmem:[%s5362_s28 + $0x38] sm:$0xff] %v2168_v36 }
 0x3a5   : > { %v3985_v2 = vpop.eup %3984  ;;  %3994 = vrcp.f32 %v1988_v25 }
 0x3a6   : > { %2228 = vst [vmem:[%s5362_s28 + $0x18] sm:$0xff] %v2164_v53  ;;  %v1750_v29 = vpop.xlane.xlu1 %1749  ;;  %v5391_v12 = vmul.f32 %v3985_v2, %v5095_v20 }
 0x3a7   : > { %v3987_v51 = vpop.eup %3986  ;;  %v1827_v11 = vsub.f32 %v5124_v32, %v1750_v29  ;;  %v2290_v29 = vpack.c.bf16 %v2164_v53, %v2163_v37  ;;  %v6251_v37 = vld [vmem:[#allocation5_spill] sm:$0xff] }
 0x3a8   : > { %v1752_v38 = vpop.xlane.xlu0 %1751  ;;  %v2162_v40 = vmul.f32 %v3987_v51, %v5099_v49  ;;  %2235 = vst [vmem:[%s5362_s28 + $0x50] sm:$0xff] %v5391_v12 }
 0x3a9   : > { %v3989_v1 = vpop.eup %3988  ;;  %v1941_v9 = vmul.f32 1.442695, %v1827_v11  ;;  %v1828_v45 = vsub.f32 %v5131_v62, %v1752_v38 }
 0x3aa   : > { %v1746_v27 = vpop.xlane.xlu1 %1745  ;;  %2226 = vst [vmem:[%s5362_s28 + $0x8] sm:$0xff] %v2162_v40  ;;  %v2289_v25 = vpack.c.bf16 %v2162_v40, %v2161_v30  ;;  %v2169_v34 = vmul.f32 %v3989_v1, %v5103_v43  ;;  %v6250_v30 = vld [vmem:[#allocation3_spill] sm:$0xff] }
 0x3ab   : > { %v3991_v20 = vpop.eup %3990  ;;  %3996 = vpow2.f32 %v1941_v9  ;;  %v1943_v2 = vmul.f32 1.442695, %v1828_v45  ;;  %v1825_v32 = vsub.f32 %v5134_v23, %v1746_v27 }
 0x3ac   : > { %3688 = vmatprep.mubr.bf16.mxu0 %v2289_v25  ;;  %v1998_v49 = vpop.xlane.xlu0 %1997  ;;  %v2166_v51 = vmul.f32 %v3991_v20, %v5106_v61  ;;  %2233 = vst [vmem:[%s5362_s28 + $0x40] sm:$0xff] %v2169_v34 }
 0x3ad   : > { %v3993_v11 = vpop.eup %3992  ;;  %3998 = vpow2.f32 %v1943_v2  ;;  %v1937_v62 = vmul.f32 1.442695, %v1825_v32  ;;  %3689 = vmatmul.mubr.bf16.vlgmr.msra.gmra.mrb[64].mxu0 %v2290_v29  ;;  %v6253_v32 = vld [vmem:[#allocation8_spill] sm:$0xff] }
 0x3ae   : > { %4000 = vrcp.f32 %v1998_v49  ;;  %3737 = vmatpush3.bf16.msra.mxu0 %v6250_v30  ;;  %v1994_v43 = vpop.xlane.xlu1 %1993  ;;  %2230 = vst [vmem:[%s5362_s28 + $0x28] sm:$0xff] %v2166_v51  ;;  %v2291_v45 = vpack.c.bf16 %v2166_v51, %v2165_v4  ;;  %v2172_v23 = vmul.f32 %v3993_v11, %v5111_v26  ;;  %v6252_v4 = vld [vmem:[#allocation6_spill] sm:$0xff]  ;;  %v2292_v26 = vpack.c.bf16 %v2168_v36, %v5368_v39 }
 0x3af   : > { %v3995_v27 = vpop.eup %3994  ;;  %4002 = vpow2.f32 %v1937_v62  ;;  %3738 = vmatprep.subr.bf16.mxu0 %v6251_v37 }
 0x3b0   : > { %4004 = vrcp.f32 %v1994_v43  ;;  %3692 = vmatprep.mubr.bf16.mxu0 %v2291_v45  ;;  %v1748_v61 = vpop.xlane.xlu0 %1747  ;;  %v2170_v53 = vmul.f32 %v3995_v27, %v5119_v42  ;;  %2236 = vst [vmem:[%s5362_s28 + $0x58] sm:$0xff] %v2172_v23  ;;  %v6254_v45 = vld [vmem:[#allocation9_spill] sm:$0xff] }
 0x3b1   : > { %v1826_v38 = vsub.f32 %v5147_v0, %v1748_v61 }
 0x3b2   : > { %3739 = vmatpush3.bf16.msra.mxu0 %v6251_v37  ;;  %v2000_v40 = vpop.xlane.xlu1 %1999  ;;  %2234 = vst [vmem:[%s5362_s28 + $0x48] sm:$0xff] %v2170_v53  ;;  %v2293_v20 = vpack.c.bf16 %v2170_v53, %v2169_v34 }
 0x3b3   : > { %v1939_v1 = vmul.f32 1.442695, %v1826_v38  ;;  %4006 = vrcp.f32 %v2000_v40  ;;  %3740 = vmatprep.subr.bf16.mxu0 %v6252_v4  ;;  %v6255_v38 = vld [vmem:[#allocation15_spill] sm:$0xff] }
 0x3b4   : > { %v1996_v9 = vpop.xlane.xlu0 %1995 }
 0x3b5   : > { %v5414_v25 = vpop.eup %3996  ;;  %4008 = vpow2.f32 %v1939_v1  ;;  %3693 = vmatmul.mubr.bf16.gmra.mrb[68].mxu0 %v2292_v26 }
 0x3b6   : > { %4010 = vrcp.f32 %v1996_v9  ;;  %3741 = vmatpush3.bf16.msra.mxu0 %v6252_v4  ;;  %v1758_v42 = vpop.xlane.xlu1 %1757  ;;  %2069 = vadd.xlane.f32.xlu0 %v5414_v25 }
 0x3b7   : > { %v5418_v0 = vpop.eup %3998  ;;  %v1831_v2 = vsub.f32 %v5164_v15, %v1758_v42  ;;  %3696 = vmatprep.mubr.bf16.mxu0 %v2293_v20  ;;  %3742 = vmatprep.subr.bf16.mxu0 %v6253_v32  ;;  %v2294_v15 = vpack.c.bf16 %v2172_v23, %v5391_v12  ;;  %v6256_v20 = vld [vmem:[#allocation21_spill] sm:$0xff] }
 0x3b8   : > { %v4001_v36 = vpop.eup %4000  ;;  %v1760_v39 = vpop.xlane.xlu0 %1759 }
 0x3b9   : > { %v5422_v29 = vpop.eup %4002  ;;  %v1949_v49 = vmul.f32 1.442695, %v1831_v2  ;;  %v1832_v34 = vsub.f32 %v5171_v56, %v1760_v39  ;;  %v2175_v51 = vmul.f32 %v4001_v36, %v5139_v6 }
 0x3ba   : > { %v4005_v11 = vpop.eup %4004  ;;  %3743 = vmatpush3.bf16.msra.mxu0 %v6253_v32  ;;  %v1754_v62 = vpop.xlane.xlu1 %1753  ;;  %2065 = vadd.xlane.f32.xlu1 %v5422_v29 }
 0x3bb   : > { %4012 = vpow2.f32 %v1949_v49  ;;  %v1951_v30 = vmul.f32 1.442695, %v1832_v34  ;;  %v1829_v43 = vsub.f32 %v5178_v19, %v1754_v62  ;;  %3744 = vmatprep.subr.bf16.mxu0 %v6254_v45  ;;  %2071 = vadd.xlane.f32.xlu0 %v5418_v0  ;;  %v2173_v56 = vmul.f32 %v4005_v11, %v5145_v60  ;;  %2239 = vst [vmem:[%s5362_s28 + $0x70] sm:$0xff] %v2175_v51 }
 0x3bc   : > { %v1756_v6 = vpop.xlane.xlu0 %1755 }
 0x3bd   : > { %v4007_v27 = vpop.eup %4006  ;;  %v1945_v37 = vmul.f32 1.442695, %v1829_v43  ;;  %v1830_v61 = vsub.f32 %v5185_v21, %v1756_v6  ;;  %3697 = vmatmul.mubr.bf16.gmra.mrb[72].mxu0 %v2294_v15  ;;  %2237 = vst [vmem:[%s5362_s28 + $0x60] sm:$0xff] %v2173_v56  ;;  %4014 = vpow2.f32 %v1951_v30 }
 0x3be   : > { %3745 = vmatpush3.bf16.msra.mxu0 %v6254_v45  ;;  %v1766_v12 = vpop.xlane.xlu1 %1765  ;;  %v2176_v19 = vmul.f32 %v4007_v27, %v5152_v44 }
 0x3bf   : > { %v5438_v23 = vpop.eup %4008  ;;  %4016 = vpow2.f32 %v1945_v37  ;;  %v1947_v60 = vmul.f32 1.442695, %v1830_v61  ;;  %v1835_v53 = vsub.f32 %v5192_v8, %v1766_v12  ;;  %3746 = vmatprep.subr.bf16.mxu0 %v6255_v38 }
 0x3c0   : > { %v4011_v40 = vpop.eup %4010  ;;  %2067 = vadd.xlane.f32.xlu0 %v5438_v23  ;;  %v1768_v21 = vpop.xlane.xlu0 %1767  ;;  %2240 = vst [vmem:[%s5362_s28 + $0x78] sm:$0xff] %v2176_v19  ;;  %v2296_v2 = vpack.c.bf16 %v2176_v19, %v2175_v51 }
 0x3c1   : > { %v2174_v1 = vmul.f32 %v4011_v40, %v5159_v41  ;;  %v1957_v4 = vmul.f32 1.442695, %v1835_v53  ;;  %4018 = vpow2.f32 %v1947_v60  ;;  %v1836_v26 = vsub.f32 %v5200_v57, %v1768_v21 }
 0x3c2   : > { %3747 = vmatpush3.bf16.msra.mxu0 %v6255_v38  ;;  %v1762_v44 = vpop.xlane.xlu1 %1761  ;;  %v6257_v38 = vld [vmem:[#allocation32_spill] sm:$0xff] }
 0x3c3   : > { %v1833_v9 = vsub.f32 %v5207_v55, %v1762_v44  ;;  %3748 = vmatprep.subr.bf16.mxu0 %v6256_v20  ;;  %2238 = vst [vmem:[%s5362_s28 + $0x68] sm:$0xff] %v2174_v1  ;;  %v2295_v8 = vpack.c.bf16 %v2174_v1, %v2173_v56  ;;  %4020 = vpow2.f32 %v1957_v4  ;;  %v1959_v57 = vmul.f32 1.442695, %v1836_v26  ;;  %v6258_v1 = vld [vmem:[#allocation2_spill] sm:$0xff] }
 0x3c4   : > { %v1764_v42 = vpop.xlane.xlu0 %1763 }
 0x3c5   : > { %v5450_v32 = vpop.eup %4012  ;;  %v1953_v36 = vmul.f32 1.442695, %v1833_v9  ;;  %3700 = vmatprep.mubr.bf16.mxu0 %v2295_v8  ;;  %v1834_v41 = vsub.f32 %v5214_v18, %v1764_v42 }
 0x3c6   : > { %3701 = vmatmul.mubr.bf16.gmra.mrb[76].mxu0 %v2296_v2  ;;  %v1774_v39 = vpop.xlane.xlu1 %1773  ;;  %2077 = vadd.xlane.f32.xlu0 %v5450_v32 }
 0x3c7   : > { %4022 = vpow2.f32 %v1953_v36  ;;  %3749 = vmatpush3.bf16.msra.mxu0 %v6256_v20  ;;  %v5455_v55 = vpop.eup %4014  ;;  %v1955_v51 = vmul.f32 1.442695, %v1834_v41  ;;  %v1839_v18 = vsub.f32 %v5221_v50, %v1774_v39 }
 0x3c8   : > { %v1776_v49 = vpop.xlane.xlu0 %1775  ;;  %4024 = vpow2.f32 %v1959_v57 }
 0x3c9   : > { %v5457_v34 = vpop.eup %4016  ;;  %4026 = vpow2.f32 %v1955_v51  ;;  %v1965_v45 = vmul.f32 1.442695, %v1839_v18  ;;  %v1840_v56 = vsub.f32 %v5228_v3, %v1776_v49  ;;  %v6259_v51 = vld [vmem:[#allocation12_spill] sm:$0xff] }
 0x3ca   : > { %v1770_v11 = vpop.xlane.xlu1 %1769  ;;  %2073 = vadd.xlane.f32.xlu1 %v5457_v34  ;;  %2079 = vadd.xlane.f32.xlu0 %v5455_v55 }
 0x3cb   : > { %v1837_v62 = vsub.f32 %v5235_v58, %v1770_v11  ;;  %v5463_v30 = vpop.eup %4018  ;;  %v1967_v50 = vmul.f32 1.442695, %v1840_v56 }
 0x3cc   : > { %v1772_v15 = vpop.xlane.xlu0 %1771 }
 0x3cd   : > { %v1961_v43 = vmul.f32 1.442695, %v1837_v62  ;;  %v5467_v6 = vpop.eup %4020  ;;  %v1838_v58 = vsub.f32 %v5238_v47, %v1772_v15  ;;  %v6260_v15 = vld [vmem:[#allocation10_spill] sm:$0xff] }
 0x3ce   : > { %2075 = vadd.xlane.f32.xlu0 %v5463_v30 }
 0x3cf   : > { %4028 = vpow2.f32 %v1961_v43  ;;  %v1963_v3 = vmul.f32 1.442695, %v1838_v58 }
 0x3d0   : > { %v2006_v27 = vpop.xlane.xlu0 %2005 }
 0x3d1   : > { %v5469_v37 = vpop.eup %4022  ;;  %4030 = vrcp.f32 %v2006_v27 }
 0x3d2   : > { %2081 = vadd.xlane.f32.xlu1 %v5469_v37  ;;  %2085 = vadd.xlane.f32.xlu0 %v5467_v6  ;;  %4032 = vpow2.f32 %v1965_v45  ;;  %v5474_v61 = vpop.eup %4024 }
 0x3d3   : > { %4034 = vpow2.f32 %v1967_v50  ;;  %v5477_v12 = vpop.eup %4026 }
 0x3d4   : > { %4036 = vpow2.f32 %v1963_v3  ;;  %v6261_v3 = vld [vmem:[#allocation16_spill] sm:$0xff] }
 0x3d6   : > { %2087 = vadd.xlane.f32.xlu0 %v5474_v61 }
 0x3d9   : > { %v5479_v19 = vpop.eup %4028 }
 0x3da   : > { %2089 = vadd.xlane.f32.xlu1 %v5479_v19  ;;  %2083 = vadd.xlane.f32.xlu0 %v5477_v12 }
 0x3db   : > { %v4031_v60 = vpop.eup %4030 }
 0x3dc   : > { %v5483_v53 = vpop.eup %4032  ;;  %v5486_v47 = vmul.f32 %v4031_v60, %v6257_v38 }
 0x3dd   : > { %v5491_v40 = vpop.eup %4034 }
 0x3de   : > { %2093 = vadd.xlane.f32.xlu0 %v5483_v53  ;;  %2243 = vst [vmem:[%s5362_s28 + $0x90] sm:$0xff] %v5486_v47  ;;  %v5494_v21 = vpop.eup %4036 }
 0x3e2   : > { %2095 = vadd.xlane.f32.xlu0 %v5491_v40 }
 0x3e6   : > { %2091 = vadd.xlane.f32.xlu0 %v5494_v21 }
 0x3eb   : > { %842 = vrot.lane.b32.xlu1 %v6258_v1, %s4190_s11 }
 0x3ef   : > { %v2038_v4 = vpop.xlane.xlu0 %2037 }
 0x3f0   : > { %4038 = vrcp.f32 %v2038_v4 }
 0x3f3   : > { %v2002_v44 = vpop.xlane.xlu1 %2001 }
 0x3f4   : > { %4040 = vrcp.f32 %v2002_v44 }
 0x3f7   : > { %v2034_v26 = vpop.xlane.xlu0 %2033 }
 0x3f8   : > { %4042 = vrcp.f32 %v2034_v26 }
 0x3f9   : > { %v2036_v9 = vpop.xlane.xlu1 %2035 }
 0x3fa   : > { %v4039_v20 = vpop.eup %4038  ;;  %4044 = vrcp.f32 %v2036_v9 }
 0x3fb   : > { %v5500_v8 = vmul.f32 %v4039_v20, %v5252_v22  ;;  %v2008_v42 = vpop.xlane.xlu0 %2007  ;;  %v6263_v20 = vld [vmem:[#allocation19_spill] sm:$0xff] }
 0x3fc   : > { %4046 = vrcp.f32 %v2008_v42  ;;  %866 = vrot.lane.b32.xlu0 %v6258_v1, %s4191_s12  ;;  %v6262_v1 = vld [vmem:[#allocation18_spill] sm:$0xff] }
 0x3fd   : > { %2259 = vst [vmem:[%s5362_s28 + $0x110] sm:$0xff] %v5500_v8  ;;  %v2014_v2 = vpop.xlane.xlu1 %2013 }
 0x3fe   : > { %v4041_v36 = vpop.eup %4040  ;;  %4048 = vrcp.f32 %v2014_v2 }
 0x3ff   : > { %v2040_v41 = vpop.xlane.xlu0 %2039  ;;  %v2177_v39 = vmul.f32 %v4041_v36, %v5257_v13 }
 0x400   : > { %4050 = vrcp.f32 %v2040_v41 }
 0x401   : > { %v2046_v57 = vpop.xlane.xlu1 %2045  ;;  %2241 = vst [vmem:[%s5362_s28 + $0x80] sm:$0xff] %v2177_v39 }
 0x402   : > { %v4043_v22 = vpop.eup %4042  ;;  %4052 = vrcp.f32 %v2046_v57 }
 0x403   : > { %v2004_v49 = vpop.xlane.xlu0 %2003  ;;  %v2193_v11 = vmul.f32 %v4043_v22, %v6259_v51 }
 0x404   : > { %v4045_v18 = vpop.eup %4044  ;;  %4054 = vrcp.f32 %v2004_v49 }
 0x405   : > { %v2010_v62 = vpop.xlane.xlu1 %2009  ;;  %v2194_v43 = vmul.f32 %v4045_v18, %v6260_v15  ;;  %2257 = vst [vmem:[%s5362_s28 + $0x100] sm:$0xff] %v2193_v11  ;;  %v6264_v15 = vld [vmem:[#allocation23_spill] sm:$0xff] }
 0x406   : > { %v4047_v45 = vpop.eup %4046  ;;  %4056 = vrcp.f32 %v2010_v62 }
 0x407   : > { %v2180_v13 = vmul.f32 %v4047_v45, %v5269_v7  ;;  %v2048_v56 = vpop.xlane.xlu0 %2047  ;;  %2258 = vst [vmem:[%s5362_s28 + $0x108] sm:$0xff] %v2194_v43  ;;  %v2305_v27 = vpack.c.bf16 %v2194_v43, %v2193_v11  ;;  %v6265_v45 = vld [vmem:[#allocation4_spill] sm:$0xff] }
 0x408   : > { %v4049_v50 = vpop.eup %4048  ;;  %4058 = vrcp.f32 %v2048_v56  ;;  %v6266_v56 = vld [vmem:[#allocation14_spill] sm:$0xff] }
 0x409   : > { %2244 = vst [vmem:[%s5362_s28 + $0x98] sm:$0xff] %v2180_v13  ;;  %v2042_v58 = vpop.xlane.xlu1 %2041  ;;  %3752 = vmatprep.mubr.bf16.mxu0 %v2305_v27  ;;  %v5515_v60 = vmul.f32 %v4049_v50, %v6261_v3  ;;  %v2298_v18 = vpack.c.bf16 %v2180_v13, %v5486_v47  ;;  %v6267_v27 = vld [vmem:[#allocation13_spill] sm:$0xff] }
 0x40a   : > { %v4051_v38 = vpop.eup %4050  ;;  %4060 = vrcp.f32 %v2042_v58 }
 0x40b   : > { %v5518_v4 = vmul.f32 %v4051_v38, %v6262_v1  ;;  %v2044_v44 = vpop.xlane.xlu0 %2043  ;;  %2247 = vst [vmem:[%s5362_s28 + $0xb0] sm:$0xff] %v5515_v60 }
 0x40c   : > { %v4053_v7 = vpop.eup %4052  ;;  %4062 = vrcp.f32 %v2044_v44 }
 0x40d   : > { %2260 = vst [vmem:[%s5362_s28 + $0x118] sm:$0xff] %v5518_v4  ;;  %v2016_v26 = vpop.xlane.xlu1 %2015  ;;  %v2306_v9 = vpack.c.bf16 %v5518_v4, %v5500_v8  ;;  %v5527_v42 = vmul.f32 %v4053_v7, %v6263_v20 }
 0x40e   : > { %v4055_v2 = vpop.eup %4054  ;;  %4064 = vrcp.f32 %v2016_v26 }
 0x40f   : > { %v2022_v36 = vpop.xlane.xlu0 %2021  ;;  %v2178_v41 = vmul.f32 %v4055_v2, %v5285_v17  ;;  %2263 = vst [vmem:[%s5362_s28 + $0x130] sm:$0xff] %v5527_v42 }
 0x410   : > { %v4057_v57 = vpop.eup %4056  ;;  %4066 = vrcp.f32 %v2022_v36 }
 0x411   : > { %v2012_v22 = vpop.xlane.xlu1 %2011  ;;  %2242 = vst [vmem:[%s5362_s28 + $0x88] sm:$0xff] %v2178_v41  ;;  %v2297_v49 = vpack.c.bf16 %v2178_v41, %v2177_v39  ;;  %v2181_v51 = vmul.f32 %v4057_v57, %v5289_v35  ;;  %v6269_v57 = vld [vmem:[#allocation17_spill] sm:$0xff] }
 0x412   : > { %v4059_v11 = vpop.eup %4058  ;;  %4068 = vrcp.f32 %v2012_v22 }
 0x413   : > { %3720 = vmatprep.mubr.bf16.mxu1 %v2297_v49  ;;  %v2018_v62 = vpop.xlane.xlu0 %2017  ;;  %2245 = vst [vmem:[%s5362_s28 + $0xa0] sm:$0xff] %v2181_v51  ;;  %v5537_v17 = vmul.f32 %v4059_v11, %v6264_v15 }
 0x414   : > { %v4061_v43 = vpop.eup %4060  ;;  %4070 = vrcp.f32 %v2018_v62  ;;  %3721 = vmatmul.mubr.bf16.vlgmr.msra.gmra.mrb[48].mxu1 %v2298_v18 }
 0x415   : > { %3769 = vmatpush3.bf16.msra.mxu1 %v6265_v45  ;;  %v2054_v39 = vpop.xlane.xlu1 %2053  ;;  %v5541_v35 = vmul.f32 %v4061_v43, %v6266_v56  ;;  %2264 = vst [vmem:[%s5362_s28 + $0x138] sm:$0xff] %v5537_v17  ;;  %v2308_v47 = vpack.c.bf16 %v5537_v17, %v5527_v42  ;;  %v6270_v43 = vld [vmem:[#allocation11_spill] sm:$0xff] }
 0x416   : > { %v4063_v13 = vpop.eup %4062  ;;  %4072 = vrcp.f32 %v2054_v39  ;;  %3770 = vmatprep.subr.bf16.mxu1 %v6267_v27 }
 0x417   : > { %v2056_v50 = vpop.xlane.xlu0 %2055  ;;  %v5549_v58 = vmul.f32 %v4063_v13, %v5301_v24  ;;  %2261 = vst [vmem:[%s5362_s28 + $0x120] sm:$0xff] %v5541_v35  ;;  %v6268_v24 = vld [vmem:[#allocation7_spill] sm:$0xff] }
 0x418   : > { %v4065_v3 = vpop.eup %4064  ;;  %4074 = vrcp.f32 %v2056_v50 }
 0x419   : > { %3771 = vmatpush3.bf16.msra.mxu1 %v6267_v27  ;;  %v2050_v38 = vpop.xlane.xlu1 %2049  ;;  %v2184_v1 = vmul.f32 %v4065_v3, %v5306_v31  ;;  %2262 = vst [vmem:[%s5362_s28 + $0x128] sm:$0xff] %v5549_v58  ;;  %v2307_v44 = vpack.c.bf16 %v5549_v58, %v5541_v35 }
 0x41a   : > { %v4067_v7 = vpop.eup %4066  ;;  %4076 = vrcp.f32 %v2050_v38  ;;  %3772 = vmatprep.subr.bf16.mxu1 %v6268_v24 }
 0x41b   : > { %v2052_v26 = vpop.xlane.xlu0 %2051  ;;  %2248 = vst [vmem:[%s5362_s28 + $0xb8] sm:$0xff] %v2184_v1  ;;  %v5562_v20 = vmul.f32 %v4067_v7, %v5310_v33  ;;  %v2300_v18 = vpack.c.bf16 %v2184_v1, %v5515_v60 }
 0x41c   : > { %v4069_v2 = vpop.eup %4068  ;;  %4078 = vrcp.f32 %v2052_v26 }
 0x41d   : > { %3773 = vmatpush3.bf16.msra.mxu1 %v6268_v24  ;;  %v2024_v31 = vpop.xlane.xlu1 %2023  ;;  %v2182_v36 = vmul.f32 %v4069_v2, %v5314_v63  ;;  %2251 = vst [vmem:[%s5362_s28 + $0xd0] sm:$0xff] %v5562_v20 }
 0x41e   : > { %v4071_v41 = vpop.eup %4070  ;;  %4080 = vrcp.f32 %v2024_v31  ;;  %3774 = vmatprep.subr.bf16.mxu1 %v6269_v57 }
 0x41f   : > { %v2030_v22 = vpop.xlane.xlu0 %2029  ;;  %2246 = vst [vmem:[%s5362_s28 + $0xa8] sm:$0xff] %v2182_v36  ;;  %v2299_v49 = vpack.c.bf16 %v2182_v36, %v2181_v51  ;;  %v2185_v33 = vmul.f32 %v4071_v41, %v5317_v59 }
 0x420   : > { %v4073_v11 = vpop.eup %4072  ;;  %4082 = vrcp.f32 %v2030_v22 }
 0x421   : > { %3775 = vmatpush3.bf16.msra.mxu1 %v6269_v57  ;;  %v2020_v62 = vpop.xlane.xlu1 %2019  ;;  %3724 = vmatprep.mubr.bf16.mxu1 %v2299_v49  ;;  %2249 = vst [vmem:[%s5362_s28 + $0xc0] sm:$0xff] %v2185_v33  ;;  %v5575_v63 = vmul.f32 %v4073_v11, %v5322_v28  ;;  %v6273_v11 = vld [vmem:[#allocation24_spill] sm:$0xff] }
 0x422   : > { %v4075_v15 = vpop.eup %4074  ;;  %4084 = vrcp.f32 %v2020_v62  ;;  %3776 = vmatprep.subr.bf16.mxu1 %v6270_v43  ;;  %3725 = vmatmul.mubr.bf16.gmra.mrb[52].mxu1 %v2300_v18 }
 0x423   : > { %v2026_v59 = vpop.xlane.xlu0 %2025  ;;  %v5579_v51 = vmul.f32 %v4075_v15, %v5326_v5  ;;  %2267 = vst [vmem:[%s5362_s28 + $0x150] sm:$0xff] %v5575_v63  ;;  %v6271_v5 = vld [vmem:[#allocation20_spill] sm:$0xff]  ;;  %v6275_v15 = vld [vmem:[#allocation22_spill] sm:$0xff] }
 0x424   : > { %v4077_v60 = vpop.eup %4076  ;;  %4086 = vrcp.f32 %v2026_v59 }
 0x425   : > { %3777 = vmatpush3.bf16.msra.mxu1 %v6270_v43  ;;  %v2062_v45 = vpop.xlane.xlu1 %2061  ;;  %v5585_v28 = vmul.f32 %v4077_v60, %v5329_v52  ;;  %2268 = vst [vmem:[%s5362_s28 + $0x158] sm:$0xff] %v5579_v51  ;;  %v2310_v39 = vpack.c.bf16 %v5579_v51, %v5575_v63  ;;  %v6276_v60 = vld [vmem:[#allocation28_spill] sm:$0xff] }
 0x426   : > { %v4079_v56 = vpop.eup %4078  ;;  %4088 = vrcp.f32 %v2062_v45  ;;  %3778 = vmatprep.subr.bf16.mxu1 %v6271_v5 }
 0x427   : > { %v2064_v13 = vpop.xlane.xlu0 %2063  ;;  %v5593_v27 = vmul.f32 %v4079_v56, %v5334_v48  ;;  %2265 = vst [vmem:[%s5362_s28 + $0x140] sm:$0xff] %v5585_v28  ;;  %v6272_v48 = vld [vmem:[#allocation25_spill] sm:$0xff] }
 0x428   : > { %v4081_v50 = vpop.eup %4080  ;;  %4090 = vrcp.f32 %v2064_v13  ;;  %v6277_v13 = vld [vmem:[#allocation29_spill] sm:$0xff] }
 0x429   : > { %3779 = vmatpush3.bf16.msra.mxu1 %v6271_v5  ;;  %v2058_v52 = vpop.xlane.xlu1 %2057  ;;  %v2188_v3 = vmul.f32 %v4081_v50, %v5338_v16  ;;  %2266 = vst [vmem:[%s5362_s28 + $0x148] sm:$0xff] %v5593_v27  ;;  %v2309_v38 = vpack.c.bf16 %v5593_v27, %v5585_v28 }
 0x42a   : > { %v4083_v1 = vpop.eup %4082  ;;  %4092 = vrcp.f32 %v2058_v52  ;;  %3780 = vmatprep.subr.bf16.mxu1 %v6272_v48 }
 0x42b   : > { %v2060_v7 = vpop.xlane.xlu0 %2059  ;;  %2252 = vst [vmem:[%s5362_s28 + $0xd8] sm:$0xff] %v2188_v3  ;;  %v2191_v24 = vmul.f32 %v4083_v1, %v5342_v10  ;;  %v2302_v10 = vpack.c.bf16 %v2188_v3, %v5562_v20  ;;  %v6274_v20 = vld [vmem:[#allocation26_spill] sm:$0xff] }
 0x42c   : > { %v4085_v26 = vpop.eup %4084  ;;  %4094 = vrcp.f32 %v2060_v7 }
 0x42d   : > { %3781 = vmatpush3.bf16.msra.mxu1 %v6272_v48  ;;  %v2032_v16 = vpop.xlane.xlu1 %2031  ;;  %v2186_v2 = vmul.f32 %v4085_v26, %v5345_v54  ;;  %2255 = vst [vmem:[%s5362_s28 + $0xf0] sm:$0xff] %v2191_v24 }
 0x42e   : > { %v4087_v31 = vpop.eup %4086  ;;  %4096 = vrcp.f32 %v2032_v16 }
 0x42f   : > { %2250 = vst [vmem:[%s5362_s28 + $0xc8] sm:$0xff] %v2186_v2  ;;  %v2301_v36 = vpack.c.bf16 %v2186_v2, %v2185_v33  ;;  %v2189_v41 = vmul.f32 %v4087_v31, %v5348_v14 }
 0x430   : > { %v4089_v57 = vpop.eup %4088 }
 0x431   : > { %v2028_v22 = vpop.xlane.xlu1 %2027  ;;  %3728 = vmatprep.mubr.bf16.mxu1 %v2301_v36  ;;  %2253 = vst [vmem:[%s5362_s28 + $0xe0] sm:$0xff] %v2189_v41  ;;  %v5614_v49 = vmul.f32 %v4089_v57, %v5351_v46 }
 0x432   : > { %v4091_v54 = vpop.eup %4090  ;;  %4098 = vrcp.f32 %v2028_v22  ;;  %3729 = vmatmul.mubr.bf16.gmra.mrb[56].mxu1 %v2302_v10 }
 0x433   : > { %v5617_v18 = vmul.f32 %v4091_v54, %v6273_v11  ;;  %2271 = vst [vmem:[%s5362_s28 + $0x170] sm:$0xff] %v5614_v49 }
 0x434   : > { %v4093_v14 = vpop.eup %4092 }
 0x435   : > { %v5622_v33 = vmul.f32 %v4093_v14, %v6274_v20  ;;  %2272 = vst [vmem:[%s5362_s28 + $0x178] sm:$0xff] %v5617_v18  ;;  %v2312_v46 = vpack.c.bf16 %v5617_v18, %v5614_v49 }
 0x436   : > { %v4095_v62 = vpop.eup %4094 }
 0x437   : > { %v5629_v43 = vmul.f32 %v4095_v62, %v6275_v15  ;;  %2269 = vst [vmem:[%s5362_s28 + $0x160] sm:$0xff] %v5622_v33 }
 0x438   : > { %v4097_v59 = vpop.eup %4096 }
 0x439   : > { %v2192_v45 = vmul.f32 %v4097_v59, %v6276_v60  ;;  %2270 = vst [vmem:[%s5362_s28 + $0x168] sm:$0xff] %v5629_v43  ;;  %v2311_v56 = vpack.c.bf16 %v5629_v43, %v5622_v33 }
 0x43b   : > { %2256 = vst [vmem:[%s5362_s28 + $0xf8] sm:$0xff] %v2192_v45  ;;  %v2304_v3 = vpack.c.bf16 %v2192_v45, %v2191_v24 }
 0x43c   : > { %v4099_v5 = vpop.eup %4098 }
 0x43d   : > { %v2190_v50 = vmul.f32 %v4099_v5, %v6277_v13 }
 0x43f   : > { %2254 = vst [vmem:[%s5362_s28 + $0xe8] sm:$0xff] %v2190_v50  ;;  %v2303_v52 = vpack.c.bf16 %v2190_v50, %v2189_v41 }
 0x441   : > { %3732 = vmatprep.mubr.bf16.mxu1 %v2303_v52 }
 0x442   : > { %3733 = vmatmul.mubr.bf16.gmra.mrb[60].mxu1 %v2304_v3 }
 0x443   : > { %v2070_v1 = vpop.xlane.xlu0 %2069 }
 0x444   : > { %4100 = vrcp.f32 %v2070_v1 }
 0x447   : > { %v2066_v48 = vpop.xlane.xlu1 %2065 }
 0x448   : > { %4102 = vrcp.f32 %v2066_v48  ;;  %v2072_v7 = vpop.xlane.xlu0 %2071 }
 0x449   : > { %4104 = vrcp.f32 %v2072_v7 }
 0x44d   : > { %v2068_v26 = vpop.xlane.xlu0 %2067 }
 0x44e   : > { %v4101_v16 = vpop.eup %4100  ;;  %4106 = vrcp.f32 %v2068_v26 }
 0x44f   : > { %v5642_v2 = vmul.f32 %v4101_v16, %v5414_v25 }
 0x451   : > { %2275 = vst [vmem:[%s5362_s28 + $0x190] sm:$0xff] %v5642_v2 }
 0x452   : > { %v4103_v24 = vpop.eup %4102 }
 0x453   : > { %v4105_v31 = vpop.eup %4104  ;;  %v2078_v36 = vpop.xlane.xlu0 %2077  ;;  %v2209_v41 = vmul.f32 %v4103_v24, %v5422_v29 }
 0x454   : > { %v5648_v57 = vmul.f32 %v4105_v31, %v5418_v0  ;;  %4108 = vrcp.f32 %v2078_v36 }
 0x455   : > { %2273 = vst [vmem:[%s5362_s28 + $0x180] sm:$0xff] %v2209_v41 }
 0x456   : > { %2276 = vst [vmem:[%s5362_s28 + $0x198] sm:$0xff] %v5648_v57 }
 0x457   : > { %v2074_v10 = vpop.xlane.xlu1 %2073  ;;  %v2080_v22 = vpop.xlane.xlu0 %2079 }
 0x458   : > { %v4107_v25 = vpop.eup %4106  ;;  %4110 = vrcp.f32 %v2074_v10 }
 0x459   : > { %4112 = vrcp.f32 %v2080_v22  ;;  %v2210_v54 = vmul.f32 %v4107_v25, %v5438_v23 }
 0x45b   : > { %v2076_v11 = vpop.xlane.xlu0 %2075  ;;  %2274 = vst [vmem:[%s5362_s28 + $0x188] sm:$0xff] %v2210_v54  ;;  %v2313_v14 = vpack.c.bf16 %v2210_v54, %v2209_v41 }
 0x45c   : > { %4114 = vrcp.f32 %v2076_v11 }
 0x45d   : > { %3784 = vmatprep.mubr.bf16.mxu1 %v2313_v14 }
 0x45e   : > { %v4109_v0 = vpop.eup %4108 }
 0x45f   : > { %v2082_v29 = vpop.xlane.xlu1 %2081  ;;  %v2086_v20 = vpop.xlane.xlu0 %2085  ;;  %v5656_v62 = vmul.f32 %v4109_v0, %v5450_v32 }
 0x460   : > { %4116 = vrcp.f32 %v2082_v29 }
 0x461   : > { %4118 = vrcp.f32 %v2086_v20  ;;  %2279 = vst [vmem:[%s5362_s28 + $0x1b0] sm:$0xff] %v5656_v62 }
 0x462   : > { %v4111_v15 = vpop.eup %4110 }
 0x463   : > { %v4113_v23 = vpop.eup %4112  ;;  %v2088_v59 = vpop.xlane.xlu0 %2087  ;;  %v2213_v60 = vmul.f32 %v4111_v15, %v5457_v34 }
 0x464   : > { %4120 = vrcp.f32 %v2088_v59  ;;  %v2216_v45 = vmul.f32 %v4113_v23, %v5455_v55 }
 0x465   : > { %2277 = vst [vmem:[%s5362_s28 + $0x1a0] sm:$0xff] %v2213_v60 }
 0x466   : > { %v4115_v5 = vpop.eup %4114  ;;  %2280 = vst [vmem:[%s5362_s28 + $0x1b8] sm:$0xff] %v2216_v45  ;;  %v2316_v58 = vpack.c.bf16 %v2216_v45, %v5656_v62 }
 0x467   : > { %v2090_v13 = vpop.xlane.xlu1 %2089  ;;  %v2084_v32 = vpop.xlane.xlu0 %2083  ;;  %v2214_v50 = vmul.f32 %v4115_v5, %v5463_v30 }
 0x468   : > { %4122 = vrcp.f32 %v2090_v13 }
 0x469   : > { %4124 = vrcp.f32 %v2084_v32  ;;  %2278 = vst [vmem:[%s5362_s28 + $0x1a8] sm:$0xff] %v2214_v50 }
 0x46a   : > { %v4117_v52 = vpop.eup %4116 }
 0x46b   : > { %v4119_v3 = vpop.eup %4118  ;;  %v843_v1 = vpop.permute.xlu1 %842  ;;  %v2217_v48 = vmul.f32 %v4117_v52, %v5469_v37 }
 0x46c   : > { %v2094_v34 = vpop.xlane.xlu0 %2093  ;;  %3750 = vmatprep.subr.bf16.mxu0 %v843_v1  ;;  %v2219_v55 = vmul.f32 %v4119_v3, %v5467_v6 }
 0x46d   : > { %4126 = vrcp.f32 %v2094_v34  ;;  %3751 = vmatpush3.bf16.msra.mxu0 %v843_v1  ;;  %2281 = vst [vmem:[%s5362_s28 + $0x1c0] sm:$0xff] %v2217_v48 }
 0x46e   : > { %v4121_v7 = vpop.eup %4120  ;;  %2283 = vst [vmem:[%s5362_s28 + $0x1d0] sm:$0xff] %v2219_v55 }
 0x46f   : > { %v2220_v26 = vmul.f32 %v4121_v7, %v5474_v61 }
 0x470   : > { %v2096_v30 = vpop.xlane.xlu0 %2095  ;;  %3753 = vmatmul.mubr.bf16.vlgmr.msra.gmra.mrb[80].mxu0 %v2306_v9  ;;  %v2315_v9 = vpack.c.bf16 %v2214_v50, %v2213_v60 }
 0x471   : > { %4128 = vrcp.f32 %v2096_v30  ;;  %3756 = vmatprep.mubr.bf16.mxu0 %v2307_v44  ;;  %2284 = vst [vmem:[%s5362_s28 + $0x1d8] sm:$0xff] %v2220_v26 }
 0x472   : > { %v4123_v6 = vpop.eup %4122 }
 0x473   : > { %v4125_v37 = vpop.eup %4124  ;;  %v2221_v24 = vmul.f32 %v4123_v6, %v5479_v19  ;;  %v2314_v19 = vpack.c.bf16 %v5648_v57, %v5642_v2 }
 0x474   : > { %v2092_v16 = vpop.xlane.xlu0 %2091  ;;  %v2218_v31 = vmul.f32 %v4125_v37, %v5477_v12 }
 0x475   : > { %4130 = vrcp.f32 %v2092_v16  ;;  %2285 = vst [vmem:[%s5362_s28 + $0x1e0] sm:$0xff] %v2221_v24 }
 0x476   : > { %2282 = vst [vmem:[%s5362_s28 + $0x1c8] sm:$0xff] %v2218_v31 }
 0x477   : > { %v4127_v61 = vpop.eup %4126 }
 0x478   : > { %v867_v8 = vpop.permute.xlu0 %866  ;;  %v2223_v4 = vmul.f32 %v4127_v61, %v5483_v53  ;;  %3757 = vmatmul.mubr.bf16.gmra.mrb[84].mxu0 %v2308_v47 }
 0x479   : > { %3782 = vmatprep.subr.bf16.mxu1 %v867_v8  ;;  %3760 = vmatprep.mubr.bf16.mxu0 %v2309_v38 }
 0x47a   : > { %3783 = vmatpush3.bf16.msra.mxu1 %v867_v8  ;;  %2287 = vst [vmem:[%s5362_s28 + $0x1f0] sm:$0xff] %v2223_v4 }
 0x47b   : > { %v4129_v12 = vpop.eup %4128 }
 0x47c   : > { %v2224_v35 = vmul.f32 %v4129_v12, %v5491_v40 }
 0x47d   : > { %3785 = vmatmul.mubr.bf16.vlgmr.msra.gmra.mrb[64].mxu1 %v2314_v19 }
 0x47e   : > { %3788 = vmatprep.mubr.bf16.mxu1 %v2315_v9  ;;  %2288 = vst [vmem:[%s5362_s28 + $0x1f8] sm:$0xff] %v2224_v35  ;;  %v2320_v2 = vpack.c.bf16 %v2224_v35, %v2223_v4 }
 0x47f   : > { %v4131_v53 = vpop.eup %4130 }
 0x480   : > { %v2222_v42 = vmul.f32 %v4131_v53, %v5494_v21  ;;  %v5695_v17 = vpop.f32.mrb[64].mxu0  ;;  %3761 = vmatmul.mubr.bf16.gmra.mrb[88].mxu0 %v2310_v39  ;;  %v2317_v21 = vpack.c.bf16 %v2218_v31, %v2217_v48  ;;  %v2318_v39 = vpack.c.bf16 %v2220_v26, %v2219_v55 }
 0x481   : > { %v5700_v47 = vpop.f32.mrb[65].mxu0  ;;  %3764 = vmatprep.mubr.bf16.mxu0 %v2311_v56 }
 0x482   : > { %2286 = vst [vmem:[%s5362_s28 + $0x1e8] sm:$0xff] %v2222_v42  ;;  %v5706_v40 = vpop.f32.mrb[66].mxu0  ;;  %v2319_v38 = vpack.c.bf16 %v2222_v42, %v2221_v24 }
 0x483   : > { %v5709_v44 = vpop.f32.mrb[67].mxu0 }
 0x485   : > { %3789 = vmatmul.mubr.bf16.gmra.mrb[68].mxu1 %v2316_v58 }
 0x486   : > { %3792 = vmatprep.mubr.bf16.mxu1 %v2317_v21 }
 0x488   : > { %v5711_v28 = vpop.f32.mrb[68].mxu0  ;;  %3765 = vmatmul.mubr.bf16.gmra.mrb[92].mxu0 %v2312_v46 }
 0x489   : > { %v5716_v63 = vpop.f32.mrb[69].mxu0 }
 0x48a   : > { %v5718_v51 = vpop.f32.mrb[70].mxu0 }
 0x48b   : > { %v5720_v27 = vpop.f32.mrb[71].mxu0 }
 0x48d   : > { %3793 = vmatmul.mubr.bf16.gmra.mrb[72].mxu1 %v2318_v39 }
 0x48e   : > { %3796 = vmatprep.mubr.bf16.mxu1 %v2319_v38 }
 0x490   : > { %v5722_v33 = vpop.f32.mrb[72].mxu0 }
 0x491   : > { %v5724_v43 = vpop.f32.mrb[73].mxu0 }
 0x492   : > { %v5726_v56 = vpop.f32.mrb[74].mxu0 }
 0x493   : > { %v5728_v36 = vpop.f32.mrb[75].mxu0 }
 0x495   : > { %3797 = vmatmul.mubr.bf16.gmra.mrb[76].mxu1 %v2320_v2 }
 0x499   : > { %v5730_v49 = vpop.f32.mrb[76].mxu0 }
 0x49a   : > { %v5732_v18 = vpop.f32.mrb[77].mxu0 }
 0x49b   : > { %v5734_v46 = vpop.f32.mrb[78].mxu0 }
 0x49c   : > { %v5736_v41 = vpop.f32.mrb[79].mxu0 }
 0x4e7   : > { %v3722_v57 = vpop.f32.mrb[48].mxu1 }
 0x4e8   : > { %2729 = vrot.lane.b32.xlu1 %v3722_v57, %s4191_s12  ;;  %v2452_v10 = vpop.f32.mrb[49].mxu1 }
 0x4e9   : > { %v3723_v22 = vpop.f32.mrb[50].mxu1 }
 0x4ea   : > { %v2455_v25 = vpop.f32.mrb[51].mxu1 }
 0x4ec   : > { %2725 = vrot.lane.b32.xlu1 %v2452_v10, %s4191_s12 }
 0x4f0   : > { %2731 = vrot.lane.b32.xlu1 %v3723_v22, %s4191_s12 }
 0x4f5   : > { %v3726_v54 = vpop.f32.mrb[52].mxu1 }
 0x4f6   : > { %v2468_v11 = vpop.f32.mrb[53].mxu1 }
 0x4f7   : > { %v3727_v14 = vpop.f32.mrb[54].mxu1 }
 0x4f8   : > { %v2471_v0 = vpop.f32.mrb[55].mxu1 }
 0x505   : > { %v3730_v29 = vpop.f32.mrb[56].mxu1 }
 0x506   : > { %v2484_v20 = vpop.f32.mrb[57].mxu1 }
 0x507   : > { %v3731_v62 = vpop.f32.mrb[58].mxu1 }
 0x508   : > { %v2487_v15 = vpop.f32.mrb[59].mxu1 }
 0x515   : > { %v3734_v23 = vpop.f32.mrb[60].mxu1 }
 0x516   : > { %v5741_v59 = vpop.f32.mrb[61].mxu1 }
 0x517   : > { %v3735_v60 = vpop.f32.mrb[62].mxu1 }
 0x518   : > { %v5743_v45 = vpop.f32.mrb[63].mxu1 }
 0x543   : > { %v3754_v5 = vpop.f32.mrb[80].mxu0 }
 0x544   : > { %2793 = vrot.lane.b32.xlu0 %v3754_v5, %s4190_s11  ;;  %v2549_v13 = vpop.f32.mrb[81].mxu0 }
 0x545   : > { %v3755_v32 = vpop.f32.mrb[82].mxu0 }
 0x546   : > { %v2552_v50 = vpop.f32.mrb[83].mxu0  ;;  %2795 = vrot.lane.b32.xlu1 %v3755_v32, %s4190_s11 }
 0x548   : > { %2789 = vrot.lane.b32.xlu0 %v2549_v13, %s4190_s11 }
 0x54a   : > { %2727 = vrot.lane.b32.xlu1 %v2455_v25, %s4191_s12 }
 0x54b   : > { %v3758_v52 = vpop.f32.mrb[84].mxu0 }
 0x54c   : > { %2737 = vrot.lane.b32.xlu0 %v3726_v54, %s4191_s12  ;;  %v2565_v3 = vpop.f32.mrb[85].mxu0 }
 0x54d   : > { %v3759_v1 = vpop.f32.mrb[86].mxu0 }
 0x54e   : > { %2791 = vrot.lane.b32.xlu1 %v2552_v50, %s4190_s11  ;;  %v2568_v34 = vpop.f32.mrb[87].mxu0 }
 0x550   : > { %v3786_v48 = vpop.f32.mrb[64].mxu1  ;;  %2801 = vrot.lane.b32.xlu0 %v3758_v52, %s4190_s11 }
 0x551   : > { %v2646_v55 = vpop.f32.mrb[65].mxu1 }
 0x552   : > { %v3787_v7 = vpop.f32.mrb[66].mxu1  ;;  %2739 = vrot.lane.b32.xlu1 %v3727_v14, %s4191_s12 }
 0x553   : > { %v2649_v30 = vpop.f32.mrb[67].mxu1  ;;  %v3762_v26 = vpop.f32.mrb[88].mxu0 }
 0x554   : > { %2733 = vrot.lane.b32.xlu0 %v2468_v11, %s4191_s12  ;;  %v2581_v6 = vpop.f32.mrb[89].mxu0 }
 0x555   : > { %v3763_v37 = vpop.f32.mrb[90].mxu0 }
 0x556   : > { %2803 = vrot.lane.b32.xlu1 %v3759_v1, %s4190_s11  ;;  %v2584_v16 = vpop.f32.mrb[91].mxu0 }
 0x558   : > { %v3790_v24 = vpop.f32.mrb[68].mxu1  ;;  %2797 = vrot.lane.b32.xlu0 %v2565_v3, %s4190_s11 }
 0x559   : > { %v2662_v31 = vpop.f32.mrb[69].mxu1 }
 0x55a   : > { %v3791_v61 = vpop.f32.mrb[70].mxu1  ;;  %v2730_v8 = vpop.permute.xlu1 %2729  ;;  %2735 = vrot.lane.b32.xlu1 %v2471_v0, %s4191_s12 }
 0x55b   : > { %v2665_v4 = vpop.f32.mrb[71].mxu1  ;;  %v5759_v12 = vsel %vm876_vm0, %v5695_v17, %v2730_v8  ;;  %v3766_v19 = vpop.f32.mrb[92].mxu0 }
 0x55c   : > { %2745 = vrot.lane.b32.xlu0 %v3730_v29, %s4191_s12  ;;  %v2597_v9 = vpop.f32.mrb[93].mxu0 }
 0x55d   : > { %v3767_v35 = vpop.f32.mrb[94].mxu0 }
 0x55e   : > { %v2726_v53 = vpop.permute.xlu1 %2725  ;;  %2799 = vrot.lane.b32.xlu1 %v2568_v34, %s4190_s11  ;;  %v2600_v42 = vpop.f32.mrb[95].mxu0 }
 0x55f   : > { %v5765_v58 = vsel %vm876_vm0, %v5700_v47, %v2726_v53  ;;  %v4165_v53 = vld [vmem:[%s4262_s14] sm:$0xff] }
 0x560   : > { %v3794_v21 = vpop.f32.mrb[72].mxu1  ;;  %2809 = vrot.lane.b32.xlu0 %v3762_v26, %s4190_s11 }
 0x561   : > { %v2678_v39 = vpop.f32.mrb[73].mxu1 }
 0x562   : > { %v3795_v38 = vpop.f32.mrb[74].mxu1  ;;  %v2732_v17 = vpop.permute.xlu1 %2731  ;;  %2747 = vrot.lane.b32.xlu1 %v3731_v62, %s4191_s12 }
 0x563   : > { %v2681_v2 = vpop.f32.mrb[75].mxu1  ;;  %v5771_v57 = vsel %vm876_vm0, %v5706_v40, %v2732_v17 }
 0x564   : > { %2741 = vrot.lane.b32.xlu0 %v2484_v20, %s4191_s12 }
 0x566   : > { %2811 = vrot.lane.b32.xlu1 %v3763_v37, %s4190_s11 }
 0x568   : > { %v3798_v10 = vpop.f32.mrb[76].mxu1  ;;  %2805 = vrot.lane.b32.xlu0 %v2581_v6, %s4190_s11 }
 0x569   : > { %v2694_v47 = vpop.f32.mrb[77].mxu1 }
 0x56a   : > { %v3799_v22 = vpop.f32.mrb[78].mxu1  ;;  %2743 = vrot.lane.b32.xlu1 %v2487_v15, %s4191_s12 }
 0x56b   : > { %v2697_v25 = vpop.f32.mrb[79].mxu1 }
 0x56c   : > { %2753 = vrot.lane.b32.xlu0 %v3734_v23, %s4191_s12 }
 0x56e   : > { %2807 = vrot.lane.b32.xlu1 %v2584_v16, %s4190_s11 }
 0x570   : > { %2817 = vrot.lane.b32.xlu0 %v3766_v19, %s4190_s11 }
 0x572   : > { %2755 = vrot.lane.b32.xlu1 %v3735_v60, %s4191_s12 }
 0x574   : > { %2749 = vrot.lane.b32.xlu0 %v5741_v59, %s4191_s12 }
 0x576   : > { %2819 = vrot.lane.b32.xlu1 %v3767_v35, %s4190_s11 }
 0x578   : > { %2813 = vrot.lane.b32.xlu0 %v2597_v9, %s4190_s11 }
 0x57a   : > { %2751 = vrot.lane.b32.xlu1 %v5743_v45, %s4191_s12 }
 0x57c   : > { %2857 = vrot.lane.b32.xlu0 %v3786_v48, %s4189_s10 }
 0x57e   : > { %2815 = vrot.lane.b32.xlu1 %v2600_v42, %s4190_s11 }
 0x580   : > { %2853 = vrot.lane.b32.xlu0 %v2646_v55, %s4189_s10 }
 0x582   : > { %2859 = vrot.lane.b32.xlu1 %v3787_v7, %s4189_s10 }
 0x584   : > { %2865 = vrot.lane.b32.xlu0 %v3790_v24, %s4189_s10 }
 0x586   : > { %2855 = vrot.lane.b32.xlu1 %v2649_v30, %s4189_s10 }
 0x588   : > { %2861 = vrot.lane.b32.xlu0 %v2662_v31, %s4189_s10 }
 0x58a   : > { %2867 = vrot.lane.b32.xlu1 %v3791_v61, %s4189_s10  ;;  %v4164_v61 = vld [vmem:[%s4262_s14 + $0x10] sm:$0xff] }
 0x58c   : > { %2873 = vrot.lane.b32.xlu0 %v3794_v21, %s4189_s10 }
 0x58e   : > { %2863 = vrot.lane.b32.xlu1 %v2665_v4, %s4189_s10 }
 0x590   : > { %2869 = vrot.lane.b32.xlu0 %v2678_v39, %s4189_s10 }
 0x592   : > { %2875 = vrot.lane.b32.xlu1 %v3795_v38, %s4189_s10 }
 0x594   : > { %2877 = vrot.lane.b32.xlu0 %v2694_v47, %s4189_s10 }
 0x596   : > { %2871 = vrot.lane.b32.xlu1 %v2681_v2, %s4189_s10  ;;  %v4166_v2 = vld [vmem:[%s4262_s14 + $0x18] sm:$0xff] }
 0x598   : > { %2881 = vrot.lane.b32.xlu0 %v3798_v10, %s4189_s10 }
 0x59a   : > { %2879 = vrot.lane.b32.xlu1 %v2697_v25, %s4189_s10 }
 0x59e   : > { %2883 = vrot.lane.b32.xlu1 %v3799_v22, %s4189_s10 }
 0x5b6   : > { %v2794_v40 = vpop.permute.xlu0 %2793 }
 0x5b7   : > { %v2920_v16 = vsel %vm2917_vm1, %v5759_v12, %v2794_v40  ;;  %v4167_v40 = vld [vmem:[%s4262_s14 + $0x8] sm:$0xff] }
 0x5b8   : > { %v2796_v54 = vpop.permute.xlu1 %2795 }
 0x5b9   : > { %v2921_v12 = vsel %vm2917_vm1, %v5771_v57, %v2796_v54 }
 0x5ba   : > { %v2790_v11 = vpop.permute.xlu0 %2789 }
 0x5bb   : > { %v2918_v19 = vsel %vm2917_vm1, %v5765_v58, %v2790_v11 }
 0x5bc   : > { %v2728_v14 = vpop.permute.xlu1 %2727 }
 0x5bd   : > { %v2902_v58 = vsel %vm876_vm0, %v5709_v44, %v2728_v14 }
 0x5be   : > { %v2738_v0 = vpop.permute.xlu0 %2737 }
 0x5bf   : > { %v2907_v57 = vsel %vm876_vm0, %v5711_v28, %v2738_v0 }
 0x5c0   : > { %v2792_v29 = vpop.permute.xlu1 %2791 }
 0x5c1   : > { %v2919_v17 = vsel %vm2917_vm1, %v2902_v58, %v2792_v29 }
 0x5c2   : > { %v2802_v20 = vpop.permute.xlu0 %2801 }
 0x5c3   : > { %v2924_v25 = vsel %vm2917_vm1, %v2907_v57, %v2802_v20 }
 0x5c4   : > { %v2740_v62 = vpop.permute.xlu1 %2739 }
 0x5c5   : > { %v2908_v11 = vsel %vm876_vm0, %v5718_v51, %v2740_v62  ;;  %v4169_v51 = vld [vmem:[%s4262_s14 + $0x38] sm:$0xff] }
 0x5c6   : > { %v2734_v15 = vpop.permute.xlu0 %2733 }
 0x5c7   : > { %v2905_v28 = vsel %vm876_vm0, %v5716_v63, %v2734_v15 }
 0x5c8   : > { %v2804_v23 = vpop.permute.xlu1 %2803 }
 0x5c9   : > { %v2925_v29 = vsel %vm2917_vm1, %v2908_v11, %v2804_v23 }
 0x5ca   : > { %v2798_v59 = vpop.permute.xlu0 %2797 }
 0x5cb   : > { %v2922_v20 = vsel %vm2917_vm1, %v2905_v28, %v2798_v59 }
 0x5cc   : > { %v2736_v60 = vpop.permute.xlu1 %2735 }
 0x5cd   : > { %v2906_v23 = vsel %vm876_vm0, %v5720_v27, %v2736_v60  ;;  %v4170_v27 = vld [vmem:[%s4262_s14 + $0x20] sm:$0xff] }
 0x5ce   : > { %v5804_v45 = vpop.permute.xlu0 %2745 }
 0x5cf   : > { %v2911_v59 = vsel %vm876_vm0, %v5722_v33, %v5804_v45 }
 0x5d0   : > { %v2800_v5 = vpop.permute.xlu1 %2799 }
 0x5d1   : > { %v2923_v63 = vsel %vm2917_vm1, %v2906_v23, %v2800_v5  ;;  %v4171_v5 = vld [vmem:[%s4262_s14 + $0x28] sm:$0xff] }
 0x5d2   : > { %v5806_v13 = vpop.permute.xlu0 %2809 }
 0x5d4   : > { %v5808_v32 = vpop.permute.xlu1 %2747 }
 0x5d6   : > { %v5810_v50 = vpop.permute.xlu0 %2741 }
 0x5d8   : > { %v5812_v52 = vpop.permute.xlu1 %2811 }
 0x5da   : > { %v5814_v3 = vpop.permute.xlu0 %2805 }
 0x5dc   : > { %v5816_v1 = vpop.permute.xlu1 %2743 }
 0x5de   : > { %v5818_v34 = vpop.permute.xlu0 %2753 }
 0x5e0   : > { %v5820_v48 = vpop.permute.xlu1 %2807 }
 0x5e2   : > { %v5822_v55 = vpop.permute.xlu0 %2817 }
 0x5e4   : > { %v5824_v7 = vpop.permute.xlu1 %2755 }
 0x5e6   : > { %v5826_v30 = vpop.permute.xlu0 %2749 }
 0x5e8   : > { %v5828_v26 = vpop.permute.xlu1 %2819 }
 0x5ea   : > { %v5830_v6 = vpop.permute.xlu0 %2813 }
 0x5ec   : > { %v5832_v37 = vpop.permute.xlu1 %2751 }
 0x5ee   : > { %v2858_v24 = vpop.permute.xlu0 %2857 }
 0x5ef   : > { %v2937_v31 = vsel %vm2934_vm2, %v2920_v16, %v2858_v24  ;;  %v4168_v24 = vld [vmem:[%s4262_s14 + $0x30] sm:$0xff] }
 0x5f0   : > { %v5838_v8 = vadd.f32 %v4164_v61, %v2937_v31  ;;  %v5840_v4 = vpop.permute.xlu1 %2815 }
 0x5f2   : > { %2971 = vadd.xlane.f32.xlu0 %v5838_v8  ;;  %v2854_v9 = vpop.permute.xlu0 %2853 }
 0x5f3   : > { %v2935_v35 = vsel %vm2934_vm2, %v2918_v19, %v2854_v9 }
 0x5f4   : > { %v5849_v42 = vadd.f32 %v4165_v53, %v2935_v35  ;;  %v2860_v21 = vpop.permute.xlu1 %2859  ;;  %v2928_v35 = vsel %vm2917_vm1, %v2911_v59, %v5806_v13  ;;  %v2909_v13 = vsel %vm876_vm0, %v5724_v43, %v5810_v50 }
 0x5f5   : > { %v2938_v39 = vsel %vm2934_vm2, %v2921_v12, %v2860_v21  ;;  %v2912_v21 = vsel %vm876_vm0, %v5726_v56, %v5808_v32  ;;  %v2926_v56 = vsel %vm2917_vm1, %v2909_v13, %v5814_v3  ;;  %v4172_v32 = vld [vmem:[%s4262_s14 + $0x50] sm:$0xff]  ;;  %v2913_v3 = vsel %vm876_vm0, %v5732_v18, %v5826_v30 }
 0x5f6   : > { %2967 = vadd.xlane.f32.xlu0 %v5849_v42  ;;  %v2866_v38 = vpop.permute.xlu0 %2865  ;;  %v5857_v10 = vadd.f32 %v4166_v2, %v2938_v39  ;;  %v2929_v45 = vsel %vm2917_vm1, %v2912_v21, %v5812_v52  ;;  %v4173_v52 = vld [vmem:[%s4262_s14 + $0x58] sm:$0xff] }
 0x5f7   : > { %v2941_v14 = vsel %vm2934_vm2, %v2924_v25, %v2866_v38 }
 0x5f8   : > { %v2856_v47 = vpop.permute.xlu1 %2855  ;;  %v5877_v31 = vadd.f32 %v4168_v24, %v2941_v14  ;;  %v4178_v24 = vld [vmem:[%s4262_s14 + $0x70] sm:$0xff] }
 0x5f9   : > { %v2936_v22 = vsel %vm2934_vm2, %v2919_v17, %v2856_v47  ;;  %v2910_v47 = vsel %vm876_vm0, %v5728_v36, %v5816_v1  ;;  %v2930_v36 = vsel %vm2917_vm1, %v2913_v3, %v5830_v6  ;;  %v4174_v1 = vld [vmem:[%s4262_s14 + $0x40] sm:$0xff]  ;;  %v2915_v6 = vsel %vm876_vm0, %v5730_v49, %v5818_v34 }
 0x5fa   : > { %v5864_v54 = vadd.f32 %v4167_v40, %v2936_v22  ;;  %2973 = vadd.xlane.f32.xlu0 %v5857_v10  ;;  %v2862_v44 = vpop.permute.xlu0 %2861  ;;  %v2927_v50 = vsel %vm2917_vm1, %v2910_v47, %v5820_v48  ;;  %v4175_v48 = vld [vmem:[%s4262_s14 + $0x48] sm:$0xff] }
 0x5fb   : > { %v2939_v19 = vsel %vm2934_vm2, %v2922_v20, %v2862_v44  ;;  %v2914_v44 = vsel %vm876_vm0, %v5736_v41, %v5832_v37  ;;  %v2932_v41 = vsel %vm2917_vm1, %v2915_v6, %v5822_v55  ;;  %v4176_v37 = vld [vmem:[%s4262_s14 + $0x60] sm:$0xff] }
 0x5fc   : > { %v2868_v16 = vpop.permute.xlu1 %2867  ;;  %2969 = vadd.xlane.f32.xlu1 %v5864_v54  ;;  %v5895_v60 = vadd.f32 %v4170_v27, %v2939_v19  ;;  %v2931_v18 = vsel %vm2917_vm1, %v2914_v44, %v5840_v4  ;;  %v4177_v4 = vld [vmem:[%s4262_s14 + $0x68] sm:$0xff] }
 0x5fd   : > { %v2942_v0 = vsel %vm2934_vm2, %v2925_v29, %v2868_v16 }
 0x5fe   : > { %v5880_v62 = vadd.f32 %v4169_v51, %v2942_v0  ;;  %v2874_v61 = vpop.permute.xlu0 %2873  ;;  %v2916_v0 = vsel %vm876_vm0, %v5734_v46, %v5824_v7 }
 0x5ff   : > { %v2945_v33 = vsel %vm2934_vm2, %v2928_v35, %v2874_v61  ;;  %v2933_v49 = vsel %vm2917_vm1, %v2916_v0, %v5828_v26  ;;  %v4179_v61 = vld [vmem:[%s4262_s14 + $0x78] sm:$0xff] }
 0x600   : > { %v2864_v15 = vpop.permute.xlu1 %2863  ;;  %2981 = vadd.xlane.f32.xlu0 %v5880_v62  ;;  %2979 = vadd.xlane.f32.xlu1 %v5877_v31  ;;  %v5915_v58 = vadd.f32 %v4172_v32, %v2945_v33 }
 0x601   : > { %v2940_v9 = vsel %vm2934_vm2, %v2923_v63, %v2864_v15 }
 0x602   : > { %v5898_v12 = vadd.f32 %v4171_v5, %v2940_v9  ;;  %v2870_v53 = vpop.permute.xlu0 %2869 }
 0x603   : > { %v2943_v43 = vsel %vm2934_vm2, %v2926_v56, %v2870_v53 }
 0x604   : > { %v2876_v39 = vpop.permute.xlu1 %2875  ;;  %2977 = vadd.xlane.f32.xlu0 %v5898_v12  ;;  %2975 = vadd.xlane.f32.xlu1 %v5895_v60  ;;  %v5935_v25 = vadd.f32 %v4174_v1, %v2943_v43 }
 0x605   : > { %v2946_v38 = vsel %vm2934_vm2, %v2929_v45, %v2876_v39 }
 0x606   : > { %v5918_v17 = vadd.f32 %v4173_v52, %v2946_v38  ;;  %v2878_v2 = vpop.permute.xlu0 %2877 }
 0x607   : > { %v2947_v11 = vsel %vm2934_vm2, %v2930_v36, %v2878_v2 }
 0x608   : > { %v2872_v57 = vpop.permute.xlu1 %2871  ;;  %2989 = vadd.xlane.f32.xlu0 %v5918_v17  ;;  %2987 = vadd.xlane.f32.xlu1 %v5915_v58  ;;  %v5955_v16 = vadd.f32 %v4176_v37, %v2947_v11 }
 0x609   : > { %v2944_v22 = vsel %vm2934_vm2, %v2927_v50, %v2872_v57 }
 0x60a   : > { %v5938_v40 = vadd.f32 %v4175_v48, %v2944_v22  ;;  %v2882_v30 = vpop.permute.xlu0 %2881 }
 0x60b   : > { %v2949_v20 = vsel %vm2934_vm2, %v2932_v41, %v2882_v30 }
 0x60c   : > { %v2880_v14 = vpop.permute.xlu1 %2879  ;;  %2985 = vadd.xlane.f32.xlu0 %v5938_v40  ;;  %2983 = vadd.xlane.f32.xlu1 %v5935_v25  ;;  %v5970_v51 = vadd.f32 %v4178_v24, %v2949_v20 }
 0x60d   : > { %v2948_v29 = vsel %vm2934_vm2, %v2931_v18, %v2880_v14 }
 0x60e   : > { %v5958_v28 = vadd.f32 %v4177_v4, %v2948_v29 }
 0x610   : > { %v2884_v34 = vpop.permute.xlu1 %2883  ;;  %2993 = vadd.xlane.f32.xlu0 %v5958_v28  ;;  %2991 = vadd.xlane.f32.xlu1 %v5955_v16 }
 0x611   : > { %v2950_v55 = vsel %vm2934_vm2, %v2933_v49, %v2884_v34 }
 0x612   : > { %v5973_v23 = vadd.f32 %v4179_v61, %v2950_v55 }
 0x614   : > { %2997 = vadd.xlane.f32.xlu0 %v5973_v23  ;;  %2995 = vadd.xlane.f32.xlu1 %v5970_v51 }
 0x67f   : > { %v2972_v46 = vpop.xlane.xlu0 %2971 }
 0x680   : > { %v3002_v7 = vmul.f32 0.0078125, %v2972_v46 }
 0x682   : > { %v5978_v26 = vsub.f32 %v5838_v8, %v3002_v7 }
 0x683   : > { %v2968_v19 = vpop.xlane.xlu0 %2967 }
 0x684   : > { %v3000_v63 = vmul.f32 0.0078125, %v2968_v19  ;;  %v3034_v15 = vmul.f32 %v5978_v26, %v5978_v26 }
 0x686   : > { %v5983_v59 = vsub.f32 %v5849_v42, %v3000_v63  ;;  %3052 = vadd.xlane.f32.xlu1 %v3034_v15 }
 0x687   : > { %v2974_v9 = vpop.xlane.xlu0 %2973 }
 0x688   : > { %v3003_v35 = vmul.f32 0.0078125, %v2974_v9  ;;  %v3032_v27 = vmul.f32 %v5983_v59, %v5983_v59 }
 0x689   : > { %v2970_v5 = vpop.xlane.xlu1 %2969 }
 0x68a   : > { %v5988_v53 = vsub.f32 %v5857_v10, %v3003_v35  ;;  %v3001_v8 = vmul.f32 0.0078125, %v2970_v5  ;;  %3048 = vadd.xlane.f32.xlu1 %v3032_v27 }
 0x68c   : > { %v5991_v21 = vsub.f32 %v5864_v54, %v3001_v8  ;;  %v3035_v33 = vmul.f32 %v5988_v53, %v5988_v53 }
 0x68d   : > { %v2980_v42 = vpop.xlane.xlu1 %2979  ;;  %v2982_v45 = vpop.xlane.xlu0 %2981 }
 0x68e   : > { %v3006_v39 = vmul.f32 0.0078125, %v2980_v42  ;;  %v3007_v13 = vmul.f32 0.0078125, %v2982_v45  ;;  %3054 = vadd.xlane.f32.xlu0 %v3035_v33  ;;  %v3033_v10 = vmul.f32 %v5991_v21, %v5991_v21 }
 0x690   : > { %v5996_v38 = vsub.f32 %v5877_v31, %v3006_v39  ;;  %v5999_v56 = vsub.f32 %v5880_v62, %v3007_v13  ;;  %v6060_v39 = vld [vmem:[%s6144_s3] ss:$0 sm:$0xff] }
 0x691   : > { %v2976_v32 = vpop.xlane.xlu1 %2975  ;;  %v2978_v54 = vpop.xlane.xlu0 %2977 }
 0x692   : > { %v3004_v52 = vmul.f32 0.0078125, %v2976_v32  ;;  %v3005_v2 = vmul.f32 0.0078125, %v2978_v54  ;;  %3050 = vadd.xlane.f32.xlu0 %v3033_v10  ;;  %v3038_v47 = vmul.f32 %v5996_v38, %v5996_v38  ;;  %v3039_v62 = vmul.f32 %v5999_v56, %v5999_v56 }
 0x694   : > { %v6006_v43 = vsub.f32 %v5895_v60, %v3004_v52  ;;  %v6009_v31 = vsub.f32 %v5898_v12, %v3005_v2  ;;  %3060 = vadd.xlane.f32.xlu1 %v3038_v47  ;;  %v6066_v52 = vld [vmem:[%s6145_s4] ss:$0 sm:$0xff] }
 0x695   : > { %v2988_v50 = vpop.xlane.xlu1 %2987  ;;  %v2990_v57 = vpop.xlane.xlu0 %2989 }
 0x696   : > { %v3010_v3 = vmul.f32 0.0078125, %v2988_v50  ;;  %v3011_v22 = vmul.f32 0.0078125, %v2990_v57  ;;  %3062 = vadd.xlane.f32.xlu0 %v3039_v62  ;;  %v3036_v36 = vmul.f32 %v6006_v43, %v6006_v43  ;;  %v3037_v12 = vmul.f32 %v6009_v31, %v6009_v31 }
 0x698   : > { %v6016_v1 = vsub.f32 %v5915_v58, %v3010_v3  ;;  %v6019_v60 = vsub.f32 %v5918_v17, %v3011_v22  ;;  %3056 = vadd.xlane.f32.xlu1 %v3036_v36 }
 0x699   : > { %v2984_v48 = vpop.xlane.xlu1 %2983  ;;  %v2986_v44 = vpop.xlane.xlu0 %2985 }
 0x69a   : > { %v3008_v11 = vmul.f32 0.0078125, %v2984_v48  ;;  %v3009_v18 = vmul.f32 0.0078125, %v2986_v44  ;;  %3058 = vadd.xlane.f32.xlu0 %v3037_v12  ;;  %v3042_v30 = vmul.f32 %v6016_v1, %v6016_v1  ;;  %v3043_v17 = vmul.f32 %v6019_v60, %v6019_v60 }
 0x69c   : > { %v6026_v14 = vsub.f32 %v5935_v25, %v3008_v11  ;;  %v6029_v58 = vsub.f32 %v5938_v40, %v3009_v18  ;;  %3068 = vadd.xlane.f32.xlu1 %v3042_v30 }
 0x69d   : > { %v2992_v6 = vpop.xlane.xlu1 %2991  ;;  %v2994_v29 = vpop.xlane.xlu0 %2993 }
 0x69e   : > { %v3012_v41 = vmul.f32 0.0078125, %v2992_v6  ;;  %v3013_v37 = vmul.f32 0.0078125, %v2994_v29  ;;  %3070 = vadd.xlane.f32.xlu0 %v3043_v17  ;;  %v3040_v4 = vmul.f32 %v6026_v14, %v6026_v14  ;;  %v3041_v40 = vmul.f32 %v6029_v58, %v6029_v58 }
 0x6a0   : > { %v6036_v0 = vsub.f32 %v5955_v16, %v3012_v41  ;;  %v6039_v25 = vsub.f32 %v5958_v28, %v3013_v37  ;;  %3064 = vadd.xlane.f32.xlu1 %v3040_v4 }
 0x6a1   : > { %v2996_v20 = vpop.xlane.xlu1 %2995  ;;  %v2998_v49 = vpop.xlane.xlu0 %2997 }
 0x6a2   : > { %v3014_v34 = vmul.f32 0.0078125, %v2996_v20  ;;  %v3015_v55 = vmul.f32 0.0078125, %v2998_v49  ;;  %3066 = vadd.xlane.f32.xlu0 %v3041_v40  ;;  %v3044_v24 = vmul.f32 %v6036_v0, %v6036_v0  ;;  %v3045_v28 = vmul.f32 %v6039_v25, %v6039_v25 }
 0x6a4   : > { %v6046_v61 = vsub.f32 %v5970_v51, %v3014_v34  ;;  %v6049_v16 = vsub.f32 %v5973_v23, %v3015_v55  ;;  %3072 = vadd.xlane.f32.xlu1 %v3044_v24 }
 0x6a6   : > { %3074 = vadd.xlane.f32.xlu0 %v3045_v28  ;;  %v3046_v46 = vmul.f32 %v6046_v61, %v6046_v61  ;;  %v3047_v7 = vmul.f32 %v6049_v16, %v6049_v16 }
 0x6a8   : > { %3076 = vadd.xlane.f32.xlu1 %v3046_v46 }
 0x6aa   : > { %3078 = vadd.xlane.f32.xlu0 %v3047_v7 }
 0x713   : > { %v3053_v19 = vpop.xlane.xlu1 %3052 }
 0x714   : > { %v3082_v63 = vmul.f32 0.0078125, %v3053_v19 }
 0x716   : > { %v3098_v51 = vadd.f32 1e-05, %v3082_v63 }
 0x717   : > { %v3049_v15 = vpop.xlane.xlu1 %3048 }
 0x718   : > { %4132 = vrsqrt.f32 %v3098_v51  ;;  %v3080_v23 = vmul.f32 0.0078125, %v3049_v15 }
 0x71a   : > { %v3096_v9 = vadd.f32 1e-05, %v3080_v23 }
 0x71b   : > { %v3055_v35 = vpop.xlane.xlu0 %3054 }
 0x71c   : > { %4134 = vrsqrt.f32 %v3096_v9  ;;  %v3083_v27 = vmul.f32 0.0078125, %v3055_v35 }
 0x71e   : > { %v3099_v5 = vadd.f32 1e-05, %v3083_v27 }
 0x71f   : > { %v3051_v8 = vpop.xlane.xlu0 %3050 }
 0x720   : > { %4136 = vrsqrt.f32 %v3099_v5  ;;  %v3081_v33 = vmul.f32 0.0078125, %v3051_v8 }
 0x721   : > { %v3061_v42 = vpop.xlane.xlu1 %3060 }
 0x722   : > { %v4133_v45 = vpop.eup %4132  ;;  %v3097_v13 = vadd.f32 1e-05, %v3081_v33  ;;  %v3086_v10 = vmul.f32 0.0078125, %v3061_v42 }
 0x723   : > { %v3130_v32 = vmul.f32 %v4133_v45, %v5978_v26  ;;  %v3063_v54 = vpop.xlane.xlu0 %3062 }
 0x724   : > { %4138 = vrsqrt.f32 %v3097_v13  ;;  %v3102_v2 = vadd.f32 1e-05, %v3086_v10  ;;  %v3087_v47 = vmul.f32 0.0078125, %v3063_v54 }
 0x725   : > { %v3153_v62 = vmul.f32 %v6060_v39, %v3130_v32  ;;  %v3057_v50 = vpop.xlane.xlu1 %3056 }
 0x726   : > { %v4135_v57 = vpop.eup %4134  ;;  %4140 = vrsqrt.f32 %v3102_v2  ;;  %v3103_v26 = vadd.f32 1e-05, %v3087_v47  ;;  %v3084_v3 = vmul.f32 0.0078125, %v3057_v50 }
 0x727   : > { %v3176_v22 = vadd.f32 %v6066_v52, %v3153_v62  ;;  %v3128_v36 = vmul.f32 %v4135_v57, %v5983_v59  ;;  %v3059_v12 = vpop.xlane.xlu0 %3058 }
 0x728   : > { %4142 = vrsqrt.f32 %v3103_v26  ;;  %v3100_v48 = vadd.f32 1e-05, %v3084_v3  ;;  %v3085_v44 = vmul.f32 0.0078125, %v3059_v12 }
 0x729   : > { %3192 = vst [vmem:[%s6074_s7 + $0x10] sm:$0xff] %v3176_v22  ;;  %v3151_v11 = vmul.f32 %v6060_v39, %v3128_v36  ;;  %v3069_v18 = vpop.xlane.xlu1 %3068 }
 0x72a   : > { %v4137_v30 = vpop.eup %4136  ;;  %4144 = vrsqrt.f32 %v3100_v48  ;;  %v3101_v17 = vadd.f32 1e-05, %v3085_v44  ;;  %v3090_v6 = vmul.f32 0.0078125, %v3069_v18 }
 0x72b   : > { %v3174_v29 = vadd.f32 %v6066_v52, %v3151_v11  ;;  %v3131_v41 = vmul.f32 %v4137_v30, %v5988_v53  ;;  %v3071_v37 = vpop.xlane.xlu0 %3070 }
 0x72c   : > { %4146 = vrsqrt.f32 %v3101_v17  ;;  %v3106_v59 = vadd.f32 1e-05, %v3090_v6  ;;  %v3091_v4 = vmul.f32 0.0078125, %v3071_v37 }
 0x72d   : > { %3190 = vst [vmem:[%s6074_s7] sm:$0xff] %v3174_v29  ;;  %v3154_v40 = vmul.f32 %v6060_v39, %v3131_v41  ;;  %v3065_v20 = vpop.xlane.xlu1 %3064 }
 0x72e   : > { %v4139_v49 = vpop.eup %4138  ;;  %4148 = vrsqrt.f32 %v3106_v59  ;;  %v3107_v34 = vadd.f32 1e-05, %v3091_v4  ;;  %v3088_v55 = vmul.f32 0.0078125, %v3065_v20 }
 0x72f   : > { %v3177_v24 = vadd.f32 %v6066_v52, %v3154_v40  ;;  %v3129_v28 = vmul.f32 %v4139_v49, %v5991_v21  ;;  %v3067_v46 = vpop.xlane.xlu0 %3066 }
 0x730   : > { %v4141_v7 = vpop.eup %4140  ;;  %4150 = vrsqrt.f32 %v3107_v34  ;;  %v3104_v53 = vadd.f32 1e-05, %v3088_v55  ;;  %v3089_v19 = vmul.f32 0.0078125, %v3067_v46 }
 0x731   : > { %3193 = vst [vmem:[%s6074_s7 + $0x18] sm:$0xff] %v3177_v24  ;;  %v3152_v63 = vmul.f32 %v6060_v39, %v3129_v28  ;;  %v3134_v51 = vmul.f32 %v4141_v7, %v5996_v38  ;;  %v3073_v15 = vpop.xlane.xlu1 %3072 }
 0x732   : > { %v4143_v23 = vpop.eup %4142  ;;  %4152 = vrsqrt.f32 %v3104_v53  ;;  %v3105_v9 = vadd.f32 1e-05, %v3089_v19  ;;  %v3092_v35 = vmul.f32 0.0078125, %v3073_v15 }
 0x733   : > { %v3175_v27 = vadd.f32 %v6066_v52, %v3152_v63  ;;  %v3157_v21 = vmul.f32 %v6060_v39, %v3134_v51  ;;  %v3135_v5 = vmul.f32 %v4143_v23, %v5999_v56  ;;  %v3075_v8 = vpop.xlane.xlu0 %3074 }
 0x734   : > { %v4145_v33 = vpop.eup %4144  ;;  %4154 = vrsqrt.f32 %v3105_v9  ;;  %v3108_v42 = vadd.f32 1e-05, %v3092_v35  ;;  %v3093_v45 = vmul.f32 0.0078125, %v3075_v8 }
 0x735   : > { %3191 = vst [vmem:[%s6074_s7 + $0x8] sm:$0xff] %v3175_v27  ;;  %v3180_v38 = vadd.f32 %v6066_v52, %v3157_v21  ;;  %v3158_v13 = vmul.f32 %v6060_v39, %v3135_v5  ;;  %v3132_v10 = vmul.f32 %v4145_v33, %v6006_v43  ;;  %v3077_v32 = vpop.xlane.xlu1 %3076 }
 0x736   : > { %v4147_v54 = vpop.eup %4146  ;;  %4156 = vrsqrt.f32 %v3108_v42  ;;  %v3109_v2 = vadd.f32 1e-05, %v3093_v45  ;;  %v3094_v47 = vmul.f32 0.0078125, %v3077_v32 }
 0x737   : > { %3196 = vst [vmem:[%s6074_s7 + $0x30] sm:$0xff] %v3180_v38  ;;  %v3181_v56 = vadd.f32 %v6066_v52, %v3158_v13  ;;  %v3155_v62 = vmul.f32 %v6060_v39, %v3132_v10  ;;  %v3133_v50 = vmul.f32 %v4147_v54, %v6009_v31  ;;  %v3079_v57 = vpop.xlane.xlu0 %3078 }
 0x738   : > { %v4149_v26 = vpop.eup %4148  ;;  %4158 = vrsqrt.f32 %v3109_v2  ;;  %v3110_v3 = vadd.f32 1e-05, %v3094_v47  ;;  %v3095_v22 = vmul.f32 0.0078125, %v3079_v57 }
 0x739   : > { %3197 = vst [vmem:[%s6074_s7 + $0x38] sm:$0xff] %v3181_v56  ;;  %v3178_v43 = vadd.f32 %v6066_v52, %v3155_v62  ;;  %v3156_v36 = vmul.f32 %v6060_v39, %v3133_v50  ;;  %v3138_v12 = vmul.f32 %v4149_v26, %v6016_v1 }
 0x73a   : > { %v4151_v48 = vpop.eup %4150  ;;  %4160 = vrsqrt.f32 %v3110_v3  ;;  %v3111_v44 = vadd.f32 1e-05, %v3095_v22 }
 0x73b   : > { %3194 = vst [vmem:[%s6074_s7 + $0x20] sm:$0xff] %v3178_v43  ;;  %v3179_v31 = vadd.f32 %v6066_v52, %v3156_v36  ;;  %v3161_v11 = vmul.f32 %v6060_v39, %v3138_v12  ;;  %v3139_v18 = vmul.f32 %v4151_v48, %v6019_v60 }
 0x73c   : > { %v4153_v30 = vpop.eup %4152  ;;  %4162 = vrsqrt.f32 %v3111_v44 }
 0x73d   : > { %3195 = vst [vmem:[%s6074_s7 + $0x28] sm:$0xff] %v3179_v31  ;;  %v3184_v17 = vadd.f32 %v6066_v52, %v3161_v11  ;;  %v3162_v6 = vmul.f32 %v6060_v39, %v3139_v18  ;;  %v3136_v1 = vmul.f32 %v4153_v30, %v6026_v14 }
 0x73e   : > { %v4155_v29 = vpop.eup %4154 }
 0x73f   : > { %3200 = vst [vmem:[%s6074_s7 + $0x50] sm:$0xff] %v3184_v17  ;;  %v3185_v41 = vadd.f32 %v6066_v52, %v3162_v6  ;;  %v3159_v37 = vmul.f32 %v6060_v39, %v3136_v1  ;;  %v3137_v59 = vmul.f32 %v4155_v29, %v6029_v58 }
 0x740   : > { %v4157_v60 = vpop.eup %4156 }
 0x741   : > { %3201 = vst [vmem:[%s6074_s7 + $0x58] sm:$0xff] %v3185_v41  ;;  %v3182_v4 = vadd.f32 %v6066_v52, %v3159_v37  ;;  %v3160_v40 = vmul.f32 %v6060_v39, %v3137_v59  ;;  %v3140_v20 = vmul.f32 %v4157_v60, %v6036_v0 }
 0x742   : > { %v4159_v14 = vpop.eup %4158 }
 0x743   : > { %3198 = vst [vmem:[%s6074_s7 + $0x40] sm:$0xff] %v3182_v4  ;;  %v3183_v49 = vadd.f32 %v6066_v52, %v3160_v40  ;;  %v3163_v34 = vmul.f32 %v6060_v39, %v3140_v20  ;;  %v3141_v55 = vmul.f32 %v4159_v14, %v6039_v25 }
 0x744   : > { %v4161_v58 = vpop.eup %4160 }
 0x745   : > { %3199 = vst [vmem:[%s6074_s7 + $0x48] sm:$0xff] %v3183_v49  ;;  %v3186_v24 = vadd.f32 %v6066_v52, %v3163_v34  ;;  %v3164_v28 = vmul.f32 %v6060_v39, %v3141_v55  ;;  %v3142_v46 = vmul.f32 %v4161_v58, %v6046_v61 }
 0x746   : > { %v4163_v0 = vpop.eup %4162 }
 0x747   : > { %3202 = vst [vmem:[%s6074_s7 + $0x60] sm:$0xff] %v3186_v24  ;;  %v3187_v7 = vadd.f32 %v6066_v52, %v3164_v28  ;;  %v3165_v53 = vmul.f32 %v6060_v39, %v3142_v46  ;;  %v3143_v19 = vmul.f32 %v4163_v0, %v6049_v16 }
 0x749   : > { %3203 = vst [vmem:[%s6074_s7 + $0x68] sm:$0xff] %v3187_v7  ;;  %v3188_v25 = vadd.f32 %v6066_v52, %v3165_v53  ;;  %v3166_v63 = vmul.f32 %v6060_v39, %v3143_v19 }
 0x74b   : > { %3204 = vst [vmem:[%s6074_s7 + $0x70] sm:$0xff] %v3188_v25  ;;  %v3189_v51 = vadd.f32 %v6066_v52, %v3166_v63 }
 0x74d   : > { %3205 = vst [vmem:[%s6074_s7 + $0x78] sm:$0xff] %v3189_v51 }
 0x74e PF: > { %s17_s21 = sadd.s32 1, %s4186_s21  }
 0x74f   : > { %p14_p4 = scmp.ge.s32.totalorder %s17_s21, 4  }
 0x751   :  { %16 = sbr.rel (!%p14_p4) target bundleno = 1 (0x1), region = 82 }

// kernel: alibi_decoder_forward.9
= control target key start
LH: loop header
LB: loop body
LE: loop exit
PB: predicated region body
PF: predicated region fallthrough
CT: control target
= control target key end

     0   :  { %v1522_v1 = vmov 0   ;;  %s2699_s1 = inlined_call_operand.vmem [shape: bf16[128,256], index: 1, kind: input, shape index: {}]   ;;  %s2700_s3 = inlined_call_operand.vmem [shape: s32[256,1], index: 3, kind: input, shape index: {}]   ;;  %s2701_s0 = inlined_call_operand.vmem [shape: f32[256,128], index: 0, kind: input, shape index: {}]   ;;  %s2702_s2 = inlined_call_operand.vmem [shape: f32[1,256], index: 2, kind: input, shape index: {}]   ;;  %s2703_s4 = inlined_call_operand.vmem [shape: f32[256,1], index: 4, kind: output, shape index: {}]  }
   0x1   :  { %v1306_v0 = vld [vmem:[%s2699_s1 + $0x4] ss:$8 sps:$4 sm:$0xff]   ;;  %206 = vmatprep.mubr.bf16.mxu0 %v1522_v1  ;;  %286 = vmatprep.mubr.bf16.mxu1 %v1522_v1  ;;  %v1308_v2 = vld [vmem:[%s2699_s1] ss:$8 sps:$4 sm:$0xff]   ;;  %v1309_v3 = vld [vmem:[%s2699_s1 + $0x14] ss:$8 sps:$4 sm:$0xff]  }
   0x2   :  { %1305 = vset.pattern.permute.xlu1 %v1522_v1  ;;  %1304 = vset.pattern.permute.xlu0 %v1522_v1  ;;  %v1311_v4 = vld [vmem:[%s2699_s1 + $0x10] ss:$8 sps:$4 sm:$0xff]   ;;  %v1312_v5 = vld [vmem:[%s2699_s1 + $0x24] ss:$8 sps:$4 sm:$0xff]   ;;  %v1314_v6 = vld [vmem:[%s2699_s1 + $0x20] ss:$8 sps:$4 sm:$0xff]  }
   0x3   :  { %174 = vmatprep.subr.bf16.mxu0 %v1306_v0  ;;  %1287 = vmatprep.subr.bf16.mxu1 %v1306_v0  ;;  %v1315_v7 = vld [vmem:[%s2699_s1 + $0x34] ss:$8 sps:$4 sm:$0xff]   ;;  %v1317_v8 = vld [vmem:[%s2699_s1 + $0x30] ss:$8 sps:$4 sm:$0xff]   ;;  %v1318_v9 = vld [vmem:[%s2699_s1 + $0x44] ss:$8 sps:$4 sm:$0xff]  }
   0x4   :  { %175 = vmatpush1.bf16.msra.mxu0 %v1308_v2  ;;  %1295 = vmatpush1.bf16.msra.mxu1 %v1308_v2  ;;  %v1320_v10 = vld [vmem:[%s2699_s1 + $0x40] ss:$8 sps:$4 sm:$0xff]   ;;  %v1321_v11 = vld [vmem:[%s2699_s1 + $0x54] ss:$8 sps:$4 sm:$0xff]   ;;  %v1323_v15 = vld [vmem:[%s2699_s1 + $0x50] ss:$8 sps:$4 sm:$0xff]  }
   0x5   :  { %176 = vmatprep.subr.bf16.mxu0 %v1309_v3  ;;  %1288 = vmatprep.subr.bf16.mxu1 %v1309_v3  ;;  %v851_v12 = vld [vmem:[%s2700_s3 + $0x8] sm:$0xff]  ;;  %v852_v13 = vld [vmem:[%s2700_s3 + $0x10] sm:$0xff]  ;;  %v850_v14 = vld [vmem:[%s2700_s3] sm:$0xff] }
   0x6   :  { %886 = vperm.xlu1 %1305, %v851_v12   ;;  %v1324_v16 = vld [vmem:[%s2699_s1 + $0x64] ss:$8 sps:$4 sm:$0xff]   ;;  %883 = vperm.xlu0 %1304, %v850_v14   ;;  %v853_v17 = vld [vmem:[%s2700_s3 + $0x18] sm:$0xff]  ;;  %v1326_v19 = vld [vmem:[%s2699_s1 + $0x60] ss:$8 sps:$4 sm:$0xff]  }
   0x7   :  { %v859_v18 = vld [vmem:[%s2700_s3 + $0x48] sm:$0xff]  ;;  %v1327_v20 = vld [vmem:[%s2699_s1 + $0x74] ss:$8 sps:$4 sm:$0xff]   ;;  %v1329_v21 = vld [vmem:[%s2699_s1 + $0x70] ss:$8 sps:$4 sm:$0xff]  }
   0x8   :  { %177 = vmatpush1.bf16.msra.mxu0 %v1311_v4  ;;  %1296 = vmatpush1.bf16.msra.mxu1 %v1311_v4  ;;  %v18_v22 = vld [vmem:[%s2701_s0] sm:$0xff]  ;;  %v861_v24 = vld [vmem:[%s2700_s3 + $0x58] sm:$0xff]  ;;  %v19_v25 = vld [vmem:[%s2701_s0 + $0x8] sm:$0xff] }
   0x9   :  { %178 = vmatprep.subr.bf16.mxu0 %v1312_v5  ;;  %1289 = vmatprep.subr.bf16.mxu1 %v1312_v5  ;;  %v854_v23 = vld [vmem:[%s2700_s3 + $0x20] sm:$0xff]  ;;  %v35_v27 = vld [vmem:[%s2701_s0 + $0x88] sm:$0xff]  ;;  %v50_v28 = vpack.c.bf16 %v19_v25, %v18_v22  ;;  %v20_v32 = vld [vmem:[%s2701_s0 + $0x10] sm:$0xff] }
   0xa   :  { %889 = vperm.xlu1 %1305, %v852_v13   ;;  %910 = vperm.xlu0 %1304, %v859_v18   ;;  %v34_v26 = vld [vmem:[%s2701_s0 + $0x80] sm:$0xff]  ;;  %v855_v30 = vld [vmem:[%s2700_s3 + $0x28] sm:$0xff]  ;;  %v856_v33 = vld [vmem:[%s2700_s3 + $0x30] sm:$0xff] }
   0xb   :  { %v58_v29 = vpack.c.bf16 %v35_v27, %v34_v26  ;;  %v863_v31 = vld [vmem:[%s2700_s3 + $0x68] sm:$0xff]  ;;  %v865_v34 = vld [vmem:[%s2700_s3 + $0x78] sm:$0xff]  ;;  %v36_v36 = vld [vmem:[%s2701_s0 + $0x90] sm:$0xff] }
   0xc   :  { %179 = vmatpush1.bf16.msra.mxu0 %v1314_v6  ;;  %1297 = vmatpush1.bf16.msra.mxu1 %v1314_v6  ;;  %v21_v35 = vld [vmem:[%s2701_s0 + $0x18] sm:$0xff]  ;;  %v867_v41 = vld [vmem:[%s2700_s3 + $0x88] sm:$0xff]  ;;  %v22_v42 = vld [vmem:[%s2701_s0 + $0x20] sm:$0xff] }
   0xd   :  { %180 = vmatprep.subr.bf16.mxu0 %v1315_v7  ;;  %1290 = vmatprep.subr.bf16.mxu1 %v1315_v7  ;;  %v37_v37 = vld [vmem:[%s2701_s0 + $0x98] sm:$0xff]  ;;  %v51_v38 = vpack.c.bf16 %v21_v35, %v20_v32  ;;  %v858_v43 = vld [vmem:[%s2700_s3 + $0x40] sm:$0xff]  ;;  %v23_v45 = vld [vmem:[%s2701_s0 + $0x28] sm:$0xff] }
   0xe   :  { %892 = vperm.xlu1 %1305, %v853_v17   ;;  %916 = vperm.xlu0 %1304, %v861_v24   ;;  %v59_v39 = vpack.c.bf16 %v37_v37, %v36_v36  ;;  %v857_v40 = vld [vmem:[%s2700_s3 + $0x38] sm:$0xff]  ;;  %v38_v46 = vld [vmem:[%s2701_s0 + $0xa0] sm:$0xff]  ;;  %v39_v47 = vld [vmem:[%s2701_s0 + $0xa8] sm:$0xff]  ;;  %v52_v48 = vpack.c.bf16 %v23_v45, %v22_v42 }
   0xf   :  { %v869_v44 = vld [vmem:[%s2700_s3 + $0x98] sm:$0xff]  ;;  %v60_v49 = vpack.c.bf16 %v39_v47, %v38_v46  ;;  %v860_v50 = vld [vmem:[%s2700_s3 + $0x50] sm:$0xff]  ;;  %v871_v51 = vld [vmem:[%s2700_s3 + $0xa8] sm:$0xff] }
  0x10   :  { %181 = vmatpush1.bf16.msra.mxu0 %v1317_v8  ;;  %1298 = vmatpush1.bf16.msra.mxu1 %v1317_v8  ;;  %v24_v52 = vld [vmem:[%s2701_s0 + $0x30] sm:$0xff]  ;;  %v862_v53 = vld [vmem:[%s2700_s3 + $0x60] sm:$0xff]  ;;  %v873_v54 = vld [vmem:[%s2700_s3 + $0xb8] sm:$0xff] }
  0x11   :  { %182 = vmatprep.subr.bf16.mxu0 %v1318_v9  ;;  %1291 = vmatprep.subr.bf16.mxu1 %v1318_v9  ;;  %v25_v55 = vld [vmem:[%s2701_s0 + $0x38] sm:$0xff]  ;;  %v40_v56 = vld [vmem:[%s2701_s0 + $0xb0] sm:$0xff]  ;;  %v875_v61 = vld [vmem:[%s2700_s3 + $0xc8] sm:$0xff] }
  0x12   :  { %895 = vperm.xlu1 %1305, %v854_v23   ;;  %922 = vperm.xlu0 %1304, %v863_v31   ;;  %v41_v57 = vld [vmem:[%s2701_s0 + $0xb8] sm:$0xff]  ;;  %v53_v58 = vpack.c.bf16 %v25_v55, %v24_v52  ;;  %v864_v60 = vld [vmem:[%s2700_s3 + $0x70] sm:$0xff]  ;;  %v26_v62 = vld [vmem:[%s2701_s0 + $0x40] sm:$0xff] }
  0x13   :  { %v61_v59 = vpack.c.bf16 %v41_v57, %v40_v56  ;;  %v866_v63 = vld [vmem:[%s2700_s3 + $0x80] sm:$0xff]  ;;  %v877_v0 = vld [vmem:[%s2700_s3 + $0xd8] sm:$0xff]  ;;  %v27_v2 = vld [vmem:[%s2701_s0 + $0x48] sm:$0xff] }
  0x14   :  { %183 = vmatpush1.bf16.msra.mxu0 %v1320_v10  ;;  %1299 = vmatpush1.bf16.msra.mxu1 %v1320_v10  ;;  %v42_v3 = vld [vmem:[%s2701_s0 + $0xc0] sm:$0xff]  ;;  %v43_v4 = vld [vmem:[%s2701_s0 + $0xc8] sm:$0xff]  ;;  %v54_v5 = vpack.c.bf16 %v27_v2, %v26_v62  ;;  %v868_v7 = vld [vmem:[%s2700_s3 + $0x90] sm:$0xff] }
  0x15   :  { %184 = vmatprep.subr.bf16.mxu0 %v1321_v11  ;;  %1292 = vmatprep.subr.bf16.mxu1 %v1321_v11  ;;  %v62_v6 = vpack.c.bf16 %v43_v4, %v42_v3  ;;  %v879_v8 = vld [vmem:[%s2700_s3 + $0xe8] sm:$0xff]  ;;  %v28_v9 = vld [vmem:[%s2701_s0 + $0x50] sm:$0xff]  ;;  %v870_v10 = vld [vmem:[%s2700_s3 + $0xa0] sm:$0xff] }
  0x16   :  { %898 = vperm.xlu1 %1305, %v855_v30   ;;  %928 = vperm.xlu0 %1304, %v865_v34   ;;  %v881_v11 = vld [vmem:[%s2700_s3 + $0xf8] sm:$0xff]  ;;  %v44_v13 = vld [vmem:[%s2701_s0 + $0xd0] sm:$0xff]  ;;  %v30_v18 = vld [vmem:[%s2701_s0 + $0x60] sm:$0xff] }
  0x17   :  { %v29_v12 = vld [vmem:[%s2701_s0 + $0x58] sm:$0xff]  ;;  %v872_v17 = vld [vmem:[%s2700_s3 + $0xb0] sm:$0xff]  ;;  %v47_v22 = vld [vmem:[%s2701_s0 + $0xe8] sm:$0xff] }
  0x18   :  { %185 = vmatpush1.bf16.msra.mxu0 %v1323_v15  ;;  %1300 = vmatpush1.bf16.msra.mxu1 %v1323_v15  ;;  %v45_v14 = vld [vmem:[%s2701_s0 + $0xd8] sm:$0xff]  ;;  %v55_v15 = vpack.c.bf16 %v29_v12, %v28_v9  ;;  %v876_v25 = vld [vmem:[%s2700_s3 + $0xd0] sm:$0xff]  ;;  %v878_v27 = vld [vmem:[%s2700_s3 + $0xe0] sm:$0xff] }
  0x19   :  { %186 = vmatprep.subr.bf16.mxu0 %v1324_v16  ;;  %1293 = vmatprep.subr.bf16.mxu1 %v1324_v16  ;;  %v63_v16 = vpack.c.bf16 %v45_v14, %v44_v13  ;;  %v32_v26 = vld [vmem:[%s2701_s0 + $0x70] sm:$0xff]  ;;  %v49_v30 = vld [vmem:[%s2701_s0 + $0xf8] sm:$0xff] }
  0x1a   :  { %901 = vperm.xlu1 %1305, %v856_v33   ;;  %934 = vperm.xlu0 %1304, %v867_v41   ;;  %v880_v33 = vld [vmem:[%s2700_s3 + $0xf0] sm:$0xff] }
  0x1c   :  { %187 = vmatpush1.bf16.msra.mxu0 %v1326_v19  ;;  %1301 = vmatpush1.bf16.msra.mxu1 %v1326_v19  ;;  %v874_v19 = vld [vmem:[%s2700_s3 + $0xc0] sm:$0xff] }
  0x1d   :  { %188 = vmatprep.subr.bf16.mxu0 %v1327_v20  ;;  %1294 = vmatprep.subr.bf16.mxu1 %v1327_v20  ;;  %v31_v20 = vld [vmem:[%s2701_s0 + $0x68] sm:$0xff] }
  0x1e   :  { %904 = vperm.xlu1 %1305, %v857_v40   ;;  %940 = vperm.xlu0 %1304, %v869_v44   ;;  %v56_v23 = vpack.c.bf16 %v31_v20, %v30_v18 }
  0x20   :  { %189 = vmatpush1.bf16.msra.mxu0 %v1329_v21  ;;  %1302 = vmatpush1.bf16.msra.mxu1 %v1329_v21  ;;  %v46_v21 = vld [vmem:[%s2701_s0 + $0xe0] sm:$0xff] }
  0x21   :  { %v64_v24 = vpack.c.bf16 %v47_v22, %v46_v21 }
  0x22   :  { %907 = vperm.xlu1 %1305, %v858_v43   ;;  %946 = vperm.xlu0 %1304, %v871_v51  }
  0x23   :  { %207 = vmatmul.mubr.bf16.vlgmr.msra.gmra.mrb[0].mxu0 %v50_v28  ;;  %287 = vmatmul.mubr.bf16.vlgmr.msra.gmra.mrb[0].mxu1 %v58_v29  ;;  %v33_v28 = vld [vmem:[%s2701_s0 + $0x78] sm:$0xff]  ;;  %v48_v29 = vld [vmem:[%s2701_s0 + $0xf0] sm:$0xff] }
  0x24   :  { %216 = vmatprep.mubr.bf16.mxu0 %v1522_v1  ;;  %296 = vmatprep.mubr.bf16.mxu1 %v1522_v1  ;;  %v57_v31 = vpack.c.bf16 %v33_v28, %v32_v26  ;;  %v65_v32 = vpack.c.bf16 %v49_v30, %v48_v29 }
  0x26   :  { %913 = vperm.xlu1 %1305, %v860_v50   ;;  %952 = vperm.xlu0 %1304, %v873_v54  }
  0x2a   :  { %919 = vperm.xlu1 %1305, %v862_v53   ;;  %958 = vperm.xlu0 %1304, %v875_v61  }
  0x2b   :  { %217 = vmatmul.mubr.bf16.gmra.mrb[4].mxu0 %v51_v38  ;;  %297 = vmatmul.mubr.bf16.gmra.mrb[4].mxu1 %v59_v39  ;;  %v82_v38 = vld [vmem:[%s2702_s2] sm:$0x3] }
  0x2c   :  { %226 = vmatprep.mubr.bf16.mxu0 %v1522_v1  ;;  %306 = vmatprep.mubr.bf16.mxu1 %v1522_v1 }
  0x2e   :  { %925 = vperm.xlu1 %1305, %v864_v60   ;;  %964 = vperm.xlu0 %1304, %v877_v0  }
  0x32   :  { %931 = vperm.xlu1 %1305, %v866_v63   ;;  %970 = vperm.xlu0 %1304, %v879_v8  }
  0x33   :  { %227 = vmatmul.mubr.bf16.gmra.mrb[8].mxu0 %v52_v48  ;;  %307 = vmatmul.mubr.bf16.gmra.mrb[8].mxu1 %v60_v49 }
  0x34   :  { %236 = vmatprep.mubr.bf16.mxu0 %v1522_v1  ;;  %316 = vmatprep.mubr.bf16.mxu1 %v1522_v1 }
  0x36   :  { %937 = vperm.xlu1 %1305, %v868_v7   ;;  %976 = vperm.xlu0 %1304, %v881_v11  }
  0x3a   :  { %943 = vperm.xlu1 %1305, %v870_v10  }
  0x3b   :  { %237 = vmatmul.mubr.bf16.gmra.mrb[12].mxu0 %v53_v58  ;;  %317 = vmatmul.mubr.bf16.gmra.mrb[12].mxu1 %v61_v59 }
  0x3c   :  { %246 = vmatprep.mubr.bf16.mxu0 %v1522_v1  ;;  %326 = vmatprep.mubr.bf16.mxu1 %v1522_v1 }
  0x3e   :  { %949 = vperm.xlu1 %1305, %v872_v17  }
  0x42   :  { %955 = vperm.xlu1 %1305, %v874_v19  }
  0x43   :  { %247 = vmatmul.mubr.bf16.gmra.mrb[16].mxu0 %v54_v5  ;;  %327 = vmatmul.mubr.bf16.gmra.mrb[16].mxu1 %v62_v6 }
  0x44   :  { %256 = vmatprep.mubr.bf16.mxu0 %v1522_v1  ;;  %336 = vmatprep.mubr.bf16.mxu1 %v1522_v1 }
  0x46   :  { %961 = vperm.xlu1 %1305, %v876_v25  }
  0x4a   :  { %967 = vperm.xlu1 %1305, %v878_v27  }
  0x4b   :  { %257 = vmatmul.mubr.bf16.gmra.mrb[20].mxu0 %v55_v15  ;;  %337 = vmatmul.mubr.bf16.gmra.mrb[20].mxu1 %v63_v16 }
  0x4c   :  { %266 = vmatprep.mubr.bf16.mxu0 %v1522_v1  ;;  %346 = vmatprep.mubr.bf16.mxu1 %v1522_v1 }
  0x4e   :  { %973 = vperm.xlu1 %1305, %v880_v33  }
  0x53   :  { %267 = vmatmul.mubr.bf16.gmra.mrb[24].mxu0 %v56_v23  ;;  %347 = vmatmul.mubr.bf16.gmra.mrb[24].mxu1 %v64_v24 }
  0x54   :  { %276 = vmatprep.mubr.bf16.mxu0 %v1522_v1  ;;  %356 = vmatprep.mubr.bf16.mxu1 %v1522_v1  ;;  %v84_v1 = vlaneseq }
  0x56   :  { %v85_v34 = vshrl.u32 %v84_v1, 7  ;;  %v1806_v36 = vand.u32 127, %v84_v1 }
  0x58   :  { %v86_v37 = vsub.s32 0, %v85_v34  ;;  %v90_v39 = vsub.s32 1, %v85_v34  ;;  %v1812_v40 = vadd.s32 128, %v1806_v36 }
  0x5a   :  { %v1814_v41 = vrot.slane %v82_v38, %v86_v37  ;;  %v1816_v42 = vrot.slane %v82_v38, %v90_v39 }
  0x5b   :  { %277 = vmatmul.mubr.bf16.gmra.mrb[28].mxu0 %v57_v31  ;;  %357 = vmatmul.mubr.bf16.gmra.mrb[28].mxu1 %v65_v32 }
  0x85   :  { %v887_v35 = vpop.permute.xlu1 %886  ;;  %v884_v44 = vpop.permute.xlu0 %883 }
  0x86   :  { %vm978_vm0 = vcmp.eq.s32.totalorder %v1806_v36, %v884_v44  ;;  %vm979_vm1 = vcmp.eq.s32.totalorder %v1812_v40, %v884_v44  ;;  %vm980_vm2 = vcmp.eq.s32.totalorder %v1806_v36, %v887_v35  ;;  %vm981_vm3 = vcmp.eq.s32.totalorder %v1812_v40, %v887_v35 }
  0x89   :  { %v1818_v43 = vpop.permute.xlu1 %889 }
  0x8a   :  { %vm982_vm4 = vcmp.eq.s32.totalorder %v1806_v36, %v1818_v43  ;;  %vm983_vm5 = vcmp.eq.s32.totalorder %v1812_v40, %v1818_v43 }
  0x8d   :  { %v893_v63 = vpop.permute.xlu1 %892 }
  0x8e   :  { %vm984_vm6 = vcmp.eq.s32.totalorder %v1806_v36, %v893_v63  ;;  %vm985_vm7 = vcmp.eq.s32.totalorder %v1812_v40, %v893_v63 }
  0x91   :  { %v1874_v21 = vpop.permute.xlu1 %895 }
  0x92   :  { %vm986_vm8 = vcmp.eq.s32.totalorder %v1806_v36, %v1874_v21  ;;  %vm987_vm9 = vcmp.eq.s32.totalorder %v1812_v40, %v1874_v21 }
  0xf6   :  { %v208_v45 = vpop.f32.mrb[0].mxu0  ;;  %v288_v46 = vpop.f32.mrb[0].mxu1 }
  0xf7   :  { %v1822_v47 = vadd.f32 %v208_v45, %v1814_v41  ;;  %v210_v48 = vpop.f32.mrb[1].mxu0  ;;  %v290_v49 = vpop.f32.mrb[1].mxu1  ;;  %v1830_v56 = vadd.f32 %v288_v46, %v1814_v41 }
  0xf8   :  { %v1826_v50 = vadd.f32 %v210_v48, %v1816_v42  ;;  %v212_v51 = vpop.f32.mrb[2].mxu0  ;;  %v292_v52 = vpop.f32.mrb[2].mxu1  ;;  %v1833_v57 = vadd.f32 %v290_v49, %v1816_v42 }
  0xf9   :  { %v214_v53 = vpop.f32.mrb[3].mxu0  ;;  %v294_v54 = vpop.f32.mrb[3].mxu1  ;;  %v1042_v55 = vsel %vm978_vm0, %v1822_v47, 0.0  ;;  %v1839_v60 = vadd.f32 %v292_v52, %v1814_v41  ;;  %v1845_v0 = vadd.f32 %v212_v51, %v1814_v41 }
  0xfa   :  { %v367_v58 = vmax.f32 %v1822_v47, %v1826_v50  ;;  %v1043_v59 = vsel %vm979_vm1, %v1826_v50, 0.0  ;;  %v1842_v61 = vadd.f32 %v294_v54, %v1816_v42  ;;  %v1848_v2 = vadd.f32 %v214_v53, %v1816_v42  ;;  %v899_v45 = vpop.permute.xlu1 %898 }
  0xfb   :  { %v1106_v62 = vadd.f32 %v1043_v59, %v1042_v55  ;;  %v415_v5 = vmax.f32 %v1830_v56, %v1833_v57  ;;  %v1044_v19 = vsel %vm980_vm2, %v1845_v0, 0.0  ;;  %vm988_vm10 = vcmp.eq.s32.totalorder %v1806_v36, %v899_v45 }
  0xfc   :  { %368 = vmax.xlane.f32.xlu0 %v367_v58  ;;  %v418_v9 = vmax.f32 %v1839_v60, %v1842_v61  ;;  %v370_v15 = vmax.f32 %v1845_v0, %v1848_v2  ;;  %v1045_v20 = vsel %vm981_vm3, %v1848_v2, 0.0  ;;  %vm989_vm11 = vcmp.eq.s32.totalorder %v1812_v40, %v899_v45 }
  0xfd   :  { %1107 = vadd.xlane.f32.xlu1 %v1106_v62  ;;  %v1109_v24 = vadd.f32 %v1045_v20, %v1044_v19 }
  0xfe   :  { %v218_v3 = vpop.f32.mrb[4].mxu0  ;;  %v298_v4 = vpop.f32.mrb[4].mxu1 }
  0xff   :  { %v1853_v6 = vadd.f32 %v218_v3, %v1814_v41  ;;  %v220_v7 = vpop.f32.mrb[5].mxu0  ;;  %v300_v8 = vpop.f32.mrb[5].mxu1  ;;  %v1879_v28 = vadd.f32 %v298_v4, %v1814_v41 }
 0x100   :  { %v1858_v10 = vadd.f32 %v220_v7, %v1816_v42  ;;  %v222_v11 = vpop.f32.mrb[6].mxu0  ;;  %v302_v12 = vpop.f32.mrb[6].mxu1  ;;  %416 = vmax.xlane.f32.xlu0 %v415_v5  ;;  %v1882_v29 = vadd.f32 %v300_v8, %v1816_v42 }
 0x101   :  { %v224_v13 = vpop.f32.mrb[7].mxu0  ;;  %v304_v14 = vpop.f32.mrb[7].mxu1  ;;  %419 = vmax.xlane.f32.xlu1 %v418_v9  ;;  %v1867_v17 = vadd.f32 %v222_v11, %v1814_v41  ;;  %v1889_v32 = vadd.f32 %v302_v12, %v1814_v41  ;;  %v1046_v38 = vsel %vm982_vm4, %v1853_v6, 0.0 }
 0x102   :  { %v373_v16 = vmax.f32 %v1853_v6, %v1858_v10  ;;  %v1870_v18 = vadd.f32 %v224_v13, %v1816_v42  ;;  %v1892_v33 = vadd.f32 %v304_v14, %v1816_v42  ;;  %v421_v35 = vmax.f32 %v1879_v28, %v1882_v29  ;;  %v902_v11 = vpop.permute.xlu1 %901 }
 0x103   :  { %v1047_v39 = vsel %vm983_vm5, %v1858_v10, 0.0  ;;  %v1048_v43 = vsel %vm984_vm6, %v1867_v17, 0.0  ;;  %vm990_vm12 = vcmp.eq.s32.totalorder %v1806_v36, %v902_v11  ;;  %vm991_vm13 = vcmp.eq.s32.totalorder %v1812_v40, %v902_v11 }
 0x104   :  { %2747 = vst [vmem:[#allocation2_spill] sm:$0xff] %v1870_v18  ;;  %371 = vmax.xlane.f32.xlu0 %v370_v15  ;;  %v376_v27 = vmax.f32 %v1867_v17, %v1870_v18  ;;  %v424_v37 = vmax.f32 %v1889_v32, %v1892_v33  ;;  %v1049_v44 = vsel %vm985_vm7, %v1870_v18, 0.0  ;;  %v1112_v49 = vadd.f32 %v1047_v39, %v1046_v38 }
 0x105   :  { %374 = vmax.xlane.f32.xlu1 %v373_v16  ;;  %v1115_v53 = vadd.f32 %v1049_v44, %v1048_v43 }
 0x106   :  { %v228_v22 = vpop.f32.mrb[8].mxu0  ;;  %v308_v23 = vpop.f32.mrb[8].mxu1 }
 0x107   :  { %v230_v25 = vpop.f32.mrb[9].mxu0  ;;  %v310_v26 = vpop.f32.mrb[9].mxu1  ;;  %v1905_v54 = vadd.f32 %v228_v22, %v1814_v41  ;;  %v1921_v8 = vadd.f32 %v308_v23, %v1814_v41 }
 0x108   :  { %v232_v30 = vpop.f32.mrb[10].mxu0  ;;  %v312_v31 = vpop.f32.mrb[10].mxu1  ;;  %1110 = vadd.xlane.f32.xlu0 %v1109_v24  ;;  %v1908_v55 = vadd.f32 %v230_v25, %v1816_v42  ;;  %v1924_v9 = vadd.f32 %v310_v26, %v1816_v42 }
 0x109   :  { %v234_v1 = vpop.f32.mrb[11].mxu0  ;;  %v314_v34 = vpop.f32.mrb[11].mxu1  ;;  %377 = vmax.xlane.f32.xlu1 %v376_v27  ;;  %2748 = vst [vmem:[#allocation3_spill] sm:$0xff] %v1905_v54  ;;  %v1911_v62 = vadd.f32 %v232_v30, %v1814_v41  ;;  %v1927_v12 = vadd.f32 %v312_v31, %v1814_v41  ;;  %v1050_v23 = vsel %vm986_vm8, %v1905_v54, 0.0 }
 0x10a   :  { %2749 = vst [vmem:[#allocation4_spill] sm:$0xff] %v1908_v55  ;;  %v1914_v63 = vadd.f32 %v234_v1, %v1816_v42  ;;  %v379_v5 = vmax.f32 %v1905_v54, %v1908_v55  ;;  %v1930_v13 = vadd.f32 %v314_v34, %v1816_v42  ;;  %v427_v16 = vmax.f32 %v1921_v8, %v1924_v9  ;;  %v905_v38 = vpop.permute.xlu1 %904 }
 0x10b   :  { %2750 = vst [vmem:[#allocation5_spill] sm:$0xff] %v1911_v62  ;;  %v1051_v24 = vsel %vm987_vm9, %v1908_v55, 0.0  ;;  %v1052_v21 = vsel %vm988_vm10, %v1911_v62, 0.0  ;;  %vm992_vm14 = vcmp.eq.s32.totalorder %v1806_v36, %v905_v38  ;;  %vm993_vm15 = vcmp.eq.s32.totalorder %v1812_v40, %v905_v38 }
 0x10c   :  { %422 = vmax.xlane.f32.xlu0 %v421_v35  ;;  %2751 = vst [vmem:[#allocation6_spill] sm:$0xff] %v1914_v63  ;;  %v382_v7 = vmax.f32 %v1911_v62, %v1914_v63  ;;  %v430_v22 = vmax.f32 %v1927_v12, %v1930_v13  ;;  %v1053_v27 = vsel %vm989_vm11, %v1914_v63, 0.0  ;;  %v1118_v1 = vadd.f32 %v1051_v24, %v1050_v23 }
 0x10d   :  { %425 = vmax.xlane.f32.xlu1 %v424_v37  ;;  %v1121_v34 = vadd.f32 %v1053_v27, %v1052_v21 }
 0x10e   :  { %v238_v46 = vpop.f32.mrb[12].mxu0  ;;  %v318_v48 = vpop.f32.mrb[12].mxu1 }
 0x10f   :  { %v240_v51 = vpop.f32.mrb[13].mxu0  ;;  %v320_v52 = vpop.f32.mrb[13].mxu1  ;;  %v1961_v35 = vadd.f32 %v238_v46, %v1814_v41 }
 0x110   :  { %v242_v58 = vpop.f32.mrb[14].mxu0  ;;  %v322_v59 = vpop.f32.mrb[14].mxu1  ;;  %1113 = vadd.xlane.f32.xlu0 %v1112_v49  ;;  %v1964_v37 = vadd.f32 %v240_v51, %v1816_v42 }
 0x111   :  { %v244_v3 = vpop.f32.mrb[15].mxu0  ;;  %v324_v4 = vpop.f32.mrb[15].mxu1  ;;  %1116 = vadd.xlane.f32.xlu1 %v1115_v53  ;;  %2752 = vst [vmem:[#allocation7_spill] sm:$0xff] %v1961_v35  ;;  %v1967_v39 = vadd.f32 %v242_v58, %v1814_v41  ;;  %v1995_v23 = vadd.f32 %v322_v59, %v1814_v41 }
 0x112   :  { %2753 = vst [vmem:[#allocation8_spill] sm:$0xff] %v1964_v37  ;;  %v1970_v43 = vadd.f32 %v244_v3, %v1816_v42  ;;  %v385_v49 = vmax.f32 %v1961_v35, %v1964_v37  ;;  %v1987_v3 = vadd.f32 %v320_v52, %v1816_v42  ;;  %v1998_v24 = vadd.f32 %v324_v4, %v1816_v42 }
 0x113   :  { %2754 = vst [vmem:[#allocation9_spill] sm:$0xff] %v1967_v39  ;;  %v1054_v4 = vsel %vm990_vm12, %v1961_v35, 0.0 }
 0x114   :  { %380 = vmax.xlane.f32.xlu0 %v379_v5  ;;  %2755 = vst [vmem:[#allocation10_spill] sm:$0xff] %v1970_v43  ;;  %v388_v58 = vmax.f32 %v1967_v39, %v1970_v43  ;;  %v1984_v5 = vadd.f32 %v318_v48, %v1814_v41  ;;  %v436_v59 = vmax.f32 %v1995_v23, %v1998_v24 }
 0x115   :  { %383 = vmax.xlane.f32.xlu1 %v382_v7 }
 0x116   :  { %v1932_v14 = vpop.f32.mrb[16].mxu0  ;;  %v1934_v15 = vpop.f32.mrb[16].mxu1 }
 0x117   :  { %v1943_v19 = vpop.f32.mrb[17].mxu0  ;;  %v1945_v20 = vpop.f32.mrb[17].mxu1  ;;  %v2028_v38 = vadd.f32 %v1932_v14, %v1814_v41 }
 0x118   :  { %v1952_v25 = vpop.f32.mrb[18].mxu0  ;;  %v1954_v26 = vpop.f32.mrb[18].mxu1  ;;  %428 = vmax.xlane.f32.xlu0 %v427_v16 }
 0x119   :  { %v254_v30 = vpop.f32.mrb[19].mxu0  ;;  %v1958_v31 = vpop.f32.mrb[19].mxu1  ;;  %431 = vmax.xlane.f32.xlu1 %v430_v22  ;;  %2756 = vst [vmem:[#allocation11_spill] sm:$0xff] %v2028_v38 }
 0x11a   :  { %v2045_v14 = vadd.f32 %v254_v30, %v1816_v42 }
 0x11c   :  { %1119 = vadd.xlane.f32.xlu0 %v1118_v1  ;;  %v433_v1 = vmax.f32 %v1984_v5, %v1987_v3  ;;  %2758 = vst [vmem:[#allocation13_spill] sm:$0xff] %v2045_v14 }
 0x11d   :  { %1122 = vadd.xlane.f32.xlu1 %v1121_v34  ;;  %v1055_v34 = vsel %vm991_vm13, %v1964_v37, 0.0 }
 0x11e   :  { %v1972_v44 = vpop.f32.mrb[20].mxu0  ;;  %v338_v45 = vpop.f32.mrb[20].mxu1  ;;  %v1124_v11 = vadd.f32 %v1055_v34, %v1054_v4 }
 0x11f   :  { %v1977_v46 = vadd.f32 %v338_v45, %v1814_v41  ;;  %v1979_v51 = vpop.f32.mrb[21].mxu0  ;;  %v340_v53 = vpop.f32.mrb[21].mxu1  ;;  %v1056_v45 = vsel %vm992_vm14, %v1967_v39, 0.0 }
 0x120   :  { %v1990_v7 = vadd.f32 %v340_v53, %v1816_v42  ;;  %v1992_v16 = vpop.f32.mrb[22].mxu0  ;;  %v342_v22 = vpop.f32.mrb[22].mxu1  ;;  %386 = vmax.xlane.f32.xlu0 %v385_v49  ;;  %v1057_v49 = vsel %vm993_vm15, %v1970_v43, 0.0 }
 0x121   :  { %v2001_v21 = vadd.f32 %v342_v22, %v1814_v41  ;;  %v2003_v48 = vpop.f32.mrb[23].mxu0  ;;  %v344_v52 = vpop.f32.mrb[23].mxu1  ;;  %389 = vmax.xlane.f32.xlu1 %v388_v58  ;;  %v1127_v37 = vadd.f32 %v1057_v49, %v1056_v45  ;;  %v2042_v45 = vadd.f32 %v1952_v25, %v1814_v41 }
 0x122   :  { %v2007_v27 = vadd.f32 %v344_v52, %v1816_v42  ;;  %v908_v43 = vpop.permute.xlu1 %907 }
 0x123   :  { %v394_v30 = vmax.f32 %v2042_v45, %v2045_v14  ;;  %vm994_vm0 = vcmp.eq.s32.totalorder %v1806_v36, %v908_v43  ;;  %vm995_vm2 = vcmp.eq.s32.totalorder %v1812_v40, %v908_v43 }
 0x124   :  { %434 = vmax.xlane.f32.xlu0 %v433_v1  ;;  %v2032_v1 = vadd.f32 %v1943_v19, %v1816_v42 }
 0x125   :  { %437 = vmax.xlane.f32.xlu1 %v436_v59 }
 0x126   :  { %v268_v53 = vpop.f32.mrb[24].mxu0  ;;  %v348_v58 = vpop.f32.mrb[24].mxu1  ;;  %2757 = vst [vmem:[#allocation12_spill] sm:$0xff] %v2032_v1  ;;  %v391_v25 = vmax.f32 %v2028_v38, %v2032_v1  ;;  %v1059_v54 = vsel %vm995_vm2, %v2032_v1, 0.0 }
 0x127   :  { %v2021_v22 = vadd.f32 %v268_v53, %v1814_v41  ;;  %v2024_v52 = vadd.f32 %v348_v58, %v1814_v41  ;;  %v270_v35 = vpop.f32.mrb[25].mxu0  ;;  %v350_v63 = vpop.f32.mrb[25].mxu1 }
 0x128   :  { %v2035_v59 = vadd.f32 %v270_v35, %v1816_v42  ;;  %v2038_v4 = vadd.f32 %v350_v63, %v1816_v42  ;;  %v272_v34 = vpop.f32.mrb[26].mxu0  ;;  %v352_v53 = vpop.f32.mrb[26].mxu1  ;;  %1125 = vadd.xlane.f32.xlu0 %v1124_v11 }
 0x129   :  { %v2048_v49 = vadd.f32 %v272_v34, %v1814_v41  ;;  %v2051_v19 = vadd.f32 %v352_v53, %v1814_v41  ;;  %v274_v35 = vpop.f32.mrb[27].mxu0  ;;  %v354_v58 = vpop.f32.mrb[27].mxu1  ;;  %1128 = vadd.xlane.f32.xlu1 %v1127_v37  ;;  %v2065_v53 = vadd.f32 %v1934_v15, %v1814_v41  ;;  %v2069_v37 = vadd.f32 %v1945_v20, %v1816_v42 }
 0x12a   :  { %v2054_v63 = vadd.f32 %v274_v35, %v1816_v42  ;;  %v2057_v11 = vadd.f32 %v354_v58, %v1816_v42  ;;  %v911_v34 = vpop.permute.xlu0 %910  ;;  %v2073_v35 = vadd.f32 %v1954_v26, %v1814_v41  ;;  %v2077_v58 = vadd.f32 %v1958_v31, %v1816_v42 }
 0x12b   :  { %2759 = vst [vmem:[#allocation14_spill] sm:$0xff] %v2065_v53  ;;  %2760 = vst [vmem:[#allocation15_spill] sm:$0xff] %v2069_v37  ;;  %vm996_vm1 = vcmp.eq.s32.totalorder %v1806_v36, %v911_v34  ;;  %v439_v20 = vmax.f32 %v2065_v53, %v2069_v37  ;;  %vm997_vm3 = vcmp.eq.s32.totalorder %v1812_v40, %v911_v34 }
 0x12c   :  { %392 = vmax.xlane.f32.xlu0 %v391_v25  ;;  %2761 = vst [vmem:[#allocation16_spill] sm:$0xff] %v2073_v35  ;;  %2762 = vst [vmem:[#allocation17_spill] sm:$0xff] %v2077_v58  ;;  %v1058_v25 = vsel %vm994_vm0, %v2028_v38, 0.0  ;;  %v442_v55 = vmax.f32 %v2073_v35, %v2077_v58 }
 0x12d   :  { %395 = vmax.xlane.f32.xlu1 %v394_v30  ;;  %v1130_v1 = vadd.f32 %v1059_v54, %v1058_v25 }
 0x12e   :  { %v278_v15 = vpop.f32.mrb[28].mxu0  ;;  %v358_v39 = vpop.f32.mrb[28].mxu1 }
 0x12f   :  { %v2087_v26 = vadd.f32 %v278_v15, %v1814_v41  ;;  %v2090_v31 = vadd.f32 %v358_v39, %v1814_v41  ;;  %v280_v30 = vpop.f32.mrb[29].mxu0  ;;  %v360_v62 = vpop.f32.mrb[29].mxu1  ;;  %v1060_v39 = vsel %vm996_vm1, %v2042_v45, 0.0  ;;  %v1061_v15 = vsel %vm997_vm3, %v2045_v14, 0.0 }
 0x130   :  { %v2096_v37 = vadd.f32 %v280_v30, %v1816_v42  ;;  %v2099_v43 = vadd.f32 %v360_v62, %v1816_v42  ;;  %v282_v53 = vpop.f32.mrb[30].mxu0  ;;  %v362_v38 = vpop.f32.mrb[30].mxu1  ;;  %440 = vmax.xlane.f32.xlu0 %v439_v20  ;;  %v1133_v34 = vadd.f32 %v1061_v15, %v1060_v39  ;;  %v2119_v14 = vadd.f32 %v1972_v44, %v1814_v41 }
 0x131   :  { %v2106_v18 = vadd.f32 %v282_v53, %v1814_v41  ;;  %v2109_v58 = vadd.f32 %v362_v38, %v1814_v41  ;;  %v284_v30 = vpop.f32.mrb[31].mxu0  ;;  %v364_v35 = vpop.f32.mrb[31].mxu1  ;;  %443 = vmax.xlane.f32.xlu1 %v442_v55  ;;  %v2123_v53 = vadd.f32 %v1979_v51, %v1816_v42  ;;  %v2127_v55 = vadd.f32 %v1992_v16, %v1814_v41 }
 0x132   :  { %v2112_v62 = vadd.f32 %v284_v30, %v1816_v42  ;;  %v2115_v20 = vadd.f32 %v364_v35, %v1816_v42  ;;  %v2131_v38 = vadd.f32 %v2003_v48, %v1816_v42  ;;  %v917_v35 = vpop.permute.xlu0 %916  ;;  %v914_v51 = vpop.permute.xlu1 %913  ;;  %v448_v41 = vmax.f32 %v2001_v21, %v2007_v27 }
 0x133   :  { %2763 = vst [vmem:[#allocation18_spill] sm:$0xff] %v2109_v58  ;;  %v397_v54 = vmax.f32 %v2119_v14, %v2123_v53  ;;  %vm998_vm4 = vcmp.eq.s32.totalorder %v1806_v36, %v914_v51  ;;  %vm999_vm5 = vcmp.eq.s32.totalorder %v1812_v40, %v914_v51  ;;  %vm1000_vm6 = vcmp.eq.s32.totalorder %v1806_v36, %v917_v35 }
 0x134   :  { %2764 = vst [vmem:[#allocation19_spill] sm:$0xff] %v2115_v20  ;;  %1131 = vadd.xlane.f32.xlu0 %v1130_v1  ;;  %v400_v44 = vmax.f32 %v2127_v55, %v2131_v38  ;;  %v445_v1 = vmax.f32 %v1977_v46, %v1990_v7  ;;  %v1062_v42 = vsel %vm998_vm4, %v2119_v14, 0.0  ;;  %v1063_v16 = vsel %vm999_vm5, %v2123_v53, 0.0 }
 0x135   :  { %1134 = vadd.xlane.f32.xlu1 %v1133_v34  ;;  %vm1001_vm7 = vcmp.eq.s32.totalorder %v1812_v40, %v917_v35  ;;  %v1064_v48 = vsel %vm1000_vm6, %v2127_v55, 0.0  ;;  %v1136_v39 = vadd.f32 %v1063_v16, %v1062_v42  ;;  %v403_v34 = vmax.f32 %v2021_v22, %v2035_v59 }
 0x136   :  { %v1065_v25 = vsel %vm1001_vm7, %v2131_v38, 0.0  ;;  %v923_v15 = vpop.permute.xlu0 %922  ;;  %v451_v51 = vmax.f32 %v2024_v52, %v2038_v4  ;;  %v409_v42 = vmax.f32 %v2087_v26, %v2096_v37 }
 0x137   :  { %v1139_v30 = vadd.f32 %v1065_v25, %v1064_v48  ;;  %v412_v48 = vmax.f32 %v2106_v18, %v2112_v62  ;;  %v457_v25 = vmax.f32 %v2090_v31, %v2099_v43  ;;  %vm1004_vm10 = vcmp.eq.s32.totalorder %v1806_v36, %v923_v15 }
 0x138   :  { %398 = vmax.xlane.f32.xlu0 %v397_v54  ;;  %v920_v54 = vpop.permute.xlu1 %919  ;;  %vm1005_vm11 = vcmp.eq.s32.totalorder %v1812_v40, %v923_v15 }
 0x139   :  { %401 = vmax.xlane.f32.xlu1 %v400_v44  ;;  %v406_v44 = vmax.f32 %v2048_v49, %v2054_v63  ;;  %vm1002_vm8 = vcmp.eq.s32.totalorder %v1806_v36, %v920_v54  ;;  %vm1003_vm9 = vcmp.eq.s32.totalorder %v1812_v40, %v920_v54 }
 0x13a   :  { %v2153_v35 = vpop.permute.xlu0 %928 }
 0x13c   :  { %446 = vmax.xlane.f32.xlu0 %v445_v1  ;;  %v454_v1 = vmax.f32 %v2051_v19, %v2057_v11 }
 0x13d   :  { %449 = vmax.xlane.f32.xlu1 %v448_v41  ;;  %v926_v41 = vpop.permute.xlu1 %925 }
 0x13e   :  { %v935_v16 = vpop.permute.xlu0 %934  ;;  %vm1006_vm13 = vcmp.eq.s32.totalorder %v1806_v36, %v926_v41  ;;  %vm1007_vm14 = vcmp.eq.s32.totalorder %v1812_v40, %v926_v41 }
 0x13f   :  { %vm1012_vm12 = vcmp.eq.s32.totalorder %v1806_v36, %v935_v16  ;;  %vm1013_vm15 = vcmp.eq.s32.totalorder %v1812_v40, %v935_v16 }
 0x140   :  { %1137 = vadd.xlane.f32.xlu0 %v1136_v39  ;;  %v1076_v15 = vsel %vm1012_vm12, %v1839_v60, 0.0 }
 0x141   :  { %1140 = vadd.xlane.f32.xlu1 %v1139_v30  ;;  %v932_v39 = vpop.permute.xlu1 %931  ;;  %v460_v30 = vmax.f32 %v2109_v58, %v2115_v20  ;;  %v1070_v20 = vsel %vm1006_vm13, %v2087_v26, 0.0  ;;  %v1071_v58 = vsel %vm1007_vm14, %v2096_v37, 0.0  ;;  %vm1008_vm14 = vcmp.eq.s32.totalorder %v1806_v36, %v2153_v35 }
 0x142   :  { %vm1010_vm0 = vcmp.eq.s32.totalorder %v1806_v36, %v932_v39  ;;  %vm1011_vm1 = vcmp.eq.s32.totalorder %v1812_v40, %v932_v39 }
 0x143   :  { %v1075_v16 = vsel %vm1011_vm1, %v1833_v57, 0.0 }
 0x144   :  { %404 = vmax.xlane.f32.xlu0 %v403_v34  ;;  %v1066_v34 = vsel %vm1002_vm8, %v2021_v22, 0.0 }
 0x145   :  { %407 = vmax.xlane.f32.xlu1 %v406_v44  ;;  %v1067_v44 = vsel %vm1003_vm9, %v2035_v59, 0.0 }
 0x146   :  { %v1142_v54 = vadd.f32 %v1067_v44, %v1066_v34  ;;  %v1148_v34 = vadd.f32 %v1071_v58, %v1070_v20 }
 0x148   :  { %452 = vmax.xlane.f32.xlu0 %v451_v51  ;;  %v1068_v51 = vsel %vm1004_vm10, %v2048_v49, 0.0 }
 0x149   :  { %455 = vmax.xlane.f32.xlu1 %v454_v1  ;;  %v1069_v1 = vsel %vm1005_vm11, %v2054_v63, 0.0 }
 0x14c   :  { %410 = vmax.xlane.f32.xlu0 %v409_v42  ;;  %v941_v42 = vpop.permute.xlu0 %940 }
 0x14d   :  { %413 = vmax.xlane.f32.xlu1 %v412_v48  ;;  %v1145_v48 = vadd.f32 %v1069_v1, %v1068_v51  ;;  %vm1016_vm2 = vcmp.eq.s32.totalorder %v1806_v36, %v941_v42  ;;  %v1074_v51 = vsel %vm1010_vm0, %v1830_v56, 0.0  ;;  %vm1017_vm3 = vcmp.eq.s32.totalorder %v1812_v40, %v941_v42 }
 0x14e   :  { %v1080_v1 = vsel %vm1016_vm2, %v1889_v32, 0.0  ;;  %v1154_v58 = vadd.f32 %v1075_v16, %v1074_v51 }
 0x150   :  { %458 = vmax.xlane.f32.xlu0 %v457_v25  ;;  %v1077_v25 = vsel %vm1013_vm15, %v1842_v61, 0.0  ;;  %v947_v41 = vpop.permute.xlu0 %946  ;;  %vm1009_vm15 = vcmp.eq.s32.totalorder %v1812_v40, %v2153_v35 }
 0x151   :  { %461 = vmax.xlane.f32.xlu1 %v460_v30  ;;  %v938_v30 = vpop.permute.xlu1 %937  ;;  %v1157_v44 = vadd.f32 %v1077_v25, %v1076_v15  ;;  %vm1020_vm6 = vcmp.eq.s32.totalorder %v1806_v36, %v947_v41  ;;  %vm1021_vm7 = vcmp.eq.s32.totalorder %v1812_v40, %v947_v41 }
 0x152   :  { %vm1014_vm4 = vcmp.eq.s32.totalorder %v1806_v36, %v938_v30  ;;  %vm1015_vm5 = vcmp.eq.s32.totalorder %v1812_v40, %v938_v30  ;;  %v1084_v42 = vsel %vm1020_vm6, %v1927_v12, 0.0  ;;  %v1085_v25 = vsel %vm1021_vm7, %v1930_v13, 0.0 }
 0x153   :  { %v1079_v15 = vsel %vm1015_vm5, %v1882_v29, 0.0 }
 0x154   :  { %1143 = vadd.xlane.f32.xlu0 %v1142_v54  ;;  %v1081_v54 = vsel %vm1017_vm3, %v1892_v33, 0.0 }
 0x155   :  { %1146 = vadd.xlane.f32.xlu1 %v1145_v48  ;;  %v944_v20 = vpop.permute.xlu1 %943  ;;  %v1163_v39 = vadd.f32 %v1081_v54, %v1080_v1  ;;  %v1078_v48 = vsel %vm1014_vm4, %v1879_v28, 0.0 }
 0x156   :  { %v1160_v30 = vadd.f32 %v1079_v15, %v1078_v48  ;;  %vm1018_vm8 = vcmp.eq.s32.totalorder %v1806_v36, %v944_v20  ;;  %vm1019_vm9 = vcmp.eq.s32.totalorder %v1812_v40, %v944_v20  ;;  %v1072_v15 = vsel %vm1008_vm14, %v2106_v18, 0.0 }
 0x157   :  { %v1082_v51 = vsel %vm1018_vm8, %v1921_v8, 0.0  ;;  %v1083_v16 = vsel %vm1019_vm9, %v1924_v9, 0.0 }
 0x158   :  { %1149 = vadd.xlane.f32.xlu0 %v1148_v34  ;;  %v953_v34 = vpop.permute.xlu0 %952 }
 0x159   :  { %1158 = vadd.xlane.f32.xlu1 %v1157_v44  ;;  %vm1024_vm10 = vcmp.eq.s32.totalorder %v1806_v36, %v953_v34  ;;  %v1169_v44 = vadd.f32 %v1085_v25, %v1084_v42  ;;  %vm1025_vm11 = vcmp.eq.s32.totalorder %v1812_v40, %v953_v34  ;;  %v950_v54 = vpop.permute.xlu1 %949  ;;  %v1073_v42 = vsel %vm1009_vm15, %v2112_v62, 0.0 }
 0x15a   :  { %v1088_v41 = vsel %vm1024_vm10, %v1995_v23, 0.0  ;;  %v1089_v1 = vsel %vm1025_vm11, %v1998_v24, 0.0  ;;  %vm1022_vm12 = vcmp.eq.s32.totalorder %v1806_v36, %v950_v54  ;;  %vm1023_vm13 = vcmp.eq.s32.totalorder %v1812_v40, %v950_v54 }
 0x15b   :  { %v1175_v20 = vadd.f32 %v1089_v1, %v1088_v41  ;;  %v1087_v48 = vsel %vm1023_vm13, %v1987_v3, 0.0  ;;  %v1151_v34 = vadd.f32 %v1073_v42, %v1072_v15 }
 0x15c   :  { %1155 = vadd.xlane.f32.xlu0 %v1154_v58  ;;  %v1166_v58 = vadd.f32 %v1083_v16, %v1082_v51 }
 0x15d   :  { %1164 = vadd.xlane.f32.xlu1 %v1163_v39  ;;  %v1086_v39 = vsel %vm1022_vm12, %v1984_v5, 0.0 }
 0x15e   :  { %v1172_v25 = vadd.f32 %v1087_v48, %v1086_v39 }
 0x160   :  { %1161 = vadd.xlane.f32.xlu0 %v1160_v30  ;;  %v2217_v30 = vpop.permute.xlu0 %958 }
 0x161   :  { %1170 = vadd.xlane.f32.xlu1 %v1169_v44  ;;  %v2219_v44 = vpop.permute.xlu1 %955  ;;  %vm1028_vm2 = vcmp.eq.s32.totalorder %v1806_v36, %v2217_v30  ;;  %vm1029_vm3 = vcmp.eq.s32.totalorder %v1812_v40, %v2217_v30 }
 0x162   :  { %vm1026_vm0 = vcmp.eq.s32.totalorder %v1806_v36, %v2219_v44  ;;  %vm1027_vm1 = vcmp.eq.s32.totalorder %v1812_v40, %v2219_v44 }
 0x164   :  { %1167 = vadd.xlane.f32.xlu0 %v1166_v58  ;;  %v2221_v51 = vpop.permute.xlu0 %964 }
 0x165   :  { %1176 = vadd.xlane.f32.xlu1 %v1175_v20  ;;  %v2223_v16 = vpop.permute.xlu1 %961  ;;  %vm1032_vm6 = vcmp.eq.s32.totalorder %v1806_v36, %v2221_v51  ;;  %vm1033_vm7 = vcmp.eq.s32.totalorder %v1812_v40, %v2221_v51 }
 0x166   :  { %vm1030_vm4 = vcmp.eq.s32.totalorder %v1806_v36, %v2223_v16  ;;  %vm1031_vm5 = vcmp.eq.s32.totalorder %v1812_v40, %v2223_v16 }
 0x168   :  { %1173 = vadd.xlane.f32.xlu0 %v1172_v25  ;;  %v2225_v41 = vpop.permute.xlu0 %970 }
 0x169   :  { %1152 = vadd.xlane.f32.xlu1 %v1151_v34  ;;  %v2227_v35 = vpop.permute.xlu1 %967  ;;  %vm1036_vm10 = vcmp.eq.s32.totalorder %v1806_v36, %v2225_v41  ;;  %vm1037_vm11 = vcmp.eq.s32.totalorder %v1812_v40, %v2225_v41 }
 0x16a   :  { %vm1034_vm8 = vcmp.eq.s32.totalorder %v1806_v36, %v2227_v35  ;;  %vm1035_vm9 = vcmp.eq.s32.totalorder %v1812_v40, %v2227_v35  ;;  %v1101_v51 = vsel %vm1037_vm11, %v2057_v11, 0.0 }
 0x16b   :  { %v1099_v16 = vsel %vm1035_vm9, %v2038_v4, 0.0 }
 0x16c   :  { %v2229_v1 = vpop.permute.xlu0 %976 }
 0x16d   :  { %2765 = vst [vmem:[#allocation20_spill] sm:$0xff] %v2229_v1  ;;  %v2231_v54 = vpop.permute.xlu1 %973 }
 0x16e   :  { %2766 = vst [vmem:[#allocation21_spill] sm:$0xff] %v2231_v54 }
 0x189   :  { %v2233_v58 = vpop.xlane.xlu0 %368 }
 0x18a   :  { %2767 = vst [vmem:[#allocation22_spill] sm:$0xff] %v2233_v58  ;;  %v463_v20 = vsub.f32 %v1822_v47, %v2233_v58  ;;  %v464_v39 = vsub.f32 %v1826_v50, %v2233_v58  ;;  %v2239_v48 = vpop.xlane.xlu1 %1107 }
 0x18b   :  { %2768 = vst [vmem:[#allocation23_spill] sm:$0xff] %v2239_v48 }
 0x18c   :  { %v527_v15 = vmul.f32 1.442695, %v463_v20  ;;  %v529_v42 = vmul.f32 1.442695, %v464_v39 }
 0x18d   :  { %v2241_v25 = vpop.xlane.xlu0 %416 }
 0x18e   :  { %1330 = vpow2.f32 %v527_v15  ;;  %v495_v34 = vsub.f32 %v1830_v56, %v2241_v25  ;;  %v496_v1 = vsub.f32 %v1833_v57, %v2241_v25  ;;  %v2247_v54 = vpop.xlane.xlu1 %419 }
 0x18f   :  { %2769 = vst [vmem:[#allocation24_spill] sm:$0xff] %v2247_v54  ;;  %1332 = vpow2.f32 %v529_v42  ;;  %v497_v47 = vsub.f32 %v1839_v60, %v2247_v54  ;;  %v498_v50 = vsub.f32 %v1842_v61, %v2247_v54 }
 0x190   :  { %v591_v20 = vmul.f32 1.442695, %v495_v34  ;;  %v593_v39 = vmul.f32 1.442695, %v496_v1 }
 0x191   :  { %v595_v48 = vmul.f32 1.442695, %v497_v47  ;;  %v597_v58 = vmul.f32 1.442695, %v498_v50  ;;  %v2253_v15 = vpop.xlane.xlu0 %371 }
 0x192   :  { %1334 = vpow2.f32 %v591_v20  ;;  %v465_v56 = vsub.f32 %v1845_v0, %v2253_v15  ;;  %v466_v57 = vsub.f32 %v1848_v2, %v2253_v15  ;;  %v2259_v42 = vpop.xlane.xlu1 %374 }
 0x193   :  { %2770 = vst [vmem:[#allocation25_spill] sm:$0xff] %v2259_v42  ;;  %1336 = vpow2.f32 %v593_v39  ;;  %v467_v60 = vsub.f32 %v1853_v6, %v2259_v42  ;;  %v468_v61 = vsub.f32 %v1858_v10, %v2259_v42  ;;  %v2773_v6 = vld [vmem:[#allocation2_spill] sm:$0xff] }
 0x194   :  { %1338 = vpow2.f32 %v595_v48  ;;  %v531_v1 = vmul.f32 1.442695, %v465_v56  ;;  %v533_v34 = vmul.f32 1.442695, %v466_v57 }
 0x195   :  { %1340 = vpow2.f32 %v597_v58  ;;  %v535_v47 = vmul.f32 1.442695, %v467_v60  ;;  %v537_v50 = vmul.f32 1.442695, %v468_v61  ;;  %v2265_v20 = vpop.xlane.xlu0 %1110 }
 0x196   :  { %2771 = vst [vmem:[#allocation26_spill] sm:$0xff] %v2265_v20  ;;  %1342 = vpow2.f32 %v531_v1  ;;  %v2267_v0 = vpop.xlane.xlu1 %377 }
 0x197   :  { %2772 = vst [vmem:[#allocation27_spill] sm:$0xff] %v2267_v0  ;;  %1344 = vpow2.f32 %v533_v34  ;;  %v469_v2 = vsub.f32 %v1867_v17, %v2267_v0  ;;  %v470_v39 = vsub.f32 %v2773_v6, %v2267_v0 }
 0x198   :  { %v1331_v54 = vpop.eup %1330  ;;  %1346 = vpow2.f32 %v535_v47 }
 0x199   :  { %v1333_v10 = vpop.eup %1332  ;;  %1348 = vpow2.f32 %v537_v50  ;;  %v539_v48 = vmul.f32 1.442695, %v469_v2  ;;  %v541_v58 = vmul.f32 1.442695, %v470_v39  ;;  %v2273_v56 = vpop.xlane.xlu0 %422 }
 0x19a   :  { %2774 = vst [vmem:[#allocation2_spill] sm:$0xff] %v2273_v56  ;;  %v499_v57 = vsub.f32 %v1879_v28, %v2273_v56  ;;  %v500_v60 = vsub.f32 %v1882_v29, %v2273_v56  ;;  %v2279_v61 = vpop.xlane.xlu1 %425  ;;  %v655_v17 = vadd.f32 %v1333_v10, %v1331_v54 }
 0x19b   :  { %2775 = vst [vmem:[#allocation28_spill] sm:$0xff] %v2279_v61  ;;  %v501_v1 = vsub.f32 %v1889_v32, %v2279_v61  ;;  %v502_v34 = vsub.f32 %v1892_v33, %v2279_v61  ;;  %1350 = vpow2.f32 %v539_v48 }
 0x19c   :  { %v1335_v47 = vpop.eup %1334  ;;  %v599_v50 = vmul.f32 1.442695, %v499_v57  ;;  %v601_v2 = vmul.f32 1.442695, %v500_v60  ;;  %656 = vadd.xlane.f32.xlu0 %v655_v17  ;;  %1352 = vpow2.f32 %v541_v58  ;;  %v2778_v58 = vld [vmem:[#allocation3_spill] sm:$0xff]  ;;  %v2779_v17 = vld [vmem:[#allocation4_spill] sm:$0xff] }
 0x19d   :  { %v1337_v6 = vpop.eup %1336  ;;  %v603_v28 = vmul.f32 1.442695, %v501_v1  ;;  %v605_v39 = vmul.f32 1.442695, %v502_v34  ;;  %v2285_v0 = vpop.xlane.xlu0 %1113 }
 0x19e   :  { %2776 = vst [vmem:[#allocation29_spill] sm:$0xff] %v2285_v0  ;;  %v1339_v29 = vpop.eup %1338  ;;  %1354 = vpow2.f32 %v599_v50  ;;  %v2287_v54 = vpop.xlane.xlu1 %1116  ;;  %v703_v10 = vadd.f32 %v1337_v6, %v1335_v47 }
 0x19f   :  { %2777 = vst [vmem:[#allocation30_spill] sm:$0xff] %v2287_v54  ;;  %v1341_v32 = vpop.eup %1340  ;;  %1356 = vpow2.f32 %v601_v2  ;;  %v2780_v2 = vld [vmem:[#allocation5_spill] sm:$0xff] }
 0x1a0   :  { %v1343_v56 = vpop.eup %1342  ;;  %1358 = vpow2.f32 %v603_v28  ;;  %704 = vadd.xlane.f32.xlu0 %v703_v10  ;;  %v2781_v28 = vld [vmem:[#allocation6_spill] sm:$0xff] }
 0x1a1   :  { %v1345_v33 = vpop.eup %1344  ;;  %1360 = vpow2.f32 %v605_v39  ;;  %v2289_v48 = vpop.xlane.xlu0 %380 }
 0x1a2   :  { %v1347_v57 = vpop.eup %1346  ;;  %v471_v60 = vsub.f32 %v2778_v58, %v2289_v48  ;;  %v472_v1 = vsub.f32 %v2779_v17, %v2289_v48  ;;  %v2295_v34 = vpop.xlane.xlu1 %383  ;;  %v658_v50 = vadd.f32 %v1345_v33, %v1343_v56 }
 0x1a3   :  { %v1349_v47 = vpop.eup %1348  ;;  %v473_v6 = vsub.f32 %v2780_v2, %v2295_v34  ;;  %v474_v10 = vsub.f32 %v2781_v28, %v2295_v34  ;;  %v706_v2 = vadd.f32 %v1341_v32, %v1339_v29 }
 0x1a4   :  { %v543_v39 = vmul.f32 1.442695, %v471_v60  ;;  %v545_v61 = vmul.f32 1.442695, %v472_v1  ;;  %659 = vadd.xlane.f32.xlu1 %v658_v50  ;;  %v661_v54 = vadd.f32 %v1349_v47, %v1347_v57 }
 0x1a5   :  { %v547_v0 = vmul.f32 1.442695, %v473_v6  ;;  %v549_v42 = vmul.f32 1.442695, %v474_v10  ;;  %v2301_v58 = vpop.xlane.xlu0 %428  ;;  %v1351_v20 = vpop.eup %1350 }
 0x1a6   :  { %1362 = vpow2.f32 %v543_v39  ;;  %662 = vadd.xlane.f32.xlu0 %v661_v54  ;;  %v503_v56 = vsub.f32 %v1921_v8, %v2301_v58  ;;  %v504_v33 = vsub.f32 %v1924_v9, %v2301_v58  ;;  %v2307_v17 = vpop.xlane.xlu1 %431  ;;  %v1353_v60 = vpop.eup %1352  ;;  %v2784_v39 = vld [vmem:[#allocation8_spill] sm:$0xff] }
 0x1a7   :  { %1364 = vpow2.f32 %v545_v61  ;;  %v505_v57 = vsub.f32 %v1927_v12, %v2307_v17  ;;  %v506_v1 = vsub.f32 %v1930_v13, %v2307_v17  ;;  %v664_v32 = vadd.f32 %v1353_v60, %v1351_v20  ;;  %v2786_v20 = vld [vmem:[#allocation9_spill] sm:$0xff] }
 0x1a8   :  { %v1355_v50 = vpop.eup %1354  ;;  %1366 = vpow2.f32 %v547_v0  ;;  %v607_v54 = vmul.f32 1.442695, %v503_v56  ;;  %v609_v47 = vmul.f32 1.442695, %v504_v33  ;;  %707 = vadd.xlane.f32.xlu1 %v706_v2 }
 0x1a9   :  { %v1357_v8 = vpop.eup %1356  ;;  %1368 = vpow2.f32 %v549_v42  ;;  %v611_v6 = vmul.f32 1.442695, %v505_v57  ;;  %v613_v9 = vmul.f32 1.442695, %v506_v1  ;;  %v2313_v28 = vpop.xlane.xlu0 %1119  ;;  %v2783_v42 = vld [vmem:[#allocation7_spill] sm:$0xff]  ;;  %v2787_v57 = vld [vmem:[#allocation10_spill] sm:$0xff] }
 0x1aa   :  { %v1359_v29 = vpop.eup %1358  ;;  %1370 = vpow2.f32 %v607_v54  ;;  %v2315_v61 = vpop.xlane.xlu1 %1122  ;;  %v709_v12 = vadd.f32 %v1357_v8, %v1355_v50 }
 0x1ab   :  { %v1361_v10 = vpop.eup %1360  ;;  %1372 = vpow2.f32 %v609_v47 }
 0x1ac   :  { %1374 = vpow2.f32 %v611_v6  ;;  %665 = vadd.xlane.f32.xlu1 %v664_v32  ;;  %710 = vadd.xlane.f32.xlu0 %v709_v12  ;;  %v712_v2 = vadd.f32 %v1361_v10, %v1359_v29 }
 0x1ad   :  { %1376 = vpow2.f32 %v613_v9  ;;  %v2317_v13 = vpop.xlane.xlu0 %386 }
 0x1ae   :  { %2782 = vst [vmem:[#allocation3_spill] sm:$0xff] %v2317_v13  ;;  %v475_v0 = vsub.f32 %v2783_v42, %v2317_v13  ;;  %v476_v56 = vsub.f32 %v2784_v39, %v2317_v13  ;;  %v2323_v33 = vpop.xlane.xlu1 %389 }
 0x1af   :  { %2785 = vst [vmem:[#allocation4_spill] sm:$0xff] %v2323_v33  ;;  %v477_v60 = vsub.f32 %v2786_v20, %v2323_v33  ;;  %v478_v1 = vsub.f32 %v2787_v57, %v2323_v33 }
 0x1b0   :  { %v1363_v50 = vpop.eup %1362  ;;  %v551_v54 = vmul.f32 1.442695, %v475_v0  ;;  %v553_v47 = vmul.f32 1.442695, %v476_v56  ;;  %713 = vadd.xlane.f32.xlu1 %v712_v2 }
 0x1b1   :  { %v1365_v8 = vpop.eup %1364  ;;  %v555_v6 = vmul.f32 1.442695, %v477_v60  ;;  %v557_v9 = vmul.f32 1.442695, %v478_v1  ;;  %v2329_v32 = vpop.xlane.xlu0 %434 }
 0x1b2   :  { %2788 = vst [vmem:[#allocation5_spill] sm:$0xff] %v2329_v32  ;;  %v1367_v12 = vpop.eup %1366  ;;  %1378 = vpow2.f32 %v551_v54  ;;  %v507_v29 = vsub.f32 %v1984_v5, %v2329_v32  ;;  %v508_v10 = vsub.f32 %v1987_v3, %v2329_v32  ;;  %v2335_v42 = vpop.xlane.xlu1 %437  ;;  %v667_v39 = vadd.f32 %v1365_v8, %v1363_v50 }
 0x1b3   :  { %2789 = vst [vmem:[#allocation6_spill] sm:$0xff] %v2335_v42  ;;  %v1369_v20 = vpop.eup %1368  ;;  %1380 = vpow2.f32 %v553_v47  ;;  %v509_v0 = vsub.f32 %v1995_v23, %v2335_v42  ;;  %v510_v56 = vsub.f32 %v1998_v24, %v2335_v42 }
 0x1b4   :  { %v1371_v2 = vpop.eup %1370  ;;  %1382 = vpow2.f32 %v555_v6  ;;  %v615_v60 = vmul.f32 1.442695, %v507_v29  ;;  %v617_v57 = vmul.f32 1.442695, %v508_v10  ;;  %668 = vadd.xlane.f32.xlu0 %v667_v39  ;;  %v670_v5 = vadd.f32 %v1369_v20, %v1367_v12  ;;  %v2794_v29 = vld [vmem:[#allocation12_spill] sm:$0xff] }
 0x1b5   :  { %v1373_v1 = vpop.eup %1372  ;;  %1384 = vpow2.f32 %v557_v9  ;;  %v619_v3 = vmul.f32 1.442695, %v509_v0  ;;  %v621_v54 = vmul.f32 1.442695, %v510_v56  ;;  %v2341_v32 = vpop.xlane.xlu0 %1125  ;;  %v2793_v9 = vld [vmem:[#allocation11_spill] sm:$0xff]  ;;  %v2796_v0 = vld [vmem:[#allocation13_spill] sm:$0xff] }
 0x1b6   :  { %2790 = vst [vmem:[#allocation7_spill] sm:$0xff] %v2341_v32  ;;  %v1375_v50 = vpop.eup %1374  ;;  %1386 = vpow2.f32 %v615_v60  ;;  %671 = vadd.xlane.f32.xlu1 %v670_v5  ;;  %v2343_v47 = vpop.xlane.xlu1 %1128  ;;  %v715_v23 = vadd.f32 %v1373_v1, %v1371_v2 }
 0x1b7   :  { %2791 = vst [vmem:[#allocation8_spill] sm:$0xff] %v2343_v47  ;;  %v1377_v8 = vpop.eup %1376  ;;  %1388 = vpow2.f32 %v617_v57 }
 0x1b8   :  { %1390 = vpow2.f32 %v619_v3  ;;  %716 = vadd.xlane.f32.xlu0 %v715_v23  ;;  %v718_v24 = vadd.f32 %v1377_v8, %v1375_v50  ;;  %v2798_v23 = vld [vmem:[#allocation14_spill] sm:$0xff] }
 0x1b9   :  { %1392 = vpow2.f32 %v621_v54  ;;  %v2345_v6 = vpop.xlane.xlu0 %392 }
 0x1ba   :  { %2792 = vst [vmem:[#allocation9_spill] sm:$0xff] %v2345_v6  ;;  %719 = vadd.xlane.f32.xlu1 %v718_v24  ;;  %v479_v12 = vsub.f32 %v2793_v9, %v2345_v6  ;;  %v480_v10 = vsub.f32 %v2794_v29, %v2345_v6  ;;  %v2351_v39 = vpop.xlane.xlu1 %395  ;;  %v2799_v24 = vld [vmem:[#allocation15_spill] sm:$0xff] }
 0x1bb   :  { %2795 = vst [vmem:[#allocation10_spill] sm:$0xff] %v2351_v39  ;;  %v481_v20 = vsub.f32 %v2042_v45, %v2351_v39  ;;  %v482_v56 = vsub.f32 %v2796_v0, %v2351_v39 }
 0x1bc   :  { %v1379_v2 = vpop.eup %1378  ;;  %v559_v60 = vmul.f32 1.442695, %v479_v12  ;;  %v561_v57 = vmul.f32 1.442695, %v480_v10  ;;  %v2801_v12 = vld [vmem:[#allocation16_spill] sm:$0xff] }
 0x1bd   :  { %v1381_v5 = vpop.eup %1380  ;;  %v563_v1 = vmul.f32 1.442695, %v481_v20  ;;  %v565_v3 = vmul.f32 1.442695, %v482_v56  ;;  %v2357_v54 = vpop.xlane.xlu0 %440  ;;  %v2802_v20 = vld [vmem:[#allocation17_spill] sm:$0xff] }
 0x1be   :  { %2797 = vst [vmem:[#allocation11_spill] sm:$0xff] %v2357_v54  ;;  %v1383_v50 = vpop.eup %1382  ;;  %1394 = vpow2.f32 %v559_v60  ;;  %v511_v8 = vsub.f32 %v2798_v23, %v2357_v54  ;;  %v512_v9 = vsub.f32 %v2799_v24, %v2357_v54  ;;  %v2363_v45 = vpop.xlane.xlu1 %443  ;;  %v673_v29 = vadd.f32 %v1381_v5, %v1379_v2 }
 0x1bf   :  { %2800 = vst [vmem:[#allocation12_spill] sm:$0xff] %v2363_v45  ;;  %v1385_v0 = vpop.eup %1384  ;;  %1396 = vpow2.f32 %v561_v57  ;;  %v513_v10 = vsub.f32 %v2801_v12, %v2363_v45  ;;  %v514_v56 = vsub.f32 %v2802_v20, %v2363_v45 }
 0x1c0   :  { %v1387_v39 = vpop.eup %1386  ;;  %1398 = vpow2.f32 %v563_v1  ;;  %v623_v60 = vmul.f32 1.442695, %v511_v8  ;;  %v625_v6 = vmul.f32 1.442695, %v512_v9  ;;  %674 = vadd.xlane.f32.xlu0 %v673_v29  ;;  %v676_v42 = vadd.f32 %v1385_v0, %v1383_v50 }
 0x1c1   :  { %v1389_v47 = vpop.eup %1388  ;;  %1400 = vpow2.f32 %v565_v3  ;;  %v627_v54 = vmul.f32 1.442695, %v513_v10  ;;  %v629_v33 = vmul.f32 1.442695, %v514_v56  ;;  %v2369_v32 = vpop.xlane.xlu0 %1131 }
 0x1c2   :  { %v1391_v2 = vpop.eup %1390  ;;  %1402 = vpow2.f32 %v623_v60  ;;  %677 = vadd.xlane.f32.xlu1 %v676_v42  ;;  %v2371_v57 = vpop.xlane.xlu1 %1134  ;;  %v721_v5 = vadd.f32 %v1389_v47, %v1387_v39 }
 0x1c3   :  { %v1393_v13 = vpop.eup %1392  ;;  %1404 = vpow2.f32 %v625_v6 }
 0x1c4   :  { %1406 = vpow2.f32 %v627_v54  ;;  %722 = vadd.xlane.f32.xlu0 %v721_v5  ;;  %v724_v1 = vadd.f32 %v1393_v13, %v1391_v2 }
 0x1c5   :  { %1408 = vpow2.f32 %v629_v33  ;;  %v2373_v8 = vpop.xlane.xlu0 %398 }
 0x1c6   :  { %725 = vadd.xlane.f32.xlu1 %v724_v1  ;;  %v483_v3 = vsub.f32 %v2119_v14, %v2373_v8  ;;  %v484_v50 = vsub.f32 %v2123_v53, %v2373_v8  ;;  %v2379_v9 = vpop.xlane.xlu1 %401 }
 0x1c7   :  { %v485_v42 = vsub.f32 %v2127_v55, %v2379_v9  ;;  %v486_v47 = vsub.f32 %v2131_v38, %v2379_v9 }
 0x1c8   :  { %v1395_v6 = vpop.eup %1394  ;;  %v567_v13 = vmul.f32 1.442695, %v483_v3  ;;  %v569_v33 = vmul.f32 1.442695, %v484_v50 }
 0x1c9   :  { %v1397_v39 = vpop.eup %1396  ;;  %v571_v54 = vmul.f32 1.442695, %v485_v42  ;;  %v573_v29 = vmul.f32 1.442695, %v486_v47  ;;  %v2385_v0 = vpop.xlane.xlu0 %446 }
 0x1ca   :  { %2803 = vst [vmem:[#allocation13_spill] sm:$0xff] %v2385_v0  ;;  %v1399_v14 = vpop.eup %1398  ;;  %1410 = vpow2.f32 %v567_v13  ;;  %v515_v53 = vsub.f32 %v1977_v46, %v2385_v0  ;;  %v516_v10 = vsub.f32 %v1990_v7, %v2385_v0  ;;  %v2391_v55 = vpop.xlane.xlu1 %449  ;;  %v679_v56 = vadd.f32 %v1397_v39, %v1395_v6 }
 0x1cb   :  { %v1401_v38 = vpop.eup %1400  ;;  %1412 = vpow2.f32 %v569_v33  ;;  %v517_v60 = vsub.f32 %v2001_v21, %v2391_v55  ;;  %v518_v2 = vsub.f32 %v2007_v27, %v2391_v55 }
 0x1cc   :  { %v1403_v5 = vpop.eup %1402  ;;  %1414 = vpow2.f32 %v571_v54  ;;  %v631_v1 = vmul.f32 1.442695, %v515_v53  ;;  %v633_v3 = vmul.f32 1.442695, %v516_v10  ;;  %680 = vadd.xlane.f32.xlu0 %v679_v56  ;;  %v682_v50 = vadd.f32 %v1401_v38, %v1399_v14 }
 0x1cd   :  { %v1405_v42 = vpop.eup %1404  ;;  %1416 = vpow2.f32 %v573_v29  ;;  %v635_v47 = vmul.f32 1.442695, %v517_v60  ;;  %v637_v13 = vmul.f32 1.442695, %v518_v2  ;;  %v2397_v0 = vpop.xlane.xlu0 %1137 }
 0x1ce   :  { %v1407_v6 = vpop.eup %1406  ;;  %1418 = vpow2.f32 %v631_v1  ;;  %683 = vadd.xlane.f32.xlu1 %v682_v50  ;;  %v2399_v33 = vpop.xlane.xlu1 %1140  ;;  %v727_v39 = vadd.f32 %v1405_v42, %v1403_v5 }
 0x1cf   :  { %v1409_v45 = vpop.eup %1408  ;;  %1420 = vpow2.f32 %v633_v3 }
 0x1d0   :  { %1422 = vpow2.f32 %v635_v47  ;;  %728 = vadd.xlane.f32.xlu0 %v727_v39  ;;  %v730_v54 = vadd.f32 %v1409_v45, %v1407_v6 }
 0x1d1   :  { %1424 = vpow2.f32 %v637_v13  ;;  %v2401_v53 = vpop.xlane.xlu0 %404 }
 0x1d2   :  { %731 = vadd.xlane.f32.xlu1 %v730_v54  ;;  %v487_v29 = vsub.f32 %v2021_v22, %v2401_v53  ;;  %v488_v14 = vsub.f32 %v2035_v59, %v2401_v53  ;;  %v2407_v10 = vpop.xlane.xlu1 %407 }
 0x1d3   :  { %v489_v56 = vsub.f32 %v2048_v49, %v2407_v10  ;;  %v490_v38 = vsub.f32 %v2054_v63, %v2407_v10 }
 0x1d4   :  { %v1411_v60 = vpop.eup %1410  ;;  %v575_v45 = vmul.f32 1.442695, %v487_v29  ;;  %v577_v2 = vmul.f32 1.442695, %v488_v14 }
 0x1d5   :  { %v1413_v5 = vpop.eup %1412  ;;  %v579_v1 = vmul.f32 1.442695, %v489_v56  ;;  %v581_v3 = vmul.f32 1.442695, %v490_v38  ;;  %v2413_v50 = vpop.xlane.xlu0 %452 }
 0x1d6   :  { %2804 = vst [vmem:[#allocation14_spill] sm:$0xff] %v2413_v50  ;;  %v1415_v22 = vpop.eup %1414  ;;  %1426 = vpow2.f32 %v575_v45  ;;  %v519_v59 = vsub.f32 %v2024_v52, %v2413_v50  ;;  %v520_v42 = vsub.f32 %v2038_v4, %v2413_v50  ;;  %v2419_v49 = vpop.xlane.xlu1 %455  ;;  %v685_v47 = vadd.f32 %v1413_v5, %v1411_v60 }
 0x1d7   :  { %v1417_v63 = vpop.eup %1416  ;;  %1428 = vpow2.f32 %v577_v2  ;;  %v521_v13 = vsub.f32 %v2051_v19, %v2419_v49  ;;  %v522_v6 = vsub.f32 %v2057_v11, %v2419_v49 }
 0x1d8   :  { %v1419_v39 = vpop.eup %1418  ;;  %1430 = vpow2.f32 %v579_v1  ;;  %v639_v54 = vmul.f32 1.442695, %v519_v59  ;;  %v641_v29 = vmul.f32 1.442695, %v520_v42  ;;  %686 = vadd.xlane.f32.xlu0 %v685_v47  ;;  %v688_v14 = vadd.f32 %v1417_v63, %v1415_v22 }
 0x1d9   :  { %v1421_v56 = vpop.eup %1420  ;;  %1432 = vpow2.f32 %v581_v3  ;;  %v643_v38 = vmul.f32 1.442695, %v521_v13  ;;  %v645_v45 = vmul.f32 1.442695, %v522_v6  ;;  %v2425_v50 = vpop.xlane.xlu0 %410 }
 0x1da   :  { %v1423_v60 = vpop.eup %1422  ;;  %1434 = vpow2.f32 %v639_v54  ;;  %689 = vadd.xlane.f32.xlu1 %v688_v14  ;;  %v491_v2 = vsub.f32 %v2087_v26, %v2425_v50  ;;  %v492_v5 = vsub.f32 %v2096_v37, %v2425_v50  ;;  %v2431_v1 = vpop.xlane.xlu1 %413  ;;  %v733_v59 = vadd.f32 %v1421_v56, %v1419_v39  ;;  %v2807_v14 = vld [vmem:[#allocation19_spill] sm:$0xff] }
 0x1db   :  { %v1425_v42 = vpop.eup %1424  ;;  %1436 = vpow2.f32 %v641_v29  ;;  %v493_v3 = vsub.f32 %v2106_v18, %v2431_v1  ;;  %v494_v22 = vsub.f32 %v2112_v62, %v2431_v1  ;;  %v2806_v62 = vld [vmem:[#allocation18_spill] sm:$0xff] }
 0x1dc   :  { %1438 = vpow2.f32 %v643_v38  ;;  %v583_v47 = vmul.f32 1.442695, %v491_v2  ;;  %v585_v63 = vmul.f32 1.442695, %v492_v5  ;;  %734 = vadd.xlane.f32.xlu0 %v733_v59  ;;  %v736_v13 = vadd.f32 %v1425_v42, %v1423_v60 }
 0x1dd   :  { %1440 = vpow2.f32 %v645_v45  ;;  %v587_v26 = vmul.f32 1.442695, %v493_v3  ;;  %v589_v6 = vmul.f32 1.442695, %v494_v22  ;;  %v2437_v37 = vpop.xlane.xlu0 %458 }
 0x1de   :  { %1442 = vpow2.f32 %v583_v47  ;;  %737 = vadd.xlane.f32.xlu1 %v736_v13  ;;  %v523_v39 = vsub.f32 %v2090_v31, %v2437_v37  ;;  %v524_v18 = vsub.f32 %v2099_v43, %v2437_v37  ;;  %v2443_v54 = vpop.xlane.xlu1 %461 }
 0x1df   :  { %2805 = vst [vmem:[#allocation15_spill] sm:$0xff] %v2443_v54  ;;  %1444 = vpow2.f32 %v585_v63  ;;  %v525_v29 = vsub.f32 %v2806_v62, %v2443_v54  ;;  %v526_v56 = vsub.f32 %v2807_v14, %v2443_v54 }
 0x1e0   :  { %v1427_v38 = vpop.eup %1426  ;;  %1446 = vpow2.f32 %v587_v26  ;;  %v647_v45 = vmul.f32 1.442695, %v523_v39  ;;  %v649_v60 = vmul.f32 1.442695, %v524_v18 }
 0x1e1   :  { %v1429_v2 = vpop.eup %1428  ;;  %1448 = vpow2.f32 %v589_v6  ;;  %v651_v5 = vmul.f32 1.442695, %v525_v29  ;;  %v653_v59 = vmul.f32 1.442695, %v526_v56 }
 0x1e2   :  { %v1431_v42 = vpop.eup %1430  ;;  %1450 = vpow2.f32 %v647_v45  ;;  %v691_v3 = vadd.f32 %v1429_v2, %v1427_v38 }
 0x1e3   :  { %v1433_v22 = vpop.eup %1432  ;;  %1452 = vpow2.f32 %v649_v60 }
 0x1e4   :  { %v1435_v47 = vpop.eup %1434  ;;  %1454 = vpow2.f32 %v651_v5  ;;  %692 = vadd.xlane.f32.xlu0 %v691_v3  ;;  %v694_v63 = vadd.f32 %v1433_v22, %v1431_v42  ;;  %v1091_v22 = vsel %vm1027_vm1, %v2799_v24, 0.0  ;;  %v1095_v24 = vsel %vm1031_vm5, %v1990_v7, 0.0 }
 0x1e5   :  { %v1437_v13 = vpop.eup %1436  ;;  %1456 = vpow2.f32 %v653_v59  ;;  %v1098_v7 = vsel %vm1034_vm8, %v2024_v52, 0.0 }
 0x1e6   :  { %v1439_v54 = vpop.eup %1438  ;;  %695 = vadd.xlane.f32.xlu1 %v694_v63  ;;  %v739_v26 = vadd.f32 %v1437_v13, %v1435_v47  ;;  %v1092_v63 = vsel %vm1028_vm2, %v2801_v12, 0.0  ;;  %v1093_v13 = vsel %vm1029_vm3, %v2802_v20, 0.0  ;;  %v1096_v12 = vsel %vm1032_vm6, %v2001_v21, 0.0 }
 0x1e7   :  { %v1441_v39 = vpop.eup %1440  ;;  %v1181_v30 = vadd.f32 %v1093_v13, %v1092_v63  ;;  %v1097_v20 = vsel %vm1033_vm7, %v2007_v27, 0.0  ;;  %v1100_v27 = vsel %vm1036_vm10, %v2051_v19, 0.0  ;;  %v1190_v52 = vadd.f32 %v1099_v16, %v1098_v7  ;;  %v2810_v63 = vld [vmem:[#allocation22_spill] sm:$0xff] }
 0x1e8   :  { %v1443_v18 = vpop.eup %1442  ;;  %740 = vadd.xlane.f32.xlu0 %v739_v26  ;;  %v742_v6 = vadd.f32 %v1441_v39, %v1439_v54  ;;  %v1090_v54 = vsel %vm1026_vm0, %v2798_v23, 0.0  ;;  %v1094_v23 = vsel %vm1030_vm4, %v1977_v46, 0.0  ;;  %v1187_v21 = vadd.f32 %v1097_v20, %v1096_v12  ;;  %v2808_v26 = vld [vmem:[#allocation21_spill] sm:$0xff]  ;;  %v2809_v39 = vld [vmem:[#allocation20_spill] sm:$0xff] }
 0x1e9   :  { %v1445_v29 = vpop.eup %1444  ;;  %v1178_v44 = vadd.f32 %v1091_v22, %v1090_v54  ;;  %v1184_v46 = vadd.f32 %v1095_v24, %v1094_v23  ;;  %vm1038_vm12 = vcmp.eq.s32.totalorder %v1806_v36, %v2808_v26  ;;  %vm1039_vm13 = vcmp.eq.s32.totalorder %v1812_v40, %v2808_v26  ;;  %v2811_v23 = vld [vmem:[#allocation23_spill] sm:$0xff] }
 0x1ea   :  { %v1447_v56 = vpop.eup %1446  ;;  %743 = vadd.xlane.f32.xlu1 %v742_v6  ;;  %v697_v45 = vadd.f32 %v1445_v29, %v1443_v18  ;;  %v1102_v4 = vsel %vm1038_vm12, %v2090_v31, 0.0  ;;  %v1103_v35 = vsel %vm1039_vm13, %v2099_v43, 0.0  ;;  %vm1040_vm14 = vcmp.eq.s32.totalorder %v1806_v36, %v2809_v39  ;;  %v2497_v31 = vpop.xlane.xlu0 %1143 }
 0x1eb   :  { %v1449_v38 = vpop.eup %1448  ;;  %vm1041_vm15 = vcmp.eq.s32.totalorder %v1812_v40, %v2809_v39  ;;  %v1193_v19 = vadd.f32 %v1101_v51, %v1100_v27  ;;  %v1104_v11 = vsel %vm1040_vm14, %v2806_v62, 0.0  ;;  %v1196_v18 = vadd.f32 %v1103_v35, %v1102_v4  ;;  %v2501_v29 = vpop.xlane.xlu1 %1146  ;;  %v2812_v35 = vld [vmem:[#allocation26_spill] sm:$0xff] }
 0x1ec   :  { %v1451_v2 = vpop.eup %1450  ;;  %698 = vadd.xlane.f32.xlu0 %v697_v45  ;;  %v700_v60 = vadd.f32 %v1449_v38, %v1447_v56  ;;  %v1105_v41 = vsel %vm1041_vm15, %v2807_v14, 0.0  ;;  %vm1234_vm0 = vcmask 7168  }
 0x1ed   :  { %v1453_v5 = vpop.eup %1452  ;;  %v1199_v6 = vadd.f32 %v1105_v41, %v1104_v11 }
 0x1ee   :  { %v1455_v3 = vpop.eup %1454  ;;  %701 = vadd.xlane.f32.xlu1 %v700_v60  ;;  %v745_v59 = vadd.f32 %v1453_v5, %v1451_v2  ;;  %v2499_v43 = vpop.xlane.xlu0 %1149 }
 0x1ef   :  { %v1457_v42 = vpop.eup %1456  ;;  %v1159_v56 = vpop.xlane.xlu1 %1158 }
 0x1f0   :  { %746 = vadd.xlane.f32.xlu0 %v745_v59  ;;  %v748_v47 = vadd.f32 %v1457_v42, %v1455_v3 }
 0x1f2   :  { %749 = vadd.xlane.f32.xlu1 %v748_v47  ;;  %v1156_v36 = vpop.xlane.xlu0 %1155 }
 0x1f3   :  { %v2505_v45 = vpop.xlane.xlu1 %1164 }
 0x1f4   :  { %1179 = vadd.xlane.f32.xlu0 %v1178_v44 }
 0x1f6   :  { %1182 = vadd.xlane.f32.xlu1 %v1181_v30  ;;  %v2503_v40 = vpop.xlane.xlu0 %1161 }
 0x1f7   :  { %v2509_v14 = vpop.xlane.xlu1 %1170 }
 0x1f8   :  { %1185 = vadd.xlane.f32.xlu0 %v1184_v46 }
 0x1fa   :  { %1188 = vadd.xlane.f32.xlu1 %v1187_v21  ;;  %v2507_v62 = vpop.xlane.xlu0 %1167 }
 0x1fb   :  { %v2513_v2 = vpop.xlane.xlu1 %1176 }
 0x1fc   :  { %1191 = vadd.xlane.f32.xlu0 %v1190_v52 }
 0x1fe   :  { %1194 = vadd.xlane.f32.xlu1 %v1193_v19  ;;  %v2511_v38 = vpop.xlane.xlu0 %1173  ;;  %v2813_v19 = vld [vmem:[#allocation25_spill] sm:$0xff] }
 0x1ff   :  { %v2515_v5 = vpop.xlane.xlu1 %1152 }
 0x200   :  { %1197 = vadd.xlane.f32.xlu0 %v1196_v18  ;;  %v2814_v18 = vld [vmem:[#allocation29_spill] sm:$0xff] }
 0x202   :  { %1200 = vadd.xlane.f32.xlu1 %v1199_v6 }
 0x229   :  { %v657_v60 = vpop.xlane.xlu0 %656 }
 0x22a   :  { %1458 = vlog2.f32 %v657_v60 }
 0x22d   :  { %v705_v3 = vpop.xlane.xlu0 %704 }
 0x22e   :  { %1460 = vlog2.f32 %v705_v3 }
 0x231   :  { %v660_v59 = vpop.xlane.xlu1 %659 }
 0x232   :  { %1462 = vlog2.f32 %v660_v59 }
 0x233   :  { %v663_v42 = vpop.xlane.xlu0 %662 }
 0x234   :  { %v1459_v54 = vpop.eup %1458  ;;  %1464 = vlog2.f32 %v663_v42 }
 0x235   :  { %v752_v22 = vmul.f32 0.6931472, %v1459_v54  ;;  %v708_v47 = vpop.xlane.xlu1 %707 }
 0x236   :  { %1466 = vlog2.f32 %v708_v47 }
 0x237   :  { %v815_v13 = vadd.f32 %v752_v22, %v2810_v63  ;;  %v2816_v63 = vld [vmem:[#allocation27_spill] sm:$0xff] }
 0x238   :  { %v1461_v44 = vpop.eup %1460 }
 0x239   :  { %v1202_v24 = vsub.f32 %v815_v13, %v2811_v23  ;;  %v784_v30 = vmul.f32 0.6931472, %v1461_v44  ;;  %v666_v12 = vpop.xlane.xlu1 %665  ;;  %v711_v20 = vpop.xlane.xlu0 %710 }
 0x23a   :  { %1468 = vlog2.f32 %v666_v12  ;;  %v2818_v12 = vld [vmem:[#allocation30_spill] sm:$0xff] }
 0x23b   :  { %1235 = vst.msk [vmem:[%s2703_s4] sm:$0xff] %vm1234_vm0, %v1202_v24  ;;  %v831_v46 = vadd.f32 %v784_v30, %v2241_v25  ;;  %1470 = vlog2.f32 %v711_v20  ;;  %v2817_v24 = vld [vmem:[#allocation2_spill] sm:$0xff] }
 0x23c   :  { %v1463_v7 = vpop.eup %1462 }
 0x23d   :  { %v1218_v16 = vsub.f32 %v831_v46, %v1156_v36  ;;  %v754_v21 = vmul.f32 0.6931472, %v1463_v7  ;;  %v714_v27 = vpop.xlane.xlu1 %713  ;;  %v2815_v36 = vld [vmem:[#allocation24_spill] sm:$0xff] }
 0x23e   :  { %v1465_v51 = vpop.eup %1464  ;;  %1472 = vlog2.f32 %v714_v27  ;;  %v2819_v7 = vld [vmem:[#allocation28_spill] sm:$0xff] }
 0x23f   :  { %1251 = vst.msk [vmem:[%s2703_s4 + $0x80] sm:$0xff] %vm1234_vm0, %v1218_v16  ;;  %v816_v26 = vadd.f32 %v754_v21, %v2253_v15  ;;  %v756_v52 = vmul.f32 0.6931472, %v1465_v51 }
 0x240   :  { %v1467_v4 = vpop.eup %1466 }
 0x241   :  { %v1203_v39 = vsub.f32 %v816_v26, %v2812_v35  ;;  %v817_v25 = vadd.f32 %v756_v52, %v2813_v19  ;;  %v786_v11 = vmul.f32 0.6931472, %v1467_v4  ;;  %v669_v41 = vpop.xlane.xlu0 %668 }
 0x242   :  { %1474 = vlog2.f32 %v669_v41 }
 0x243   :  { %1236 = vst.msk [vmem:[%s2703_s4 + $0x8] sm:$0xff] %vm1234_vm0, %v1203_v39  ;;  %v1204_v6 = vsub.f32 %v817_v25, %v2814_v18  ;;  %v832_v60 = vadd.f32 %v786_v11, %v2815_v36  ;;  %v672_v3 = vpop.xlane.xlu1 %671 }
 0x244   :  { %v1469_v15 = vpop.eup %1468  ;;  %1476 = vlog2.f32 %v672_v3 }
 0x245   :  { %v1471_v59 = vpop.eup %1470  ;;  %1237 = vst.msk [vmem:[%s2703_s4 + $0x10] sm:$0xff] %vm1234_vm0, %v1204_v6  ;;  %v1219_v42 = vsub.f32 %v832_v60, %v1159_v56  ;;  %v758_v54 = vmul.f32 0.6931472, %v1469_v15  ;;  %v717_v22 = vpop.xlane.xlu0 %716 }
 0x246   :  { %v788_v47 = vmul.f32 0.6931472, %v1471_v59  ;;  %1478 = vlog2.f32 %v717_v22  ;;  %v2821_v22 = vld [vmem:[#allocation7_spill] sm:$0xff] }
 0x247   :  { %1252 = vst.msk [vmem:[%s2703_s4 + $0x88] sm:$0xff] %vm1234_vm0, %v1219_v42  ;;  %v818_v13 = vadd.f32 %v758_v54, %v2816_v63  ;;  %v720_v44 = vpop.xlane.xlu1 %719  ;;  %v2822_v63 = vld [vmem:[#allocation4_spill] sm:$0xff] }
 0x248   :  { %v1473_v23 = vpop.eup %1472  ;;  %v833_v30 = vadd.f32 %v788_v47, %v2817_v24  ;;  %1480 = vlog2.f32 %v720_v44 }
 0x249   :  { %v1205_v20 = vsub.f32 %v818_v13, %v2818_v12  ;;  %v790_v46 = vmul.f32 0.6931472, %v1473_v23  ;;  %v2823_v23 = vld [vmem:[#allocation8_spill] sm:$0xff] }
 0x24a   :  { %v1220_v56 = vsub.f32 %v833_v30, %v2503_v40  ;;  %v2824_v30 = vld [vmem:[#allocation5_spill] sm:$0xff] }
 0x24b   :  { %1238 = vst.msk [vmem:[%s2703_s4 + $0x18] sm:$0xff] %vm1234_vm0, %v1205_v20  ;;  %v834_v16 = vadd.f32 %v790_v46, %v2819_v7 }
 0x24c   :  { %v1475_v21 = vpop.eup %1474  ;;  %1253 = vst.msk [vmem:[%s2703_s4 + $0x90] sm:$0xff] %vm1234_vm0, %v1220_v56  ;;  %v2825_v56 = vld [vmem:[#allocation6_spill] sm:$0xff] }
 0x24d   :  { %v1221_v27 = vsub.f32 %v834_v16, %v2505_v45  ;;  %v760_v51 = vmul.f32 0.6931472, %v1475_v21  ;;  %v675_v26 = vpop.xlane.xlu0 %674 }
 0x24e   :  { %v1477_v52 = vpop.eup %1476  ;;  %1482 = vlog2.f32 %v675_v26 }
 0x24f   :  { %1254 = vst.msk [vmem:[%s2703_s4 + $0x98] sm:$0xff] %vm1234_vm0, %v1221_v27  ;;  %v819_v40 = vadd.f32 %v760_v51, %v2289_v48  ;;  %v762_v4 = vmul.f32 0.6931472, %v1477_v52  ;;  %v678_v35 = vpop.xlane.xlu1 %677 }
 0x250   :  { %v1479_v39 = vpop.eup %1478  ;;  %1484 = vlog2.f32 %v678_v35 }
 0x251   :  { %v1206_v19 = vsub.f32 %v819_v40, %v2313_v28  ;;  %v820_v25 = vadd.f32 %v762_v4, %v2295_v34  ;;  %v792_v45 = vmul.f32 0.6931472, %v1479_v39  ;;  %v723_v11 = vpop.xlane.xlu0 %722  ;;  %v2826_v40 = vld [vmem:[#allocation9_spill] sm:$0xff] }
 0x252   :  { %v1481_v41 = vpop.eup %1480  ;;  %1486 = vlog2.f32 %v723_v11 }
 0x253   :  { %1239 = vst.msk [vmem:[%s2703_s4 + $0x20] sm:$0xff] %vm1234_vm0, %v1206_v19  ;;  %v1207_v18 = vsub.f32 %v820_v25, %v2315_v61  ;;  %v835_v48 = vadd.f32 %v792_v45, %v2301_v58  ;;  %v794_v6 = vmul.f32 0.6931472, %v1481_v41  ;;  %v726_v36 = vpop.xlane.xlu1 %725  ;;  %v2827_v25 = vld [vmem:[#allocation10_spill] sm:$0xff] }
 0x254   :  { %1488 = vlog2.f32 %v726_v36 }
 0x255   :  { %1240 = vst.msk [vmem:[%s2703_s4 + $0x28] sm:$0xff] %vm1234_vm0, %v1207_v18  ;;  %v1222_v34 = vsub.f32 %v835_v48, %v2507_v62  ;;  %v836_v28 = vadd.f32 %v794_v6, %v2307_v17  ;;  %v2820_v62 = vld [vmem:[#allocation3_spill] sm:$0xff] }
 0x257   :  { %1255 = vst.msk [vmem:[%s2703_s4 + $0xa0] sm:$0xff] %vm1234_vm0, %v1222_v34  ;;  %v1223_v61 = vsub.f32 %v836_v28, %v2509_v14 }
 0x258   :  { %v1483_v58 = vpop.eup %1482 }
 0x259   :  { %1256 = vst.msk [vmem:[%s2703_s4 + $0xa8] sm:$0xff] %vm1234_vm0, %v1223_v61  ;;  %v764_v60 = vmul.f32 0.6931472, %v1483_v58  ;;  %v681_v3 = vpop.xlane.xlu0 %680 }
 0x25a   :  { %v1485_v15 = vpop.eup %1484  ;;  %1490 = vlog2.f32 %v681_v3 }
 0x25b   :  { %v821_v59 = vadd.f32 %v764_v60, %v2820_v62  ;;  %v766_v17 = vmul.f32 0.6931472, %v1485_v15  ;;  %v684_v42 = vpop.xlane.xlu1 %683 }
 0x25c   :  { %v1487_v54 = vpop.eup %1486  ;;  %1492 = vlog2.f32 %v684_v42 }
 0x25d   :  { %v1208_v47 = vsub.f32 %v821_v59, %v2821_v22  ;;  %v822_v14 = vadd.f32 %v766_v17, %v2822_v63  ;;  %v796_v13 = vmul.f32 0.6931472, %v1487_v54  ;;  %v729_v16 = vpop.xlane.xlu0 %728 }
 0x25e   :  { %v1489_v44 = vpop.eup %1488 }
 0x25f   :  { %1241 = vst.msk [vmem:[%s2703_s4 + $0x30] sm:$0xff] %vm1234_vm0, %v1208_v47  ;;  %v1209_v24 = vsub.f32 %v822_v14, %v2823_v23  ;;  %v837_v12 = vadd.f32 %v796_v13, %v2824_v30  ;;  %v798_v20 = vmul.f32 0.6931472, %v1489_v44  ;;  %v732_v27 = vpop.xlane.xlu1 %731  ;;  %v2828_v23 = vld [vmem:[#allocation11_spill] sm:$0xff] }
 0x261   :  { %1242 = vst.msk [vmem:[%s2703_s4 + $0x38] sm:$0xff] %vm1234_vm0, %v1209_v24  ;;  %v1224_v46 = vsub.f32 %v837_v12, %v2511_v38  ;;  %v838_v7 = vadd.f32 %v798_v20, %v2825_v56 }
 0x263   :  { %1257 = vst.msk [vmem:[%s2703_s4 + $0xb0] sm:$0xff] %vm1234_vm0, %v1224_v46  ;;  %v1225_v21 = vsub.f32 %v838_v7, %v2513_v2 }
 0x264   :  { %v1491_v51 = vpop.eup %1490 }
 0x265   :  { %1258 = vst.msk [vmem:[%s2703_s4 + $0xb8] sm:$0xff] %vm1234_vm0, %v1225_v21  ;;  %v768_v26 = vmul.f32 0.6931472, %v1491_v51  ;;  %v687_v52 = vpop.xlane.xlu0 %686 }
 0x266   :  { %v1493_v38 = vpop.eup %1492  ;;  %1494 = vlog2.f32 %v687_v52 }
 0x267   :  { %v823_v4 = vadd.f32 %v768_v26, %v2826_v40  ;;  %v770_v35 = vmul.f32 0.6931472, %v1493_v38  ;;  %v690_v39 = vpop.xlane.xlu1 %689 }
 0x268   :  { %1496 = vlog2.f32 %v690_v39 }
 0x269   :  { %v1210_v19 = vsub.f32 %v823_v4, %v2369_v32  ;;  %v824_v2 = vadd.f32 %v770_v35, %v2827_v25  ;;  %v735_v11 = vpop.xlane.xlu0 %734  ;;  %1498 = vlog2.f32 %v729_v16  ;;  %v2829_v16 = vld [vmem:[#allocation12_spill] sm:$0xff] }
 0x26a   :  { %1500 = vlog2.f32 %v732_v27 }
 0x26b   :  { %1243 = vst.msk [vmem:[%s2703_s4 + $0x40] sm:$0xff] %vm1234_vm0, %v1210_v19  ;;  %v1211_v45 = vsub.f32 %v824_v2, %v2371_v57  ;;  %v738_v41 = vpop.xlane.xlu1 %737 }
 0x26d   :  { %1244 = vst.msk [vmem:[%s2703_s4 + $0x48] sm:$0xff] %vm1234_vm0, %v1211_v45 }
 0x270   :  { %v1495_v18 = vpop.eup %1494 }
 0x271   :  { %v772_v32 = vmul.f32 0.6931472, %v1495_v18  ;;  %v693_v48 = vpop.xlane.xlu0 %692  ;;  %v2831_v18 = vld [vmem:[#allocation14_spill] sm:$0xff] }
 0x272   :  { %v1497_v6 = vpop.eup %1496  ;;  %1502 = vlog2.f32 %v693_v48 }
 0x273   :  { %v825_v36 = vadd.f32 %v772_v32, %v2373_v8  ;;  %v774_v34 = vmul.f32 0.6931472, %v1497_v6  ;;  %1504 = vlog2.f32 %v735_v11  ;;  %v696_v28 = vpop.xlane.xlu1 %695  ;;  %v1499_v8 = vpop.eup %1498 }
 0x274   :  { %1506 = vlog2.f32 %v696_v28  ;;  %v800_v59 = vmul.f32 0.6931472, %v1499_v8 }
 0x275   :  { %v1212_v57 = vsub.f32 %v825_v36, %v2397_v0  ;;  %v826_v61 = vadd.f32 %v774_v34, %v2379_v9  ;;  %1508 = vlog2.f32 %v738_v41  ;;  %v741_v58 = vpop.xlane.xlu0 %740  ;;  %v1501_v9 = vpop.eup %1500 }
 0x276   :  { %1510 = vlog2.f32 %v741_v58  ;;  %v802_v22 = vmul.f32 0.6931472, %v1501_v9  ;;  %v839_v24 = vadd.f32 %v800_v59, %v2828_v23 }
 0x277   :  { %1245 = vst.msk [vmem:[%s2703_s4 + $0x50] sm:$0xff] %vm1234_vm0, %v1212_v57  ;;  %v1213_v60 = vsub.f32 %v826_v61, %v2399_v33  ;;  %v744_v3 = vpop.xlane.xlu1 %743 }
 0x278   :  { %1512 = vlog2.f32 %v744_v3  ;;  %v840_v21 = vadd.f32 %v802_v22, %v2829_v16 }
 0x279   :  { %1246 = vst.msk [vmem:[%s2703_s4 + $0x58] sm:$0xff] %vm1234_vm0, %v1213_v60  ;;  %v699_v0 = vpop.xlane.xlu0 %698  ;;  %v2832_v60 = vld [vmem:[#allocation15_spill] sm:$0xff] }
 0x27a   :  { %1514 = vlog2.f32 %v699_v0 }
 0x27b   :  { %v702_v15 = vpop.xlane.xlu1 %701 }
 0x27c   :  { %v1503_v62 = vpop.eup %1502  ;;  %1516 = vlog2.f32 %v702_v15 }
 0x27d   :  { %v1505_v17 = vpop.eup %1504  ;;  %v776_v42 = vmul.f32 0.6931472, %v1503_v62  ;;  %v747_v54 = vpop.xlane.xlu0 %746 }
 0x27e   :  { %v1507_v33 = vpop.eup %1506  ;;  %1518 = vlog2.f32 %v747_v54  ;;  %v804_v44 = vmul.f32 0.6931472, %v1505_v17 }
 0x27f   :  { %v1509_v47 = vpop.eup %1508  ;;  %v827_v63 = vadd.f32 %v776_v42, %v2401_v53  ;;  %v778_v14 = vmul.f32 0.6931472, %v1507_v33  ;;  %v750_v13 = vpop.xlane.xlu1 %749 }
 0x280   :  { %1520 = vlog2.f32 %v750_v13  ;;  %v1511_v30 = vpop.eup %1510  ;;  %v806_v56 = vmul.f32 0.6931472, %v1509_v47 }
 0x281   :  { %v1214_v12 = vsub.f32 %v827_v63, %v2497_v31  ;;  %v828_v20 = vadd.f32 %v778_v14, %v2407_v10  ;;  %v1180_v46 = vpop.xlane.xlu0 %1179  ;;  %v808_v52 = vmul.f32 0.6931472, %v1511_v30  ;;  %v2830_v31 = vld [vmem:[#allocation13_spill] sm:$0xff] }
 0x282   :  { %v1226_v7 = vsub.f32 %v839_v24, %v1180_v46  ;;  %v1513_v27 = vpop.eup %1512  ;;  %v841_v38 = vadd.f32 %v804_v44, %v2830_v31  ;;  %v842_v19 = vadd.f32 %v806_v56, %v2391_v55 }
 0x283   :  { %1247 = vst.msk [vmem:[%s2703_s4 + $0x60] sm:$0xff] %vm1234_vm0, %v1214_v12  ;;  %v1215_v53 = vsub.f32 %v828_v20, %v2501_v29  ;;  %v1183_v51 = vpop.xlane.xlu1 %1182  ;;  %v810_v29 = vmul.f32 0.6931472, %v1513_v27  ;;  %v843_v32 = vadd.f32 %v808_v52, %v2831_v18 }
 0x284   :  { %v1515_v26 = vpop.eup %1514  ;;  %1259 = vst.msk [vmem:[%s2703_s4 + $0xc0] sm:$0xff] %vm1234_vm0, %v1226_v7  ;;  %v1227_v10 = vsub.f32 %v840_v21, %v1183_v51 }
 0x285   :  { %1248 = vst.msk [vmem:[%s2703_s4 + $0x68] sm:$0xff] %vm1234_vm0, %v1215_v53  ;;  %v780_v40 = vmul.f32 0.6931472, %v1515_v26  ;;  %v1186_v4 = vpop.xlane.xlu0 %1185  ;;  %v844_v28 = vadd.f32 %v810_v29, %v2419_v49 }
 0x286   :  { %v1517_v35 = vpop.eup %1516  ;;  %1260 = vst.msk [vmem:[%s2703_s4 + $0xc8] sm:$0xff] %vm1234_vm0, %v1227_v10  ;;  %v1228_v39 = vsub.f32 %v841_v38, %v1186_v4 }
 0x287   :  { %v829_v25 = vadd.f32 %v780_v40, %v2425_v50  ;;  %v782_v2 = vmul.f32 0.6931472, %v1517_v35  ;;  %v1189_v45 = vpop.xlane.xlu1 %1188 }
 0x288   :  { %v1519_v11 = vpop.eup %1518  ;;  %1261 = vst.msk [vmem:[%s2703_s4 + $0xd0] sm:$0xff] %vm1234_vm0, %v1228_v39  ;;  %v1229_v41 = vsub.f32 %v842_v19, %v1189_v45 }
 0x289   :  { %v1216_v48 = vsub.f32 %v829_v25, %v2499_v43  ;;  %v830_v6 = vadd.f32 %v782_v2, %v2431_v1  ;;  %v812_v36 = vmul.f32 0.6931472, %v1519_v11  ;;  %v1192_v34 = vpop.xlane.xlu0 %1191 }
 0x28a   :  { %v1521_v55 = vpop.eup %1520  ;;  %1262 = vst.msk [vmem:[%s2703_s4 + $0xd8] sm:$0xff] %vm1234_vm0, %v1229_v41  ;;  %v1230_v50 = vsub.f32 %v843_v32, %v1192_v34 }
 0x28b   :  { %1249 = vst.msk [vmem:[%s2703_s4 + $0x70] sm:$0xff] %vm1234_vm0, %v1216_v48  ;;  %v1217_v43 = vsub.f32 %v830_v6, %v2515_v5  ;;  %v814_v57 = vmul.f32 0.6931472, %v1521_v55  ;;  %v1195_v1 = vpop.xlane.xlu1 %1194  ;;  %v845_v61 = vadd.f32 %v812_v36, %v2437_v37 }
 0x28c   :  { %1263 = vst.msk [vmem:[%s2703_s4 + $0xe0] sm:$0xff] %vm1234_vm0, %v1230_v50  ;;  %v1231_v58 = vsub.f32 %v844_v28, %v1195_v1 }
 0x28d   :  { %1250 = vst.msk [vmem:[%s2703_s4 + $0x78] sm:$0xff] %vm1234_vm0, %v1217_v43  ;;  %v1198_v49 = vpop.xlane.xlu0 %1197  ;;  %v846_v3 = vadd.f32 %v814_v57, %v2832_v60 }
 0x28e   :  { %1264 = vst.msk [vmem:[%s2703_s4 + $0xe8] sm:$0xff] %vm1234_vm0, %v1231_v58  ;;  %v1232_v37 = vsub.f32 %v845_v61, %v1198_v49 }
 0x28f   :  { %v1201_v5 = vpop.xlane.xlu1 %1200 }
 0x290   :  { %1265 = vst.msk [vmem:[%s2703_s4 + $0xf0] sm:$0xff] %vm1234_vm0, %v1232_v37  ;;  %v1233_v8 = vsub.f32 %v846_v3, %v1201_v5 }
 0x292   :  { %1266 = vst.msk [vmem:[%s2703_s4 + $0xf8] sm:$0xff] %vm1234_vm0, %v1233_v8 }

</bundles_post_ra>
